<compile_context>
chip_gen: v6e
topology: v6e:2x2x1
jax: 0.10.0
libtpu: 0.0.40
codegen_flags: <defaults>
</compile_context>

<pallas_src>
import jax
import jax.numpy as jnp
import numpy as np
from jax.experimental import pallas as pl
from jax.experimental.pallas import tpu as pltpu


def _round_up(x, m):
    return (x + m - 1) // m * m


# ----------------------------------------------------------------------------
# Tiling plans, shared by prepare_params (weight padding) and the forward.
# ----------------------------------------------------------------------------
def _kn_plan(K, N):
    Kp = _round_up(K, 128)
    tk = min(Kp, 2048)
    Kp = _round_up(Kp, tk)
    # Lane-dense N tile, capped at 2048 so Conv1's 8192-wide output splits into
    # >= 4 "parallel" j-blocks (work for both v7x TensorCores), and capped so a
    # double-buffered bf16 RHS block stays small (safe on all generations).
    tn_cap = max(128, ((4 * 1024 * 1024) // (2 * tk)) // 128 * 128)
    Np = _round_up(N, 128)
    tn = min(Np, 2048, tn_cap)
    Np = _round_up(Np, tn)
    return Kp, Np, tk, tn


def _m_plan(M):
    Mp = _round_up(M, 16)          # bf16 packs 16 sublanes per vreg
    tm = 256
    while Mp % tm:                 # pick a tile that divides Mp (>= 16)
        tm //= 2
    return Mp, tm


# ----------------------------------------------------------------------------
# Fused batched matmul kernel:
#   optional LHS prologue:  a = max(a * scale + shift, 0)   (BN apply + ReLU)
#   MXU:                    acc += a @ b   (bf16 operands, f32 accumulation)
#   optional epilogue:      per-column sum / sum-sq partials (BN statistics)
# ----------------------------------------------------------------------------
def _make_bmm_kernel(apply_affine, emit_stats, m_true, m_pad, tm):
    mask_rows = apply_affine and emit_stats and (m_pad != m_true)

    def kernel(*refs):
        it = iter(refs)
        a_ref = next(it)
        if apply_affine:
            s_ref = next(it)
            t_ref = next(it)
        b_ref = next(it)
        o_ref = next(it)
        stats_ref = next(it) if emit_stats else None
        acc_ref = next(it)

        @pl.when(pl.program_id(3) == 0)
        def _():
            acc_ref[...] = jnp.zeros_like(acc_ref)

        a = a_ref[0]
        if apply_affine:
            # Fused BatchNorm-apply + ReLU on the (pre-BN) cols tile.
            a32 = a.astype(jnp.float32)
            a32 = jnp.maximum(a32 * s_ref[...] + t_ref[...], 0.0)
            if mask_rows:
                # Padded M rows would otherwise become max(shift, 0) != 0 and
                # contaminate the fused stats; zero them.
                row = (pl.program_id(1) * tm
                       + jax.lax.broadcasted_iota(jnp.int32, (tm, 1), 0))
                a32 = jnp.where(row < m_true, a32, 0.0)
            a = a32.astype(jnp.bfloat16)

        acc_ref[...] += jnp.dot(a, b_ref[0], preferred_element_type=jnp.float32)

        @pl.when(pl.program_id(3) == pl.num_programs(3) - 1)
        def _():
            acc = acc_ref[...]
            o_ref[0] = acc.astype(o_ref.dtype)
            if emit_stats:
                # Per-column sum / sum-of-squares as 8-sublane partials (pure
                # VALU; the 8->1 / per-tile reduce finishes in glue JAX).
                p = acc.reshape(acc.shape[0] // 8, 8, acc.shape[1])
                stats_ref[0, 0, 0:8, :] = jnp.sum(p, axis=0)
                stats_ref[0, 0, 8:16, :] = jnp.sum(p * p, axis=0)

    return kernel


def pallas_bmm(a, w, *, K, N, scale_shift=None, emit_stats=False,
               out_dtype=jnp.bfloat16):
    """a: (G, M, K) float; w: (G, Kp, Np) pre-padded bf16 (from prepare_params).

    Returns (G, M, N) [plus (colsum, colsumsq, row_count) if emit_stats]."""
    G, M, Ka = a.shape
    assert Ka == K
    Kp, Np, tk, tn = _kn_plan(K, N)
    Mp, tm = _m_plan(M)
    assert w.shape == (G, Kp, Np), (w.shape, (G, Kp, Np))

    a_p = jnp.pad(a.astype(jnp.bfloat16), ((0, 0), (0, Mp - M), (0, Kp - K)))

    apply_affine = scale_shift is not None
    n_i = Mp // tm
    grid = (G, n_i, Np // tn, Kp // tk)

    inputs = [a_p]
    in_specs = [pl.BlockSpec((1, tm, tk), lambda g, i, j, k: (g, i, k))]
    if apply_affine:
        s, t = scale_shift
        s_p = jnp.pad(s.astype(jnp.float32).reshape(1, -1),
                      ((0, 0), (0, Kp - s.shape[-1])))
        t_p = jnp.pad(t.astype(jnp.float32).reshape(1, -1),
                      ((0, 0), (0, Kp - t.shape[-1])))
        inputs += [s_p, t_p]
        in_specs += [pl.BlockSpec((1, tk), lambda g, i, j, k: (0, k)),
                     pl.BlockSpec((1, tk), lambda g, i, j, k: (0, k))]
    inputs.append(w)
    in_specs.append(pl.BlockSpec((1, tk, tn), lambda g, i, j, k: (g, k, j)))

    main_shape = jax.ShapeDtypeStruct((G, Mp, Np), out_dtype)
    main_spec = pl.BlockSpec((1, tm, tn), lambda g, i, j, k: (g, i, j))
    if emit_stats:
        out_shape = (main_shape,
                     jax.ShapeDtypeStruct((G, n_i, 16, Np), jnp.float32))
        out_specs = [main_spec,
                     pl.BlockSpec((1, 1, 16, tn), lambda g, i, j, k: (g, i, 0, j))]
    else:
        out_shape = main_shape
        out_specs = main_spec

    res = pl.pallas_call(
        _make_bmm_kernel(apply_affine, emit_stats, M, Mp, tm),
        out_shape=out_shape,
        grid_spec=pltpu.PrefetchScalarGridSpec(
            num_scalar_prefetch=0,
            grid=grid,
            in_specs=in_specs,
            out_specs=out_specs,
            scratch_shapes=[pltpu.VMEM((tm, tn), jnp.float32)]),
        compiler_params=pltpu.CompilerParams(
            dimension_semantics=("parallel", "parallel", "parallel", "arbitrary"),
            vmem_limit_bytes=32 * 1024 * 1024),
    )(*inputs)

    if emit_stats:
        out, stats = res
        colsum = jnp.sum(stats[:, :, 0:8, :N], axis=(0, 1, 2))
        colsumsq = jnp.sum(stats[:, :, 8:16, :N], axis=(0, 1, 2))
        return out[:, :M, :N], (colsum, colsumsq, G * M)
    return res[:, :M, :N]


# ----------------------------------------------------------------------------
# BatchNorm (training-mode batch stats) scale/shift from fused column stats.
# ----------------------------------------------------------------------------
def _bn_affine(stats, gamma, beta, spatial_groups=1):
    colsum, colsumsq, count = stats
    C = gamma.shape[0]
    if spatial_groups > 1:
        colsum = colsum.reshape(spatial_groups, C).sum(axis=0)
        colsumsq = colsumsq.reshape(spatial_groups, C).sum(axis=0)
        count = count * spatial_groups
    mean = colsum / count
    var = jnp.maximum(colsumsq / count - mean * mean, 0.0)   # biased, as PyTorch
    scale = gamma * jax.lax.rsqrt(var + 1e-5)
    shift = beta - mean * scale
    return scale, shift


def _bn_pad_value(scale, shift):
    # Per-channel value v with relu(v*scale + shift) == 0 exactly, even after v
    # is rounded to bf16 (margin > bf16 eps).  Lets the transposed conv's
    # spatial zero-padding survive the BN+ReLU fused into the next matmul's
    # LHS prologue.
    s = jnp.where(jnp.abs(scale) < 1e-20, 1e-20, scale)
    v0 = -shift / s
    margin = jnp.abs(v0) * (1.0 / 128.0) + 1e-3
    return v0 - jnp.sign(s) * margin


def _pad_spatial(x, pad_val):
    # x: (B, H, W, C) pre-BN activation; pad border with the per-channel value.
    B, H, W, C = x.shape
    full = jnp.broadcast_to(pad_val.astype(x.dtype).reshape(1, 1, 1, C),
                            (B, H + 2, W + 2, C))
    return jax.lax.dynamic_update_slice(full, x, (0, 1, 1, 0))


# ----------------------------------------------------------------------------
# ConvTranspose2d(k=4, s=2, p=1) as 4 parity-class 2x2 stride-1 convs.
# out[2p+dh, 2q+dw] uses the 2x2 kernel slice {kh = 3-dh-2r, kw = 3-dw-2s}.
# ----------------------------------------------------------------------------
def _ct_split_weights(w_ct):
    # (Cin, Cout, 4, 4) -> (4, 4*Cin, Cout); K index = (r*2+s)*Cin + ci.
    Cin, Cout = w_ct.shape[:2]
    mats = []
    for dh in range(2):
        for dw in range(2):
            taps = [w_ct[:, :, 3 - dh - 2 * r, 3 - dw - 2 * s]
                    for r in range(2) for s in range(2)]          # each (Cin, Cout)
            mats.append(jnp.stack(taps, axis=0).reshape(4 * Cin, Cout))
    return jnp.stack(mats, axis=0)                                 # (4, 4*Cin, Cout)


def _im2col_2x2(xp, dh, dw):
    # xp: (B, H+2, W+2, Cin) padded activation -> (B*H*W, 4*Cin)
    B, Hp, Wp, Cin = xp.shape
    H, W = Hp - 2, Wp - 2
    patches = [xp[:, dh + r: dh + r + H, dw + s: dw + s + W, :]
               for r in range(2) for s in range(2)]
    p = jnp.concatenate(patches, axis=-1)                          # (B, H, W, 4*Cin)
    return p.reshape(B * H * W, 4 * Cin)


def _cols_2x2(xp):
    # (4, B*H*W, 4*Cin), parity class index = dh*2 + dw.
    return jnp.stack([_im2col_2x2(xp, dh, dw)
                      for dh in range(2) for dw in range(2)], axis=0)


def _interleave_parity(y, B, H, W, C):
    # y: (4, B*H*W, C) with class index dh*2+dw -> (B, 2H, 2W, C)
    y = y.reshape(2, 2, B, H, W, C)
    y = jnp.transpose(y, (2, 3, 0, 4, 1, 5))
    return y.reshape(B, 2 * H, 2 * W, C)


# ----------------------------------------------------------------------------
# One-time parameter preparation (outside jit): matmul layout + padding + bf16.
# ----------------------------------------------------------------------------
def prepare_params(params):
    ngf = 64
    w1 = params["w1"]                                   # (nz, 512, 4, 4)
    nz = w1.shape[0]
    mats = {
        # Conv1 on a 1x1 input == matmul; column layout (kh, kw, co).
        "w1m": jnp.transpose(w1, (0, 2, 3, 1)).reshape(1, nz, 16 * ngf * 8),
        "w2m": _ct_split_weights(params["w2"]),          # (4, 2048, 256)
        "w3m": _ct_split_weights(params["w3"]),          # (4, 1024, 128)
        "w4m": _ct_split_weights(params["w4"]),          # (4, 512, 3)
    }
    prep = {}
    for name, w in mats.items():
        G, K, N = w.shape
        Kp, Np, _, _ = _kn_plan(K, N)                    # Conv4: N 3 -> 128 lanes
        prep[name] = jnp.pad(w, ((0, 0), (0, Kp - K),
                                 (0, Np - N))).astype(jnp.bfloat16)
    for k in ("g1", "b1", "g2", "b2", "g3", "b3"):
        prep[k] = params[k]
    return prep


# ----------------------------------------------------------------------------
# Generator_Cifar forward: z (B, nz) -> NCHW (B, 3, 32, 32)
# ----------------------------------------------------------------------------
def generator_cifar_forward(prep, z):
    B, nz = z.shape
    ngf = 64

    # Conv1 (nz -> 512, 1x1 -> 4x4): plain matmul; BN1 stats fused into the
    # epilogue (computed from the f32 accumulator).
    y1, st1 = pallas_bmm(z[None], prep["w1m"], K=nz, N=16 * ngf * 8,
                         emit_stats=True)                            # (1, B, 8192)
    sc1, sh1 = _bn_affine(st1, prep["g1"], prep["b1"], spatial_groups=16)
    x = y1[0].reshape(B, 4, 4, ngf * 8)                              # pre-BN NHWC

    # Conv2: 4x4 -> 8x8; BN1-apply + ReLU fused into the LHS prologue.
    cols = _cols_2x2(_pad_spatial(x, _bn_pad_value(sc1, sh1)))
    y2, st2 = pallas_bmm(cols, prep["w2m"], K=4 * ngf * 8, N=ngf * 4,
                         scale_shift=(jnp.tile(sc1, 4), jnp.tile(sh1, 4)),
                         emit_stats=True)                            # (4, B*16, 256)
    sc2, sh2 = _bn_affine(st2, prep["g2"], prep["b2"])
    x = _interleave_parity(y2, B, 4, 4, ngf * 4)                     # (B,8,8,256)

    # Conv3: 8x8 -> 16x16.
    cols = _cols_2x2(_pad_spatial(x, _bn_pad_value(sc2, sh2)))
    y3, st3 = pallas_bmm(cols, prep["w3m"], K=4 * ngf * 4, N=ngf * 2,
                         scale_shift=(jnp.tile(sc2, 4), jnp.tile(sh2, 4)),
                         emit_stats=True)                            # (4, B*64, 128)
    sc3, sh3 = _bn_affine(st3, prep["g3"], prep["b3"])
    x = _interleave_parity(y3, B, 8, 8, ngf * 2)                     # (B,16,16,128)

    # Conv4: 16x16 -> 32x32; output channels stay lane-padded to 128 through
    # the kernel; tanh runs in glue on the 3 real channels only.
    cols = _cols_2x2(_pad_spatial(x, _bn_pad_value(sc3, sh3)))
    y4 = pallas_bmm(cols, prep["w4m"], K=4 * ngf * 2, N=128,
                    scale_shift=(jnp.tile(sc3, 4), jnp.tile(sh3, 4)),
                    out_dtype=jnp.bfloat16)                          # (4, B*256, 128)
    out = _interleave_parity(y4, B, 16, 16, 128)                     # (B,32,32,128)
    out = jnp.tanh(out[..., :3].astype(jnp.float32))
    return out.transpose(0, 3, 1, 2)                                 # (B, 3, 32, 32)


# ----------------------------------------------------------------------------
# Deterministic parameter init (matches weights_init statistics).
# ----------------------------------------------------------------------------
def init_params(key, z_dim, conditional=False):
    nz = z_dim + (10 if conditional else 0)
    ngf = 64
    ks = jax.random.split(key, 8)

    def conv_w(k, cin, cout):
        return 0.02 * jax.random.normal(k, (cin, cout, 4, 4), jnp.float32)

    def bn_g(k, c):
        return 1.0 + 0.02 * jax.random.normal(k, (c,), jnp.float32)

    params = dict(
        w1=conv_w(ks[0], nz, ngf * 8), g1=bn_g(ks[1], ngf * 8), b1=jnp.zeros(ngf * 8),
        w2=conv_w(ks[2], ngf * 8, ngf * 4), g2=bn_g(ks[3], ngf * 4), b2=jnp.zeros(ngf * 4),
        w3=conv_w(ks[4], ngf * 4, ngf * 2), g3=bn_g(ks[5], ngf * 2), b3=jnp.zeros(ngf * 2),
        w4=conv_w(ks[6], ngf * 2, 3),
    )
    return params, nz


# ----------------------------------------------------------------------------
# Pure-JAX f32 reference (PyTorch semantics) for validation.
# ----------------------------------------------------------------------------
def _conv_transpose_ref(x_nchw, w_ct, stride, pad):
    k = w_ct.shape[2]
    w_conv = jnp.transpose(jnp.flip(w_ct, axis=(2, 3)), (1, 0, 2, 3))  # OIHW
    return jax.lax.conv_general_dilated(
        x_nchw, w_conv, window_strides=(1, 1),
        padding=[(k - 1 - pad, k - 1 - pad)] * 2,
        lhs_dilation=(stride, stride),
        dimension_numbers=("NCHW", "OIHW", "NCHW"))


def _bn_relu_ref(x, g, b):
    mean = x.mean(axis=(0, 2, 3), keepdims=True)
    var = jnp.square(x - mean).mean(axis=(0, 2, 3), keepdims=True)
    y = (x - mean) / jnp.sqrt(var + 1e-5) * g.reshape(1, -1, 1, 1) + b.reshape(1, -1, 1, 1)
    return jnp.maximum(y, 0.0)


def generator_ref(params, z):
    B, nz = z.shape
    x = z.reshape(B, nz, 1, 1)
    x = _bn_relu_ref(_conv_transpose_ref(x, params["w1"], 1, 0), params["g1"], params["b1"])
    x = _bn_relu_ref(_conv_transpose_ref(x, params["w2"], 2, 1), params["g2"], params["b2"])
    x = _bn_relu_ref(_conv_transpose_ref(x, params["w3"], 2, 1), params["g3"], params["b3"])
    return jnp.tanh(_conv_transpose_ref(x, params["w4"], 2, 1))


if __name__ == "__main__":
    key = jax.random.PRNGKey(0)
    kp, kz = jax.random.split(key)
    z_dim = 64
    params, nz = init_params(kp, z_dim, conditional=False)
    prep = prepare_params(params)          # one-time weight layout/pad/bf16

    B = 2
    z = jax.random.normal(kz, (B, nz), jnp.float32)

    fwd = jax.jit(generator_cifar_forward)
    out = jax.block_until_ready(fwd(prep, z))
    assert out.shape == (B, 3, 32, 32), out.shape

    # bf16 operands (f32 accumulation / f32 fused BN stats) vs. f32 reference;
    # output range is [-1, 1].
    ref = generator_ref(params, z)
    np.testing.assert_allclose(np.asarray(out), np.asarray(ref), atol=3e-2, rtol=3e-2)

    print("KERNEL_OK")
</pallas_src>

<mosaic_0001>
module attributes {stable_mosaic.version = 11 : i64} {
  func.func @kernel(%arg0: i32, %arg1: i32, %arg2: i32, %arg3: i32, %arg4: memref<1x16x128xbf16, #tpu.memory_space<vmem>>, %arg5: memref<1x128x2048xbf16, #tpu.memory_space<vmem>>, %arg6: memref<1x16x2048xbf16, #tpu.memory_space<vmem>>, %arg7: memref<1x1x16x2048xf32, #tpu.memory_space<vmem>>, %arg8: memref<16x2048xf32, #tpu.memory_space<vmem>>) attributes {dimension_semantics = [#tpu.dimension_semantics<parallel>, #tpu.dimension_semantics<parallel>, #tpu.dimension_semantics<parallel>, #tpu.dimension_semantics<arbitrary>], iteration_bounds = array<i64: 1, 1, 4, 1>, scalar_prefetch = 0 : i64, scratch_operands = 1 : i64, tpu.core_type = #tpu.core_type<tc>, window_params = [{transform_indices = @transform_0, window_bounds = array<i64: 1, 16, 128>}, {transform_indices = @transform_1, window_bounds = array<i64: 1, 128, 2048>}, {transform_indices = @transform_2, window_bounds = array<i64: 1, 16, 2048>}, {transform_indices = @transform_3, window_bounds = array<i64: 1, 1, 16, 2048>}]} {
    %c0_i32 = arith.constant 0 : i32
    %0 = arith.cmpi eq, %arg3, %c0_i32 : i32
    %1 = arith.extui %0 : i1 to i32
    %c0_i32_0 = arith.constant 0 : i32
    %2 = arith.cmpi ne, %1, %c0_i32_0 : i32
    scf.if %2 {
      %cst_12 = arith.constant 0.000000e+00 : f32
      %14 = vector.broadcast %cst_12 : f32 to vector<16x2048xf32>
      %c0_13 = arith.constant 0 : index
      %c0_14 = arith.constant 0 : index
      %15 = vector.load %arg8[%c0_13, %c0_14] : memref<16x2048xf32, #tpu.memory_space<vmem>>, vector<16x2048xf32>
      tpu.vector_store %arg8[%c0_13, %c0_14], %14 {strides = array<i32>} : memref<16x2048xf32, #tpu.memory_space<vmem>>, vector<16x2048xf32>,
    } else {
    }
    %c0 = arith.constant 0 : index
    %c0_1 = arith.constant 0 : index
    %c0_2 = arith.constant 0 : index
    %3 = vector.load %arg4[%c0, %c0_1, %c0_2] : memref<1x16x128xbf16, #tpu.memory_space<vmem>>, vector<1x16x128xbf16>
    %4 = vector.shape_cast %3 : vector<1x16x128xbf16> to vector<16x128xbf16>
    %c0_3 = arith.constant 0 : index
    %c0_4 = arith.constant 0 : index
    %5 = vector.load %arg8[%c0_3, %c0_4] : memref<16x2048xf32, #tpu.memory_space<vmem>>, vector<16x2048xf32>
    %c0_5 = arith.constant 0 : index
    %c0_6 = arith.constant 0 : index
    %c0_7 = arith.constant 0 : index
    %6 = vector.load %arg5[%c0_5, %c0_6, %c0_7] : memref<1x128x2048xbf16, #tpu.memory_space<vmem>>, vector<1x128x2048xbf16>
    %7 = vector.shape_cast %6 : vector<1x128x2048xbf16> to vector<128x2048xbf16>
    %cst = arith.constant dense<0.000000e+00> : vector<16x2048xf32>
    %8 = tpu.matmul %4, %7, %cst {dimension_numbers = #tpu.dot_dimension_numbers<[1], [0], [0], [1], [0, 0, 1, 1], [], []>} : vector<16x128xbf16>, vector<128x2048xbf16>, vector<16x2048xf32> -> vector<16x2048xf32>
    %9 = arith.addf %5, %8 : vector<16x2048xf32>
    %c0_8 = arith.constant 0 : index
    %c0_9 = arith.constant 0 : index
    %10 = vector.load %arg8[%c0_8, %c0_9] : memref<16x2048xf32, #tpu.memory_space<vmem>>, vector<16x2048xf32>
    tpu.vector_store %arg8[%c0_8, %c0_9], %9 {strides = array<i32>} : memref<16x2048xf32, #tpu.memory_space<vmem>>, vector<16x2048xf32>,
    %c0_i32_10 = arith.constant 0 : i32
    %11 = arith.cmpi eq, %arg3, %c0_i32_10 : i32
    %12 = arith.extui %11 : i1 to i32
    %c0_i32_11 = arith.constant 0 : i32
    %13 = arith.cmpi ne, %12, %c0_i32_11 : i32
    scf.if %13 {
      %c0_12 = arith.constant 0 : index
      %c0_13 = arith.constant 0 : index
      %14 = vector.load %arg8[%c0_12, %c0_13] : memref<16x2048xf32, #tpu.memory_space<vmem>>, vector<16x2048xf32>
      %15 = arith.truncf %14 : vector<16x2048xf32> to vector<16x2048xbf16>
      %c0_14 = arith.constant 0 : index
      %c0_15 = arith.constant 0 : index
      %c0_16 = arith.constant 0 : index
      %16 = vector.load %arg6[%c0_14, %c0_15, %c0_16] : memref<1x16x2048xbf16, #tpu.memory_space<vmem>>, vector<1x16x2048xbf16>
      %17 = vector.shape_cast %16 : vector<1x16x2048xbf16> to vector<16x2048xbf16>
      %18 = vector.shape_cast %15 : vector<16x2048xbf16> to vector<1x16x2048xbf16>
      tpu.vector_store %arg6[%c0_14, %c0_15, %c0_16], %18 {strides = array<i32>} : memref<1x16x2048xbf16, #tpu.memory_space<vmem>>, vector<1x16x2048xbf16>,
      %19 = vector.shape_cast %14 : vector<16x2048xf32> to vector<2x8x2048xf32>
      %cst_17 = arith.constant dense<0.000000e+00> : vector<8x2048xf32>
      %20 = vector.multi_reduction <add>, %19, %cst_17 [0] : vector<2x8x2048xf32> to vector<8x2048xf32>
      %c0_18 = arith.constant 0 : index
      %c0_19 = arith.constant 0 : index
      %c0_20 = arith.constant 0 : index
      %c0_21 = arith.constant 0 : index
      %21 = vector.load %arg7[%c0_18, %c0_19, %c0_20, %c0_21] : memref<1x1x16x2048xf32, #tpu.memory_space<vmem>>, vector<1x1x8x2048xf32>
      %22 = vector.shape_cast %21 : vector<1x1x8x2048xf32> to vector<8x2048xf32>
      %23 = vector.shape_cast %20 : vector<8x2048xf32> to vector<1x1x8x2048xf32>
      tpu.vector_store %arg7[%c0_18, %c0_19, %c0_20, %c0_21], %23 {strides = array<i32>} : memref<1x1x16x2048xf32, #tpu.memory_space<vmem>>, vector<1x1x8x2048xf32>,
      %24 = arith.mulf %19, %19 : vector<2x8x2048xf32>
      %cst_22 = arith.constant dense<0.000000e+00> : vector<8x2048xf32>
      %25 = vector.multi_reduction <add>, %24, %cst_22 [0] : vector<2x8x2048xf32> to vector<8x2048xf32>
      %c0_23 = arith.constant 0 : index
      %c0_24 = arith.constant 0 : index
      %c8 = arith.constant 8 : index
      %c0_25 = arith.constant 0 : index
      %26 = vector.load %arg7[%c0_23, %c0_24, %c8, %c0_25] : memref<1x1x16x2048xf32, #tpu.memory_space<vmem>>, vector<1x1x8x2048xf32>
      %27 = vector.shape_cast %26 : vector<1x1x8x2048xf32> to vector<8x2048xf32>
      %28 = vector.shape_cast %25 : vector<8x2048xf32> to vector<1x1x8x2048xf32>
      tpu.vector_store %arg7[%c0_23, %c0_24, %c8, %c0_25], %28 {strides = array<i32>} : memref<1x1x16x2048xf32, #tpu.memory_space<vmem>>, vector<1x1x8x2048xf32>,
    } else {
    }
    return
  }
  func.func @transform_0(%arg0: i32, %arg1: i32, %arg2: i32, %arg3: i32) -> (i32, i32, i32) {
    %c0_i32 = arith.constant 0 : i32
    return %arg0, %arg1, %arg3 : i32, i32, i32
  }
  func.func @transform_1(%arg0: i32, %arg1: i32, %arg2: i32, %arg3: i32) -> (i32, i32, i32) {
    %c0_i32 = arith.constant 0 : i32
    return %arg0, %arg3, %arg2 : i32, i32, i32
  }
  func.func @transform_2(%arg0: i32, %arg1: i32, %arg2: i32, %arg3: i32) -> (i32, i32, i32) {
    %c0_i32 = arith.constant 0 : i32
    return %arg0, %arg1, %arg2 : i32, i32, i32
  }
  func.func @transform_3(%arg0: i32, %arg1: i32, %arg2: i32, %arg3: i32) -> (i32, i32, i32, i32) {
    %c0_i32 = arith.constant 0 : i32
    %c0_i32_0 = arith.constant 0 : i32
    return %arg0, %arg1, %c0_i32, %arg2 : i32, i32, i32, i32
  }
}

module attributes {stable_mosaic.version = 11 : i64} {
  func.func @kernel(%arg0: i32, %arg1: i32, %arg2: i32, %arg3: i32, %arg4: memref<1x32x2048xbf16, #tpu.memory_space<vmem>>, %arg5: memref<1x2048xf32, #tpu.memory_space<vmem>>, %arg6: memref<1x2048xf32, #tpu.memory_space<vmem>>, %arg7: memref<1x2048x256xbf16, #tpu.memory_space<vmem>>, %arg8: memref<1x32x256xbf16, #tpu.memory_space<vmem>>, %arg9: memref<1x1x16x256xf32, #tpu.memory_space<vmem>>, %arg10: memref<32x256xf32, #tpu.memory_space<vmem>>) attributes {dimension_semantics = [#tpu.dimension_semantics<parallel>, #tpu.dimension_semantics<parallel>, #tpu.dimension_semantics<parallel>, #tpu.dimension_semantics<arbitrary>], iteration_bounds = array<i64: 4, 1, 1, 1>, scalar_prefetch = 0 : i64, scratch_operands = 1 : i64, tpu.core_type = #tpu.core_type<tc>, window_params = [{transform_indices = @transform_0, window_bounds = array<i64: 1, 32, 2048>}, {transform_indices = @transform_1, window_bounds = array<i64: 1, 2048>}, {transform_indices = @transform_2, window_bounds = array<i64: 1, 2048>}, {transform_indices = @transform_3, window_bounds = array<i64: 1, 2048, 256>}, {transform_indices = @transform_4, window_bounds = array<i64: 1, 32, 256>}, {transform_indices = @transform_5, window_bounds = array<i64: 1, 1, 16, 256>}]} {
    %c0_i32 = arith.constant 0 : i32
    %0 = arith.cmpi eq, %arg3, %c0_i32 : i32
    %1 = arith.extui %0 : i1 to i32
    %c0_i32_0 = arith.constant 0 : i32
    %2 = arith.cmpi ne, %1, %c0_i32_0 : i32
    scf.if %2 {
      %cst_17 = arith.constant 0.000000e+00 : f32
      %24 = vector.broadcast %cst_17 : f32 to vector<32x256xf32>
      %c0_18 = arith.constant 0 : index
      %c0_19 = arith.constant 0 : index
      %25 = vector.load %arg10[%c0_18, %c0_19] : memref<32x256xf32, #tpu.memory_space<vmem>>, vector<32x256xf32>
      tpu.vector_store %arg10[%c0_18, %c0_19], %24 {strides = array<i32>} : memref<32x256xf32, #tpu.memory_space<vmem>>, vector<32x256xf32>,
    } else {
    }
    %c0 = arith.constant 0 : index
    %c0_1 = arith.constant 0 : index
    %c0_2 = arith.constant 0 : index
    %3 = vector.load %arg4[%c0, %c0_1, %c0_2] : memref<1x32x2048xbf16, #tpu.memory_space<vmem>>, vector<1x32x2048xbf16>
    %4 = vector.shape_cast %3 : vector<1x32x2048xbf16> to vector<32x2048xbf16>
    %5 = arith.extf %4 : vector<32x2048xbf16> to vector<32x2048xf32>
    %c0_3 = arith.constant 0 : index
    %c0_4 = arith.constant 0 : index
    %6 = vector.load %arg5[%c0_3, %c0_4] : memref<1x2048xf32, #tpu.memory_space<vmem>>, vector<1x2048xf32>
    %7 = vector.broadcast %6 : vector<1x2048xf32> to vector<32x2048xf32>
    %8 = arith.mulf %5, %7 : vector<32x2048xf32>
    %c0_5 = arith.constant 0 : index
    %c0_6 = arith.constant 0 : index
    %9 = vector.load %arg6[%c0_5, %c0_6] : memref<1x2048xf32, #tpu.memory_space<vmem>>, vector<1x2048xf32>
    %10 = vector.broadcast %9 : vector<1x2048xf32> to vector<32x2048xf32>
    %11 = arith.addf %8, %10 : vector<32x2048xf32>
    %cst = arith.constant 0.000000e+00 : f32
    %12 = vector.broadcast %cst : f32 to vector<32x2048xf32>
    %13 = arith.maximumf %11, %12 : vector<32x2048xf32>
    %14 = arith.truncf %13 : vector<32x2048xf32> to vector<32x2048xbf16>
    %c0_7 = arith.constant 0 : index
    %c0_8 = arith.constant 0 : index
    %15 = vector.load %arg10[%c0_7, %c0_8] : memref<32x256xf32, #tpu.memory_space<vmem>>, vector<32x256xf32>
    %c0_9 = arith.constant 0 : index
    %c0_10 = arith.constant 0 : index
    %c0_11 = arith.constant 0 : index
    %16 = vector.load %arg7[%c0_9, %c0_10, %c0_11] : memref<1x2048x256xbf16, #tpu.memory_space<vmem>>, vector<1x2048x256xbf16>
    %17 = vector.shape_cast %16 : vector<1x2048x256xbf16> to vector<2048x256xbf16>
    %cst_12 = arith.constant dense<0.000000e+00> : vector<32x256xf32>
    %18 = tpu.matmul %14, %17, %cst_12 {dimension_numbers = #tpu.dot_dimension_numbers<[1], [0], [0], [1], [0, 0, 1, 1], [], []>} : vector<32x2048xbf16>, vector<2048x256xbf16>, vector<32x256xf32> -> vector<32x256xf32>
    %19 = arith.addf %15, %18 : vector<32x256xf32>
    %c0_13 = arith.constant 0 : index
    %c0_14 = arith.constant 0 : index
    %20 = vector.load %arg10[%c0_13, %c0_14] : memref<32x256xf32, #tpu.memory_space<vmem>>, vector<32x256xf32>
    tpu.vector_store %arg10[%c0_13, %c0_14], %19 {strides = array<i32>} : memref<32x256xf32, #tpu.memory_space<vmem>>, vector<32x256xf32>,
    %c0_i32_15 = arith.constant 0 : i32
    %21 = arith.cmpi eq, %arg3, %c0_i32_15 : i32
    %22 = arith.extui %21 : i1 to i32
    %c0_i32_16 = arith.constant 0 : i32
    %23 = arith.cmpi ne, %22, %c0_i32_16 : i32
    scf.if %23 {
      %c0_17 = arith.constant 0 : index
      %c0_18 = arith.constant 0 : index
      %24 = vector.load %arg10[%c0_17, %c0_18] : memref<32x256xf32, #tpu.memory_space<vmem>>, vector<32x256xf32>
      %25 = arith.truncf %24 : vector<32x256xf32> to vector<32x256xbf16>
      %c0_19 = arith.constant 0 : index
      %c0_20 = arith.constant 0 : index
      %c0_21 = arith.constant 0 : index
      %26 = vector.load %arg8[%c0_19, %c0_20, %c0_21] : memref<1x32x256xbf16, #tpu.memory_space<vmem>>, vector<1x32x256xbf16>
      %27 = vector.shape_cast %26 : vector<1x32x256xbf16> to vector<32x256xbf16>
      %28 = vector.shape_cast %25 : vector<32x256xbf16> to vector<1x32x256xbf16>
      tpu.vector_store %arg8[%c0_19, %c0_20, %c0_21], %28 {strides = array<i32>} : memref<1x32x256xbf16, #tpu.memory_space<vmem>>, vector<1x32x256xbf16>,
      %29 = vector.shape_cast %24 : vector<32x256xf32> to vector<4x8x256xf32>
      %cst_22 = arith.constant dense<0.000000e+00> : vector<8x256xf32>
      %30 = vector.multi_reduction <add>, %29, %cst_22 [0] : vector<4x8x256xf32> to vector<8x256xf32>
      %c0_23 = arith.constant 0 : index
      %c0_24 = arith.constant 0 : index
      %c0_25 = arith.constant 0 : index
      %c0_26 = arith.constant 0 : index
      %31 = vector.load %arg9[%c0_23, %c0_24, %c0_25, %c0_26] : memref<1x1x16x256xf32, #tpu.memory_space<vmem>>, vector<1x1x8x256xf32>
      %32 = vector.shape_cast %31 : vector<1x1x8x256xf32> to vector<8x256xf32>
      %33 = vector.shape_cast %30 : vector<8x256xf32> to vector<1x1x8x256xf32>
      tpu.vector_store %arg9[%c0_23, %c0_24, %c0_25, %c0_26], %33 {strides = array<i32>} : memref<1x1x16x256xf32, #tpu.memory_space<vmem>>, vector<1x1x8x256xf32>,
      %34 = arith.mulf %29, %29 : vector<4x8x256xf32>
      %cst_27 = arith.constant dense<0.000000e+00> : vector<8x256xf32>
      %35 = vector.multi_reduction <add>, %34, %cst_27 [0] : vector<4x8x256xf32> to vector<8x256xf32>
      %c0_28 = arith.constant 0 : index
      %c0_29 = arith.constant 0 : index
      %c8 = arith.constant 8 : index
      %c0_30 = arith.constant 0 : index
      %36 = vector.load %arg9[%c0_28, %c0_29, %c8, %c0_30] : memref<1x1x16x256xf32, #tpu.memory_space<vmem>>, vector<1x1x8x256xf32>
      %37 = vector.shape_cast %36 : vector<1x1x8x256xf32> to vector<8x256xf32>
      %38 = vector.shape_cast %35 : vector<8x256xf32> to vector<1x1x8x256xf32>
      tpu.vector_store %arg9[%c0_28, %c0_29, %c8, %c0_30], %38 {strides = array<i32>} : memref<1x1x16x256xf32, #tpu.memory_space<vmem>>, vector<1x1x8x256xf32>,
    } else {
    }
    return
  }
  func.func @transform_0(%arg0: i32, %arg1: i32, %arg2: i32, %arg3: i32) -> (i32, i32, i32) {
    %c0_i32 = arith.constant 0 : i32
    return %arg0, %arg1, %arg3 : i32, i32, i32
  }
  func.func @transform_1(%arg0: i32, %arg1: i32, %arg2: i32, %arg3: i32) -> (i32, i32) {
    %c0_i32 = arith.constant 0 : i32
    %c0_i32_0 = arith.constant 0 : i32
    return %c0_i32, %arg3 : i32, i32
  }
  func.func @transform_2(%arg0: i32, %arg1: i32, %arg2: i32, %arg3: i32) -> (i32, i32) {
    %c0_i32 = arith.constant 0 : i32
    %c0_i32_0 = arith.constant 0 : i32
    return %c0_i32, %arg3 : i32, i32
  }
  func.func @transform_3(%arg0: i32, %arg1: i32, %arg2: i32, %arg3: i32) -> (i32, i32, i32) {
    %c0_i32 = arith.constant 0 : i32
    return %arg0, %arg3, %arg2 : i32, i32, i32
  }
  func.func @transform_4(%arg0: i32, %arg1: i32, %arg2: i32, %arg3: i32) -> (i32, i32, i32) {
    %c0_i32 = arith.constant 0 : i32
    return %arg0, %arg1, %arg2 : i32, i32, i32
  }
  func.func @transform_5(%arg0: i32, %arg1: i32, %arg2: i32, %arg3: i32) -> (i32, i32, i32, i32) {
    %c0_i32 = arith.constant 0 : i32
    %c0_i32_0 = arith.constant 0 : i32
    return %arg0, %arg1, %c0_i32, %arg2 : i32, i32, i32, i32
  }
}

module attributes {stable_mosaic.version = 11 : i64} {
  func.func @kernel(%arg0: i32, %arg1: i32, %arg2: i32, %arg3: i32, %arg4: memref<1x128x1024xbf16, #tpu.memory_space<vmem>>, %arg5: memref<1x1024xf32, #tpu.memory_space<vmem>>, %arg6: memref<1x1024xf32, #tpu.memory_space<vmem>>, %arg7: memref<1x1024x128xbf16, #tpu.memory_space<vmem>>, %arg8: memref<1x128x128xbf16, #tpu.memory_space<vmem>>, %arg9: memref<1x1x16x128xf32, #tpu.memory_space<vmem>>, %arg10: memref<128x128xf32, #tpu.memory_space<vmem>>) attributes {dimension_semantics = [#tpu.dimension_semantics<parallel>, #tpu.dimension_semantics<parallel>, #tpu.dimension_semantics<parallel>, #tpu.dimension_semantics<arbitrary>], iteration_bounds = array<i64: 4, 1, 1, 1>, scalar_prefetch = 0 : i64, scratch_operands = 1 : i64, tpu.core_type = #tpu.core_type<tc>, window_params = [{transform_indices = @transform_0, window_bounds = array<i64: 1, 128, 1024>}, {transform_indices = @transform_1, window_bounds = array<i64: 1, 1024>}, {transform_indices = @transform_2, window_bounds = array<i64: 1, 1024>}, {transform_indices = @transform_3, window_bounds = array<i64: 1, 1024, 128>}, {transform_indices = @transform_4, window_bounds = array<i64: 1, 128, 128>}, {transform_indices = @transform_5, window_bounds = array<i64: 1, 1, 16, 128>}]} {
    %c0_i32 = arith.constant 0 : i32
    %0 = arith.cmpi eq, %arg3, %c0_i32 : i32
    %1 = arith.extui %0 : i1 to i32
    %c0_i32_0 = arith.constant 0 : i32
    %2 = arith.cmpi ne, %1, %c0_i32_0 : i32
    scf.if %2 {
      %cst_17 = arith.constant 0.000000e+00 : f32
      %24 = vector.broadcast %cst_17 : f32 to vector<128x128xf32>
      %c0_18 = arith.constant 0 : index
      %c0_19 = arith.constant 0 : index
      %25 = vector.load %arg10[%c0_18, %c0_19] : memref<128x128xf32, #tpu.memory_space<vmem>>, vector<128x128xf32>
      tpu.vector_store %arg10[%c0_18, %c0_19], %24 {strides = array<i32>} : memref<128x128xf32, #tpu.memory_space<vmem>>, vector<128x128xf32>,
    } else {
    }
    %c0 = arith.constant 0 : index
    %c0_1 = arith.constant 0 : index
    %c0_2 = arith.constant 0 : index
    %3 = vector.load %arg4[%c0, %c0_1, %c0_2] : memref<1x128x1024xbf16, #tpu.memory_space<vmem>>, vector<1x128x1024xbf16>
    %4 = vector.shape_cast %3 : vector<1x128x1024xbf16> to vector<128x1024xbf16>
    %5 = arith.extf %4 : vector<128x1024xbf16> to vector<128x1024xf32>
    %c0_3 = arith.constant 0 : index
    %c0_4 = arith.constant 0 : index
    %6 = vector.load %arg5[%c0_3, %c0_4] : memref<1x1024xf32, #tpu.memory_space<vmem>>, vector<1x1024xf32>
    %7 = vector.broadcast %6 : vector<1x1024xf32> to vector<128x1024xf32>
    %8 = arith.mulf %5, %7 : vector<128x1024xf32>
    %c0_5 = arith.constant 0 : index
    %c0_6 = arith.constant 0 : index
    %9 = vector.load %arg6[%c0_5, %c0_6] : memref<1x1024xf32, #tpu.memory_space<vmem>>, vector<1x1024xf32>
    %10 = vector.broadcast %9 : vector<1x1024xf32> to vector<128x1024xf32>
    %11 = arith.addf %8, %10 : vector<128x1024xf32>
    %cst = arith.constant 0.000000e+00 : f32
    %12 = vector.broadcast %cst : f32 to vector<128x1024xf32>
    %13 = arith.maximumf %11, %12 : vector<128x1024xf32>
    %14 = arith.truncf %13 : vector<128x1024xf32> to vector<128x1024xbf16>
    %c0_7 = arith.constant 0 : index
    %c0_8 = arith.constant 0 : index
    %15 = vector.load %arg10[%c0_7, %c0_8] : memref<128x128xf32, #tpu.memory_space<vmem>>, vector<128x128xf32>
    %c0_9 = arith.constant 0 : index
    %c0_10 = arith.constant 0 : index
    %c0_11 = arith.constant 0 : index
    %16 = vector.load %arg7[%c0_9, %c0_10, %c0_11] : memref<1x1024x128xbf16, #tpu.memory_space<vmem>>, vector<1x1024x128xbf16>
    %17 = vector.shape_cast %16 : vector<1x1024x128xbf16> to vector<1024x128xbf16>
    %cst_12 = arith.constant dense<0.000000e+00> : vector<128x128xf32>
    %18 = tpu.matmul %14, %17, %cst_12 {dimension_numbers = #tpu.dot_dimension_numbers<[1], [0], [0], [1], [0, 0, 1, 1], [], []>} : vector<128x1024xbf16>, vector<1024x128xbf16>, vector<128x128xf32> -> vector<128x128xf32>
    %19 = arith.addf %15, %18 : vector<128x128xf32>
    %c0_13 = arith.constant 0 : index
    %c0_14 = arith.constant 0 : index
    %20 = vector.load %arg10[%c0_13, %c0_14] : memref<128x128xf32, #tpu.memory_space<vmem>>, vector<128x128xf32>
    tpu.vector_store %arg10[%c0_13, %c0_14], %19 {strides = array<i32>} : memref<128x128xf32, #tpu.memory_space<vmem>>, vector<128x128xf32>,
    %c0_i32_15 = arith.constant 0 : i32
    %21 = arith.cmpi eq, %arg3, %c0_i32_15 : i32
    %22 = arith.extui %21 : i1 to i32
    %c0_i32_16 = arith.constant 0 : i32
    %23 = arith.cmpi ne, %22, %c0_i32_16 : i32
    scf.if %23 {
      %c0_17 = arith.constant 0 : index
      %c0_18 = arith.constant 0 : index
      %24 = vector.load %arg10[%c0_17, %c0_18] : memref<128x128xf32, #tpu.memory_space<vmem>>, vector<128x128xf32>
      %25 = arith.truncf %24 : vector<128x128xf32> to vector<128x128xbf16>
      %c0_19 = arith.constant 0 : index
      %c0_20 = arith.constant 0 : index
      %c0_21 = arith.constant 0 : index
      %26 = vector.load %arg8[%c0_19, %c0_20, %c0_21] : memref<1x128x128xbf16, #tpu.memory_space<vmem>>, vector<1x128x128xbf16>
      %27 = vector.shape_cast %26 : vector<1x128x128xbf16> to vector<128x128xbf16>
      %28 = vector.shape_cast %25 : vector<128x128xbf16> to vector<1x128x128xbf16>
      tpu.vector_store %arg8[%c0_19, %c0_20, %c0_21], %28 {strides = array<i32>} : memref<1x128x128xbf16, #tpu.memory_space<vmem>>, vector<1x128x128xbf16>,
      %29 = vector.shape_cast %24 : vector<128x128xf32> to vector<16x8x128xf32>
      %cst_22 = arith.constant dense<0.000000e+00> : vector<8x128xf32>
      %30 = vector.multi_reduction <add>, %29, %cst_22 [0] : vector<16x8x128xf32> to vector<8x128xf32>
      %c0_23 = arith.constant 0 : index
      %c0_24 = arith.constant 0 : index
      %c0_25 = arith.constant 0 : index
      %c0_26 = arith.constant 0 : index
      %31 = vector.load %arg9[%c0_23, %c0_24, %c0_25, %c0_26] : memref<1x1x16x128xf32, #tpu.memory_space<vmem>>, vector<1x1x8x128xf32>
      %32 = vector.shape_cast %31 : vector<1x1x8x128xf32> to vector<8x128xf32>
      %33 = vector.shape_cast %30 : vector<8x128xf32> to vector<1x1x8x128xf32>
      tpu.vector_store %arg9[%c0_23, %c0_24, %c0_25, %c0_26], %33 {strides = array<i32>} : memref<1x1x16x128xf32, #tpu.memory_space<vmem>>, vector<1x1x8x128xf32>,
      %34 = arith.mulf %29, %29 : vector<16x8x128xf32>
      %cst_27 = arith.constant dense<0.000000e+00> : vector<8x128xf32>
      %35 = vector.multi_reduction <add>, %34, %cst_27 [0] : vector<16x8x128xf32> to vector<8x128xf32>
      %c0_28 = arith.constant 0 : index
      %c0_29 = arith.constant 0 : index
      %c8 = arith.constant 8 : index
      %c0_30 = arith.constant 0 : index
      %36 = vector.load %arg9[%c0_28, %c0_29, %c8, %c0_30] : memref<1x1x16x128xf32, #tpu.memory_space<vmem>>, vector<1x1x8x128xf32>
      %37 = vector.shape_cast %36 : vector<1x1x8x128xf32> to vector<8x128xf32>
      %38 = vector.shape_cast %35 : vector<8x128xf32> to vector<1x1x8x128xf32>
      tpu.vector_store %arg9[%c0_28, %c0_29, %c8, %c0_30], %38 {strides = array<i32>} : memref<1x1x16x128xf32, #tpu.memory_space<vmem>>, vector<1x1x8x128xf32>,
    } else {
    }
    return
  }
  func.func @transform_0(%arg0: i32, %arg1: i32, %arg2: i32, %arg3: i32) -> (i32, i32, i32) {
    %c0_i32 = arith.constant 0 : i32
    return %arg0, %arg1, %arg3 : i32, i32, i32
  }
  func.func @transform_1(%arg0: i32, %arg1: i32, %arg2: i32, %arg3: i32) -> (i32, i32) {
    %c0_i32 = arith.constant 0 : i32
    %c0_i32_0 = arith.constant 0 : i32
    return %c0_i32, %arg3 : i32, i32
  }
  func.func @transform_2(%arg0: i32, %arg1: i32, %arg2: i32, %arg3: i32) -> (i32, i32) {
    %c0_i32 = arith.constant 0 : i32
    %c0_i32_0 = arith.constant 0 : i32
    return %c0_i32, %arg3 : i32, i32
  }
  func.func @transform_3(%arg0: i32, %arg1: i32, %arg2: i32, %arg3: i32) -> (i32, i32, i32) {
    %c0_i32 = arith.constant 0 : i32
    return %arg0, %arg3, %arg2 : i32, i32, i32
  }
  func.func @transform_4(%arg0: i32, %arg1: i32, %arg2: i32, %arg3: i32) -> (i32, i32, i32) {
    %c0_i32 = arith.constant 0 : i32
    return %arg0, %arg1, %arg2 : i32, i32, i32
  }
  func.func @transform_5(%arg0: i32, %arg1: i32, %arg2: i32, %arg3: i32) -> (i32, i32, i32, i32) {
    %c0_i32 = arith.constant 0 : i32
    %c0_i32_0 = arith.constant 0 : i32
    return %arg0, %arg1, %c0_i32, %arg2 : i32, i32, i32, i32
  }
}

module attributes {stable_mosaic.version = 11 : i64} {
  func.func @kernel(%arg0: i32, %arg1: i32, %arg2: i32, %arg3: i32, %arg4: memref<1x256x512xbf16, #tpu.memory_space<vmem>>, %arg5: memref<1x512xf32, #tpu.memory_space<vmem>>, %arg6: memref<1x512xf32, #tpu.memory_space<vmem>>, %arg7: memref<1x512x128xbf16, #tpu.memory_space<vmem>>, %arg8: memref<1x256x128xbf16, #tpu.memory_space<vmem>>, %arg9: memref<256x128xf32, #tpu.memory_space<vmem>>) attributes {dimension_semantics = [#tpu.dimension_semantics<parallel>, #tpu.dimension_semantics<parallel>, #tpu.dimension_semantics<parallel>, #tpu.dimension_semantics<arbitrary>], iteration_bounds = array<i64: 4, 2, 1, 1>, scalar_prefetch = 0 : i64, scratch_operands = 1 : i64, tpu.core_type = #tpu.core_type<tc>, window_params = [{transform_indices = @transform_0, window_bounds = array<i64: 1, 256, 512>}, {transform_indices = @transform_1, window_bounds = array<i64: 1, 512>}, {transform_indices = @transform_2, window_bounds = array<i64: 1, 512>}, {transform_indices = @transform_3, window_bounds = array<i64: 1, 512, 128>}, {transform_indices = @transform_4, window_bounds = array<i64: 1, 256, 128>}]} {
    %c0_i32 = arith.constant 0 : i32
    %0 = arith.cmpi eq, %arg3, %c0_i32 : i32
    %1 = arith.extui %0 : i1 to i32
    %c0_i32_0 = arith.constant 0 : i32
    %2 = arith.cmpi ne, %1, %c0_i32_0 : i32
    scf.if %2 {
      %cst_17 = arith.constant 0.000000e+00 : f32
      %24 = vector.broadcast %cst_17 : f32 to vector<256x128xf32>
      %c0_18 = arith.constant 0 : index
      %c0_19 = arith.constant 0 : index
      %25 = vector.load %arg9[%c0_18, %c0_19] : memref<256x128xf32, #tpu.memory_space<vmem>>, vector<256x128xf32>
      tpu.vector_store %arg9[%c0_18, %c0_19], %24 {strides = array<i32>} : memref<256x128xf32, #tpu.memory_space<vmem>>, vector<256x128xf32>,
    } else {
    }
    %c0 = arith.constant 0 : index
    %c0_1 = arith.constant 0 : index
    %c0_2 = arith.constant 0 : index
    %3 = vector.load %arg4[%c0, %c0_1, %c0_2] : memref<1x256x512xbf16, #tpu.memory_space<vmem>>, vector<1x256x512xbf16>
    %4 = vector.shape_cast %3 : vector<1x256x512xbf16> to vector<256x512xbf16>
    %5 = arith.extf %4 : vector<256x512xbf16> to vector<256x512xf32>
    %c0_3 = arith.constant 0 : index
    %c0_4 = arith.constant 0 : index
    %6 = vector.load %arg5[%c0_3, %c0_4] : memref<1x512xf32, #tpu.memory_space<vmem>>, vector<1x512xf32>
    %7 = vector.broadcast %6 : vector<1x512xf32> to vector<256x512xf32>
    %8 = arith.mulf %5, %7 : vector<256x512xf32>
    %c0_5 = arith.constant 0 : index
    %c0_6 = arith.constant 0 : index
    %9 = vector.load %arg6[%c0_5, %c0_6] : memref<1x512xf32, #tpu.memory_space<vmem>>, vector<1x512xf32>
    %10 = vector.broadcast %9 : vector<1x512xf32> to vector<256x512xf32>
    %11 = arith.addf %8, %10 : vector<256x512xf32>
    %cst = arith.constant 0.000000e+00 : f32
    %12 = vector.broadcast %cst : f32 to vector<256x512xf32>
    %13 = arith.maximumf %11, %12 : vector<256x512xf32>
    %14 = arith.truncf %13 : vector<256x512xf32> to vector<256x512xbf16>
    %c0_7 = arith.constant 0 : index
    %c0_8 = arith.constant 0 : index
    %15 = vector.load %arg9[%c0_7, %c0_8] : memref<256x128xf32, #tpu.memory_space<vmem>>, vector<256x128xf32>
    %c0_9 = arith.constant 0 : index
    %c0_10 = arith.constant 0 : index
    %c0_11 = arith.constant 0 : index
    %16 = vector.load %arg7[%c0_9, %c0_10, %c0_11] : memref<1x512x128xbf16, #tpu.memory_space<vmem>>, vector<1x512x128xbf16>
    %17 = vector.shape_cast %16 : vector<1x512x128xbf16> to vector<512x128xbf16>
    %cst_12 = arith.constant dense<0.000000e+00> : vector<256x128xf32>
    %18 = tpu.matmul %14, %17, %cst_12 {dimension_numbers = #tpu.dot_dimension_numbers<[1], [0], [0], [1], [0, 0, 1, 1], [], []>} : vector<256x512xbf16>, vector<512x128xbf16>, vector<256x128xf32> -> vector<256x128xf32>
    %19 = arith.addf %15, %18 : vector<256x128xf32>
    %c0_13 = arith.constant 0 : index
    %c0_14 = arith.constant 0 : index
    %20 = vector.load %arg9[%c0_13, %c0_14] : memref<256x128xf32, #tpu.memory_space<vmem>>, vector<256x128xf32>
    tpu.vector_store %arg9[%c0_13, %c0_14], %19 {strides = array<i32>} : memref<256x128xf32, #tpu.memory_space<vmem>>, vector<256x128xf32>,
    %c0_i32_15 = arith.constant 0 : i32
    %21 = arith.cmpi eq, %arg3, %c0_i32_15 : i32
    %22 = arith.extui %21 : i1 to i32
    %c0_i32_16 = arith.constant 0 : i32
    %23 = arith.cmpi ne, %22, %c0_i32_16 : i32
    scf.if %23 {
      %c0_17 = arith.constant 0 : index
      %c0_18 = arith.constant 0 : index
      %24 = vector.load %arg9[%c0_17, %c0_18] : memref<256x128xf32, #tpu.memory_space<vmem>>, vector<256x128xf32>
      %25 = arith.truncf %24 : vector<256x128xf32> to vector<256x128xbf16>
      %c0_19 = arith.constant 0 : index
      %c0_20 = arith.constant 0 : index
      %c0_21 = arith.constant 0 : index
      %26 = vector.load %arg8[%c0_19, %c0_20, %c0_21] : memref<1x256x128xbf16, #tpu.memory_space<vmem>>, vector<1x256x128xbf16>
      %27 = vector.shape_cast %26 : vector<1x256x128xbf16> to vector<256x128xbf16>
      %28 = vector.shape_cast %25 : vector<256x128xbf16> to vector<1x256x128xbf16>
      tpu.vector_store %arg8[%c0_19, %c0_20, %c0_21], %28 {strides = array<i32>} : memref<1x256x128xbf16, #tpu.memory_space<vmem>>, vector<1x256x128xbf16>,
    } else {
    }
    return
  }
  func.func @transform_0(%arg0: i32, %arg1: i32, %arg2: i32, %arg3: i32) -> (i32, i32, i32) {
    %c0_i32 = arith.constant 0 : i32
    return %arg0, %arg1, %arg3 : i32, i32, i32
  }
  func.func @transform_1(%arg0: i32, %arg1: i32, %arg2: i32, %arg3: i32) -> (i32, i32) {
    %c0_i32 = arith.constant 0 : i32
    %c0_i32_0 = arith.constant 0 : i32
    return %c0_i32, %arg3 : i32, i32
  }
  func.func @transform_2(%arg0: i32, %arg1: i32, %arg2: i32, %arg3: i32) -> (i32, i32) {
    %c0_i32 = arith.constant 0 : i32
    %c0_i32_0 = arith.constant 0 : i32
    return %c0_i32, %arg3 : i32, i32
  }
  func.func @transform_3(%arg0: i32, %arg1: i32, %arg2: i32, %arg3: i32) -> (i32, i32, i32) {
    %c0_i32 = arith.constant 0 : i32
    return %arg0, %arg3, %arg2 : i32, i32, i32
  }
  func.func @transform_4(%arg0: i32, %arg1: i32, %arg2: i32, %arg3: i32) -> (i32, i32, i32) {
    %c0_i32 = arith.constant 0 : i32
    return %arg0, %arg1, %arg2 : i32, i32, i32
  }
}

</mosaic_0001>

<bundles_post_ra>
// kernel: squeeze.1
= control target key start
LH: loop header
LB: loop body
LE: loop exit
PB: predicated region body
PF: predicated region fallthrough
CT: control target
= control target key end

     0   :  { %s2183_s0 = inlined_call_operand.vmem [shape: bf16[1,2,8192], index: 0, kind: input, shape index: {}]   ;;  %s2184_s1 = inlined_call_operand.vmem [shape: bf16[2,4,4,512], index: 1, kind: output, shape index: {}]  }
   0x1   :  { %v1757_v0 = vld [vmem:[%s2183_s0 + $0x3f] sm:$0x1]  ;;  %v1758_v1 = vld [vmem:[%s2183_s0 + $0x3e] sm:$0x1]  ;;  %v1759_v2 = vld [vmem:[%s2183_s0 + $0x3d] sm:$0x1] }
   0x2   :  { %v18_v3 = vunpack.c.l.bf16 %v1757_v0  ;;  %v34_v4 = vunpack.c.l.bf16 %v1758_v1  ;;  %v50_v5 = vunpack.c.l.bf16 %v1759_v2  ;;  %v1760_v6 = vld [vmem:[%s2183_s0 + $0x3c] sm:$0x1]  ;;  %v1761_v7 = vld [vmem:[%s2183_s0 + $0x3b] sm:$0x1]  ;;  %v1762_v8 = vld [vmem:[%s2183_s0 + $0x3a] sm:$0x1] }
   0x3   :  { %v66_v9 = vunpack.c.l.bf16 %v1760_v6  ;;  %v82_v10 = vunpack.c.l.bf16 %v1761_v7  ;;  %v98_v11 = vunpack.c.l.bf16 %v1762_v8  ;;  %v1763_v12 = vld [vmem:[%s2183_s0 + $0x39] sm:$0x1]  ;;  %v1764_v13 = vld [vmem:[%s2183_s0 + $0x38] sm:$0x1]  ;;  %v1765_v14 = vld [vmem:[%s2183_s0 + $0x37] sm:$0x1] }
   0x4   :  { %21 = vst [vmem:[#allocation1 + $0x148] sm:$0x3] %v18_v3  ;;  %37 = vst [vmem:[#allocation1 + $0x48] sm:$0x3] %v34_v4  ;;  %v114_v15 = vunpack.c.l.bf16 %v1763_v12  ;;  %v130_v16 = vunpack.c.l.bf16 %v1764_v13  ;;  %v146_v17 = vunpack.c.l.bf16 %v1765_v14  ;;  %v1766_v18 = vld [vmem:[%s2183_s0 + $0x36] sm:$0x1] }
   0x5   :  { %53 = vst [vmem:[#allocation1 + $0x120] sm:$0x3] %v50_v5  ;;  %v1767_v19 = vld [vmem:[%s2183_s0 + $0x35] sm:$0x1]  ;;  %v1768_v20 = vld [vmem:[%s2183_s0 + $0x34] sm:$0x1]  ;;  %v162_v21 = vunpack.c.l.bf16 %v1766_v18 }
   0x6   :  { %69 = vst [vmem:[#allocation1 + $0x1e0] sm:$0x3] %v66_v9  ;;  %85 = vst [vmem:[#allocation1 + $0x1a8] sm:$0x3] %v82_v10  ;;  %v178_v22 = vunpack.c.l.bf16 %v1767_v19  ;;  %v194_v23 = vunpack.c.l.bf16 %v1768_v20  ;;  %v1769_v24 = vld [vmem:[%s2183_s0 + $0x33] sm:$0x1] }
   0x7   :  { %101 = vst [vmem:[#allocation1 + $0x90] sm:$0x3] %v98_v11  ;;  %v1770_v25 = vld [vmem:[%s2183_s0 + $0x32] sm:$0x1]  ;;  %v1771_v26 = vld [vmem:[%s2183_s0 + $0x31] sm:$0x1]  ;;  %v210_v27 = vunpack.c.l.bf16 %v1769_v24 }
   0x8   :  { %117 = vst [vmem:[#allocation1 + $0xc8] sm:$0x3] %v114_v15  ;;  %133 = vst [vmem:[#allocation1 + $0x1b0] sm:$0x3] %v130_v16  ;;  %v226_v28 = vunpack.c.l.bf16 %v1770_v25  ;;  %v242_v29 = vunpack.c.l.bf16 %v1771_v26  ;;  %v1772_v30 = vld [vmem:[%s2183_s0 + $0x30] sm:$0x1] }
   0x9   :  { %149 = vst [vmem:[#allocation1 + $0x78] sm:$0x3] %v146_v17  ;;  %v1773_v31 = vld [vmem:[%s2183_s0 + $0x2f] sm:$0x1]  ;;  %v1774_v32 = vld [vmem:[%s2183_s0 + $0x2e] sm:$0x1]  ;;  %v258_v33 = vunpack.c.l.bf16 %v1772_v30 }
   0xa   :  { %165 = vst [vmem:[#allocation1 + $0xe8] sm:$0x3] %v162_v21  ;;  %181 = vst [vmem:[#allocation1 + $0xe0] sm:$0x3] %v178_v22  ;;  %v274_v34 = vunpack.c.l.bf16 %v1773_v31  ;;  %v290_v35 = vunpack.c.l.bf16 %v1774_v32  ;;  %v1775_v36 = vld [vmem:[%s2183_s0 + $0x2d] sm:$0x1] }
   0xb   :  { %197 = vst [vmem:[#allocation1 + $0x160] sm:$0x3] %v194_v23  ;;  %v1776_v37 = vld [vmem:[%s2183_s0 + $0x2c] sm:$0x1]  ;;  %v1777_v38 = vld [vmem:[%s2183_s0 + $0x2b] sm:$0x1]  ;;  %v306_v39 = vunpack.c.l.bf16 %v1775_v36 }
   0xc   :  { %213 = vst [vmem:[#allocation1 + $0xd8] sm:$0x3] %v210_v27  ;;  %229 = vst [vmem:[#allocation1 + $0xa8] sm:$0x3] %v226_v28  ;;  %v322_v40 = vunpack.c.l.bf16 %v1776_v37  ;;  %v338_v41 = vunpack.c.l.bf16 %v1777_v38  ;;  %v1778_v42 = vld [vmem:[%s2183_s0 + $0x2a] sm:$0x1] }
   0xd   :  { %245 = vst [vmem:[#allocation1 + $0xf0] sm:$0x3] %v242_v29  ;;  %v1779_v43 = vld [vmem:[%s2183_s0 + $0x29] sm:$0x1]  ;;  %v1780_v44 = vld [vmem:[%s2183_s0 + $0x28] sm:$0x1]  ;;  %v354_v45 = vunpack.c.l.bf16 %v1778_v42 }
   0xe   :  { %261 = vst [vmem:[#allocation1 + $0x198] sm:$0x3] %v258_v33  ;;  %277 = vst [vmem:[#allocation1 + $0x118] sm:$0x3] %v274_v34  ;;  %v370_v46 = vunpack.c.l.bf16 %v1779_v43  ;;  %v386_v47 = vunpack.c.l.bf16 %v1780_v44  ;;  %v1781_v48 = vld [vmem:[%s2183_s0 + $0x27] sm:$0x1] }
   0xf   :  { %293 = vst [vmem:[#allocation1 + $0x70] sm:$0x3] %v290_v35  ;;  %v1782_v49 = vld [vmem:[%s2183_s0 + $0x26] sm:$0x1]  ;;  %v1783_v50 = vld [vmem:[%s2183_s0 + $0x25] sm:$0x1]  ;;  %v402_v51 = vunpack.c.l.bf16 %v1781_v48 }
  0x10   :  { %309 = vst [vmem:[#allocation1 + $0xc0] sm:$0x3] %v306_v39  ;;  %325 = vst [vmem:[#allocation1 + $0xb8] sm:$0x3] %v322_v40  ;;  %v418_v52 = vunpack.c.l.bf16 %v1782_v49  ;;  %v434_v53 = vunpack.c.l.bf16 %v1783_v50  ;;  %v1784_v54 = vld [vmem:[%s2183_s0 + $0x24] sm:$0x1] }
  0x11   :  { %341 = vst [vmem:[#allocation1 + $0x178] sm:$0x3] %v338_v41  ;;  %v1785_v55 = vld [vmem:[%s2183_s0 + $0x23] sm:$0x1]  ;;  %v1786_v56 = vld [vmem:[%s2183_s0 + $0x22] sm:$0x1]  ;;  %v450_v57 = vunpack.c.l.bf16 %v1784_v54 }
  0x12   :  { %357 = vst [vmem:[#allocation1 + $0x50] sm:$0x3] %v354_v45  ;;  %373 = vst [vmem:[#allocation1 + $0x40] sm:$0x3] %v370_v46  ;;  %v466_v58 = vunpack.c.l.bf16 %v1785_v55  ;;  %v482_v59 = vunpack.c.l.bf16 %v1786_v56  ;;  %v1787_v60 = vld [vmem:[%s2183_s0 + $0x21] sm:$0x1] }
  0x13   :  { %389 = vst [vmem:[#allocation1 + $0x1d0] sm:$0x3] %v386_v47  ;;  %v1788_v61 = vld [vmem:[%s2183_s0 + $0x20] sm:$0x1]  ;;  %v1789_v62 = vld [vmem:[%s2183_s0 + $0x1f] sm:$0x1]  ;;  %v498_v63 = vunpack.c.l.bf16 %v1787_v60 }
  0x14   :  { %405 = vst [vmem:[#allocation1 + $0x10] sm:$0x3] %v402_v51  ;;  %421 = vst [vmem:[#allocation1 + $0x100] sm:$0x3] %v418_v52  ;;  %v514_v0 = vunpack.c.l.bf16 %v1788_v61  ;;  %v530_v1 = vunpack.c.l.bf16 %v1789_v62  ;;  %v1790_v2 = vld [vmem:[%s2183_s0 + $0x1e] sm:$0x1] }
  0x15   :  { %437 = vst [vmem:[#allocation1 + $0x98] sm:$0x3] %v434_v53  ;;  %v1791_v3 = vld [vmem:[%s2183_s0 + $0x1d] sm:$0x1]  ;;  %v1792_v4 = vld [vmem:[%s2183_s0 + $0x1c] sm:$0x1]  ;;  %v546_v5 = vunpack.c.l.bf16 %v1790_v2 }
  0x16   :  { %453 = vst [vmem:[#allocation1 + $0x1c8] sm:$0x3] %v450_v57  ;;  %469 = vst [vmem:[#allocation1 + $0x18] sm:$0x3] %v466_v58  ;;  %v562_v6 = vunpack.c.l.bf16 %v1791_v3  ;;  %v578_v7 = vunpack.c.l.bf16 %v1792_v4  ;;  %v1793_v8 = vld [vmem:[%s2183_s0 + $0x1b] sm:$0x1] }
  0x17   :  { %485 = vst [vmem:[#allocation1 + $0x1f8] sm:$0x3] %v482_v59  ;;  %v1794_v9 = vld [vmem:[%s2183_s0 + $0x1a] sm:$0x1]  ;;  %v1795_v10 = vld [vmem:[%s2183_s0 + $0x19] sm:$0x1]  ;;  %v594_v11 = vunpack.c.l.bf16 %v1793_v8 }
  0x18   :  { %501 = vst [vmem:[#allocation1 + $0x108] sm:$0x3] %v498_v63  ;;  %517 = vst [vmem:[#allocation1 + $0x1f0] sm:$0x3] %v514_v0  ;;  %v610_v12 = vunpack.c.l.bf16 %v1794_v9  ;;  %v626_v13 = vunpack.c.l.bf16 %v1795_v10  ;;  %v1796_v14 = vld [vmem:[%s2183_s0 + $0x18] sm:$0x1] }
  0x19   :  { %533 = vst [vmem:[#allocation1 + $0xb0] sm:$0x3] %v530_v1  ;;  %v1797_v15 = vld [vmem:[%s2183_s0 + $0x17] sm:$0x1]  ;;  %v1798_v16 = vld [vmem:[%s2183_s0 + $0x16] sm:$0x1]  ;;  %v642_v17 = vunpack.c.l.bf16 %v1796_v14 }
  0x1a   :  { %549 = vst [vmem:[#allocation1 + $0x28] sm:$0x3] %v546_v5  ;;  %565 = vst [vmem:[#allocation1 + $0xf8] sm:$0x3] %v562_v6  ;;  %v658_v18 = vunpack.c.l.bf16 %v1797_v15  ;;  %v674_v19 = vunpack.c.l.bf16 %v1798_v16  ;;  %v1799_v20 = vld [vmem:[%s2183_s0 + $0x15] sm:$0x1] }
  0x1b   :  { %581 = vst [vmem:[#allocation1 + $0x130] sm:$0x3] %v578_v7  ;;  %v1800_v21 = vld [vmem:[%s2183_s0 + $0x14] sm:$0x1]  ;;  %v1801_v22 = vld [vmem:[%s2183_s0 + $0x13] sm:$0x1]  ;;  %v690_v23 = vunpack.c.l.bf16 %v1799_v20 }
  0x1c   :  { %597 = vst [vmem:[#allocation1 + $0x1b8] sm:$0x3] %v594_v11  ;;  %613 = vst [vmem:[#allocation1] sm:$0x3] %v610_v12  ;;  %v706_v24 = vunpack.c.l.bf16 %v1800_v21  ;;  %v722_v25 = vunpack.c.l.bf16 %v1801_v22  ;;  %v1802_v26 = vld [vmem:[%s2183_s0 + $0x12] sm:$0x1] }
  0x1d   :  { %629 = vst [vmem:[#allocation1 + $0x1d8] sm:$0x3] %v626_v13  ;;  %v1803_v27 = vld [vmem:[%s2183_s0 + $0x11] sm:$0x1]  ;;  %v1804_v28 = vld [vmem:[%s2183_s0 + $0x10] sm:$0x1]  ;;  %v738_v29 = vunpack.c.l.bf16 %v1802_v26 }
  0x1e   :  { %645 = vst [vmem:[#allocation1 + $0xd0] sm:$0x3] %v642_v17  ;;  %661 = vst [vmem:[#allocation1 + $0x58] sm:$0x3] %v658_v18  ;;  %v754_v30 = vunpack.c.l.bf16 %v1803_v27  ;;  %v770_v31 = vunpack.c.l.bf16 %v1804_v28  ;;  %v1805_v32 = vld [vmem:[%s2183_s0 + $0xf] sm:$0x1] }
  0x1f   :  { %677 = vst [vmem:[#allocation1 + $0x8] sm:$0x3] %v674_v19  ;;  %v1806_v33 = vld [vmem:[%s2183_s0 + $0xe] sm:$0x1]  ;;  %v1807_v34 = vld [vmem:[%s2183_s0 + $0xd] sm:$0x1]  ;;  %v786_v35 = vunpack.c.l.bf16 %v1805_v32 }
  0x20   :  { %693 = vst [vmem:[#allocation1 + $0x110] sm:$0x3] %v690_v23  ;;  %709 = vst [vmem:[#allocation1 + $0x180] sm:$0x3] %v706_v24  ;;  %v802_v36 = vunpack.c.l.bf16 %v1806_v33  ;;  %v818_v37 = vunpack.c.l.bf16 %v1807_v34  ;;  %v1808_v38 = vld [vmem:[%s2183_s0 + $0xc] sm:$0x1] }
  0x21   :  { %725 = vst [vmem:[#allocation1 + $0x188] sm:$0x3] %v722_v25  ;;  %v1809_v39 = vld [vmem:[%s2183_s0 + $0xb] sm:$0x1]  ;;  %v1810_v40 = vld [vmem:[%s2183_s0 + $0xa] sm:$0x1]  ;;  %v834_v41 = vunpack.c.l.bf16 %v1808_v38 }
  0x22   :  { %741 = vst [vmem:[#allocation1 + $0x168] sm:$0x3] %v738_v29  ;;  %757 = vst [vmem:[#allocation1 + $0x20] sm:$0x3] %v754_v30  ;;  %v850_v42 = vunpack.c.l.bf16 %v1809_v39  ;;  %v866_v43 = vunpack.c.l.bf16 %v1810_v40  ;;  %v1811_v44 = vld [vmem:[%s2183_s0 + $0x9] sm:$0x1] }
  0x23   :  { %773 = vst [vmem:[#allocation1 + $0x128] sm:$0x3] %v770_v31  ;;  %v1812_v45 = vld [vmem:[%s2183_s0 + $0x8] sm:$0x1]  ;;  %v1813_v46 = vld [vmem:[%s2183_s0 + $0x7] sm:$0x1]  ;;  %v882_v47 = vunpack.c.l.bf16 %v1811_v44 }
  0x24   :  { %789 = vst [vmem:[#allocation1 + $0x140] sm:$0x3] %v786_v35  ;;  %805 = vst [vmem:[#allocation1 + $0x170] sm:$0x3] %v802_v36  ;;  %v898_v48 = vunpack.c.l.bf16 %v1812_v45  ;;  %v914_v49 = vunpack.c.l.bf16 %v1813_v46  ;;  %v1814_v50 = vld [vmem:[%s2183_s0 + $0x6] sm:$0x1] }
  0x25   :  { %821 = vst [vmem:[#allocation1 + $0x150] sm:$0x3] %v818_v37  ;;  %v1815_v51 = vld [vmem:[%s2183_s0 + $0x5] sm:$0x1]  ;;  %v1816_v52 = vld [vmem:[%s2183_s0 + $0x4] sm:$0x1]  ;;  %v930_v53 = vunpack.c.l.bf16 %v1814_v50 }
  0x26   :  { %837 = vst [vmem:[#allocation1 + $0x30] sm:$0x3] %v834_v41  ;;  %853 = vst [vmem:[#allocation1 + $0x88] sm:$0x3] %v850_v42  ;;  %v946_v54 = vunpack.c.l.bf16 %v1815_v51  ;;  %v962_v55 = vunpack.c.l.bf16 %v1816_v52  ;;  %v1817_v56 = vld [vmem:[%s2183_s0 + $0x3] sm:$0x1] }
  0x27   :  { %869 = vst [vmem:[#allocation1 + $0x80] sm:$0x3] %v866_v43  ;;  %v1818_v57 = vld [vmem:[%s2183_s0 + $0x2] sm:$0x1]  ;;  %v1819_v58 = vld [vmem:[%s2183_s0 + $0x1] sm:$0x1]  ;;  %v978_v59 = vunpack.c.l.bf16 %v1817_v56 }
  0x28   :  { %885 = vst [vmem:[#allocation1 + $0x190] sm:$0x3] %v882_v47  ;;  %901 = vst [vmem:[#allocation1 + $0x68] sm:$0x3] %v898_v48  ;;  %v994_v60 = vunpack.c.l.bf16 %v1818_v57  ;;  %v1009_v61 = vunpack.c.l.bf16 %v1819_v58  ;;  %v1022_v62 = vld [vmem:[%s2183_s0] sm:$0x1] }
  0x29   :  { %917 = vst [vmem:[#allocation1 + $0x60] sm:$0x3] %v914_v49  ;;  %v1193_v63 = vld [vmem:[#allocation1 + $0x130] sm:$0x3]   ;;  %v1199_v0 = vld [vmem:[#allocation1 + $0xf8] sm:$0x3]   ;;  %v1023_v1 = vunpack.c.l.bf16 %v1022_v62 }
  0x2a   :  { %933 = vst [vmem:[#allocation1 + $0x1c0] sm:$0x3] %v930_v53  ;;  %949 = vst [vmem:[#allocation1 + $0x138] sm:$0x3] %v946_v54  ;;  %v1175_v2 = vld [vmem:[#allocation1 + $0x1d8] sm:$0x3]  }
  0x2b   :  { %965 = vst [vmem:[#allocation1 + $0x38] sm:$0x3] %v962_v55  ;;  %v1181_v3 = vld [vmem:[#allocation1] sm:$0x3]   ;;  %v1187_v4 = vld [vmem:[#allocation1 + $0x1b8] sm:$0x3]  }
  0x2c   :  { %1195 = vst [vmem:[#allocation0 + $0x23] sm:$0x1] %v1193_v63   ;;  %1197 = vst [vmem:[#allocation0 + $0xa2] sm:$0x2] %v1193_v63   ;;  %v1157_v5 = vld [vmem:[#allocation1 + $0x8] sm:$0x3]  }
  0x2d   :  { %1201 = vst [vmem:[#allocation0 + $0x2b] sm:$0x1] %v1199_v0   ;;  %1203 = vst [vmem:[#allocation0 + $0xaa] sm:$0x2] %v1199_v0   ;;  %v1163_v6 = vld [vmem:[#allocation1 + $0x58] sm:$0x3]  }
  0x2e   :  { %981 = vst [vmem:[#allocation1 + $0xa0] sm:$0x3] %v978_v59  ;;  %997 = vst [vmem:[#allocation1 + $0x1e8] sm:$0x3] %v994_v60  ;;  %v1169_v7 = vld [vmem:[#allocation1 + $0xd0] sm:$0x3]  }
  0x2f   :  { %1012 = vst [vmem:[#allocation1 + $0x1a0] sm:$0x3] %v1009_v61  ;;  %1177 = vst [vmem:[#allocation0 + $0x2a] sm:$0x1] %v1175_v2   ;;  %v1139_v8 = vld [vmem:[#allocation1 + $0x188] sm:$0x3]  }
  0x30   :  { %1179 = vst [vmem:[#allocation0 + $0xa9] sm:$0x2] %v1175_v2   ;;  %1183 = vst [vmem:[#allocation0 + $0x32] sm:$0x1] %v1181_v3   ;;  %v1145_v9 = vld [vmem:[#allocation1 + $0x180] sm:$0x3]  }
  0x31   :  { %1185 = vst [vmem:[#allocation0 + $0xb1] sm:$0x2] %v1181_v3   ;;  %1189 = vst [vmem:[#allocation0 + $0x3a] sm:$0x1] %v1187_v4   ;;  %v1151_v10 = vld [vmem:[#allocation1 + $0x110] sm:$0x3]  }
  0x32   :  { %1191 = vst [vmem:[#allocation0 + $0xb9] sm:$0x2] %v1187_v4   ;;  %1025 = vst [vmem:[#allocation1 + $0x158] sm:$0x3] %v1023_v1  ;;  %v1121_v11 = vld [vmem:[#allocation1 + $0x128] sm:$0x3]  }
  0x33   :  { %1159 = vst [vmem:[#allocation0 + $0x31] sm:$0x1] %v1157_v5   ;;  %1161 = vst [vmem:[#allocation0 + $0xb0] sm:$0x2] %v1157_v5   ;;  %v1127_v12 = vld [vmem:[#allocation1 + $0x20] sm:$0x3]  }
  0x34   :  { %1165 = vst [vmem:[#allocation0 + $0x39] sm:$0x1] %v1163_v6   ;;  %1167 = vst [vmem:[#allocation0 + $0xb8] sm:$0x2] %v1163_v6   ;;  %v1133_v13 = vld [vmem:[#allocation1 + $0x168] sm:$0x3]  }
  0x35   :  { %1171 = vst [vmem:[#allocation0 + $0x22] sm:$0x1] %v1169_v7   ;;  %1173 = vst [vmem:[#allocation0 + $0xa1] sm:$0x2] %v1169_v7   ;;  %v1103_v14 = vld [vmem:[#allocation1 + $0x150] sm:$0x3]  }
  0x36   :  { %1141 = vst [vmem:[#allocation0 + $0x38] sm:$0x1] %v1139_v8   ;;  %1143 = vst [vmem:[#allocation0 + $0xb7] sm:$0x2] %v1139_v8   ;;  %v1109_v15 = vld [vmem:[#allocation1 + $0x170] sm:$0x3]  }
  0x37   :  { %1147 = vst [vmem:[#allocation0 + $0x21] sm:$0x1] %v1145_v9   ;;  %1149 = vst [vmem:[#allocation0 + $0xa0] sm:$0x2] %v1145_v9   ;;  %v1115_v16 = vld [vmem:[#allocation1 + $0x140] sm:$0x3]  }
  0x38   :  { %1153 = vst [vmem:[#allocation0 + $0x29] sm:$0x1] %v1151_v10   ;;  %1155 = vst [vmem:[#allocation0 + $0xa8] sm:$0x2] %v1151_v10   ;;  %v1085_v17 = vld [vmem:[#allocation1 + $0x80] sm:$0x3]  }
  0x39   :  { %1123 = vst [vmem:[#allocation0 + $0x20] sm:$0x1] %v1121_v11   ;;  %1125 = vst [vmem:[#allocation0 + $0x9f] sm:$0x2] %v1121_v11   ;;  %v1091_v18 = vld [vmem:[#allocation1 + $0x88] sm:$0x3]  }
  0x3a   :  { %1129 = vst [vmem:[#allocation0 + $0x28] sm:$0x1] %v1127_v12   ;;  %1131 = vst [vmem:[#allocation0 + $0xa7] sm:$0x2] %v1127_v12   ;;  %v1097_v19 = vld [vmem:[#allocation1 + $0x30] sm:$0x3]  }
  0x3b   :  { %1135 = vst [vmem:[#allocation0 + $0x30] sm:$0x1] %v1133_v13   ;;  %1137 = vst [vmem:[#allocation0 + $0xaf] sm:$0x2] %v1133_v13   ;;  %v1067_v20 = vld [vmem:[#allocation1 + $0x60] sm:$0x3]  }
  0x3c   :  { %1105 = vst [vmem:[#allocation0 + $0xb] sm:$0x1] %v1103_v14   ;;  %1107 = vst [vmem:[#allocation0 + $0x8a] sm:$0x2] %v1103_v14   ;;  %v1073_v21 = vld [vmem:[#allocation1 + $0x68] sm:$0x3]  }
  0x3d   :  { %1111 = vst [vmem:[#allocation0 + $0x13] sm:$0x1] %v1109_v15   ;;  %1113 = vst [vmem:[#allocation0 + $0x92] sm:$0x2] %v1109_v15   ;;  %v1079_v22 = vld [vmem:[#allocation1 + $0x190] sm:$0x3]  }
  0x3e   :  { %1117 = vst [vmem:[#allocation0 + $0x1b] sm:$0x1] %v1115_v16   ;;  %1119 = vst [vmem:[#allocation0 + $0x9a] sm:$0x2] %v1115_v16   ;;  %v1049_v23 = vld [vmem:[#allocation1 + $0x38] sm:$0x3]  }
  0x3f   :  { %1087 = vst [vmem:[#allocation0 + $0x12] sm:$0x1] %v1085_v17   ;;  %1089 = vst [vmem:[#allocation0 + $0x91] sm:$0x2] %v1085_v17   ;;  %v1055_v24 = vld [vmem:[#allocation1 + $0x138] sm:$0x3]  }
  0x40   :  { %1093 = vst [vmem:[#allocation0 + $0x1a] sm:$0x1] %v1091_v18   ;;  %1095 = vst [vmem:[#allocation0 + $0x99] sm:$0x2] %v1091_v18   ;;  %v1061_v25 = vld [vmem:[#allocation1 + $0x1c0] sm:$0x3]  }
  0x41   :  { %1099 = vst [vmem:[#allocation0 + $0x3] sm:$0x1] %v1097_v19   ;;  %1101 = vst [vmem:[#allocation0 + $0x82] sm:$0x2] %v1097_v19   ;;  %v1031_v26 = vld [vmem:[#allocation1 + $0x1a0] sm:$0x3]  }
  0x42   :  { %1069 = vst [vmem:[#allocation0 + $0x19] sm:$0x1] %v1067_v20   ;;  %1071 = vst [vmem:[#allocation0 + $0x98] sm:$0x2] %v1067_v20   ;;  %v1037_v27 = vld [vmem:[#allocation1 + $0x1e8] sm:$0x3]  }
  0x43   :  { %1075 = vst [vmem:[#allocation0 + $0x2] sm:$0x1] %v1073_v21   ;;  %1077 = vst [vmem:[#allocation0 + $0x81] sm:$0x2] %v1073_v21   ;;  %v1043_v28 = vld [vmem:[#allocation1 + $0xa0] sm:$0x3]  }
  0x44   :  { %1081 = vst [vmem:[#allocation0 + $0xa] sm:$0x1] %v1079_v22   ;;  %1083 = vst [vmem:[#allocation0 + $0x89] sm:$0x2] %v1079_v22   ;;  %v1026_v29 = vld [vmem:[#allocation1 + $0x158] sm:$0x3]  }
  0x45   :  { %1051 = vst [vmem:[#allocation0 + $0x1] sm:$0x1] %v1049_v23   ;;  %1053 = vst [vmem:[#allocation0 + $0x80] sm:$0x2] %v1049_v23   ;;  %v1205_v30 = vld [vmem:[#allocation1 + $0x28] sm:$0x3]  }
  0x46   :  { %1057 = vst [vmem:[#allocation0 + $0x9] sm:$0x1] %v1055_v24   ;;  %1059 = vst [vmem:[#allocation0 + $0x88] sm:$0x2] %v1055_v24   ;;  %v1211_v31 = vld [vmem:[#allocation1 + $0xb0] sm:$0x3]  }
  0x47   :  { %1063 = vst [vmem:[#allocation0 + $0x11] sm:$0x1] %v1061_v25   ;;  %1065 = vst [vmem:[#allocation0 + $0x90] sm:$0x2] %v1061_v25   ;;  %v1217_v32 = vld [vmem:[#allocation1 + $0x1f0] sm:$0x3]  }
  0x48   :  { %1033 = vst [vmem:[#allocation0 + $0x8] sm:$0x1] %v1031_v26   ;;  %1035 = vst [vmem:[#allocation0 + $0x87] sm:$0x2] %v1031_v26   ;;  %v1223_v33 = vld [vmem:[#allocation1 + $0x108] sm:$0x3]  }
  0x49   :  { %1039 = vst [vmem:[#allocation0 + $0x10] sm:$0x1] %v1037_v27   ;;  %1041 = vst [vmem:[#allocation0 + $0x8f] sm:$0x2] %v1037_v27   ;;  %v1229_v34 = vld [vmem:[#allocation1 + $0x1f8] sm:$0x3]  }
  0x4a   :  { %1045 = vst [vmem:[#allocation0 + $0x18] sm:$0x1] %v1043_v28   ;;  %1047 = vst [vmem:[#allocation0 + $0x97] sm:$0x2] %v1043_v28   ;;  %v1235_v35 = vld [vmem:[#allocation1 + $0x18] sm:$0x3]  }
  0x4b   :  { %1027 = vst [vmem:[#allocation0] sm:$0x1] %v1026_v29   ;;  %1029 = vst [vmem:[#allocation0 + $0x7f] sm:$0x2] %v1026_v29   ;;  %v1241_v36 = vld [vmem:[#allocation1 + $0x1c8] sm:$0x3]  }
  0x4c   :  { %1207 = vst [vmem:[#allocation0 + $0x33] sm:$0x1] %v1205_v30   ;;  %1209 = vst [vmem:[#allocation0 + $0xb2] sm:$0x2] %v1205_v30   ;;  %v1247_v37 = vld [vmem:[#allocation1 + $0x98] sm:$0x3]  }
  0x4d   :  { %1213 = vst [vmem:[#allocation0 + $0x3b] sm:$0x1] %v1211_v31   ;;  %1215 = vst [vmem:[#allocation0 + $0xba] sm:$0x2] %v1211_v31   ;;  %v1253_v38 = vld [vmem:[#allocation1 + $0x100] sm:$0x3]  }
  0x4e   :  { %1219 = vst [vmem:[#allocation0 + $0x40] sm:$0x1] %v1217_v32   ;;  %1221 = vst [vmem:[#allocation0 + $0xbf] sm:$0x2] %v1217_v32   ;;  %v1259_v39 = vld [vmem:[#allocation1 + $0x10] sm:$0x3]  }
  0x4f   :  { %1225 = vst [vmem:[#allocation0 + $0x48] sm:$0x1] %v1223_v33   ;;  %1227 = vst [vmem:[#allocation0 + $0xc7] sm:$0x2] %v1223_v33   ;;  %v1265_v40 = vld [vmem:[#allocation1 + $0x1d0] sm:$0x3]  }
  0x50   :  { %1231 = vst [vmem:[#allocation0 + $0x50] sm:$0x1] %v1229_v34   ;;  %1233 = vst [vmem:[#allocation0 + $0xcf] sm:$0x2] %v1229_v34   ;;  %v1271_v41 = vld [vmem:[#allocation1 + $0x40] sm:$0x3]  }
  0x51   :  { %1237 = vst [vmem:[#allocation0 + $0x58] sm:$0x1] %v1235_v35   ;;  %1239 = vst [vmem:[#allocation0 + $0xd7] sm:$0x2] %v1235_v35   ;;  %v1277_v42 = vld [vmem:[#allocation1 + $0x50] sm:$0x3]  }
  0x52   :  { %1243 = vst [vmem:[#allocation0 + $0x41] sm:$0x1] %v1241_v36   ;;  %1245 = vst [vmem:[#allocation0 + $0xc0] sm:$0x2] %v1241_v36   ;;  %v1283_v43 = vld [vmem:[#allocation1 + $0x178] sm:$0x3]  }
  0x53   :  { %1249 = vst [vmem:[#allocation0 + $0x49] sm:$0x1] %v1247_v37   ;;  %1251 = vst [vmem:[#allocation0 + $0xc8] sm:$0x2] %v1247_v37   ;;  %v1289_v44 = vld [vmem:[#allocation1 + $0xb8] sm:$0x3]  }
  0x54   :  { %1255 = vst [vmem:[#allocation0 + $0x51] sm:$0x1] %v1253_v38   ;;  %1257 = vst [vmem:[#allocation0 + $0xd0] sm:$0x2] %v1253_v38   ;;  %v1295_v45 = vld [vmem:[#allocation1 + $0xc0] sm:$0x3]  }
  0x55   :  { %1261 = vst [vmem:[#allocation0 + $0x59] sm:$0x1] %v1259_v39   ;;  %1263 = vst [vmem:[#allocation0 + $0xd8] sm:$0x2] %v1259_v39   ;;  %v1301_v46 = vld [vmem:[#allocation1 + $0x70] sm:$0x3]  }
  0x56   :  { %1267 = vst [vmem:[#allocation0 + $0x42] sm:$0x1] %v1265_v40   ;;  %1269 = vst [vmem:[#allocation0 + $0xc1] sm:$0x2] %v1265_v40   ;;  %v1307_v47 = vld [vmem:[#allocation1 + $0x118] sm:$0x3]  }
  0x57   :  { %1273 = vst [vmem:[#allocation0 + $0x4a] sm:$0x1] %v1271_v41   ;;  %1275 = vst [vmem:[#allocation0 + $0xc9] sm:$0x2] %v1271_v41   ;;  %v1313_v48 = vld [vmem:[#allocation1 + $0x198] sm:$0x3]  }
  0x58   :  { %1279 = vst [vmem:[#allocation0 + $0x52] sm:$0x1] %v1277_v42   ;;  %1281 = vst [vmem:[#allocation0 + $0xd1] sm:$0x2] %v1277_v42   ;;  %v1319_v49 = vld [vmem:[#allocation1 + $0xf0] sm:$0x3]  }
  0x59   :  { %1285 = vst [vmem:[#allocation0 + $0x5a] sm:$0x1] %v1283_v43   ;;  %1287 = vst [vmem:[#allocation0 + $0xd9] sm:$0x2] %v1283_v43   ;;  %v1325_v50 = vld [vmem:[#allocation1 + $0xa8] sm:$0x3]  }
  0x5a   :  { %1291 = vst [vmem:[#allocation0 + $0x43] sm:$0x1] %v1289_v44   ;;  %1293 = vst [vmem:[#allocation0 + $0xc2] sm:$0x2] %v1289_v44   ;;  %v1331_v51 = vld [vmem:[#allocation1 + $0xd8] sm:$0x3]  }
  0x5b   :  { %1297 = vst [vmem:[#allocation0 + $0x4b] sm:$0x1] %v1295_v45   ;;  %1299 = vst [vmem:[#allocation0 + $0xca] sm:$0x2] %v1295_v45   ;;  %v1337_v52 = vld [vmem:[#allocation1 + $0x160] sm:$0x3]  }
  0x5c   :  { %1303 = vst [vmem:[#allocation0 + $0x53] sm:$0x1] %v1301_v46   ;;  %1305 = vst [vmem:[#allocation0 + $0xd2] sm:$0x2] %v1301_v46   ;;  %v1343_v53 = vld [vmem:[#allocation1 + $0xe0] sm:$0x3]  }
  0x5d   :  { %1309 = vst [vmem:[#allocation0 + $0x5b] sm:$0x1] %v1307_v47   ;;  %1311 = vst [vmem:[#allocation0 + $0xda] sm:$0x2] %v1307_v47   ;;  %v1349_v54 = vld [vmem:[#allocation1 + $0xe8] sm:$0x3]  }
  0x5e   :  { %1315 = vst [vmem:[#allocation0 + $0x60] sm:$0x1] %v1313_v48   ;;  %1317 = vst [vmem:[#allocation0 + $0xdf] sm:$0x2] %v1313_v48   ;;  %v1355_v55 = vld [vmem:[#allocation1 + $0x78] sm:$0x3]  }
  0x5f   :  { %1321 = vst [vmem:[#allocation0 + $0x68] sm:$0x1] %v1319_v49   ;;  %1323 = vst [vmem:[#allocation0 + $0xe7] sm:$0x2] %v1319_v49   ;;  %v1361_v56 = vld [vmem:[#allocation1 + $0x1b0] sm:$0x3]  }
  0x60   :  { %1327 = vst [vmem:[#allocation0 + $0x70] sm:$0x1] %v1325_v50   ;;  %1329 = vst [vmem:[#allocation0 + $0xef] sm:$0x2] %v1325_v50   ;;  %v1367_v57 = vld [vmem:[#allocation1 + $0xc8] sm:$0x3]  }
  0x61   :  { %1333 = vst [vmem:[#allocation0 + $0x78] sm:$0x1] %v1331_v51   ;;  %1335 = vst [vmem:[#allocation0 + $0xf7] sm:$0x2] %v1331_v51   ;;  %v1373_v58 = vld [vmem:[#allocation1 + $0x90] sm:$0x3]  }
  0x62   :  { %1339 = vst [vmem:[#allocation0 + $0x61] sm:$0x1] %v1337_v52   ;;  %1341 = vst [vmem:[#allocation0 + $0xe0] sm:$0x2] %v1337_v52   ;;  %v1379_v59 = vld [vmem:[#allocation1 + $0x1a8] sm:$0x3]  }
  0x63   :  { %1345 = vst [vmem:[#allocation0 + $0x69] sm:$0x1] %v1343_v53   ;;  %1347 = vst [vmem:[#allocation0 + $0xe8] sm:$0x2] %v1343_v53   ;;  %v1385_v60 = vld [vmem:[#allocation1 + $0x1e0] sm:$0x3]  }
  0x64   :  { %1351 = vst [vmem:[#allocation0 + $0x71] sm:$0x1] %v1349_v54   ;;  %1353 = vst [vmem:[#allocation0 + $0xf0] sm:$0x2] %v1349_v54   ;;  %v1391_v61 = vld [vmem:[#allocation1 + $0x120] sm:$0x3]  }
  0x65   :  { %1357 = vst [vmem:[#allocation0 + $0x79] sm:$0x1] %v1355_v55   ;;  %1359 = vst [vmem:[#allocation0 + $0xf8] sm:$0x2] %v1355_v55   ;;  %v1397_v62 = vld [vmem:[#allocation1 + $0x48] sm:$0x3]  }
  0x66   :  { %1363 = vst [vmem:[#allocation0 + $0x62] sm:$0x1] %v1361_v56   ;;  %1365 = vst [vmem:[#allocation0 + $0xe1] sm:$0x2] %v1361_v56   ;;  %v1403_v63 = vld [vmem:[#allocation1 + $0x148] sm:$0x3]  }
  0x67   :  { %1369 = vst [vmem:[#allocation0 + $0x6a] sm:$0x1] %v1367_v57   ;;  %1371 = vst [vmem:[#allocation0 + $0xe9] sm:$0x2] %v1367_v57   ;;  %v1413_v0 = vld [vmem:[#allocation0] sm:$0xf] }
  0x68   :  { %1375 = vst [vmem:[#allocation0 + $0x72] sm:$0x1] %v1373_v58   ;;  %1377 = vst [vmem:[#allocation0 + $0xf1] sm:$0x2] %v1373_v58   ;;  %v1419_v1 = vld [vmem:[#allocation0 + $0x8] sm:$0xf] }
  0x69   :  { %1381 = vst [vmem:[#allocation0 + $0x7a] sm:$0x1] %v1379_v59   ;;  %1383 = vst [vmem:[#allocation0 + $0xf9] sm:$0x2] %v1379_v59   ;;  %v1426_v2 = vld [vmem:[#allocation0 + $0x10] sm:$0xf] }
  0x6a   :  { %1387 = vst [vmem:[#allocation0 + $0x63] sm:$0x1] %v1385_v60   ;;  %1389 = vst [vmem:[#allocation0 + $0xe2] sm:$0x2] %v1385_v60   ;;  %v1852_v3 = vmov 0.0  }
  0x6b   :  { %1393 = vst [vmem:[#allocation0 + $0x6b] sm:$0x1] %v1391_v61   ;;  %1395 = vst [vmem:[#allocation0 + $0xea] sm:$0x2] %v1391_v61   ;;  %v1414_v4 = vpack.c.bf16 %v1852_v3, %v1413_v0  ;;  %v1420_v5 = vpack.c.bf16 %v1852_v3, %v1419_v1  ;;  %v1427_v6 = vpack.c.bf16 %v1852_v3, %v1426_v2  ;;  %v1434_v7 = vld [vmem:[#allocation0 + $0x18] sm:$0xf] }
  0x6c   :  { %1399 = vst [vmem:[#allocation0 + $0x73] sm:$0x1] %v1397_v62   ;;  %1401 = vst [vmem:[#allocation0 + $0xf2] sm:$0x2] %v1397_v62   ;;  %v1442_v8 = vld [vmem:[#allocation0 + $0x20] sm:$0xf]  ;;  %v1435_v10 = vpack.c.bf16 %v1852_v3, %v1434_v7 }
  0x6d   :  { %1405 = vst [vmem:[#allocation0 + $0x7b] sm:$0x1] %v1403_v63   ;;  %1407 = vst [vmem:[#allocation0 + $0xfa] sm:$0x2] %v1403_v63   ;;  %v1450_v9 = vld [vmem:[#allocation0 + $0x28] sm:$0xf]  ;;  %v1443_v11 = vpack.c.bf16 %v1852_v3, %v1442_v8 }
  0x6e   :  { %v1451_v12 = vpack.c.bf16 %v1852_v3, %v1450_v9  ;;  %v1458_v13 = vld [vmem:[#allocation0 + $0x30] sm:$0xf]  ;;  %v1466_v14 = vld [vmem:[#allocation0 + $0x38] sm:$0xf]  ;;  %v1474_v15 = vld [vmem:[#allocation0 + $0x40] sm:$0xf] }
  0x6f   :  { %1417 = vst [vmem:[%s2184_s1] sm:$0x3] %v1414_v4  ;;  %1820 = vst [vmem:[%s2184_s1 + $0x2] sm:$0x3] %v1420_v5  ;;  %v1459_v16 = vpack.c.bf16 %v1852_v3, %v1458_v13  ;;  %v1467_v17 = vpack.c.bf16 %v1852_v3, %v1466_v14  ;;  %v1475_v18 = vpack.c.bf16 %v1852_v3, %v1474_v15  ;;  %v1482_v19 = vld [vmem:[#allocation0 + $0x48] sm:$0xf] }
  0x70   :  { %1821 = vst [vmem:[%s2184_s1 + $0x4] sm:$0x3] %v1427_v6  ;;  %v1490_v20 = vld [vmem:[#allocation0 + $0x50] sm:$0xf]  ;;  %v1498_v21 = vld [vmem:[#allocation0 + $0x58] sm:$0xf]  ;;  %v1483_v22 = vpack.c.bf16 %v1852_v3, %v1482_v19 }
  0x71   :  { %1822 = vst [vmem:[%s2184_s1 + $0x6] sm:$0x3] %v1435_v10  ;;  %1823 = vst [vmem:[%s2184_s1 + $0x8] sm:$0x3] %v1443_v11  ;;  %v1491_v23 = vpack.c.bf16 %v1852_v3, %v1490_v20  ;;  %v1499_v24 = vpack.c.bf16 %v1852_v3, %v1498_v21  ;;  %v1538_v25 = vld [vmem:[#allocation0 + $0x80] sm:$0xf] }
  0x72   :  { %1824 = vst [vmem:[%s2184_s1 + $0xa] sm:$0x3] %v1451_v12  ;;  %v1546_v26 = vld [vmem:[#allocation0 + $0x88] sm:$0xf]  ;;  %v1554_v27 = vld [vmem:[#allocation0 + $0x90] sm:$0xf]  ;;  %v1539_v28 = vpack.c.bf16 %v1852_v3, %v1538_v25 }
  0x73   :  { %1825 = vst [vmem:[%s2184_s1 + $0xc] sm:$0x3] %v1459_v16  ;;  %1826 = vst [vmem:[%s2184_s1 + $0xe] sm:$0x3] %v1467_v17  ;;  %v1547_v29 = vpack.c.bf16 %v1852_v3, %v1546_v26  ;;  %v1555_v30 = vpack.c.bf16 %v1852_v3, %v1554_v27  ;;  %v1562_v31 = vld [vmem:[#allocation0 + $0x98] sm:$0xf] }
  0x74   :  { %1827 = vst [vmem:[%s2184_s1 + $0x10] sm:$0x3] %v1475_v18  ;;  %v1570_v32 = vld [vmem:[#allocation0 + $0xa0] sm:$0xf]  ;;  %v1578_v33 = vld [vmem:[#allocation0 + $0xa8] sm:$0xf]  ;;  %v1563_v36 = vpack.c.bf16 %v1852_v3, %v1562_v31 }
  0x75   :  { %1828 = vst [vmem:[%s2184_s1 + $0x12] sm:$0x3] %v1483_v22  ;;  %1829 = vst [vmem:[%s2184_s1 + $0x14] sm:$0x3] %v1491_v23  ;;  %v1506_v34 = vld [vmem:[#allocation0 + $0x60] sm:$0xf]  ;;  %v1571_v37 = vpack.c.bf16 %v1852_v3, %v1570_v32  ;;  %v1579_v38 = vpack.c.bf16 %v1852_v3, %v1578_v33 }
  0x76   :  { %1830 = vst [vmem:[%s2184_s1 + $0x16] sm:$0x3] %v1499_v24  ;;  %v1514_v35 = vld [vmem:[#allocation0 + $0x68] sm:$0xf]  ;;  %v1586_v39 = vld [vmem:[#allocation0 + $0xb0] sm:$0xf]  ;;  %v1507_v40 = vpack.c.bf16 %v1852_v3, %v1506_v34 }
  0x77   :  { %v1515_v41 = vpack.c.bf16 %v1852_v3, %v1514_v35  ;;  %v1522_v42 = vld [vmem:[#allocation0 + $0x70] sm:$0xf]  ;;  %v1530_v43 = vld [vmem:[#allocation0 + $0x78] sm:$0xf]  ;;  %1835 = vst [vmem:[%s2184_s1 + $0x20] sm:$0x3] %v1539_v28  ;;  %v1587_v44 = vpack.c.bf16 %v1852_v3, %v1586_v39 }
  0x78   :  { %1836 = vst [vmem:[%s2184_s1 + $0x22] sm:$0x3] %v1547_v29  ;;  %1837 = vst [vmem:[%s2184_s1 + $0x24] sm:$0x3] %v1555_v30  ;;  %v1594_v45 = vld [vmem:[#allocation0 + $0xb8] sm:$0xf]  ;;  %v1523_v46 = vpack.c.bf16 %v1852_v3, %v1522_v42  ;;  %v1531_v47 = vpack.c.bf16 %v1852_v3, %v1530_v43 }
  0x79   :  { %1838 = vst [vmem:[%s2184_s1 + $0x26] sm:$0x3] %v1563_v36  ;;  %1839 = vst [vmem:[%s2184_s1 + $0x28] sm:$0x3] %v1571_v37  ;;  %v1595_v48 = vpack.c.bf16 %v1852_v3, %v1594_v45  ;;  %v1602_v49 = vld [vmem:[#allocation0 + $0xc0] sm:$0xf] }
  0x7a   :  { %1840 = vst [vmem:[%s2184_s1 + $0x2a] sm:$0x3] %v1579_v38  ;;  %v1610_v50 = vld [vmem:[#allocation0 + $0xc8] sm:$0xf]  ;;  %v1618_v51 = vld [vmem:[#allocation0 + $0xd0] sm:$0xf]  ;;  %v1603_v52 = vpack.c.bf16 %v1852_v3, %v1602_v49 }
  0x7b   :  { %1831 = vst [vmem:[%s2184_s1 + $0x18] sm:$0x3] %v1507_v40  ;;  %1832 = vst [vmem:[%s2184_s1 + $0x1a] sm:$0x3] %v1515_v41  ;;  %v1611_v53 = vpack.c.bf16 %v1852_v3, %v1610_v50  ;;  %v1619_v54 = vpack.c.bf16 %v1852_v3, %v1618_v51  ;;  %v1626_v55 = vld [vmem:[#allocation0 + $0xd8] sm:$0xf] }
  0x7c   :  { %1841 = vst [vmem:[%s2184_s1 + $0x2c] sm:$0x3] %v1587_v44  ;;  %v1634_v56 = vld [vmem:[#allocation0 + $0xe0] sm:$0xf]  ;;  %v1642_v57 = vld [vmem:[#allocation0 + $0xe8] sm:$0xf]  ;;  %v1627_v58 = vpack.c.bf16 %v1852_v3, %v1626_v55 }
  0x7d   :  { %1833 = vst [vmem:[%s2184_s1 + $0x1c] sm:$0x3] %v1523_v46  ;;  %1834 = vst [vmem:[%s2184_s1 + $0x1e] sm:$0x3] %v1531_v47  ;;  %v1635_v59 = vpack.c.bf16 %v1852_v3, %v1634_v56  ;;  %v1643_v60 = vpack.c.bf16 %v1852_v3, %v1642_v57  ;;  %v1650_v61 = vld [vmem:[#allocation0 + $0xf0] sm:$0xf] }
  0x7e   :  { %1842 = vst [vmem:[%s2184_s1 + $0x2e] sm:$0x3] %v1595_v48  ;;  %v1658_v62 = vld [vmem:[#allocation0 + $0xf8] sm:$0xf]  ;;  %1843 = vst [vmem:[%s2184_s1 + $0x30] sm:$0x3] %v1603_v52  ;;  %v1651_v63 = vpack.c.bf16 %v1852_v3, %v1650_v61 }
  0x7f   :  { %1844 = vst [vmem:[%s2184_s1 + $0x32] sm:$0x3] %v1611_v53  ;;  %1845 = vst [vmem:[%s2184_s1 + $0x34] sm:$0x3] %v1619_v54  ;;  %v1659_v0 = vpack.c.bf16 %v1852_v3, %v1658_v62 }
  0x80   :  { %1846 = vst [vmem:[%s2184_s1 + $0x36] sm:$0x3] %v1627_v58  ;;  %1847 = vst [vmem:[%s2184_s1 + $0x38] sm:$0x3] %v1635_v59 }
  0x81   :  { %1848 = vst [vmem:[%s2184_s1 + $0x3a] sm:$0x3] %v1643_v60  ;;  %1849 = vst [vmem:[%s2184_s1 + $0x3c] sm:$0x3] %v1651_v63 }
  0x82   :  { %1850 = vst [vmem:[%s2184_s1 + $0x3e] sm:$0x3] %v1659_v0 }

// kernel: generator_cifar_forward.4
= control target key start
LH: loop header
LB: loop body
LE: loop exit
PB: predicated region body
PF: predicated region fallthrough
CT: control target
= control target key end

     0   :  { %9 = vsyncpa [#allocation4], 0  ;;  %s2830_s0 = inlined_call_operand.vmem [shape: bf16[1,16,128], index: 0, kind: input, shape index: {}]   ;;  %s2831_s1 = inlined_call_operand.hbm [shape: bf16[1,128,8192], index: 1, kind: input, shape index: {}]   ;;  %s2832_s2 = inlined_call_operand.vmem [shape: bf16[1,16,8192], index: 2, kind: output, shape index: {0}]   ;;  %s2833_s3 = inlined_call_operand.vmem [shape: f32[1,1,16,8192], index: 3, kind: output, shape index: {1}]  }
   0x1   :  { %11 = vsyncpa [#allocation4 + $0x1], 0  ;;  %s2430_s12 = smov 0   ;;  %s2432_s13 = smov 0  }
   0x2   :  { %s2434_s14 = smov 0   ;;  %s2436_s15 = smov 0  }
   0x3   :  { %s2438_s16 = smov 0   ;;  %s2440_s17 = smov 0  }
   0x4 LB: > { %s2081_s18 = sadd.s32 4294967295, %s2403_s17   ;;  %s35_s19 = sadd.s32 1, %s2399_s16  ;;  %s2403_s17 = sphi %s2440_s17, %s17_s17   ;;  %s2399_s16 = sphi %s2438_s16, %s2842_s16   ;;  %s2395_s15 = sphi %s2436_s15, %s2841_s15   ;;  %s2391_s14 = sphi %s2434_s14, %s2840_s14   ;;  %s2387_s13 = sphi %s2432_s13, %s2839_s13   ;;  %s2383_s12 = sphi %s2430_s12, %s2838_s12  }
   0x5   : > { %p37_p0 = scmp.ge.s32.totalorder %s35_s19, 4  ;;  %s84_s20 = sadd.s32 1, %s2391_s14 }
   0x6   : > { %p91_p1 = scmp.ne.s32.totalorder %s2391_s14, %s2387_s13  ;;  %p92_p2 = scmp.eq.s32.totalorder %s2403_s17, 0 }
   0x7   : > { %s2844_s19 = smov (%p37_p0, %s35_s19), 0  ;;  %p97_p4 = scmp.ne.s32.totalorder %s2387_s13, %s2383_s12 }
   0x8   : > { %p2466_p3 = por %p92_p2, %p91_p1  ;;  %s80_s22 = ssub.s32 %s2399_s16, %s2844_s19 }
   0x9   : > { %p98_p5 = scmp.eq.s32.totalorder %s2081_s18, 0  ;;  %p82_p6 = scmp.eq.s32.totalorder %s80_s22, 0 }
   0xa   : > { %p125_p7 = scmp.eq.s32.totalorder %s2081_s18, 3  ;;  %p2271_p10 = scmp.lt.s32.totalorder %s2403_s17, 4 }
   0xb   : > { %p2473_p8 = por %p98_p5, %p97_p4  ;;  %s197_s26 = sand.u32 1, %s2391_s14  }
   0xc   : > { %s2478_s24 = scalar_select %p82_p6, %s2391_s14, %s84_s20  }
   0xd   : > { %p2480_p9 = por %p125_p7, %p91_p1  ;;  %s2246_s27 = sshll.u32 %s2399_s16, 10 }
   0xe   : > { %s2086_s28 = sshll.u32 %s197_s26, 10  ;;  %s212_s4 = scalar_lea.hbm %s2831_s1, %s2246_s27 }
   0xf   : > { %s201_s5 = scalar_lea.vmem [#allocation3], %s2086_s28  ;;  %p2492_p11 = pnand %p2271_p10, %p2466_p3 }
  0x10   : > { %s213_s6 = sshll.u32 %s201_s5, 4  ;;  %p2089_p12 = scmp.ge.s32.totalorder %s2403_s17, 1  ;;  %s214_s6 = int_to_ptr.vmem [resolvable:$true] %s213_s6 }
  0x11   : > { %s198_s8 = scalar_lea.sflag [#allocation4], %s197_s26  ;;  %p2327_p13 = pneg %p2492_p11 }
  0x12   : > { %s2338_s9 = scalar_lea.vmem %s214_s6, 16384  ;;  %s2405_s10 = smov [#allocation3]  }
  0x13   : > { %p2339_p0 = scmp.ne.s32.totalorder %s214_s6, %s2338_s9  ;;  %s2343_s11 = sshll.u32 %s2405_s10, 4  ;;  %s2344_s11 = int_to_ptr.vmem [resolvable:$false] %s2343_s11 }
  0x14   : > { %s2345_s12 = scalar_lea.vmem %s2344_s11, 32768  ;;  %p2346_p4 = scmp.lt.s32.totalorder %s214_s6, %s2344_s11 }
  0x15   : > { %p2341_p1 = pnand %p2339_p0, %p2327_p13  ;;  %p2347_p5 = scmp.lt.s32.totalorder %s2345_s12, %s2338_s9 }
  0x17   : > { %p2342_p2 = pneg %p2341_p1  ;;  %p2348_p3 = por %p2347_p5, %p2346_p4 }
  0x19   : > { %p2349_p6 = pnand %p2348_p3, %p2342_p2 }
  0x1b   : > { %2352 = shalt.err (!%p2349_p6)
}
  0x1c   : > { %s2406_s18 = smov 4096   ;;  %s2407_s20 = smov 1024  }
  0x1d   : > { %s2408_s21 = smov 64   ;;  %p221_p7 = scmp.lt.s32.totalorder %s2403_s17, 5 }
  0x1e   : > { %2270 = dma.hbm_to_vmem [thread:$0]  (!%p2492_p11), %s212_s4, 16384, %s214_s6, %s198_s8, %s2406_s18, %s2407_s20, %s2408_s21  }
  0x1f   : > { %p222_p10 = pnand %p2089_p12, %p221_p7 }
  0x20   : > { %s2505_s22 = sand.u32 (!%p222_p10), 1, %s2387_s13  }
  0x21   : > { %225 = sbr.rel (%p222_p10) target bundleno = 401 (0x191), region = 28  ;;  %s2090_s26 = sshll.u32 (!%p222_p10), %s2505_s22, 10 }
  0x22   : > { %s228_s27 = scalar_lea.sflag (!%p222_p10), [#allocation4], %s2505_s22  ;;  %s2509_s28 = scalar_lea.vmem (!%p222_p10), [#allocation3], %s2090_s26 }
  0x26   : > { %2378 = dma.done.wait (%p2473_p8), %s228_s27, 16384  }
  0x27   : > { %2380 = vsyncadd (%p2473_p8), %s228_s27, 4294950912  ;;  %v2409_v0 = vmov 0   ;;  %v470_v1 = vld [vmem:[%s2509_s28 + $0x380] sm:$0xff]  ;;  %v471_v3 = vld [vmem:[%s2509_s28 + $0x388] sm:$0xff]  ;;  %s2091_s30 = sshll.u32 %s2505_s22, 7  ;;  %s2092_s4 = sshll.u32 %s2505_s22, 8 }
  0x28   : > { %1164 = vmatprep.mubr.bf16.mxu0 %v2409_v0  ;;  %1207 = vmatprep.mubr.bf16.mxu1 %v2409_v0  ;;  %v478_v2 = vld [vmem:[%s2509_s28 + $0x3c0] sm:$0xff]  ;;  %v479_v5 = vld [vmem:[%s2509_s28 + $0x3c8] sm:$0xff]  ;;  %v472_v63 = vld [vmem:[%s2509_s28 + $0x390] sm:$0xff]  ;;  %s2666_s5 = scalar_lea.vmem [#allocation5], %s2091_s30  ;;  %s2670_s6 = scalar_lea.vmem [#allocation6], %s2092_s4 }
  0x29   : > { %v2207_v4 = vcombine.high %v470_v1, %v478_v2  ;;  %v2206_v6 = vcombine.low %v470_v1, %v478_v2  ;;  %v454_v7 = vld [vmem:[%s2509_s28 + $0x300] sm:$0xff]  ;;  %v2209_v9 = vcombine.high %v471_v3, %v479_v5  ;;  %v2208_v10 = vcombine.low %v471_v3, %v479_v5  ;;  %v455_v12 = vld [vmem:[%s2509_s28 + $0x308] sm:$0xff]  ;;  %v480_v1 = vld [vmem:[%s2509_s28 + $0x3d0] sm:$0xff]  ;;  %s2263_s7 = sshll.u32 (%p2480_p9), %s2395_s15, 6 }
  0x2a   : > { %v462_v8 = vld [vmem:[%s2509_s28 + $0x340] sm:$0xff]  ;;  %v463_v13 = vld [vmem:[%s2509_s28 + $0x348] sm:$0xff]  ;;  %v473_v2 = vld [vmem:[%s2509_s28 + $0x398] sm:$0xff]  ;;  %s1801_s10 = scalar_lea.vmem (%p2480_p9), %s2832_s2, %s2263_s7 }
  0x2b   : > { %v2191_v11 = vcombine.high %v454_v7, %v462_v8  ;;  %v438_v14 = vld [vmem:[%s2509_s28 + $0x280] sm:$0xff]  ;;  %1132 = vmatprep.subr.bf16.mxu0 %v2207_v4  ;;  %v2193_v15 = vcombine.high %v455_v12, %v463_v13  ;;  %v439_v17 = vld [vmem:[%s2509_s28 + $0x288] sm:$0xff]  ;;  %1175 = vmatprep.subr.bf16.mxu1 %v2209_v9  ;;  %v2190_v19 = vcombine.low %v454_v7, %v462_v8  ;;  %v481_v3 = vld [vmem:[%s2509_s28 + $0x3d8] sm:$0xff] }
  0x2c   : > { %v446_v16 = vld [vmem:[%s2509_s28 + $0x2c0] sm:$0xff]  ;;  %v447_v18 = vld [vmem:[%s2509_s28 + $0x2c8] sm:$0xff]  ;;  %1133 = vmatpush1.bf16.msra.mxu0 %v2206_v6  ;;  %1176 = vmatpush1.bf16.msra.mxu1 %v2208_v10  ;;  %v2192_v20 = vcombine.low %v455_v12, %v463_v13  ;;  %v2211_v6 = vcombine.high %v472_v63, %v480_v1  ;;  %v2213_v7 = vcombine.high %v473_v2, %v481_v3  ;;  %v456_v8 = vld [vmem:[%s2509_s28 + $0x310] sm:$0xff] }
  0x2d   : > { %1134 = vmatprep.subr.bf16.mxu0 %v2191_v11  ;;  %v2175_v21 = vcombine.high %v438_v14, %v446_v16  ;;  %1177 = vmatprep.subr.bf16.mxu1 %v2193_v15  ;;  %v2177_v22 = vcombine.high %v439_v17, %v447_v18  ;;  %v422_v23 = vld [vmem:[%s2509_s28 + $0x200] sm:$0xff]  ;;  %v423_v25 = vld [vmem:[%s2509_s28 + $0x208] sm:$0xff]  ;;  %v2174_v27 = vcombine.low %v438_v14, %v446_v16  ;;  %v464_v9 = vld [vmem:[%s2509_s28 + $0x350] sm:$0xff] }
  0x2e   : > { %v430_v24 = vld [vmem:[%s2509_s28 + $0x240] sm:$0xff]  ;;  %v431_v26 = vld [vmem:[%s2509_s28 + $0x248] sm:$0xff]  ;;  %v2176_v28 = vcombine.low %v439_v17, %v447_v18  ;;  %v457_v11 = vld [vmem:[%s2509_s28 + $0x318] sm:$0xff]  ;;  %v2210_v13 = vcombine.low %v472_v63, %v480_v1  ;;  %v2212_v14 = vcombine.low %v473_v2, %v481_v3  ;;  %v2195_v15 = vcombine.high %v456_v8, %v464_v9 }
  0x2f   : > { %v2159_v29 = vcombine.high %v422_v23, %v430_v24  ;;  %v2161_v30 = vcombine.high %v423_v25, %v431_v26  ;;  %v406_v31 = vld [vmem:[%s2509_s28 + $0x180] sm:$0xff]  ;;  %v407_v33 = vld [vmem:[%s2509_s28 + $0x188] sm:$0xff]  ;;  %v2158_v35 = vcombine.low %v422_v23, %v430_v24  ;;  %v2160_v36 = vcombine.low %v423_v25, %v431_v26  ;;  %v465_v12 = vld [vmem:[%s2509_s28 + $0x358] sm:$0xff] }
  0x30   : > { %1135 = vmatpush1.bf16.msra.mxu0 %v2190_v19  ;;  %1178 = vmatpush1.bf16.msra.mxu1 %v2192_v20  ;;  %v414_v32 = vld [vmem:[%s2509_s28 + $0x1c0] sm:$0xff]  ;;  %v415_v34 = vld [vmem:[%s2509_s28 + $0x1c8] sm:$0xff]  ;;  %v2197_v16 = vcombine.high %v457_v11, %v465_v12  ;;  %v440_v17 = vld [vmem:[%s2509_s28 + $0x290] sm:$0xff] }
  0x31   : > { %1136 = vmatprep.subr.bf16.mxu0 %v2175_v21  ;;  %1179 = vmatprep.subr.bf16.mxu1 %v2177_v22  ;;  %v2143_v37 = vcombine.high %v406_v31, %v414_v32  ;;  %v2145_v38 = vcombine.high %v407_v33, %v415_v34  ;;  %v390_v39 = vld [vmem:[%s2509_s28 + $0x100] sm:$0xff]  ;;  %v391_v41 = vld [vmem:[%s2509_s28 + $0x108] sm:$0xff]  ;;  %v2142_v43 = vcombine.low %v406_v31, %v414_v32  ;;  %v448_v18 = vld [vmem:[%s2509_s28 + $0x2d0] sm:$0xff] }
  0x32   : > { %v398_v40 = vld [vmem:[%s2509_s28 + $0x140] sm:$0xff]  ;;  %v399_v42 = vld [vmem:[%s2509_s28 + $0x148] sm:$0xff]  ;;  %v2144_v44 = vcombine.low %v407_v33, %v415_v34  ;;  %v441_v19 = vld [vmem:[%s2509_s28 + $0x298] sm:$0xff]  ;;  %v2194_v21 = vcombine.low %v456_v8, %v464_v9  ;;  %v2196_v22 = vcombine.low %v457_v11, %v465_v12  ;;  %v2179_v23 = vcombine.high %v440_v17, %v448_v18 }
  0x33   : > { %v2127_v45 = vcombine.high %v390_v39, %v398_v40  ;;  %v2129_v46 = vcombine.high %v391_v41, %v399_v42  ;;  %v374_v47 = vld [vmem:[%s2509_s28 + $0x80] sm:$0xff]  ;;  %v375_v49 = vld [vmem:[%s2509_s28 + $0x88] sm:$0xff]  ;;  %v2126_v51 = vcombine.low %v390_v39, %v398_v40  ;;  %v2128_v52 = vcombine.low %v391_v41, %v399_v42  ;;  %v449_v20 = vld [vmem:[%s2509_s28 + $0x2d8] sm:$0xff] }
  0x34   : > { %1137 = vmatpush1.bf16.msra.mxu0 %v2174_v27  ;;  %1180 = vmatpush1.bf16.msra.mxu1 %v2176_v28  ;;  %v382_v48 = vld [vmem:[%s2509_s28 + $0xc0] sm:$0xff]  ;;  %v383_v50 = vld [vmem:[%s2509_s28 + $0xc8] sm:$0xff]  ;;  %v2181_v24 = vcombine.high %v441_v19, %v449_v20  ;;  %v424_v25 = vld [vmem:[%s2509_s28 + $0x210] sm:$0xff] }
  0x35   : > { %1138 = vmatprep.subr.bf16.mxu0 %v2159_v29  ;;  %1181 = vmatprep.subr.bf16.mxu1 %v2161_v30  ;;  %v2111_v53 = vcombine.high %v374_v47, %v382_v48  ;;  %v2113_v54 = vcombine.high %v375_v49, %v383_v50  ;;  %v358_v55 = vld [vmem:[%s2509_s28] sm:$0xff]  ;;  %v359_v57 = vld [vmem:[%s2509_s28 + $0x8] sm:$0xff]  ;;  %v2110_v59 = vcombine.low %v374_v47, %v382_v48  ;;  %v432_v26 = vld [vmem:[%s2509_s28 + $0x250] sm:$0xff] }
  0x36   : > { %v366_v56 = vld [vmem:[%s2509_s28 + $0x40] sm:$0xff]  ;;  %v367_v58 = vld [vmem:[%s2509_s28 + $0x48] sm:$0xff]  ;;  %v2112_v60 = vcombine.low %v375_v49, %v383_v50  ;;  %v425_v27 = vld [vmem:[%s2509_s28 + $0x218] sm:$0xff]  ;;  %v2178_v29 = vcombine.low %v440_v17, %v448_v18  ;;  %v2180_v30 = vcombine.low %v441_v19, %v449_v20  ;;  %v2163_v31 = vcombine.high %v424_v25, %v432_v26 }
  0x37   : > { %v2095_v61 = vcombine.high %v358_v55, %v366_v56  ;;  %v2097_v62 = vcombine.high %v359_v57, %v367_v58  ;;  %v2094_v4 = vcombine.low %v358_v55, %v366_v56  ;;  %v2096_v5 = vcombine.low %v359_v57, %v367_v58  ;;  %v2558_v10 = vld [vmem:[%s2830_s0] sm:$0xff]   ;;  %v433_v28 = vld [vmem:[%s2509_s28 + $0x258] sm:$0xff]  ;;  %v408_v33 = vld [vmem:[%s2509_s28 + $0x190] sm:$0xff] }
  0x38   : > { %1139 = vmatpush1.bf16.msra.mxu0 %v2158_v35  ;;  %1182 = vmatpush1.bf16.msra.mxu1 %v2160_v36  ;;  %v2165_v32 = vcombine.high %v425_v27, %v433_v28  ;;  %v416_v34 = vld [vmem:[%s2509_s28 + $0x1d0] sm:$0xff]  ;;  %v409_v35 = vld [vmem:[%s2509_s28 + $0x198] sm:$0xff]  ;;  %v474_v2 = vld [vmem:[%s2509_s28 + $0x3a0] sm:$0xff] }
  0x39   : > { %1140 = vmatprep.subr.bf16.mxu0 %v2143_v37  ;;  %1183 = vmatprep.subr.bf16.mxu1 %v2145_v38  ;;  %v417_v36 = vld [vmem:[%s2509_s28 + $0x1d8] sm:$0xff]  ;;  %v2162_v37 = vcombine.low %v424_v25, %v432_v26  ;;  %v2164_v38 = vcombine.low %v425_v27, %v433_v28  ;;  %v2147_v39 = vcombine.high %v408_v33, %v416_v34  ;;  %v392_v41 = vld [vmem:[%s2509_s28 + $0x110] sm:$0xff]  ;;  %v482_v3 = vld [vmem:[%s2509_s28 + $0x3e0] sm:$0xff] }
  0x3a   : > { %v2149_v40 = vcombine.high %v409_v35, %v417_v36  ;;  %v400_v42 = vld [vmem:[%s2509_s28 + $0x150] sm:$0xff]  ;;  %v2215_v8 = vcombine.high %v474_v2, %v482_v3  ;;  %v458_v11 = vld [vmem:[%s2509_s28 + $0x320] sm:$0xff] }
  0x3b   : > { %v2131_v47 = vcombine.high %v392_v41, %v400_v42  ;;  %v376_v49 = vld [vmem:[%s2509_s28 + $0x90] sm:$0xff]  ;;  %v466_v12 = vld [vmem:[%s2509_s28 + $0x360] sm:$0xff] }
  0x3c   : > { %1141 = vmatpush1.bf16.msra.mxu0 %v2142_v43  ;;  %1184 = vmatpush1.bf16.msra.mxu1 %v2144_v44  ;;  %v393_v43 = vld [vmem:[%s2509_s28 + $0x118] sm:$0xff]  ;;  %v384_v50 = vld [vmem:[%s2509_s28 + $0xd0] sm:$0xff]  ;;  %v2199_v17 = vcombine.high %v458_v11, %v466_v12  ;;  %v442_v19 = vld [vmem:[%s2509_s28 + $0x2a0] sm:$0xff] }
  0x3d   : > { %1142 = vmatprep.subr.bf16.mxu0 %v2127_v45  ;;  %1185 = vmatprep.subr.bf16.mxu1 %v2129_v46  ;;  %v401_v44 = vld [vmem:[%s2509_s28 + $0x158] sm:$0xff]  ;;  %v2146_v45 = vcombine.low %v408_v33, %v416_v34  ;;  %v2148_v46 = vcombine.low %v409_v35, %v417_v36  ;;  %v2115_v55 = vcombine.high %v376_v49, %v384_v50  ;;  %v360_v57 = vld [vmem:[%s2509_s28 + $0x10] sm:$0xff]  ;;  %v450_v20 = vld [vmem:[%s2509_s28 + $0x2e0] sm:$0xff] }
  0x3e   : > { %v2133_v48 = vcombine.high %v393_v43, %v401_v44  ;;  %v368_v58 = vld [vmem:[%s2509_s28 + $0x50] sm:$0xff]  ;;  %v2183_v25 = vcombine.high %v442_v19, %v450_v20  ;;  %v426_v27 = vld [vmem:[%s2509_s28 + $0x220] sm:$0xff] }
  0x3f   : > { %v2099_v63 = vcombine.high %v360_v57, %v368_v58  ;;  %v434_v28 = vld [vmem:[%s2509_s28 + $0x260] sm:$0xff] }
  0x40   : > { %1143 = vmatpush1.bf16.msra.mxu0 %v2126_v51  ;;  %1186 = vmatpush1.bf16.msra.mxu1 %v2128_v52  ;;  %v377_v51 = vld [vmem:[%s2509_s28 + $0x98] sm:$0xff]  ;;  %v2167_v33 = vcombine.high %v426_v27, %v434_v28  ;;  %v410_v35 = vld [vmem:[%s2509_s28 + $0x1a0] sm:$0xff] }
  0x41   : > { %1144 = vmatprep.subr.bf16.mxu0 %v2111_v53  ;;  %1187 = vmatprep.subr.bf16.mxu1 %v2113_v54  ;;  %v385_v52 = vld [vmem:[%s2509_s28 + $0xd8] sm:$0xff]  ;;  %v2130_v53 = vcombine.low %v392_v41, %v400_v42  ;;  %v2132_v54 = vcombine.low %v393_v43, %v401_v44  ;;  %v418_v36 = vld [vmem:[%s2509_s28 + $0x1e0] sm:$0xff] }
  0x42   : > { %v2117_v56 = vcombine.high %v377_v51, %v385_v52  ;;  %v2151_v41 = vcombine.high %v410_v35, %v418_v36  ;;  %v394_v43 = vld [vmem:[%s2509_s28 + $0x120] sm:$0xff] }
  0x43   : > { %v402_v44 = vld [vmem:[%s2509_s28 + $0x160] sm:$0xff] }
  0x44   : > { %1145 = vmatpush1.bf16.msra.mxu0 %v2110_v59  ;;  %1188 = vmatpush1.bf16.msra.mxu1 %v2112_v60  ;;  %v361_v59 = vld [vmem:[%s2509_s28 + $0x18] sm:$0xff] }
  0x45   : > { %1146 = vmatprep.subr.bf16.mxu0 %v2095_v61  ;;  %1189 = vmatprep.subr.bf16.mxu1 %v2097_v62  ;;  %v369_v60 = vld [vmem:[%s2509_s28 + $0x58] sm:$0xff]  ;;  %v2114_v61 = vcombine.low %v376_v49, %v384_v50  ;;  %v2116_v62 = vcombine.low %v377_v51, %v385_v52  ;;  %v2135_v49 = vcombine.high %v394_v43, %v402_v44  ;;  %v378_v51 = vld [vmem:[%s2509_s28 + $0xa0] sm:$0xff] }
  0x46   : > { %v2101_v1 = vcombine.high %v361_v59, %v369_v60  ;;  %v386_v52 = vld [vmem:[%s2509_s28 + $0xe0] sm:$0xff] }
  0x48   : > { %1147 = vmatpush1.bf16.msra.mxu0 %v2094_v4  ;;  %1190 = vmatpush1.bf16.msra.mxu1 %v2096_v5  ;;  %v475_v4 = vld [vmem:[%s2509_s28 + $0x3a8] sm:$0xff] }
  0x49   : > { %1218 = vmatprep.subr.bf16.mxu0 %v2211_v6  ;;  %1261 = vmatprep.subr.bf16.mxu1 %v2213_v7  ;;  %v483_v5 = vld [vmem:[%s2509_s28 + $0x3e8] sm:$0xff]  ;;  %v2098_v6 = vcombine.low %v360_v57, %v368_v58  ;;  %v2100_v7 = vcombine.low %v361_v59, %v369_v60  ;;  %v2119_v57 = vcombine.high %v378_v51, %v386_v52  ;;  %v362_v59 = vld [vmem:[%s2509_s28 + $0x20] sm:$0xff] }
  0x4a   : > { %v2217_v9 = vcombine.high %v475_v4, %v483_v5  ;;  %v370_v60 = vld [vmem:[%s2509_s28 + $0x60] sm:$0xff] }
  0x4b   : > { %1165 = vmatmul.mubr.bf16.vlgmr.msra.gmra.mxu0 %v2558_v10  ;;  %1208 = vmatmul.mubr.bf16.vlgmr.msra.gmra.mxu1 %v2558_v10 }
  0x4c   : > { %1219 = vmatpush1.bf16.msra.mxu0 %v2210_v13  ;;  %1262 = vmatpush1.bf16.msra.mxu1 %v2212_v14  ;;  %v459_v13 = vld [vmem:[%s2509_s28 + $0x328] sm:$0xff] }
  0x4d   : > { %1220 = vmatprep.subr.bf16.mxu0 %v2195_v15  ;;  %1263 = vmatprep.subr.bf16.mxu1 %v2197_v16  ;;  %v467_v14 = vld [vmem:[%s2509_s28 + $0x368] sm:$0xff]  ;;  %v2214_v15 = vcombine.low %v474_v2, %v482_v3  ;;  %v2216_v16 = vcombine.low %v475_v4, %v483_v5  ;;  %v2103_v2 = vcombine.high %v362_v59, %v370_v60  ;;  %v476_v4 = vld [vmem:[%s2509_s28 + $0x3b0] sm:$0xff] }
  0x4e   : > { %1250 = vmatprep.mubr.bf16.mxu0 %v2409_v0  ;;  %1293 = vmatprep.mubr.bf16.mxu1 %v2409_v0  ;;  %v2201_v18 = vcombine.high %v459_v13, %v467_v14  ;;  %v484_v5 = vld [vmem:[%s2509_s28 + $0x3f0] sm:$0xff] }
  0x50   : > { %1221 = vmatpush1.bf16.msra.mxu0 %v2194_v21  ;;  %1264 = vmatpush1.bf16.msra.mxu1 %v2196_v22  ;;  %v443_v21 = vld [vmem:[%s2509_s28 + $0x2a8] sm:$0xff] }
  0x51   : > { %1222 = vmatprep.subr.bf16.mxu0 %v2179_v23  ;;  %1265 = vmatprep.subr.bf16.mxu1 %v2181_v24  ;;  %v451_v22 = vld [vmem:[%s2509_s28 + $0x2e8] sm:$0xff]  ;;  %v2198_v23 = vcombine.low %v458_v11, %v466_v12  ;;  %v2200_v24 = vcombine.low %v459_v13, %v467_v14  ;;  %v2219_v11 = vcombine.high %v476_v4, %v484_v5  ;;  %v460_v13 = vld [vmem:[%s2509_s28 + $0x330] sm:$0xff] }
  0x52   : > { %v2185_v26 = vcombine.high %v443_v21, %v451_v22  ;;  %v468_v14 = vld [vmem:[%s2509_s28 + $0x370] sm:$0xff] }
  0x54   : > { %1223 = vmatpush1.bf16.msra.mxu0 %v2178_v29  ;;  %1266 = vmatpush1.bf16.msra.mxu1 %v2180_v30  ;;  %v427_v29 = vld [vmem:[%s2509_s28 + $0x228] sm:$0xff] }
  0x55   : > { %1224 = vmatprep.subr.bf16.mxu0 %v2163_v31  ;;  %1267 = vmatprep.subr.bf16.mxu1 %v2165_v32  ;;  %v435_v30 = vld [vmem:[%s2509_s28 + $0x268] sm:$0xff]  ;;  %v2182_v31 = vcombine.low %v442_v19, %v450_v20  ;;  %v2184_v32 = vcombine.low %v443_v21, %v451_v22  ;;  %v2203_v19 = vcombine.high %v460_v13, %v468_v14  ;;  %v444_v21 = vld [vmem:[%s2509_s28 + $0x2b0] sm:$0xff] }
  0x56   : > { %v2169_v34 = vcombine.high %v427_v29, %v435_v30  ;;  %v452_v22 = vld [vmem:[%s2509_s28 + $0x2f0] sm:$0xff] }
  0x58   : > { %1225 = vmatpush1.bf16.msra.mxu0 %v2162_v37  ;;  %1268 = vmatpush1.bf16.msra.mxu1 %v2164_v38  ;;  %v411_v37 = vld [vmem:[%s2509_s28 + $0x1a8] sm:$0xff] }
  0x59   : > { %1226 = vmatprep.subr.bf16.mxu0 %v2147_v39  ;;  %1269 = vmatprep.subr.bf16.mxu1 %v2149_v40  ;;  %v419_v38 = vld [vmem:[%s2509_s28 + $0x1e8] sm:$0xff]  ;;  %v2166_v39 = vcombine.low %v426_v27, %v434_v28  ;;  %v2168_v40 = vcombine.low %v427_v29, %v435_v30  ;;  %v2187_v27 = vcombine.high %v444_v21, %v452_v22  ;;  %v428_v29 = vld [vmem:[%s2509_s28 + $0x230] sm:$0xff] }
  0x5a   : > { %v2153_v42 = vcombine.high %v411_v37, %v419_v38  ;;  %v436_v30 = vld [vmem:[%s2509_s28 + $0x270] sm:$0xff] }
  0x5c   : > { %1227 = vmatpush1.bf16.msra.mxu0 %v2146_v45  ;;  %1270 = vmatpush1.bf16.msra.mxu1 %v2148_v46  ;;  %v395_v45 = vld [vmem:[%s2509_s28 + $0x128] sm:$0xff] }
  0x5d   : > { %1228 = vmatprep.subr.bf16.mxu0 %v2131_v47  ;;  %1271 = vmatprep.subr.bf16.mxu1 %v2133_v48  ;;  %v403_v46 = vld [vmem:[%s2509_s28 + $0x168] sm:$0xff]  ;;  %v2150_v47 = vcombine.low %v410_v35, %v418_v36  ;;  %v2152_v48 = vcombine.low %v411_v37, %v419_v38  ;;  %v2171_v35 = vcombine.high %v428_v29, %v436_v30  ;;  %v412_v37 = vld [vmem:[%s2509_s28 + $0x1b0] sm:$0xff] }
  0x5e   : > { %v2137_v50 = vcombine.high %v395_v45, %v403_v46  ;;  %v420_v38 = vld [vmem:[%s2509_s28 + $0x1f0] sm:$0xff] }
  0x60   : > { %1229 = vmatpush1.bf16.msra.mxu0 %v2130_v53  ;;  %1272 = vmatpush1.bf16.msra.mxu1 %v2132_v54  ;;  %v379_v53 = vld [vmem:[%s2509_s28 + $0xa8] sm:$0xff] }
  0x61   : > { %1230 = vmatprep.subr.bf16.mxu0 %v2115_v55  ;;  %1273 = vmatprep.subr.bf16.mxu1 %v2117_v56  ;;  %v387_v54 = vld [vmem:[%s2509_s28 + $0xe8] sm:$0xff]  ;;  %v2134_v55 = vcombine.low %v394_v43, %v402_v44  ;;  %v2136_v56 = vcombine.low %v395_v45, %v403_v46  ;;  %v396_v44 = vld [vmem:[%s2509_s28 + $0x130] sm:$0xff]  ;;  %v397_v46 = vld [vmem:[%s2509_s28 + $0x138] sm:$0xff] }
  0x62   : > { %v2121_v58 = vcombine.high %v379_v53, %v387_v54  ;;  %v404_v45 = vld [vmem:[%s2509_s28 + $0x170] sm:$0xff] }
  0x64   : > { %1231 = vmatpush1.bf16.msra.mxu0 %v2114_v61  ;;  %1274 = vmatpush1.bf16.msra.mxu1 %v2116_v62  ;;  %v363_v61 = vld [vmem:[%s2509_s28 + $0x28] sm:$0xff] }
  0x65   : > { %1232 = vmatprep.subr.bf16.mxu0 %v2099_v63  ;;  %1275 = vmatprep.subr.bf16.mxu1 %v2101_v1  ;;  %v371_v62 = vld [vmem:[%s2509_s28 + $0x68] sm:$0xff]  ;;  %v2118_v63 = vcombine.low %v378_v51, %v386_v52  ;;  %v2120_v1 = vcombine.low %v379_v53, %v387_v54  ;;  %v380_v52 = vld [vmem:[%s2509_s28 + $0xb0] sm:$0xff]  ;;  %v381_v54 = vld [vmem:[%s2509_s28 + $0xb8] sm:$0xff] }
  0x66   : > { %v2105_v3 = vcombine.high %v363_v61, %v371_v62  ;;  %v388_v53 = vld [vmem:[%s2509_s28 + $0xf0] sm:$0xff] }
  0x68   : > { %1233 = vmatpush1.bf16.msra.mxu0 %v2098_v6  ;;  %1276 = vmatpush1.bf16.msra.mxu1 %v2100_v7  ;;  %v477_v6 = vld [vmem:[%s2509_s28 + $0x3b8] sm:$0xff] }
  0x69   : > { %1304 = vmatprep.subr.bf16.mxu0 %v2215_v8  ;;  %1347 = vmatprep.subr.bf16.mxu1 %v2217_v9  ;;  %v485_v7 = vld [vmem:[%s2509_s28 + $0x3f8] sm:$0xff]  ;;  %v2102_v8 = vcombine.low %v362_v59, %v370_v60  ;;  %v2104_v9 = vcombine.low %v363_v61, %v371_v62  ;;  %v364_v60 = vld [vmem:[%s2509_s28 + $0x30] sm:$0xff] }
  0x6a   : > { %v2221_v12 = vcombine.high %v477_v6, %v485_v7  ;;  %v372_v61 = vld [vmem:[%s2509_s28 + $0x70] sm:$0xff]  ;;  %v365_v62 = vld [vmem:[%s2509_s28 + $0x38] sm:$0xff] }
  0x6b   : > { %1251 = vmatmul.mubr.bf16.vlgmr.msra.gmra.mxu0 %v2558_v10  ;;  %1294 = vmatmul.mubr.bf16.vlgmr.msra.gmra.mxu1 %v2558_v10 }
  0x6c   : > { %1305 = vmatpush1.bf16.msra.mxu0 %v2214_v15  ;;  %1348 = vmatpush1.bf16.msra.mxu1 %v2216_v16  ;;  %v461_v15 = vld [vmem:[%s2509_s28 + $0x338] sm:$0xff] }
  0x6d   : > { %1306 = vmatprep.subr.bf16.mxu0 %v2199_v17  ;;  %1349 = vmatprep.subr.bf16.mxu1 %v2201_v18  ;;  %v469_v16 = vld [vmem:[%s2509_s28 + $0x378] sm:$0xff]  ;;  %v2218_v17 = vcombine.low %v476_v4, %v484_v5  ;;  %v2220_v18 = vcombine.low %v477_v6, %v485_v7  ;;  %v2106_v5 = vcombine.low %v364_v60, %v372_v61 }
  0x6e   : > { %1336 = vmatprep.mubr.bf16.mxu0 %v2409_v0  ;;  %1379 = vmatprep.mubr.bf16.mxu1 %v2409_v0  ;;  %v2205_v20 = vcombine.high %v461_v15, %v469_v16 }
  0x70   : > { %1307 = vmatpush1.bf16.msra.mxu0 %v2198_v23  ;;  %1350 = vmatpush1.bf16.msra.mxu1 %v2200_v24  ;;  %v445_v23 = vld [vmem:[%s2509_s28 + $0x2b8] sm:$0xff] }
  0x71   : > { %1308 = vmatprep.subr.bf16.mxu0 %v2183_v25  ;;  %1351 = vmatprep.subr.bf16.mxu1 %v2185_v26  ;;  %v453_v24 = vld [vmem:[%s2509_s28 + $0x2f8] sm:$0xff]  ;;  %v2202_v25 = vcombine.low %v460_v13, %v468_v14  ;;  %v2204_v26 = vcombine.low %v461_v15, %v469_v16 }
  0x72   : > { %v2189_v28 = vcombine.high %v445_v23, %v453_v24 }
  0x74   : > { %1309 = vmatpush1.bf16.msra.mxu0 %v2182_v31  ;;  %1352 = vmatpush1.bf16.msra.mxu1 %v2184_v32  ;;  %v429_v31 = vld [vmem:[%s2509_s28 + $0x238] sm:$0xff] }
  0x75   : > { %1310 = vmatprep.subr.bf16.mxu0 %v2167_v33  ;;  %1353 = vmatprep.subr.bf16.mxu1 %v2169_v34  ;;  %v437_v32 = vld [vmem:[%s2509_s28 + $0x278] sm:$0xff]  ;;  %v2186_v33 = vcombine.low %v444_v21, %v452_v22  ;;  %v2188_v34 = vcombine.low %v445_v23, %v453_v24 }
  0x76   : > { %v2173_v36 = vcombine.high %v429_v31, %v437_v32 }
  0x78   : > { %1311 = vmatpush1.bf16.msra.mxu0 %v2166_v39  ;;  %1354 = vmatpush1.bf16.msra.mxu1 %v2168_v40  ;;  %v413_v39 = vld [vmem:[%s2509_s28 + $0x1b8] sm:$0xff] }
  0x79   : > { %1312 = vmatprep.subr.bf16.mxu0 %v2151_v41  ;;  %1355 = vmatprep.subr.bf16.mxu1 %v2153_v42  ;;  %v421_v40 = vld [vmem:[%s2509_s28 + $0x1f8] sm:$0xff]  ;;  %v2170_v41 = vcombine.low %v428_v29, %v436_v30  ;;  %v2155_v42 = vcombine.high %v412_v37, %v420_v38 }
  0x7a   : > { %v2157_v43 = vcombine.high %v413_v39, %v421_v40 }
  0x7c   : > { %1313 = vmatpush1.bf16.msra.mxu0 %v2150_v47  ;;  %1356 = vmatpush1.bf16.msra.mxu1 %v2152_v48  ;;  %v405_v47 = vld [vmem:[%s2509_s28 + $0x178] sm:$0xff]  ;;  %v2154_v48 = vcombine.low %v412_v37, %v420_v38 }
  0x7d   : > { %1314 = vmatprep.subr.bf16.mxu0 %v2135_v49  ;;  %1357 = vmatprep.subr.bf16.mxu1 %v2137_v50  ;;  %v2156_v49 = vcombine.low %v413_v39, %v421_v40  ;;  %v2139_v50 = vcombine.high %v396_v44, %v404_v45  ;;  %v2141_v51 = vcombine.high %v397_v46, %v405_v47 }
  0x80   : > { %1315 = vmatpush1.bf16.msra.mxu0 %v2134_v55  ;;  %1358 = vmatpush1.bf16.msra.mxu1 %v2136_v56  ;;  %v389_v55 = vld [vmem:[%s2509_s28 + $0xf8] sm:$0xff]  ;;  %v2138_v56 = vcombine.low %v396_v44, %v404_v45 }
  0x81   : > { %1316 = vmatprep.subr.bf16.mxu0 %v2119_v57  ;;  %1359 = vmatprep.subr.bf16.mxu1 %v2121_v58  ;;  %v2140_v57 = vcombine.low %v397_v46, %v405_v47  ;;  %v2123_v58 = vcombine.high %v380_v52, %v388_v53  ;;  %v2125_v59 = vcombine.high %v381_v54, %v389_v55 }
  0x84   : > { %1317 = vmatpush1.bf16.msra.mxu0 %v2118_v63  ;;  %1360 = vmatpush1.bf16.msra.mxu1 %v2120_v1  ;;  %v373_v63 = vld [vmem:[%s2509_s28 + $0x78] sm:$0xff]  ;;  %v2122_v1 = vcombine.low %v380_v52, %v388_v53 }
  0x85   : > { %1318 = vmatprep.subr.bf16.mxu0 %v2103_v2  ;;  %1361 = vmatprep.subr.bf16.mxu1 %v2105_v3  ;;  %v2124_v2 = vcombine.low %v381_v54, %v389_v55  ;;  %v2107_v3 = vcombine.high %v364_v60, %v372_v61  ;;  %v2109_v4 = vcombine.high %v365_v62, %v373_v63 }
  0x86   : > { %v2108_v6 = vcombine.low %v365_v62, %v373_v63 }
  0x88   : > { %1319 = vmatpush1.bf16.msra.mxu0 %v2102_v8  ;;  %1362 = vmatpush1.bf16.msra.mxu1 %v2104_v9 }
  0x89   : > { %1390 = vmatprep.subr.bf16.mxu0 %v2219_v11  ;;  %1433 = vmatprep.subr.bf16.mxu1 %v2221_v12 }
  0x8b   : > { %1337 = vmatmul.mubr.bf16.vlgmr.msra.gmra.mxu0 %v2558_v10  ;;  %1380 = vmatmul.mubr.bf16.vlgmr.msra.gmra.mxu1 %v2558_v10 }
  0x8c   : > { %1391 = vmatpush1.bf16.msra.mxu0 %v2218_v17  ;;  %1434 = vmatpush1.bf16.msra.mxu1 %v2220_v18 }
  0x8d   : > { %1392 = vmatprep.subr.bf16.mxu0 %v2203_v19  ;;  %1435 = vmatprep.subr.bf16.mxu1 %v2205_v20 }
  0x8e   : > { %1422 = vmatprep.mubr.bf16.mxu0 %v2409_v0  ;;  %1465 = vmatprep.mubr.bf16.mxu1 %v2409_v0  ;;  %v2172_v0 = vcombine.low %v429_v31, %v437_v32 }
  0x90   : > { %1393 = vmatpush1.bf16.msra.mxu0 %v2202_v25  ;;  %1436 = vmatpush1.bf16.msra.mxu1 %v2204_v26 }
  0x91   : > { %1394 = vmatprep.subr.bf16.mxu0 %v2187_v27  ;;  %1437 = vmatprep.subr.bf16.mxu1 %v2189_v28 }
  0x94   : > { %1395 = vmatpush1.bf16.msra.mxu0 %v2186_v33  ;;  %1438 = vmatpush1.bf16.msra.mxu1 %v2188_v34 }
  0x95   : > { %1396 = vmatprep.subr.bf16.mxu0 %v2171_v35  ;;  %1439 = vmatprep.subr.bf16.mxu1 %v2173_v36 }
  0x98   : > { %1397 = vmatpush1.bf16.msra.mxu0 %v2170_v41  ;;  %1440 = vmatpush1.bf16.msra.mxu1 %v2172_v0 }
  0x99   : > { %1398 = vmatprep.subr.bf16.mxu0 %v2155_v42  ;;  %1441 = vmatprep.subr.bf16.mxu1 %v2157_v43 }
  0x9c   : > { %1399 = vmatpush1.bf16.msra.mxu0 %v2154_v48  ;;  %1442 = vmatpush1.bf16.msra.mxu1 %v2156_v49 }
  0x9d   : > { %1400 = vmatprep.subr.bf16.mxu0 %v2139_v50  ;;  %1443 = vmatprep.subr.bf16.mxu1 %v2141_v51 }
  0xa0   : > { %1401 = vmatpush1.bf16.msra.mxu0 %v2138_v56  ;;  %1444 = vmatpush1.bf16.msra.mxu1 %v2140_v57 }
  0xa1   : > { %1402 = vmatprep.subr.bf16.mxu0 %v2123_v58  ;;  %1445 = vmatprep.subr.bf16.mxu1 %v2125_v59 }
  0xa4   : > { %1403 = vmatpush1.bf16.msra.mxu0 %v2122_v1  ;;  %1446 = vmatpush1.bf16.msra.mxu1 %v2124_v2 }
  0xa5   : > { %1404 = vmatprep.subr.bf16.mxu0 %v2107_v3  ;;  %1447 = vmatprep.subr.bf16.mxu1 %v2109_v4 }
  0xa8   : > { %1405 = vmatpush1.bf16.msra.mxu0 %v2106_v5  ;;  %1448 = vmatpush1.bf16.msra.mxu1 %v2108_v6 }
  0xab   : > { %1423 = vmatmul.mubr.bf16.vlgmr.msra.gmra.mxu0 %v2558_v10  ;;  %1466 = vmatmul.mubr.bf16.vlgmr.msra.gmra.mxu1 %v2558_v10 }
 0x10b   : > { %v1166_v7 = vpop.f32.mrf.mxu0  ;;  %v1209_v8 = vpop.f32.mrf.mxu1 }
 0x10c   : > { %v1719_v15 = vmul.f32 %v1166_v7, %v1166_v7  ;;  %v1721_v16 = vmul.f32 %v1209_v8, %v1209_v8 }
 0x10d   : > { %v1168_v9 = vpop.f32.mrf.mxu0  ;;  %v1211_v12 = vpop.f32.mrf.mxu1 }
 0x10e   : > { %v2247_v11 = vpack.c.bf16 %v1168_v9, %v1166_v7  ;;  %v2248_v13 = vpack.c.bf16 %v1211_v12, %v1209_v8  ;;  %v1720_v10 = vmul.f32 %v1168_v9, %v1168_v9  ;;  %v1722_v20 = vmul.f32 %v1211_v12, %v1211_v12 }
 0x10f   : > { %v1170_v14 = vpop.f32.mrf.mxu0  ;;  %v1213_v19 = vpop.f32.mrf.mxu1 }
 0x110   : > { %1671 = vst [vmem:[%s2666_s5] sm:$0xff] %v2247_v11  ;;  %v1687_v17 = vadd.f32 %v1170_v14, %v1166_v7  ;;  %v1735_v18 = vmul.f32 %v1170_v14, %v1170_v14  ;;  %1672 = vst [vmem:[%s2666_s5 + $0x8] sm:$0xff] %v2248_v13  ;;  %v1689_v21 = vadd.f32 %v1213_v19, %v1209_v8 }
 0x111   : > { %v1737_v22 = vmul.f32 %v1213_v19, %v1213_v19  ;;  %v1172_v23 = vpop.f32.mrf.mxu0  ;;  %v1215_v28 = vpop.f32.mrf.mxu1 }
 0x112   : > { %1703 = vst [vmem:[%s2670_s6] sm:$0xff] %v1687_v17  ;;  %v1751_v24 = vadd.f32 %v1735_v18, %v1719_v15  ;;  %v2255_v25 = vpack.c.bf16 %v1172_v23, %v1170_v14  ;;  %v1688_v26 = vadd.f32 %v1172_v23, %v1168_v9  ;;  %v1736_v27 = vmul.f32 %v1172_v23, %v1172_v23 }
 0x113   : > { %1705 = vst [vmem:[%s2670_s6 + $0x10] sm:$0xff] %v1689_v21  ;;  %v1753_v29 = vadd.f32 %v1737_v22, %v1721_v16  ;;  %v2256_v30 = vpack.c.bf16 %v1215_v28, %v1213_v19  ;;  %v1690_v31 = vadd.f32 %v1215_v28, %v1211_v12  ;;  %v1738_v32 = vmul.f32 %v1215_v28, %v1215_v28 }
 0x114   : > { %1767 = vst [vmem:[%s2670_s6 + $0x80] sm:$0xff] %v1751_v24  ;;  %1679 = vst [vmem:[%s2666_s5 + $0x40] sm:$0xff] %v2255_v25  ;;  %v1752_v33 = vadd.f32 %v1736_v27, %v1720_v10 }
 0x115   : > { %1704 = vst [vmem:[%s2670_s6 + $0x8] sm:$0xff] %v1688_v26  ;;  %1769 = vst [vmem:[%s2670_s6 + $0x90] sm:$0xff] %v1753_v29  ;;  %v1754_v34 = vadd.f32 %v1738_v32, %v1722_v20 }
 0x116   : > { %1680 = vst [vmem:[%s2666_s5 + $0x48] sm:$0xff] %v2256_v30  ;;  %1706 = vst [vmem:[%s2670_s6 + $0x18] sm:$0xff] %v1690_v31 }
 0x117   : > { %1768 = vst [vmem:[%s2670_s6 + $0x88] sm:$0xff] %v1752_v33  ;;  %1770 = vst [vmem:[%s2670_s6 + $0x98] sm:$0xff] %v1754_v34 }
 0x12b   : > { %v1252_v35 = vpop.f32.mrf.mxu0  ;;  %v1295_v36 = vpop.f32.mrf.mxu1 }
 0x12c   : > { %v1723_v0 = vmul.f32 %v1252_v35, %v1252_v35  ;;  %v1725_v42 = vmul.f32 %v1295_v36, %v1295_v36 }
 0x12d   : > { %v1254_v37 = vpop.f32.mrf.mxu0  ;;  %v1297_v39 = vpop.f32.mrf.mxu1 }
 0x12e   : > { %v2249_v38 = vpack.c.bf16 %v1254_v37, %v1252_v35  ;;  %v2250_v40 = vpack.c.bf16 %v1297_v39, %v1295_v36  ;;  %v1724_v46 = vmul.f32 %v1254_v37, %v1254_v37  ;;  %v1726_v47 = vmul.f32 %v1297_v39, %v1297_v39 }
 0x12f   : > { %v1256_v41 = vpop.f32.mrf.mxu0  ;;  %v1299_v45 = vpop.f32.mrf.mxu1 }
 0x130   : > { %1673 = vst [vmem:[%s2666_s5 + $0x10] sm:$0xff] %v2249_v38  ;;  %v1691_v43 = vadd.f32 %v1256_v41, %v1252_v35  ;;  %v1739_v44 = vmul.f32 %v1256_v41, %v1256_v41  ;;  %1674 = vst [vmem:[%s2666_s5 + $0x18] sm:$0xff] %v2250_v40  ;;  %v1693_v48 = vadd.f32 %v1299_v45, %v1295_v36 }
 0x131   : > { %v1741_v49 = vmul.f32 %v1299_v45, %v1299_v45  ;;  %v1258_v50 = vpop.f32.mrf.mxu0  ;;  %v1301_v55 = vpop.f32.mrf.mxu1 }
 0x132   : > { %1707 = vst [vmem:[%s2670_s6 + $0x20] sm:$0xff] %v1691_v43  ;;  %v1755_v51 = vadd.f32 %v1739_v44, %v1723_v0  ;;  %v2257_v52 = vpack.c.bf16 %v1258_v50, %v1256_v41  ;;  %v1692_v53 = vadd.f32 %v1258_v50, %v1254_v37  ;;  %v1740_v54 = vmul.f32 %v1258_v50, %v1258_v50 }
 0x133   : > { %1709 = vst [vmem:[%s2670_s6 + $0x30] sm:$0xff] %v1693_v48  ;;  %v1757_v56 = vadd.f32 %v1741_v49, %v1725_v42  ;;  %v2258_v57 = vpack.c.bf16 %v1301_v55, %v1299_v45  ;;  %v1694_v58 = vadd.f32 %v1301_v55, %v1297_v39  ;;  %v1742_v59 = vmul.f32 %v1301_v55, %v1301_v55  ;;  %v1816_v55 = vld [vmem:[%s2666_s5 + $0x8] sm:$0xff] (%p2480_p9) }
 0x134   : > { %1771 = vst [vmem:[%s2670_s6 + $0xa0] sm:$0xff] %v1755_v51  ;;  %1681 = vst [vmem:[%s2666_s5 + $0x50] sm:$0xff] %v2257_v52  ;;  %v1756_v60 = vadd.f32 %v1740_v54, %v1724_v46  ;;  %v1814_v54 = vld [vmem:[%s2666_s5] sm:$0xff] (%p2480_p9) }
 0x135   : > { %1708 = vst [vmem:[%s2670_s6 + $0x28] sm:$0xff] %v1692_v53  ;;  %1773 = vst [vmem:[%s2670_s6 + $0xb0] sm:$0xff] %v1757_v56  ;;  %v1758_v61 = vadd.f32 %v1742_v59, %v1726_v47 }
 0x136   : > { %1682 = vst [vmem:[%s2666_s5 + $0x58] sm:$0xff] %v2258_v57  ;;  %1710 = vst [vmem:[%s2670_s6 + $0x38] sm:$0xff] %v1694_v58 }
 0x137   : > { %1772 = vst [vmem:[%s2670_s6 + $0xa8] sm:$0xff] %v1756_v60  ;;  %1774 = vst [vmem:[%s2670_s6 + $0xb8] sm:$0xff] %v1758_v61  ;;  %v1818_v56 = vld [vmem:[%s2666_s5 + $0x10] sm:$0xff] (%p2480_p9)  ;;  %v1820_v57 = vld [vmem:[%s2666_s5 + $0x18] sm:$0xff] (%p2480_p9) }
 0x138   : > { %1815 = vst [vmem:[%s1801_s10] sm:$0xff] (%p2480_p9), %v1814_v54  ;;  %1817 = vst [vmem:[%s1801_s10 + $0x8] sm:$0xff] (%p2480_p9), %v1816_v55 }
 0x139   : > { %1819 = vst [vmem:[%s1801_s10 + $0x10] sm:$0xff] (%p2480_p9), %v1818_v56  ;;  %1821 = vst [vmem:[%s1801_s10 + $0x18] sm:$0xff] (%p2480_p9), %v1820_v57 }
 0x14b   : > { %v1338_v62 = vpop.f32.mrf.mxu0  ;;  %v1381_v63 = vpop.f32.mrf.mxu1 }
 0x14c   : > { %v1727_v6 = vmul.f32 %v1338_v62, %v1338_v62  ;;  %v1729_v7 = vmul.f32 %v1381_v63, %v1381_v63 }
 0x14d   : > { %v1340_v1 = vpop.f32.mrf.mxu0  ;;  %v1383_v3 = vpop.f32.mrf.mxu1 }
 0x14e   : > { %v2251_v2 = vpack.c.bf16 %v1340_v1, %v1338_v62  ;;  %v2252_v4 = vpack.c.bf16 %v1383_v3, %v1381_v63  ;;  %v1728_v12 = vmul.f32 %v1340_v1, %v1340_v1  ;;  %v1730_v13 = vmul.f32 %v1383_v3, %v1383_v3 }
 0x14f   : > { %v1342_v5 = vpop.f32.mrf.mxu0  ;;  %v1385_v11 = vpop.f32.mrf.mxu1 }
 0x150   : > { %1675 = vst [vmem:[%s2666_s5 + $0x20] sm:$0xff] %v2251_v2  ;;  %v1695_v8 = vadd.f32 %v1342_v5, %v1338_v62  ;;  %v1743_v9 = vmul.f32 %v1342_v5, %v1342_v5  ;;  %1676 = vst [vmem:[%s2666_s5 + $0x28] sm:$0xff] %v2252_v4  ;;  %v1697_v14 = vadd.f32 %v1385_v11, %v1381_v63  ;;  %v1830_v62 = vld [vmem:[%s2666_s5 + $0x40] sm:$0xff] (%p2480_p9)  ;;  %v1832_v63 = vld [vmem:[%s2666_s5 + $0x48] sm:$0xff] (%p2480_p9) }
 0x151   : > { %v1745_v15 = vmul.f32 %v1385_v11, %v1385_v11  ;;  %v1344_v16 = vpop.f32.mrf.mxu0  ;;  %v1387_v20 = vpop.f32.mrf.mxu1  ;;  %1831 = vst [vmem:[%s1801_s10 + $0x100] sm:$0xff] (%p2480_p9), %v1830_v62  ;;  %v1836_v2 = vld [vmem:[%s2666_s5 + $0x58] sm:$0xff] (%p2480_p9)  ;;  %1833 = vst [vmem:[%s1801_s10 + $0x108] sm:$0xff] (%p2480_p9), %v1832_v63 }
 0x152   : > { %1711 = vst [vmem:[%s2670_s6 + $0x40] sm:$0xff] %v1695_v8  ;;  %v1759_v17 = vadd.f32 %v1743_v9, %v1727_v6  ;;  %v2259_v18 = vpack.c.bf16 %v1344_v16, %v1342_v5  ;;  %v1696_v19 = vadd.f32 %v1344_v16, %v1340_v1  ;;  %v1744_v10 = vmul.f32 %v1344_v16, %v1344_v16  ;;  %v1834_v1 = vld [vmem:[%s2666_s5 + $0x50] sm:$0xff] (%p2480_p9) }
 0x153   : > { %1713 = vst [vmem:[%s2670_s6 + $0x50] sm:$0xff] %v1697_v14  ;;  %v1761_v21 = vadd.f32 %v1745_v15, %v1729_v7  ;;  %v2260_v22 = vpack.c.bf16 %v1387_v20, %v1385_v11  ;;  %v1698_v23 = vadd.f32 %v1387_v20, %v1383_v3  ;;  %v1746_v24 = vmul.f32 %v1387_v20, %v1387_v20 }
 0x154   : > { %1775 = vst [vmem:[%s2670_s6 + $0xc0] sm:$0xff] %v1759_v17  ;;  %1683 = vst [vmem:[%s2666_s5 + $0x60] sm:$0xff] %v2259_v18  ;;  %v1760_v25 = vadd.f32 %v1744_v10, %v1728_v12 }
 0x155   : > { %1712 = vst [vmem:[%s2670_s6 + $0x48] sm:$0xff] %v1696_v19  ;;  %1777 = vst [vmem:[%s2670_s6 + $0xd0] sm:$0xff] %v1761_v21  ;;  %v1762_v26 = vadd.f32 %v1746_v24, %v1730_v13 }
 0x156   : > { %1684 = vst [vmem:[%s2666_s5 + $0x68] sm:$0xff] %v2260_v22  ;;  %1714 = vst [vmem:[%s2670_s6 + $0x58] sm:$0xff] %v1698_v23 }
 0x157   : > { %1776 = vst [vmem:[%s2670_s6 + $0xc8] sm:$0xff] %v1760_v25  ;;  %1778 = vst [vmem:[%s2670_s6 + $0xd8] sm:$0xff] %v1762_v26  ;;  %v1822_v58 = vld [vmem:[%s2666_s5 + $0x20] sm:$0xff] (%p2480_p9)  ;;  %v1824_v59 = vld [vmem:[%s2666_s5 + $0x28] sm:$0xff] (%p2480_p9) }
 0x158   : > { %1823 = vst [vmem:[%s1801_s10 + $0x20] sm:$0xff] (%p2480_p9), %v1822_v58  ;;  %1825 = vst [vmem:[%s1801_s10 + $0x28] sm:$0xff] (%p2480_p9), %v1824_v59 }
 0x159   : > { %1835 = vst [vmem:[%s1801_s10 + $0x110] sm:$0xff] (%p2480_p9), %v1834_v1  ;;  %1837 = vst [vmem:[%s1801_s10 + $0x118] sm:$0xff] (%p2480_p9), %v1836_v2 }
 0x15b   : > { %v1838_v3 = vld [vmem:[%s2666_s5 + $0x60] sm:$0xff] (%p2480_p9) }
 0x15c   : > { %1839 = vst [vmem:[%s1801_s10 + $0x120] sm:$0xff] (%p2480_p9), %v1838_v3 }
 0x15d   : > { %v1840_v4 = vld [vmem:[%s2666_s5 + $0x68] sm:$0xff] (%p2480_p9) }
 0x15e   : > { %1841 = vst [vmem:[%s1801_s10 + $0x128] sm:$0xff] (%p2480_p9), %v1840_v4 }
 0x16b   : > { %v1424_v27 = vpop.f32.mrf.mxu0  ;;  %v1467_v28 = vpop.f32.mrf.mxu1 }
 0x16c   : > { %v1731_v34 = vmul.f32 %v1424_v27, %v1424_v27  ;;  %v1733_v35 = vmul.f32 %v1467_v28, %v1467_v28 }
 0x16d   : > { %v1426_v29 = vpop.f32.mrf.mxu0  ;;  %v1469_v31 = vpop.f32.mrf.mxu1 }
 0x16e   : > { %v2253_v30 = vpack.c.bf16 %v1426_v29, %v1424_v27  ;;  %v2254_v32 = vpack.c.bf16 %v1469_v31, %v1467_v28  ;;  %v1732_v39 = vmul.f32 %v1426_v29, %v1426_v29  ;;  %v1734_v40 = vmul.f32 %v1469_v31, %v1469_v31 }
 0x16f   : > { %v1428_v33 = vpop.f32.mrf.mxu0  ;;  %v1471_v38 = vpop.f32.mrf.mxu1 }
 0x170   : > { %1677 = vst [vmem:[%s2666_s5 + $0x30] sm:$0xff] %v2253_v30  ;;  %v1699_v36 = vadd.f32 %v1428_v33, %v1424_v27  ;;  %v1747_v37 = vmul.f32 %v1428_v33, %v1428_v33  ;;  %1678 = vst [vmem:[%s2666_s5 + $0x38] sm:$0xff] %v2254_v32  ;;  %v1701_v41 = vadd.f32 %v1471_v38, %v1467_v28 }
 0x171   : > { %v1749_v0 = vmul.f32 %v1471_v38, %v1471_v38  ;;  %v1430_v42 = vpop.f32.mrf.mxu0  ;;  %v1473_v47 = vpop.f32.mrf.mxu1 }
 0x172   : > { %1715 = vst [vmem:[%s2670_s6 + $0x60] sm:$0xff] %v1699_v36  ;;  %v1763_v43 = vadd.f32 %v1747_v37, %v1731_v34  ;;  %v2261_v44 = vpack.c.bf16 %v1430_v42, %v1428_v33  ;;  %v1700_v45 = vadd.f32 %v1430_v42, %v1426_v29  ;;  %v1748_v46 = vmul.f32 %v1430_v42, %v1430_v42 }
 0x173   : > { %1717 = vst [vmem:[%s2670_s6 + $0x70] sm:$0xff] %v1701_v41  ;;  %v1765_v48 = vadd.f32 %v1749_v0, %v1733_v35  ;;  %v2262_v49 = vpack.c.bf16 %v1473_v47, %v1471_v38  ;;  %v1702_v50 = vadd.f32 %v1473_v47, %v1469_v31  ;;  %v1750_v51 = vmul.f32 %v1473_v47, %v1473_v47  ;;  %1793 = sbr.rel (!%p2480_p9) target bundleno = 383 (0x17f), region = 44 }
 0x174   : > { %1779 = vst [vmem:[%s2670_s6 + $0xe0] sm:$0xff] %v1763_v43  ;;  %1685 = vst [vmem:[%s2666_s5 + $0x70] sm:$0xff] %v2261_v44  ;;  %v1764_v52 = vadd.f32 %v1748_v46, %v1732_v39 }
 0x175   : > { %1716 = vst [vmem:[%s2670_s6 + $0x68] sm:$0xff] %v1700_v45  ;;  %1781 = vst [vmem:[%s2670_s6 + $0xf0] sm:$0xff] %v1765_v48  ;;  %v1766_v53 = vadd.f32 %v1750_v51, %v1734_v40 }
 0x176   : > { %1686 = vst [vmem:[%s2666_s5 + $0x78] sm:$0xff] %v2262_v49  ;;  %1718 = vst [vmem:[%s2670_s6 + $0x78] sm:$0xff] %v1702_v50 }
 0x177   : > { %1780 = vst [vmem:[%s2670_s6 + $0xe8] sm:$0xff] %v1764_v52  ;;  %1782 = vst [vmem:[%s2670_s6 + $0xf8] sm:$0xff] %v1766_v53  ;;  %v1826_v60 = vld [vmem:[%s2666_s5 + $0x30] sm:$0xff] (%p2480_p9)  ;;  %v1828_v61 = vld [vmem:[%s2666_s5 + $0x38] sm:$0xff] (%p2480_p9) }
 0x178   : > { %1827 = vst [vmem:[%s1801_s10 + $0x30] sm:$0xff] %v1826_v60  ;;  %1829 = vst [vmem:[%s1801_s10 + $0x38] sm:$0xff] %v1828_v61 }
 0x17b   : > { %v1842_v5 = vld [vmem:[%s2666_s5 + $0x70] sm:$0xff] }
 0x17c   : > { %1843 = vst [vmem:[%s1801_s10 + $0x130] sm:$0xff] %v1842_v5 }
 0x17d   : > { %v1844_v6 = vld [vmem:[%s2666_s5 + $0x78] sm:$0xff] }
 0x17e   : > { %1845 = vst [vmem:[%s1801_s10 + $0x138] sm:$0xff] %v1844_v6 }
 0x17f PF: > { %1851 = sbr.rel (!%p2480_p9) target bundleno = 401 (0x191), region = 67  ;;  %s2264_s11 = sshll.u32 (%p2480_p9), %s2395_s15, 7  ;;  %v1871_v7 = vld [vmem:[%s2670_s6] sm:$0xff] (%p2480_p9)  ;;  %v1873_v8 = vld [vmem:[%s2670_s6 + $0x8] sm:$0xff] (%p2480_p9)  ;;  %v1875_v9 = vld [vmem:[%s2670_s6 + $0x10] sm:$0xff] (%p2480_p9) }
 0x180   : > { %s2749_s20 = scalar_lea.vmem (%p2480_p9), %s2833_s3, %s2264_s11  ;;  %v1877_v11 = vld [vmem:[%s2670_s6 + $0x18] sm:$0xff] (%p2480_p9)  ;;  %v1879_v12 = vld [vmem:[%s2670_s6 + $0x20] sm:$0xff] (%p2480_p9)  ;;  %v1881_v13 = vld [vmem:[%s2670_s6 + $0x28] sm:$0xff] (%p2480_p9) }
 0x181   : > { %1872 = vst [vmem:[%s2749_s20] sm:$0xff] (%p2480_p9), %v1871_v7  ;;  %1874 = vst [vmem:[%s2749_s20 + $0x8] sm:$0xff] (%p2480_p9), %v1873_v8  ;;  %v1883_v14 = vld [vmem:[%s2670_s6 + $0x30] sm:$0xff] (%p2480_p9)  ;;  %v1885_v15 = vld [vmem:[%s2670_s6 + $0x38] sm:$0xff] (%p2480_p9) }
 0x182   : > { %1876 = vst [vmem:[%s2749_s20 + $0x10] sm:$0xff] (%p2480_p9), %v1875_v9  ;;  %1878 = vst [vmem:[%s2749_s20 + $0x18] sm:$0xff] (%p2480_p9), %v1877_v11  ;;  %v1887_v16 = vld [vmem:[%s2670_s6 + $0x40] sm:$0xff] (%p2480_p9)  ;;  %v1889_v17 = vld [vmem:[%s2670_s6 + $0x48] sm:$0xff] (%p2480_p9) }
 0x183   : > { %1880 = vst [vmem:[%s2749_s20 + $0x20] sm:$0xff] (%p2480_p9), %v1879_v12  ;;  %1882 = vst [vmem:[%s2749_s20 + $0x28] sm:$0xff] (%p2480_p9), %v1881_v13  ;;  %v1891_v18 = vld [vmem:[%s2670_s6 + $0x50] sm:$0xff] (%p2480_p9)  ;;  %v1893_v19 = vld [vmem:[%s2670_s6 + $0x58] sm:$0xff] (%p2480_p9) }
 0x184   : > { %1884 = vst [vmem:[%s2749_s20 + $0x30] sm:$0xff] %v1883_v14  ;;  %1886 = vst [vmem:[%s2749_s20 + $0x38] sm:$0xff] %v1885_v15  ;;  %v1895_v10 = vld [vmem:[%s2670_s6 + $0x60] sm:$0xff]  ;;  %v1897_v20 = vld [vmem:[%s2670_s6 + $0x68] sm:$0xff] }
 0x185   : > { %1888 = vst [vmem:[%s2749_s20 + $0x40] sm:$0xff] %v1887_v16  ;;  %1890 = vst [vmem:[%s2749_s20 + $0x48] sm:$0xff] %v1889_v17  ;;  %v1899_v21 = vld [vmem:[%s2670_s6 + $0x70] sm:$0xff]  ;;  %v1901_v22 = vld [vmem:[%s2670_s6 + $0x78] sm:$0xff] }
 0x186   : > { %1892 = vst [vmem:[%s2749_s20 + $0x50] sm:$0xff] %v1891_v18  ;;  %1894 = vst [vmem:[%s2749_s20 + $0x58] sm:$0xff] %v1893_v19  ;;  %v1903_v23 = vld [vmem:[%s2670_s6 + $0x80] sm:$0xff]  ;;  %v1905_v24 = vld [vmem:[%s2670_s6 + $0x88] sm:$0xff] }
 0x187   : > { %1896 = vst [vmem:[%s2749_s20 + $0x60] sm:$0xff] %v1895_v10  ;;  %1898 = vst [vmem:[%s2749_s20 + $0x68] sm:$0xff] %v1897_v20  ;;  %v1907_v25 = vld [vmem:[%s2670_s6 + $0x90] sm:$0xff]  ;;  %v1909_v26 = vld [vmem:[%s2670_s6 + $0x98] sm:$0xff] }
 0x188   : > { %1900 = vst [vmem:[%s2749_s20 + $0x70] sm:$0xff] %v1899_v21  ;;  %1902 = vst [vmem:[%s2749_s20 + $0x78] sm:$0xff] %v1901_v22  ;;  %v1911_v27 = vld [vmem:[%s2670_s6 + $0xa0] sm:$0xff]  ;;  %v1913_v28 = vld [vmem:[%s2670_s6 + $0xa8] sm:$0xff] }
 0x189   : > { %1904 = vst [vmem:[%s2749_s20 + $0x200] sm:$0xff] %v1903_v23  ;;  %1906 = vst [vmem:[%s2749_s20 + $0x208] sm:$0xff] %v1905_v24  ;;  %v1915_v29 = vld [vmem:[%s2670_s6 + $0xb0] sm:$0xff]  ;;  %v1917_v30 = vld [vmem:[%s2670_s6 + $0xb8] sm:$0xff] }
 0x18a   : > { %1908 = vst [vmem:[%s2749_s20 + $0x210] sm:$0xff] %v1907_v25  ;;  %1910 = vst [vmem:[%s2749_s20 + $0x218] sm:$0xff] %v1909_v26  ;;  %v1919_v31 = vld [vmem:[%s2670_s6 + $0xc0] sm:$0xff]  ;;  %v1921_v32 = vld [vmem:[%s2670_s6 + $0xc8] sm:$0xff] }
 0x18b   : > { %1912 = vst [vmem:[%s2749_s20 + $0x220] sm:$0xff] %v1911_v27  ;;  %1914 = vst [vmem:[%s2749_s20 + $0x228] sm:$0xff] %v1913_v28  ;;  %v1923_v33 = vld [vmem:[%s2670_s6 + $0xd0] sm:$0xff]  ;;  %v1925_v34 = vld [vmem:[%s2670_s6 + $0xd8] sm:$0xff] }
 0x18c   : > { %1916 = vst [vmem:[%s2749_s20 + $0x230] sm:$0xff] %v1915_v29  ;;  %1918 = vst [vmem:[%s2749_s20 + $0x238] sm:$0xff] %v1917_v30  ;;  %v1927_v35 = vld [vmem:[%s2670_s6 + $0xe0] sm:$0xff]  ;;  %v1929_v36 = vld [vmem:[%s2670_s6 + $0xe8] sm:$0xff] }
 0x18d   : > { %1920 = vst [vmem:[%s2749_s20 + $0x240] sm:$0xff] %v1919_v31  ;;  %1922 = vst [vmem:[%s2749_s20 + $0x248] sm:$0xff] %v1921_v32  ;;  %v1931_v37 = vld [vmem:[%s2670_s6 + $0xf0] sm:$0xff]  ;;  %v1933_v38 = vld [vmem:[%s2670_s6 + $0xf8] sm:$0xff] }
 0x18e   : > { %1924 = vst [vmem:[%s2749_s20 + $0x250] sm:$0xff] %v1923_v33  ;;  %1926 = vst [vmem:[%s2749_s20 + $0x258] sm:$0xff] %v1925_v34 }
 0x18f   : > { %1928 = vst [vmem:[%s2749_s20 + $0x260] sm:$0xff] %v1927_v35  ;;  %1930 = vst [vmem:[%s2749_s20 + $0x268] sm:$0xff] %v1929_v36 }
 0x190   : > { %1932 = vst [vmem:[%s2749_s20 + $0x270] sm:$0xff] %v1931_v37  ;;  %1934 = vst [vmem:[%s2749_s20 + $0x278] sm:$0xff] %v1933_v38 }
 0x191 PF: > { %s17_s17 = sadd.s32 1, %s2403_s17   ;;  %s2838_s12 = smov %s2387_s13 }
 0x192   : > { %p14_p8 = scmp.ge.s32.totalorder %s17_s17, 6   ;;  %s2839_s13 = smov %s2391_s14 }
 0x193   : > { %s2840_s14 = smov %s2478_s24  ;;  %s2841_s15 = smov %s2399_s16 }
 0x194   : > { %s2842_s16 = smov %s2844_s19  ;;  %16 = sbr.rel (!%p14_p8) target bundleno = 4 (0x4), region = 137 }
 0x199   :  { %1957 = vsyncpa [#allocation4], 1 }
 0x19a   :  { %1959 = vsyncpa [#allocation4 + $0x1], 1 }

// kernel: generator_cifar_forward.5
= control target key start
LH: loop header
LB: loop body
LE: loop exit
PB: predicated region body
PF: predicated region fallthrough
CT: control target
= control target key end

     0   :  { %s3963_s18 = smov 0   ;;  %s3965_s19 = smov 0   ;;  %s4715_s0 = inlined_call_operand.vmem [shape: bf16[4,32,2048], index: 0, kind: input, shape index: {}]   ;;  %s4716_s1 = inlined_call_operand.vmem [shape: f32[1,2048], index: 1, kind: input, shape index: {}]   ;;  %s4717_s2 = inlined_call_operand.vmem [shape: f32[1,2048], index: 2, kind: input, shape index: {}]   ;;  %s4718_s3 = inlined_call_operand.vmem [shape: bf16[4,2048,256], index: 3, kind: input, shape index: {}]   ;;  %s4719_s4 = inlined_call_operand.vmem [shape: bf16[4,32,256], index: 4, kind: output, shape index: {0}]   ;;  %s4720_s5 = inlined_call_operand.vmem [shape: f32[4,1,16,256], index: 5, kind: output, shape index: {1}]  }
   0x1   :  { %s3967_s20 = smov 0  }
   0x2 LB: > { %s42_s21 = sadd.s32 1, %s3927_s19  ;;  %p3222_p0 = scmp.ge.s32.totalorder %s3931_s20, 1  ;;  %s3931_s20 = sphi %s3967_s20, %s16_s20   ;;  %s3927_s19 = sphi %s3965_s19, %s4722_s19   ;;  %s3923_s18 = sphi %s3963_s18, %s4721_s18  }
   0x3   : > { %p44_p1 = scmp.ge.s32.totalorder %s42_s21, 4  ;;  %p284_p2 = scmp.lt.s32.totalorder %s3931_s20, 5 }
   0x5   : > { %s4724_s21 = smov (%p44_p1, %s42_s21), 0  ;;  %p285_p3 = pnand %p3222_p0, %p284_p2 }
   0x6   : > { %p367_p4 = scmp.lt.s32.totalorder (!%p285_p3), %s3923_s18, 3 }
   0x7   : > { %288 = sbr.rel (%p285_p3) target bundleno = 488 (0x1e8), region = 36 }
   0xc   : > { %s4726_s18 = smov (!%p367_p4, %s3923_s18), 3  ;;  %v549_v34 = vlaneseq  ;;  %v4040_v45 = vld [vmem:[%s4716_s1] sm:$0xff] }
   0xd   : > { %s3494_s22 = sshll.u32 %s4726_s18, 11  ;;  %s3493_s26 = sshll.u32 %s4726_s18, 8  ;;  %v4055_v49 = vld [vmem:[%s4717_s2] sm:$0xff] }
   0xe   : > { %s3987_s25 = scalar_lea.vmem %s4718_s3, %s3494_s22  ;;  %v4027_v39 = vshrl.u32 %v549_v34, 7  ;;  %s4050_s6 = scalar_lea.vmem %s4715_s0, %s3493_s26 }
   0xf   : > { %v3525_v0 = vld [vmem:[%s3987_s25 + $0x74] ss:$8 sps:$4 sm:$0xff]   ;;  %v3529_v2 = vld [vmem:[%s3987_s25 + $0x70] ss:$8 sps:$4 sm:$0xff]   ;;  %v3531_v4 = vld [vmem:[%s3987_s25 + $0x64] ss:$8 sps:$4 sm:$0xff]  }
  0x10   : > { %v3527_v1 = vld [vmem:[%s3987_s25 + $0x174] ss:$8 sps:$4 sm:$0xff]   ;;  %2481 = vmatprep.subr.bf16.mxu0 %v3525_v0  ;;  %v3530_v3 = vld [vmem:[%s3987_s25 + $0x170] ss:$8 sps:$4 sm:$0xff]   ;;  %v3533_v5 = vld [vmem:[%s3987_s25 + $0x164] ss:$8 sps:$4 sm:$0xff]  }
  0x11   : > { %2534 = vmatprep.subr.bf16.mxu1 %v3527_v1  ;;  %2482 = vmatpush1.bf16.msra.mxu0 %v3529_v2  ;;  %v3535_v6 = vld [vmem:[%s3987_s25 + $0x60] ss:$8 sps:$4 sm:$0xff]   ;;  %v3537_v8 = vld [vmem:[%s3987_s25 + $0x54] ss:$8 sps:$4 sm:$0xff]   ;;  %v3541_v10 = vld [vmem:[%s3987_s25 + $0x50] ss:$8 sps:$4 sm:$0xff]  }
  0x12   : > { %2535 = vmatpush1.bf16.msra.mxu1 %v3530_v3  ;;  %2483 = vmatprep.subr.bf16.mxu0 %v3531_v4  ;;  %v3536_v7 = vld [vmem:[%s3987_s25 + $0x160] ss:$8 sps:$4 sm:$0xff]   ;;  %v3539_v9 = vld [vmem:[%s3987_s25 + $0x154] ss:$8 sps:$4 sm:$0xff]   ;;  %v3542_v11 = vld [vmem:[%s3987_s25 + $0x150] ss:$8 sps:$4 sm:$0xff]  }
  0x13   : > { %2536 = vmatprep.subr.bf16.mxu1 %v3533_v5  ;;  %v3543_v12 = vld [vmem:[%s3987_s25 + $0x44] ss:$8 sps:$4 sm:$0xff]   ;;  %v3547_v14 = vld [vmem:[%s3987_s25 + $0x40] ss:$8 sps:$4 sm:$0xff]   ;;  %v3549_v16 = vld [vmem:[%s3987_s25 + $0x34] ss:$8 sps:$4 sm:$0xff]  }
  0x14   : > { %v3545_v13 = vld [vmem:[%s3987_s25 + $0x144] ss:$8 sps:$4 sm:$0xff]   ;;  %v3548_v15 = vld [vmem:[%s3987_s25 + $0x140] ss:$8 sps:$4 sm:$0xff]   ;;  %v3551_v17 = vld [vmem:[%s3987_s25 + $0x134] ss:$8 sps:$4 sm:$0xff]  }
  0x15   : > { %2484 = vmatpush1.bf16.msra.mxu0 %v3535_v6  ;;  %v3553_v18 = vld [vmem:[%s3987_s25 + $0x30] ss:$8 sps:$4 sm:$0xff]   ;;  %v3555_v20 = vld [vmem:[%s3987_s25 + $0x24] ss:$8 sps:$4 sm:$0xff]   ;;  %v3559_v22 = vld [vmem:[%s3987_s25 + $0x20] ss:$8 sps:$4 sm:$0xff]  }
  0x16   : > { %2537 = vmatpush1.bf16.msra.mxu1 %v3536_v7  ;;  %2485 = vmatprep.subr.bf16.mxu0 %v3537_v8  ;;  %v3554_v19 = vld [vmem:[%s3987_s25 + $0x130] ss:$8 sps:$4 sm:$0xff]   ;;  %v3557_v21 = vld [vmem:[%s3987_s25 + $0x124] ss:$8 sps:$4 sm:$0xff]   ;;  %v3560_v23 = vld [vmem:[%s3987_s25 + $0x120] ss:$8 sps:$4 sm:$0xff]  }
  0x17   : > { %2538 = vmatprep.subr.bf16.mxu1 %v3539_v9  ;;  %v3561_v24 = vld [vmem:[%s3987_s25 + $0x14] ss:$8 sps:$4 sm:$0xff]   ;;  %v3565_v26 = vld [vmem:[%s3987_s25 + $0x10] ss:$8 sps:$4 sm:$0xff]   ;;  %v3567_v28 = vld [vmem:[%s3987_s25 + $0x4] ss:$8 sps:$4 sm:$0xff]  }
  0x18   : > { %v3563_v25 = vld [vmem:[%s3987_s25 + $0x114] ss:$8 sps:$4 sm:$0xff]   ;;  %v3566_v27 = vld [vmem:[%s3987_s25 + $0x110] ss:$8 sps:$4 sm:$0xff]   ;;  %v3569_v29 = vld [vmem:[%s3987_s25 + $0x104] ss:$8 sps:$4 sm:$0xff]  }
  0x19   : > { %2486 = vmatpush1.bf16.msra.mxu0 %v3541_v10  ;;  %v3571_v30 = vld [vmem:[%s3987_s25] ss:$8 sps:$4 sm:$0xff]   ;;  %v3573_v32 = vld [vmem:[%s3987_s25 + $0xf4] ss:$8 sps:$4 sm:$0xff]   ;;  %v3577_v35 = vld [vmem:[%s3987_s25 + $0xf0] ss:$8 sps:$4 sm:$0xff]  }
  0x1a   : > { %2539 = vmatpush1.bf16.msra.mxu1 %v3542_v11  ;;  %2487 = vmatprep.subr.bf16.mxu0 %v3543_v12  ;;  %v3572_v31 = vld [vmem:[%s3987_s25 + $0x100] ss:$8 sps:$4 sm:$0xff]   ;;  %v3575_v33 = vld [vmem:[%s3987_s25 + $0x1f4] ss:$8 sps:$4 sm:$0xff]   ;;  %v3578_v36 = vld [vmem:[%s3987_s25 + $0x1f0] ss:$8 sps:$4 sm:$0xff]  }
  0x1b   : > { %2540 = vmatprep.subr.bf16.mxu1 %v3545_v13  ;;  %v3579_v37 = vld [vmem:[%s3987_s25 + $0xe4] ss:$8 sps:$4 sm:$0xff]   ;;  %v3583_v40 = vld [vmem:[%s3987_s25 + $0xe0] ss:$8 sps:$4 sm:$0xff]   ;;  %v3585_v42 = vld [vmem:[%s3987_s25 + $0xd4] ss:$8 sps:$4 sm:$0xff]  }
  0x1c   : > { %v3581_v38 = vld [vmem:[%s3987_s25 + $0x1e4] ss:$8 sps:$4 sm:$0xff]   ;;  %v3584_v41 = vld [vmem:[%s3987_s25 + $0x1e0] ss:$8 sps:$4 sm:$0xff]   ;;  %v3587_v43 = vld [vmem:[%s3987_s25 + $0x1d4] ss:$8 sps:$4 sm:$0xff]  }
  0x1d   : > { %2488 = vmatpush1.bf16.msra.mxu0 %v3547_v14  ;;  %v4035_v44 = vsub.s32 1, %v4027_v39  ;;  %v4043_v46 = vsub.s32 3, %v4027_v39  ;;  %v3589_v47 = vld [vmem:[%s3987_s25 + $0xd0] ss:$8 sps:$4 sm:$0xff]   ;;  %v3591_v50 = vld [vmem:[%s3987_s25 + $0xc4] ss:$8 sps:$4 sm:$0xff]  }
  0x1e   : > { %2541 = vmatpush1.bf16.msra.mxu1 %v3548_v15  ;;  %2489 = vmatprep.subr.bf16.mxu0 %v3549_v16  ;;  %v3590_v48 = vld [vmem:[%s3987_s25 + $0x1d0] ss:$8 sps:$4 sm:$0xff]   ;;  %v3593_v51 = vld [vmem:[%s3987_s25 + $0x1c4] ss:$8 sps:$4 sm:$0xff]   ;;  %v4064_v53 = vsub.s32 0, %v4027_v39  ;;  %v4067_v54 = vsub.s32 2, %v4027_v39 }
  0x1f   : > { %2542 = vmatprep.subr.bf16.mxu1 %v3551_v17  ;;  %v4061_v52 = vrot.slane %v4040_v45, %v4035_v44  ;;  %v3595_v55 = vld [vmem:[%s3987_s25 + $0xc0] ss:$8 sps:$4 sm:$0xff]   ;;  %v4074_v58 = vrot.slane %v4040_v45, %v4043_v46  ;;  %v4079_v61 = vrot.slane %v4055_v49, %v4035_v44  ;;  %v3597_v0 = vld [vmem:[%s3987_s25 + $0xb4] ss:$8 sps:$4 sm:$0xff]   ;;  %v4086_v3 = vrot.slane %v4055_v49, %v4043_v46  ;;  %v3601_v13 = vld [vmem:[%s3987_s25 + $0xb0] ss:$8 sps:$4 sm:$0xff]  }
  0x20   : > { %v3596_v56 = vld [vmem:[%s3987_s25 + $0x1c0] ss:$8 sps:$4 sm:$0xff]   ;;  %v3599_v4 = vld [vmem:[%s3987_s25 + $0x1b4] ss:$8 sps:$4 sm:$0xff]   ;;  %v4092_v7 = vrot.slane %v4040_v45, %v4064_v53  ;;  %v4096_v8 = vrot.slane %v4040_v45, %v4067_v54  ;;  %v3602_v14 = vld [vmem:[%s3987_s25 + $0x1b0] ss:$8 sps:$4 sm:$0xff]  }
  0x21   : > { %2490 = vmatpush1.bf16.msra.mxu0 %v3553_v18  ;;  %v449_v57 = vld [vmem:[%s4050_s6] sm:$0xff]  ;;  %v450_v62 = vld [vmem:[%s4050_s6 + $0x8] sm:$0xff]  ;;  %s3495_s13 = sshll.u32 %s4726_s18, 5 }
  0x22   : > { %2543 = vmatpush1.bf16.msra.mxu1 %v3554_v19  ;;  %2491 = vmatprep.subr.bf16.mxu0 %v3555_v20  ;;  %v457_v59 = vld [vmem:[%s4050_s6 + $0x40] sm:$0xff]  ;;  %v482_v60 = vunpack.c.h.bf16 %v449_v57  ;;  %v458_v63 = vld [vmem:[%s4050_s6 + $0x48] sm:$0xff]  ;;  %v484_v2 = vunpack.c.h.bf16 %v450_v62  ;;  %v481_v9 = vunpack.c.l.bf16 %v449_v57  ;;  %v483_v16 = vunpack.c.l.bf16 %v450_v62  ;;  %s4695_s16 = scalar_lea.vmem %s4719_s4, %s3495_s13  ;;  %s435_s23 = scalar_lea.vmem %s4720_s5, %s3495_s13 }
  0x23   : > { %2544 = vmatprep.subr.bf16.mxu1 %v3557_v21  ;;  %v498_v1 = vunpack.c.h.bf16 %v457_v59  ;;  %v500_v6 = vunpack.c.h.bf16 %v458_v63  ;;  %v497_v10 = vunpack.c.l.bf16 %v457_v59  ;;  %v499_v17 = vunpack.c.l.bf16 %v458_v63  ;;  %v3603_v19 = vld [vmem:[%s3987_s25 + $0xa4] ss:$8 sps:$4 sm:$0xff]   ;;  %v3607_v34 = vld [vmem:[%s3987_s25 + $0xa0] ss:$8 sps:$4 sm:$0xff]  }
  0x24   : > { %v630_v5 = vmul.f32 %v4061_v52, %v482_v60  ;;  %v632_v12 = vmul.f32 %v4074_v58, %v484_v2  ;;  %v3620_v63 = vld [vmem:[%s3987_s25 + $0x180] ss:$8 sps:$4 sm:$0xff]  }
  0x25   : > { %2492 = vmatpush1.bf16.msra.mxu0 %v3559_v22  ;;  %v646_v11 = vmul.f32 %v4061_v52, %v498_v1  ;;  %v648_v18 = vmul.f32 %v4074_v58, %v500_v6  ;;  %v3605_v22 = vld [vmem:[%s3987_s25 + $0x1a4] ss:$8 sps:$4 sm:$0xff]   ;;  %v3626_v1 = vld [vmem:[%s3987_s25 + $0x374] ss:$8 sps:$4 sm:$0xff]   ;;  %v3624_v6 = vld [vmem:[%s3987_s25 + $0x370] ss:$8 sps:$4 sm:$0xff]  }
  0x26   : > { %2545 = vmatpush1.bf16.msra.mxu1 %v3560_v23  ;;  %2493 = vmatprep.subr.bf16.mxu0 %v3561_v24  ;;  %v778_v15 = vadd.f32 %v4079_v61, %v630_v5  ;;  %v780_v21 = vadd.f32 %v4086_v3, %v632_v12  ;;  %v3621_v5 = vld [vmem:[%s3987_s25 + $0x270] ss:$8 sps:$4 sm:$0xff]   ;;  %v3630_v12 = vld [vmem:[%s3987_s25 + $0x360] ss:$8 sps:$4 sm:$0xff]  }
  0x27   : > { %2546 = vmatprep.subr.bf16.mxu1 %v3563_v25  ;;  %v794_v20 = vadd.f32 %v4079_v61, %v646_v11  ;;  %v796_v24 = vadd.f32 %v4086_v3, %v648_v18  ;;  %v4111_v25 = vrot.slane %v4055_v49, %v4064_v53  ;;  %v3627_v11 = vld [vmem:[%s3987_s25 + $0x260] ss:$8 sps:$4 sm:$0xff]   ;;  %v3644_v18 = vld [vmem:[%s3987_s25 + $0x344] ss:$8 sps:$4 sm:$0xff]  }
  0x28   : > { %v842_v23 = vmax.f32 %v778_v15, 0.0  ;;  %v3633_v15 = vld [vmem:[%s3987_s25 + $0x250] ss:$8 sps:$4 sm:$0xff]  }
  0x29   : > { %2494 = vmatpush1.bf16.msra.mxu0 %v3565_v26  ;;  %v858_v26 = vmax.f32 %v794_v20, 0.0  ;;  %v4153_v20 = vsub.s32 5, %v4027_v39 }
  0x2a   : > { %2547 = vmatpush1.bf16.msra.mxu1 %v3566_v27  ;;  %2495 = vmatprep.subr.bf16.mxu0 %v3567_v28  ;;  %v844_v27 = vmax.f32 %v780_v21, 0.0  ;;  %v629_v28 = vmul.f32 %v4092_v7, %v481_v9  ;;  %v3629_v9 = vld [vmem:[%s3987_s25 + $0x264] ss:$8 sps:$4 sm:$0xff]   ;;  %v3639_v21 = vld [vmem:[%s3987_s25 + $0x240] ss:$8 sps:$4 sm:$0xff]  }
  0x2b   : > { %2548 = vmatprep.subr.bf16.mxu1 %v3569_v29  ;;  %v4116_v29 = vrot.slane %v4055_v49, %v4067_v54 }
  0x2d   : > { %2496 = vmatpush1.bf16.msra.mxu0 %v3571_v30  ;;  %v860_v30 = vmax.f32 %v796_v24, 0.0  ;;  %v3642_v24 = vld [vmem:[%s3987_s25 + $0x340] ss:$8 sps:$4 sm:$0xff]  }
  0x2e   : > { %2549 = vmatpush1.bf16.msra.mxu1 %v3572_v31  ;;  %2497 = vmatprep.subr.bf16.mxu0 %v3573_v32  ;;  %v645_v31 = vmul.f32 %v4092_v7, %v497_v10  ;;  %v631_v32 = vmul.f32 %v4096_v8, %v483_v16  ;;  %v3632_v10 = vld [vmem:[%s3987_s25 + $0x364] ss:$8 sps:$4 sm:$0xff]   ;;  %v3636_v16 = vld [vmem:[%s3987_s25 + $0x350] ss:$8 sps:$4 sm:$0xff]  }
  0x2f   : > { %2550 = vmatprep.subr.bf16.mxu1 %v3575_v33  ;;  %v647_v33 = vmul.f32 %v4096_v8, %v499_v17  ;;  %v3641_v17 = vld [vmem:[%s3987_s25 + $0x244] ss:$8 sps:$4 sm:$0xff]  }
  0x31   : > { %2498 = vmatpush2.bf16.msra.mxu0 %v3577_v35  ;;  %v3608_v35 = vld [vmem:[%s3987_s25 + $0x1a0] ss:$8 sps:$4 sm:$0xff]  }
  0x32   : > { %2551 = vmatpush2.bf16.msra.mxu1 %v3578_v36  ;;  %2499 = vmatprep.subr.bf16.mxu0 %v3579_v37  ;;  %v906_v36 = vpack.c.bf16 %v858_v26, %v842_v23  ;;  %v3609_v37 = vld [vmem:[%s3987_s25 + $0x94] ss:$8 sps:$4 sm:$0xff]   ;;  %v4160_v23 = vsub.s32 7, %v4027_v39 }
  0x33   : > { %2552 = vmatprep.subr.bf16.mxu1 %v3581_v38  ;;  %v3611_v38 = vld [vmem:[%s3987_s25 + $0x194] ss:$8 sps:$4 sm:$0xff]  }
  0x34   : > { %2513 = vmatprep.mubr.bf16.mxu0 %v906_v36  ;;  %v3647_v26 = vld [vmem:[%s3987_s25 + $0x234] ss:$8 sps:$4 sm:$0xff]  }
  0x35   : > { %2500 = vmatpush2.bf16.msra.mxu0 %v3583_v40  ;;  %v908_v40 = vpack.c.bf16 %v860_v30, %v844_v27  ;;  %v3650_v27 = vld [vmem:[%s3987_s25 + $0x334] ss:$8 sps:$4 sm:$0xff]   ;;  %v3648_v30 = vld [vmem:[%s3987_s25 + $0x330] ss:$8 sps:$4 sm:$0xff]  }
  0x36   : > { %2553 = vmatpush2.bf16.msra.mxu1 %v3584_v41  ;;  %2501 = vmatprep.subr.bf16.mxu0 %v3585_v42  ;;  %v3613_v41 = vld [vmem:[%s3987_s25 + $0x90] ss:$8 sps:$4 sm:$0xff]   ;;  %v777_v42 = vadd.f32 %v4111_v25, %v629_v28 }
  0x37   : > { %2554 = vmatprep.subr.bf16.mxu1 %v3587_v43  ;;  %2566 = vmatprep.mubr.bf16.mxu1 %v908_v40  ;;  %v793_v43 = vadd.f32 %v4111_v25, %v645_v31  ;;  %v3645_v28 = vld [vmem:[%s3987_s25 + $0x230] ss:$8 sps:$4 sm:$0xff]  }
  0x38   : > { %v841_v57 = vmax.f32 %v777_v42, 0.0 }
  0x39   : > { %2502 = vmatpush2.bf16.msra.mxu0 %v3589_v47  ;;  %v779_v47 = vadd.f32 %v4116_v29, %v631_v32  ;;  %v857_v59 = vmax.f32 %v793_v43, 0.0  ;;  %v465_v32 = vld [vmem:[%s4050_s6 + $0x80] sm:$0xff] }
  0x3a   : > { %2555 = vmatpush2.bf16.msra.mxu1 %v3590_v48  ;;  %2503 = vmatprep.subr.bf16.mxu0 %v3591_v50  ;;  %v795_v48 = vadd.f32 %v4116_v29, %v647_v33  ;;  %v3614_v50 = vld [vmem:[%s3987_s25 + $0x190] ss:$8 sps:$4 sm:$0xff]   ;;  %v473_v33 = vld [vmem:[%s4050_s6 + $0xc0] sm:$0xff]  ;;  %v513_v43 = vunpack.c.l.bf16 %v465_v32 }
  0x3b   : > { %2556 = vmatprep.subr.bf16.mxu1 %v3593_v51  ;;  %v3615_v51 = vld [vmem:[%s3987_s25 + $0x84] ss:$8 sps:$4 sm:$0xff]   ;;  %v843_v60 = vmax.f32 %v779_v47, 0.0  ;;  %v905_v2 = vpack.c.bf16 %v857_v59, %v841_v57  ;;  %v530_v40 = vunpack.c.h.bf16 %v473_v33 }
  0x3c   : > { %v859_v62 = vmax.f32 %v795_v48, 0.0  ;;  %v3653_v47 = vld [vmem:[%s3987_s25 + $0x224] ss:$8 sps:$4 sm:$0xff]  }
  0x3d   : > { %2504 = vmatpush2.bf16.msra.mxu0 %v3595_v55  ;;  %v3617_v55 = vld [vmem:[%s3987_s25 + $0x184] ss:$8 sps:$4 sm:$0xff]   ;;  %v678_v57 = vmul.f32 %v4061_v52, %v530_v40 }
  0x3e   : > { %2557 = vmatpush2.bf16.msra.mxu1 %v3596_v56  ;;  %2505 = vmatprep.subr.bf16.mxu0 %v3597_v0  ;;  %v3619_v56 = vld [vmem:[%s3987_s25 + $0x80] ss:$8 sps:$4 sm:$0xff]   ;;  %v3623_v0 = vld [vmem:[%s3987_s25 + $0x274] ss:$8 sps:$4 sm:$0xff]   ;;  %v3656_v48 = vld [vmem:[%s3987_s25 + $0x324] ss:$8 sps:$4 sm:$0xff]  }
  0x3f   : > { %2558 = vmatprep.subr.bf16.mxu1 %v3599_v4  ;;  %v907_v4 = vpack.c.bf16 %v859_v62, %v843_v60  ;;  %v661_v60 = vmul.f32 %v4092_v7, %v513_v43  ;;  %v3651_v62 = vld [vmem:[%s3987_s25 + $0x220] ss:$8 sps:$4 sm:$0xff]  }
  0x41   : > { %2506 = vmatpush2.bf16.msra.mxu0 %v3601_v13  ;;  %v3635_v13 = vld [vmem:[%s3987_s25 + $0x254] ss:$8 sps:$4 sm:$0xff]  }
  0x42   : > { %2559 = vmatpush2.bf16.msra.mxu1 %v3602_v14  ;;  %2507 = vmatprep.subr.bf16.mxu0 %v3603_v19  ;;  %v3638_v14 = vld [vmem:[%s3987_s25 + $0x354] ss:$8 sps:$4 sm:$0xff]   ;;  %v4150_v19 = vsub.s32 4, %v4027_v39 }
  0x43   : > { %2560 = vmatprep.subr.bf16.mxu1 %v3605_v22  ;;  %v4157_v22 = vsub.s32 6, %v4027_v39  ;;  %v466_v39 = vld [vmem:[%s4050_s6 + $0x88] sm:$0xff] }
  0x44   : > { %v4169_v31 = vrot.slane %v4040_v45, %v4150_v19  ;;  %v516_v42 = vunpack.c.h.bf16 %v466_v39 }
  0x45   : > { %2508 = vmatpush2.bf16.msra.mxu0 %v3607_v34  ;;  %v4176_v34 = vrot.slane %v4040_v45, %v4153_v20  ;;  %v4184_v36 = vrot.slane %v4040_v45, %v4157_v22  ;;  %v4230_v40 = vrot.slane %v4055_v49, %v4157_v22 }
  0x46   : > { %2561 = vmatpush2.bf16.msra.mxu1 %v3608_v35  ;;  %2509 = vmatprep.subr.bf16.mxu0 %v3609_v37  ;;  %v4180_v35 = vrot.slane %v4055_v49, %v4153_v20  ;;  %v4188_v37 = vrot.slane %v4040_v45, %v4160_v23  ;;  %v664_v59 = vmul.f32 %v4074_v58, %v516_v42 }
  0x47   : > { %2562 = vmatprep.subr.bf16.mxu1 %v3611_v38  ;;  %v514_v38 = vunpack.c.h.bf16 %v465_v32 }
  0x49   : > { %2510 = vmatpush2.bf16.msra.mxu0 %v3613_v41  ;;  %v474_v41 = vld [vmem:[%s4050_s6 + $0xc8] sm:$0xff]  ;;  %v662_v45 = vmul.f32 %v4061_v52, %v514_v38  ;;  %v452_v38 = vld [vmem:[%s4050_s6 + $0x18] sm:$0xff] }
  0x4a   : > { %2563 = vmatpush2.bf16.msra.mxu1 %v3614_v50  ;;  %2511 = vmatprep.subr.bf16.mxu0 %v3615_v51  ;;  %v532_v50 = vunpack.c.h.bf16 %v474_v41  ;;  %v529_v51 = vunpack.c.l.bf16 %v473_v33  ;;  %v451_v33 = vld [vmem:[%s4050_s6 + $0x10] sm:$0xff] }
  0x4b   : > { %2564 = vmatprep.subr.bf16.mxu1 %v3617_v55  ;;  %v515_v55 = vunpack.c.l.bf16 %v466_v39  ;;  %v810_v52 = vadd.f32 %v4079_v61, %v662_v45  ;;  %v459_v39 = vld [vmem:[%s4050_s6 + $0x50] sm:$0xff]  ;;  %v486_v42 = vunpack.c.h.bf16 %v451_v33 }
  0x4c   : > { %v501_v43 = vunpack.c.l.bf16 %v459_v39 }
  0x4d   : > { %2512 = vmatpush2.bf16.msra.mxu0 %v3619_v56  ;;  %v531_v56 = vunpack.c.l.bf16 %v474_v41  ;;  %v485_v41 = vunpack.c.l.bf16 %v451_v33  ;;  %v3678_v33 = vld [vmem:[%s3987_s25 + $0x3e0] ss:$8 sps:$4 sm:$0xff]  }
  0x4e   : > { %2565 = vmatpush2.bf16.msra.mxu1 %v3620_v63  ;;  %2587 = vmatprep.subr.bf16.mxu0 %v3623_v0  ;;  %v680_v63 = vmul.f32 %v4074_v58, %v532_v50  ;;  %v677_v0 = vmul.f32 %v4092_v7, %v529_v51  ;;  %v3659_v58 = vld [vmem:[%s3987_s25 + $0x214] ss:$8 sps:$4 sm:$0xff]   ;;  %v3663_v50 = vld [vmem:[%s3987_s25 + $0x200] ss:$8 sps:$4 sm:$0xff]  }
  0x4f   : > { %2640 = vmatprep.subr.bf16.mxu1 %v3626_v1  ;;  %v663_v1 = vmul.f32 %v4096_v8, %v515_v55  ;;  %v487_v55 = vunpack.c.l.bf16 %v452_v38 }
  0x50   : > { %2514 = vmatmul.mubr.bf16.vlgmr.msra.gmra.mxu0 %v905_v2  ;;  %v679_v2 = vmul.f32 %v4096_v8, %v531_v56  ;;  %v828_v7 = vadd.f32 %v4086_v3, %v680_v63  ;;  %v809_v8 = vadd.f32 %v4111_v25, %v661_v60  ;;  %v488_v56 = vunpack.c.h.bf16 %v452_v38 }
  0x51   : > { %2567 = vmatmul.mubr.bf16.vlgmr.msra.gmra.mxu1 %v907_v4  ;;  %2588 = vmatpush1.bf16.msra.mxu0 %v3621_v5  ;;  %v3654_v4 = vld [vmem:[%s3987_s25 + $0x320] ss:$8 sps:$4 sm:$0xff]   ;;  %v826_v5 = vadd.f32 %v4079_v61, %v678_v57  ;;  %v811_v61 = vadd.f32 %v4116_v29, %v663_v1  ;;  %v3671_v57 = vld [vmem:[%s3987_s25 + $0x2f4] ss:$8 sps:$4 sm:$0xff]   ;;  %v634_v60 = vmul.f32 %v4176_v34, %v486_v42 }
  0x52   : > { %2641 = vmatpush1.bf16.msra.mxu1 %v3624_v6  ;;  %2589 = vmatprep.subr.bf16.mxu0 %v3629_v9  ;;  %v812_v6 = vadd.f32 %v4086_v3, %v664_v59  ;;  %v3662_v9 = vld [vmem:[%s3987_s25 + $0x314] ss:$8 sps:$4 sm:$0xff]   ;;  %v3665_v3 = vld [vmem:[%s3987_s25 + $0x204] ss:$8 sps:$4 sm:$0xff]   ;;  %v633_v59 = vmul.f32 %v4169_v31, %v485_v41 }
  0x53   : > { %2642 = vmatprep.subr.bf16.mxu1 %v3632_v10  ;;  %v825_v10 = vadd.f32 %v4111_v25, %v677_v0  ;;  %v3674_v0 = vld [vmem:[%s3987_s25 + $0x3f4] ss:$8 sps:$4 sm:$0xff]  }
  0x55   : > { %2590 = vmatpush1.bf16.msra.mxu0 %v3627_v11  ;;  %v3657_v11 = vld [vmem:[%s3987_s25 + $0x210] ss:$8 sps:$4 sm:$0xff]  }
  0x56   : > { %2643 = vmatpush1.bf16.msra.mxu1 %v3630_v12  ;;  %2591 = vmatprep.subr.bf16.mxu0 %v3635_v13  ;;  %v874_v12 = vmax.f32 %v810_v52, 0.0  ;;  %v890_v13 = vmax.f32 %v826_v5, 0.0  ;;  %v3669_v52 = vld [vmem:[%s3987_s25 + $0x2f0] ss:$8 sps:$4 sm:$0xff]   ;;  %v782_v5 = vadd.f32 %v4180_v35, %v634_v60 }
  0x57   : > { %2644 = vmatprep.subr.bf16.mxu1 %v3638_v14  ;;  %v876_v14 = vmax.f32 %v812_v6, 0.0  ;;  %v3684_v60 = vld [vmem:[%s3987_s25 + $0x3d0] ss:$8 sps:$4 sm:$0xff]  }
  0x58   : > { %v922_v25 = vpack.c.bf16 %v890_v13, %v874_v12 }
  0x59   : > { %2592 = vmatpush1.bf16.msra.mxu0 %v3633_v15  ;;  %v3660_v15 = vld [vmem:[%s3987_s25 + $0x310] ss:$8 sps:$4 sm:$0xff]  }
  0x5a   : > { %2645 = vmatpush1.bf16.msra.mxu1 %v3636_v16  ;;  %2593 = vmatprep.subr.bf16.mxu0 %v3641_v17  ;;  %v892_v16 = vmax.f32 %v828_v7, 0.0  ;;  %v873_v17 = vmax.f32 %v809_v8, 0.0  ;;  %v3672_v7 = vld [vmem:[%s3987_s25 + $0x3f0] ss:$8 sps:$4 sm:$0xff]   ;;  %v3677_v8 = vld [vmem:[%s3987_s25 + $0x2e4] ss:$8 sps:$4 sm:$0xff]  }
  0x5b   : > { %2646 = vmatprep.subr.bf16.mxu1 %v3644_v18  ;;  %v889_v18 = vmax.f32 %v825_v10, 0.0  ;;  %2523 = vmatprep.mubr.bf16.mxu0 %v922_v25 }
  0x5d   : > { %2594 = vmatpush1.bf16.msra.mxu0 %v3639_v21  ;;  %v827_v21 = vadd.f32 %v4116_v29, %v679_v2  ;;  %v924_v29 = vpack.c.bf16 %v892_v16, %v876_v14  ;;  %v635_v2 = vmul.f32 %v4184_v36, %v487_v55  ;;  %v4255_v14 = vld [vmem:[%s4050_s6 + $0x90] sm:$0xff] }
  0x5e   : > { %2647 = vmatpush1.bf16.msra.mxu1 %v3642_v24  ;;  %2595 = vmatprep.subr.bf16.mxu0 %v3647_v26  ;;  %v3668_v24 = vld [vmem:[%s3987_s25 + $0x304] ss:$8 sps:$4 sm:$0xff]   ;;  %v875_v26 = vmax.f32 %v811_v61, 0.0  ;;  %v846_v61 = vmax.f32 %v782_v5, 0.0  ;;  %v517_v41 = vunpack.c.l.bf16 %v4255_v14  ;;  %v3686_v55 = vld [vmem:[%s3987_s25 + $0x3d4] ss:$8 sps:$4 sm:$0xff]  }
  0x5f   : > { %2648 = vmatprep.subr.bf16.mxu1 %v3650_v27  ;;  %v4219_v27 = vrot.slane %v4055_v49, %v4160_v23  ;;  %v891_v32 = vmax.f32 %v827_v21, 0.0  ;;  %2576 = vmatprep.mubr.bf16.mxu1 %v924_v29  ;;  %v783_v13 = vadd.f32 %v4230_v40, %v635_v2  ;;  %v3680_v21 = vld [vmem:[%s3987_s25 + $0x3e4] ss:$8 sps:$4 sm:$0xff]  }
  0x60   : > { %v3692_v2 = vld [vmem:[%s3987_s25 + $0x3c4] ss:$8 sps:$4 sm:$0xff]  }
  0x61   : > { %2596 = vmatpush1.bf16.msra.mxu0 %v3645_v28  ;;  %v4223_v28 = vrot.slane %v4055_v49, %v4150_v19  ;;  %v923_v51 = vpack.c.bf16 %v891_v32, %v875_v26  ;;  %v3666_v49 = vld [vmem:[%s3987_s25 + $0x300] ss:$8 sps:$4 sm:$0xff]   ;;  %v847_v26 = vmax.f32 %v783_v13, 0.0  ;;  %v3701_v13 = vld [vmem:[%s3987_s25 + $0x2a4] ss:$8 sps:$4 sm:$0xff]  }
  0x62   : > { %2649 = vmatpush1.bf16.msra.mxu1 %v3648_v30  ;;  %2597 = vmatprep.subr.bf16.mxu0 %v3653_v47  ;;  %v921_v30 = vpack.c.bf16 %v889_v18, %v873_v17  ;;  %v502_v47 = vunpack.c.h.bf16 %v459_v39  ;;  %v4260_v18 = vld [vmem:[%s4050_s6 + $0xd0] sm:$0xff]  ;;  %v3675_v32 = vld [vmem:[%s3987_s25 + $0x2e0] ss:$8 sps:$4 sm:$0xff]  }
  0x63   : > { %2650 = vmatprep.subr.bf16.mxu1 %v3656_v48  ;;  %v460_v48 = vld [vmem:[%s4050_s6 + $0x58] sm:$0xff]  ;;  %2577 = vmatmul.mubr.bf16.gmra.mxu1 %v923_v51  ;;  %v533_v42 = vunpack.c.l.bf16 %v4260_v18 }
  0x64   : > { %2524 = vmatmul.mubr.bf16.gmra.mxu0 %v921_v30  ;;  %v503_v45 = vunpack.c.l.bf16 %v460_v48  ;;  %v504_v63 = vunpack.c.h.bf16 %v460_v48  ;;  %v650_v1 = vmul.f32 %v4176_v34, %v502_v47  ;;  %v3683_v51 = vld [vmem:[%s3987_s25 + $0x2d4] ss:$8 sps:$4 sm:$0xff]  }
  0x65   : > { %2598 = vmatpush1.bf16.msra.mxu0 %v3651_v62  ;;  %v649_v62 = vmul.f32 %v4169_v31, %v501_v43  ;;  %v4270_v43 = vld [vmem:[%s4050_s6 + $0x98] sm:$0xff] }
  0x66   : > { %2651 = vmatpush1.bf16.msra.mxu1 %v3654_v4  ;;  %2599 = vmatprep.subr.bf16.mxu0 %v3659_v58  ;;  %v636_v4 = vmul.f32 %v4188_v37, %v488_v56  ;;  %v651_v6 = vmul.f32 %v4184_v36, %v503_v45  ;;  %v652_v58 = vmul.f32 %v4188_v37, %v504_v63 }
  0x67   : > { %2652 = vmatprep.subr.bf16.mxu1 %v3662_v9  ;;  %v781_v9 = vadd.f32 %v4223_v28, %v633_v59  ;;  %v798_v10 = vadd.f32 %v4180_v35, %v650_v1  ;;  %v797_v12 = vadd.f32 %v4223_v28, %v649_v62  ;;  %v665_v56 = vmul.f32 %v4169_v31, %v517_v41  ;;  %v3716_v41 = vld [vmem:[%s3987_s25 + $0x384] ss:$8 sps:$4 sm:$0xff]  }
  0x68   : > { %v799_v17 = vadd.f32 %v4230_v40, %v651_v6  ;;  %v681_v45 = vmul.f32 %v4169_v31, %v533_v42  ;;  %v3687_v6 = vld [vmem:[%s3987_s25 + $0x2c0] ss:$8 sps:$4 sm:$0xff]  }
  0x69   : > { %2600 = vmatpush1.bf16.msra.mxu0 %v3657_v11  ;;  %v784_v11 = vadd.f32 %v4219_v27, %v636_v4  ;;  %v845_v16 = vmax.f32 %v781_v9, 0.0  ;;  %v861_v25 = vmax.f32 %v797_v12, 0.0  ;;  %v813_v62 = vadd.f32 %v4223_v28, %v665_v56  ;;  %v3695_v9 = vld [vmem:[%s3987_s25 + $0x2b4] ss:$8 sps:$4 sm:$0xff]   ;;  %v3696_v12 = vld [vmem:[%s3987_s25 + $0x3b0] ss:$8 sps:$4 sm:$0xff]  }
  0x6a   : > { %2653 = vmatpush1.bf16.msra.mxu1 %v3660_v15  ;;  %2601 = vmatprep.subr.bf16.mxu0 %v3665_v3  ;;  %v800_v15 = vadd.f32 %v4219_v27, %v652_v58  ;;  %v862_v3 = vmax.f32 %v798_v10, 0.0  ;;  %v863_v30 = vmax.f32 %v799_v17, 0.0  ;;  %v829_v63 = vadd.f32 %v4223_v28, %v681_v45  ;;  %v3698_v10 = vld [vmem:[%s3987_s25 + $0x3b4] ss:$8 sps:$4 sm:$0xff]  }
  0x6b   : > { %2654 = vmatprep.subr.bf16.mxu1 %v3668_v24  ;;  %v848_v24 = vmax.f32 %v784_v11, 0.0  ;;  %v4265_v38 = vpack.c.bf16 %v861_v25, %v845_v16  ;;  %v877_v4 = vmax.f32 %v813_v62, 0.0  ;;  %v534_v16 = vunpack.c.h.bf16 %v4260_v18  ;;  %v3707_v25 = vld [vmem:[%s3987_s25 + $0x294] ss:$8 sps:$4 sm:$0xff]  }
  0x6c   : > { %v864_v29 = vmax.f32 %v800_v15, 0.0  ;;  %v910_v39 = vpack.c.bf16 %v862_v3, %v846_v61  ;;  %v4272_v48 = vpack.c.bf16 %v863_v30, %v847_v26  ;;  %v3704_v61 = vld [vmem:[%s3987_s25 + $0x3a4] ss:$8 sps:$4 sm:$0xff]   ;;  %v518_v15 = vunpack.c.h.bf16 %v4255_v14  ;;  %v3699_v3 = vld [vmem:[%s3987_s25 + $0x2a0] ss:$8 sps:$4 sm:$0xff]  }
  0x6d   : > { %2602 = vmatpush1.bf16.msra.mxu0 %v3663_v50  ;;  %v4275_v50 = vld [vmem:[%s4050_s6 + $0xd8] sm:$0xff]  ;;  %v520_v17 = vunpack.c.h.bf16 %v4270_v43  ;;  %v682_v18 = vmul.f32 %v4176_v34, %v534_v16 }
  0x6e   : > { %2655 = vmatpush1.bf16.msra.mxu1 %v3666_v49  ;;  %2603 = vmatprep.subr.bf16.mxu0 %v3671_v57  ;;  %v912_v47 = vpack.c.bf16 %v864_v29, %v848_v24  ;;  %v3681_v49 = vld [vmem:[%s3987_s25 + $0x2d0] ss:$8 sps:$4 sm:$0xff]   ;;  %v519_v57 = vunpack.c.l.bf16 %v4270_v43  ;;  %v535_v59 = vunpack.c.l.bf16 %v4275_v50  ;;  %v3702_v24 = vld [vmem:[%s3987_s25 + $0x3a0] ss:$8 sps:$4 sm:$0xff]   ;;  %v3710_v26 = vld [vmem:[%s3987_s25 + $0x394] ss:$8 sps:$4 sm:$0xff]   ;;  %v666_v14 = vmul.f32 %v4176_v34, %v518_v15 }
  0x6f   : > { %2656 = vmatprep.subr.bf16.mxu1 %v3674_v0  ;;  %2619 = vmatprep.mubr.bf16.mxu0 %v910_v39  ;;  %v3689_v0 = vld [vmem:[%s3987_s25 + $0x2c4] ss:$8 sps:$4 sm:$0xff]   ;;  %v668_v29 = vmul.f32 %v4188_v37, %v520_v17  ;;  %v830_v34 = vadd.f32 %v4180_v35, %v682_v18  ;;  %v3738_v17 = vld [vmem:[%s3987_s25 + $0x540] ss:$8 sps:$4 sm:$0xff]  }
  0x70   : > { %2672 = vmatprep.mubr.bf16.mxu1 %v912_v47  ;;  %v667_v31 = vmul.f32 %v4184_v36, %v519_v57  ;;  %v683_v1 = vmul.f32 %v4184_v36, %v535_v59  ;;  %v3690_v36 = vld [vmem:[%s3987_s25 + $0x3c0] ss:$8 sps:$4 sm:$0xff]   ;;  %v3713_v39 = vld [vmem:[%s3987_s25 + $0x284] ss:$8 sps:$4 sm:$0xff]   ;;  %v814_v42 = vadd.f32 %v4180_v35, %v666_v14  ;;  %v3717_v57 = vld [vmem:[%s3987_s25 + $0x470] ss:$8 sps:$4 sm:$0xff]  }
  0x71   : > { %2604 = vmatpush2.bf16.msra.mxu0 %v3669_v52  ;;  %v893_v52 = vmax.f32 %v829_v63, 0.0  ;;  %v816_v43 = vadd.f32 %v4219_v27, %v668_v29  ;;  %v3711_v47 = vld [vmem:[%s3987_s25 + $0x280] ss:$8 sps:$4 sm:$0xff]   ;;  %v894_v45 = vmax.f32 %v830_v34, 0.0  ;;  %v3725_v59 = vld [vmem:[%s3987_s25 + $0x464] ss:$8 sps:$4 sm:$0xff]  }
  0x72   : > { %2657 = vmatpush2.bf16.msra.mxu1 %v3672_v7  ;;  %2605 = vmatprep.subr.bf16.mxu0 %v3677_v8  ;;  %v815_v5 = vadd.f32 %v4230_v40, %v667_v31  ;;  %v831_v28 = vadd.f32 %v4230_v40, %v683_v1  ;;  %v3693_v40 = vld [vmem:[%s3987_s25 + $0x2b0] ss:$8 sps:$4 sm:$0xff]   ;;  %v878_v56 = vmax.f32 %v814_v42, 0.0  ;;  %v3726_v31 = vld [vmem:[%s3987_s25 + $0x560] ss:$8 sps:$4 sm:$0xff]  }
  0x73   : > { %2658 = vmatprep.subr.bf16.mxu1 %v3680_v21  ;;  %v4294_v58 = vpack.c.bf16 %v893_v52, %v877_v4  ;;  %v536_v21 = vunpack.c.h.bf16 %v4275_v50  ;;  %v3714_v50 = vld [vmem:[%s3987_s25 + $0x380] ss:$8 sps:$4 sm:$0xff]   ;;  %v3731_v1 = vld [vmem:[%s3987_s25 + $0x454] ss:$8 sps:$4 sm:$0xff]   ;;  %v3729_v4 = vld [vmem:[%s3987_s25 + $0x450] ss:$8 sps:$4 sm:$0xff]  }
  0x74   : > { %v879_v7 = vmax.f32 %v815_v5, 0.0  ;;  %v895_v8 = vmax.f32 %v831_v28, 0.0  ;;  %v926_v62 = vpack.c.bf16 %v894_v45, %v878_v56  ;;  %v3732_v52 = vld [vmem:[%s3987_s25 + $0x550] ss:$8 sps:$4 sm:$0xff]   ;;  %v3737_v5 = vld [vmem:[%s3987_s25 + $0x444] ss:$8 sps:$4 sm:$0xff]  }
  0x75   : > { %2606 = vmatpush2.bf16.msra.mxu0 %v3675_v32  ;;  %v684_v30 = vmul.f32 %v4188_v37, %v536_v21  ;;  %v3705_v32 = vld [vmem:[%s3987_s25 + $0x290] ss:$8 sps:$4 sm:$0xff]   ;;  %v4344_v28 = vld [vmem:[%s4050_s6 + $0x20] sm:$0xff] }
  0x76   : > { %2659 = vmatpush2.bf16.msra.mxu1 %v3678_v33  ;;  %2607 = vmatprep.subr.bf16.mxu0 %v3683_v51  ;;  %v4299_v11 = vpack.c.bf16 %v895_v8, %v879_v7  ;;  %v3708_v33 = vld [vmem:[%s3987_s25 + $0x390] ss:$8 sps:$4 sm:$0xff]   ;;  %v3719_v51 = vld [vmem:[%s3987_s25 + $0x474] ss:$8 sps:$4 sm:$0xff]  }
  0x77   : > { %2660 = vmatprep.subr.bf16.mxu1 %v3686_v55  ;;  %v832_v37 = vadd.f32 %v4219_v27, %v684_v30  ;;  %v3722_v55 = vld [vmem:[%s3987_s25 + $0x574] ss:$8 sps:$4 sm:$0xff]   ;;  %v3720_v27 = vld [vmem:[%s3987_s25 + $0x570] ss:$8 sps:$4 sm:$0xff]  }
  0x78   : > { %v3741_v14 = vld [vmem:[%s3987_s25 + $0x430] ss:$8 sps:$4 sm:$0xff]  }
  0x79   : > { %2608 = vmatpush2.bf16.msra.mxu0 %v3681_v49  ;;  %v880_v49 = vmax.f32 %v816_v43, 0.0  ;;  %v896_v35 = vmax.f32 %v832_v37, 0.0  ;;  %v3744_v30 = vld [vmem:[%s3987_s25 + $0x530] ss:$8 sps:$4 sm:$0xff]   ;;  %v3747_v43 = vld [vmem:[%s3987_s25 + $0x420] ss:$8 sps:$4 sm:$0xff]  }
  0x7a   : > { %2661 = vmatpush2.bf16.msra.mxu1 %v3684_v60  ;;  %2609 = vmatprep.subr.bf16.mxu0 %v3689_v0  ;;  %v3728_v60 = vld [vmem:[%s3987_s25 + $0x564] ss:$8 sps:$4 sm:$0xff]   ;;  %v3723_v0 = vld [vmem:[%s3987_s25 + $0x460] ss:$8 sps:$4 sm:$0xff]   ;;  %v3753_v56 = vld [vmem:[%s3987_s25 + $0x410] ss:$8 sps:$4 sm:$0xff]  }
  0x7b   : > { %2662 = vmatprep.subr.bf16.mxu1 %v3692_v2  ;;  %v928_v63 = vpack.c.bf16 %v896_v35, %v880_v49  ;;  %v3734_v2 = vld [vmem:[%s3987_s25 + $0x554] ss:$8 sps:$4 sm:$0xff]   ;;  %v3756_v45 = vld [vmem:[%s3987_s25 + $0x510] ss:$8 sps:$4 sm:$0xff]   ;;  %v3761_v49 = vld [vmem:[%s3987_s25 + $0x404] ss:$8 sps:$4 sm:$0xff]  }
  0x7c   : > { %v3764_v35 = vld [vmem:[%s3987_s25 + $0x504] ss:$8 sps:$4 sm:$0xff]  }
  0x7d   : > { %2610 = vmatpush2.bf16.msra.mxu0 %v3687_v6  ;;  %v490_v6 = vunpack.c.h.bf16 %v4344_v28 }
  0x7e   : > { %2663 = vmatpush2.bf16.msra.mxu1 %v3690_v36  ;;  %2611 = vmatprep.subr.bf16.mxu0 %v3695_v9  ;;  %v4353_v36 = vld [vmem:[%s4716_s1 + $0x8] sm:$0xff] }
  0x7f   : > { %2664 = vmatprep.subr.bf16.mxu1 %v3698_v10  ;;  %v4358_v9 = vld [vmem:[%s4717_s2 + $0x8] sm:$0xff]  ;;  %v4363_v8 = vrot.slane %v4353_v36, %v4035_v44 }
  0x80   : > { %v4366_v10 = vld [vmem:[%s4050_s6 + $0x28] sm:$0xff] }
  0x81   : > { %2612 = vmatpush2.bf16.msra.mxu0 %v3693_v40  ;;  %v4369_v40 = vld [vmem:[%s4050_s6 + $0x68] sm:$0xff]  ;;  %v638_v15 = vmul.f32 %v4363_v8, %v490_v6  ;;  %v491_v6 = vunpack.c.l.bf16 %v4366_v10 }
  0x82   : > { %2665 = vmatpush2.bf16.msra.mxu1 %v3696_v12  ;;  %2613 = vmatprep.subr.bf16.mxu0 %v3701_v13  ;;  %v4373_v12 = vrot.slane %v4358_v9, %v4035_v44  ;;  %v492_v13 = vunpack.c.h.bf16 %v4366_v10  ;;  %v508_v16 = vunpack.c.h.bf16 %v4369_v40  ;;  %v4385_v44 = vrot.slane %v4353_v36, %v4043_v46  ;;  %v3777_v10 = vld [vmem:[%s3987_s25 + $0x4d0] ss:$8 sps:$4 sm:$0xff]  }
  0x83   : > { %2666 = vmatprep.subr.bf16.mxu1 %v3704_v61  ;;  %v3735_v61 = vld [vmem:[%s3987_s25 + $0x440] ss:$8 sps:$4 sm:$0xff]  }
  0x84   : > { %v656_v29 = vmul.f32 %v4385_v44, %v508_v16 }
  0x85   : > { %2614 = vmatpush2.bf16.msra.mxu0 %v3699_v3  ;;  %v786_v3 = vadd.f32 %v4373_v12, %v638_v15  ;;  %v477_v15 = vld [vmem:[%s4050_s6 + $0xe0] sm:$0xff] }
  0x86   : > { %2667 = vmatpush2.bf16.msra.mxu1 %v3702_v24  ;;  %2615 = vmatprep.subr.bf16.mxu0 %v3707_v25  ;;  %v4392_v24 = vrot.slane %v4358_v9, %v4043_v46 }
  0x87   : > { %2668 = vmatprep.subr.bf16.mxu1 %v3710_v26  ;;  %v640_v26 = vmul.f32 %v4385_v44, %v492_v13  ;;  %v850_v18 = vmax.f32 %v786_v3, 0.0  ;;  %v3782_v13 = vld [vmem:[%s3987_s25 + $0x5d4] ss:$8 sps:$4 sm:$0xff]  }
  0x89   : > { %2616 = vmatpush2.bf16.msra.mxu0 %v3705_v32  ;;  %v3749_v32 = vld [vmem:[%s3987_s25 + $0x424] ss:$8 sps:$4 sm:$0xff]   ;;  %v788_v46 = vadd.f32 %v4392_v24, %v640_v26 }
  0x8a   : > { %2669 = vmatpush2.bf16.msra.mxu1 %v3708_v33  ;;  %2617 = vmatprep.subr.bf16.mxu0 %v3713_v39  ;;  %v3752_v39 = vld [vmem:[%s3987_s25 + $0x524] ss:$8 sps:$4 sm:$0xff]  }
  0x8b   : > { %2670 = vmatprep.subr.bf16.mxu1 %v3716_v41  ;;  %v804_v41 = vadd.f32 %v4392_v24, %v656_v29  ;;  %v852_v34 = vmax.f32 %v788_v46, 0.0  ;;  %v3785_v26 = vld [vmem:[%s3987_s25 + $0x4c4] ss:$8 sps:$4 sm:$0xff]  }
  0x8d   : > { %2618 = vmatpush2.bf16.msra.mxu0 %v3711_v47  ;;  %v868_v37 = vmax.f32 %v804_v41, 0.0  ;;  %v3750_v47 = vld [vmem:[%s3987_s25 + $0x520] ss:$8 sps:$4 sm:$0xff]  }
  0x8e   : > { %2671 = vmatpush2.bf16.msra.mxu1 %v3714_v50  ;;  %2693 = vmatprep.subr.bf16.mxu0 %v3719_v51  ;;  %v3755_v50 = vld [vmem:[%s3987_s25 + $0x414] ss:$8 sps:$4 sm:$0xff]  }
  0x8f   : > { %2746 = vmatprep.subr.bf16.mxu1 %v3722_v55  ;;  %v3758_v51 = vld [vmem:[%s3987_s25 + $0x514] ss:$8 sps:$4 sm:$0xff]   ;;  %v916_v55 = vpack.c.bf16 %v868_v37, %v852_v34  ;;  %v537_v37 = vunpack.c.l.bf16 %v477_v15 }
  0x90   : > { %2620 = vmatmul.mubr.bf16.vlgmr.msra.gmra.mxu0 %v4265_v38  ;;  %v3740_v38 = vld [vmem:[%s3987_s25 + $0x544] ss:$8 sps:$4 sm:$0xff]   ;;  %v3794_v34 = vld [vmem:[%s3987_s25 + $0x5b4] ss:$8 sps:$4 sm:$0xff]  }
  0x91   : > { %2673 = vmatmul.mubr.bf16.vlgmr.msra.gmra.mxu1 %v4272_v48  ;;  %2694 = vmatpush1.bf16.msra.mxu0 %v3717_v57  ;;  %v4347_v48 = vld [vmem:[%s4050_s6 + $0x60] sm:$0xff] }
  0x92   : > { %2747 = vmatpush1.bf16.msra.mxu1 %v3720_v27  ;;  %2695 = vmatprep.subr.bf16.mxu0 %v3725_v59  ;;  %v506_v7 = vunpack.c.h.bf16 %v4347_v48  ;;  %v3759_v57 = vld [vmem:[%s3987_s25 + $0x400] ss:$8 sps:$4 sm:$0xff]   ;;  %v3767_v59 = vld [vmem:[%s3987_s25 + $0x4f4] ss:$8 sps:$4 sm:$0xff]  }
  0x93   : > { %2748 = vmatprep.subr.bf16.mxu1 %v3728_v60  ;;  %2629 = vmatprep.mubr.bf16.mxu0 %v926_v62  ;;  %v3762_v27 = vld [vmem:[%s3987_s25 + $0x500] ss:$8 sps:$4 sm:$0xff]   ;;  %v3770_v60 = vld [vmem:[%s3987_s25 + $0x5f4] ss:$8 sps:$4 sm:$0xff]   ;;  %v3765_v62 = vld [vmem:[%s3987_s25 + $0x4f0] ss:$8 sps:$4 sm:$0xff]  }
  0x94   : > { %2682 = vmatprep.mubr.bf16.mxu1 %v928_v63  ;;  %v654_v21 = vmul.f32 %v4363_v8, %v506_v7  ;;  %v3768_v63 = vld [vmem:[%s3987_s25 + $0x5f0] ss:$8 sps:$4 sm:$0xff]   ;;  %v4431_v7 = vrot.slane %v4353_v36, %v4067_v54 }
  0x95   : > { %2696 = vmatpush1.bf16.msra.mxu0 %v3723_v0  ;;  %v3773_v0 = vld [vmem:[%s3987_s25 + $0x4e4] ss:$8 sps:$4 sm:$0xff]  }
  0x96   : > { %2749 = vmatpush1.bf16.msra.mxu1 %v3726_v31  ;;  %2697 = vmatprep.subr.bf16.mxu0 %v3731_v1  ;;  %v802_v25 = vadd.f32 %v4373_v12, %v654_v21  ;;  %v3776_v31 = vld [vmem:[%s3987_s25 + $0x5e4] ss:$8 sps:$4 sm:$0xff]   ;;  %v3771_v1 = vld [vmem:[%s3987_s25 + $0x4e0] ss:$8 sps:$4 sm:$0xff]   ;;  %v4443_v21 = vrot.slane %v4358_v9, %v4064_v53 }
  0x97   : > { %2750 = vmatprep.subr.bf16.mxu1 %v3734_v2  ;;  %v3774_v2 = vld [vmem:[%s3987_s25 + $0x5e0] ss:$8 sps:$4 sm:$0xff]  }
  0x98   : > { %2630 = vmatmul.mubr.bf16.gmra.mxu0 %v4294_v58  ;;  %v3743_v58 = vld [vmem:[%s3987_s25 + $0x434] ss:$8 sps:$4 sm:$0xff]   ;;  %v866_v33 = vmax.f32 %v802_v25, 0.0  ;;  %v538_v25 = vunpack.c.h.bf16 %v477_v15 }
  0x99   : > { %2683 = vmatmul.mubr.bf16.gmra.mxu1 %v4299_v11  ;;  %2698 = vmatpush1.bf16.msra.mxu0 %v3729_v4  ;;  %v3746_v11 = vld [vmem:[%s3987_s25 + $0x534] ss:$8 sps:$4 sm:$0xff]   ;;  %v489_v4 = vunpack.c.l.bf16 %v4344_v28  ;;  %v469_v28 = vld [vmem:[%s4050_s6 + $0xa0] sm:$0xff] }
  0x9a   : > { %2751 = vmatpush1.bf16.msra.mxu1 %v3732_v52  ;;  %2699 = vmatprep.subr.bf16.mxu0 %v3737_v5  ;;  %v914_v42 = vpack.c.bf16 %v866_v33, %v850_v18  ;;  %v4424_v52 = vrot.slane %v4353_v36, %v4064_v53  ;;  %v3779_v5 = vld [vmem:[%s3987_s25 + $0x4d4] ss:$8 sps:$4 sm:$0xff]   ;;  %v522_v3 = vunpack.c.h.bf16 %v469_v28  ;;  %v3783_v53 = vld [vmem:[%s3987_s25 + $0x4c0] ss:$8 sps:$4 sm:$0xff]   ;;  %v686_v41 = vmul.f32 %v4363_v8, %v538_v25 }
  0x9b   : > { %2752 = vmatprep.subr.bf16.mxu1 %v3740_v38  ;;  %2778 = vmatprep.mubr.bf16.mxu1 %v916_v55  ;;  %v505_v38 = vunpack.c.l.bf16 %v4347_v48  ;;  %v470_v18 = vld [vmem:[%s4050_s6 + $0xa8] sm:$0xff]  ;;  %v455_v15 = vld [vmem:[%s4050_s6 + $0x30] sm:$0xff] }
  0x9c   : > { %2725 = vmatprep.mubr.bf16.mxu0 %v914_v42  ;;  %v637_v48 = vmul.f32 %v4424_v52, %v489_v4  ;;  %v3786_v33 = vld [vmem:[%s3987_s25 + $0x5c0] ss:$8 sps:$4 sm:$0xff]   ;;  %v3791_v42 = vld [vmem:[%s3987_s25 + $0x4b4] ss:$8 sps:$4 sm:$0xff]  }
  0x9d   : > { %2700 = vmatpush1.bf16.msra.mxu0 %v3735_v61  ;;  %v507_v61 = vunpack.c.l.bf16 %v4369_v40  ;;  %v653_v16 = vmul.f32 %v4424_v52, %v505_v38  ;;  %v4447_v40 = vrot.slane %v4358_v9, %v4067_v54  ;;  %v4492_v38 = vrot.slane %v4353_v36, %v4150_v19 }
  0x9e   : > { %2753 = vmatpush1.bf16.msra.mxu1 %v3738_v17  ;;  %2701 = vmatprep.subr.bf16.mxu0 %v3743_v58  ;;  %v639_v17 = vmul.f32 %v4431_v7, %v491_v6  ;;  %v3780_v58 = vld [vmem:[%s3987_s25 + $0x5d0] ss:$8 sps:$4 sm:$0xff]   ;;  %v785_v54 = vadd.f32 %v4443_v21, %v637_v48  ;;  %v3806_v6 = vld [vmem:[%s3987_s25 + $0x594] ss:$8 sps:$4 sm:$0xff]   ;;  %v4506_v48 = vrot.slane %v4353_v36, %v4157_v22 }
  0x9f   : > { %2754 = vmatprep.subr.bf16.mxu1 %v3746_v11  ;;  %v655_v11 = vmul.f32 %v4431_v7, %v507_v61  ;;  %v801_v29 = vadd.f32 %v4443_v21, %v653_v16 }
  0xa0   : > { %v849_v55 = vmax.f32 %v785_v54, 0.0  ;;  %v494_v54 = vunpack.c.h.bf16 %v455_v15 }
  0xa1   : > { %2702 = vmatpush1.bf16.msra.mxu0 %v3741_v14  ;;  %v3788_v14 = vld [vmem:[%s3987_s25 + $0x5c4] ss:$8 sps:$4 sm:$0xff]   ;;  %v803_v46 = vadd.f32 %v4447_v40, %v655_v11  ;;  %v456_v11 = vld [vmem:[%s4050_s6 + $0x38] sm:$0xff] }
  0xa2   : > { %2755 = vmatpush1.bf16.msra.mxu1 %v3744_v30  ;;  %2703 = vmatprep.subr.bf16.mxu0 %v3749_v32  ;;  %v787_v30 = vadd.f32 %v4447_v40, %v639_v17  ;;  %v4459_v32 = vld [vmem:[%s4050_s6 + $0xe8] sm:$0xff] }
  0xa3   : > { %2756 = vmatprep.subr.bf16.mxu1 %v3752_v39  ;;  %v670_v39 = vmul.f32 %v4363_v8, %v522_v3  ;;  %v867_v8 = vmax.f32 %v803_v46, 0.0  ;;  %v464_v3 = vld [vmem:[%s4050_s6 + $0x78] sm:$0xff] }
  0xa5   : > { %2704 = vmatpush1.bf16.msra.mxu0 %v3747_v43  ;;  %v521_v43 = vunpack.c.l.bf16 %v469_v28  ;;  %v539_v28 = vunpack.c.l.bf16 %v4459_v32 }
  0xa6   : > { %2757 = vmatpush1.bf16.msra.mxu1 %v3750_v47  ;;  %2705 = vmatprep.subr.bf16.mxu0 %v3755_v50  ;;  %v524_v47 = vunpack.c.h.bf16 %v470_v18  ;;  %v540_v50 = vunpack.c.h.bf16 %v4459_v32  ;;  %v511_v32 = vunpack.c.l.bf16 %v464_v3 }
  0xa7   : > { %2758 = vmatprep.subr.bf16.mxu1 %v3758_v51  ;;  %v3789_v51 = vld [vmem:[%s3987_s25 + $0x4b0] ss:$8 sps:$4 sm:$0xff]  }
  0xa9   : > { %2706 = vmatpush1.bf16.msra.mxu0 %v3753_v56  ;;  %v865_v56 = vmax.f32 %v801_v29, 0.0  ;;  %v4530_v29 = vrot.slane %v4353_v36, %v4153_v20 }
  0xaa   : > { %2759 = vmatpush1.bf16.msra.mxu1 %v3756_v45  ;;  %2707 = vmatprep.subr.bf16.mxu0 %v3761_v49  ;;  %v3792_v45 = vld [vmem:[%s3987_s25 + $0x5b0] ss:$8 sps:$4 sm:$0xff]   ;;  %v851_v49 = vmax.f32 %v787_v30, 0.0 }
  0xab   : > { %2760 = vmatprep.subr.bf16.mxu1 %v3764_v35  ;;  %v4471_v35 = vadd.f32 %v4373_v12, %v670_v39 }
  0xac   : > { %v4486_v4 = vpack.c.bf16 %v867_v8, %v851_v49  ;;  %v642_v49 = vmul.f32 %v4530_v29, %v494_v54  ;;  %v4554_v8 = vrot.slane %v4358_v9, %v4153_v20  ;;  %v4563_v20 = vrot.slane %v4358_v9, %v4160_v23 }
  0xad   : > { %2708 = vmatpush1.bf16.msra.mxu0 %v3759_v57  ;;  %v4474_v57 = vadd.f32 %v4373_v12, %v686_v41  ;;  %v3798_v12 = vld [vmem:[%s3987_s25 + $0x5a0] ss:$8 sps:$4 sm:$0xff]  }
  0xae   : > { %2761 = vmatpush1.bf16.msra.mxu1 %v3762_v27  ;;  %2709 = vmatprep.subr.bf16.mxu0 %v3767_v59  ;;  %v3797_v27 = vld [vmem:[%s3987_s25 + $0x4a4] ss:$8 sps:$4 sm:$0xff]  }
  0xaf   : > { %2762 = vmatprep.subr.bf16.mxu1 %v3770_v60  ;;  %v3800_v59 = vld [vmem:[%s3987_s25 + $0x5a4] ss:$8 sps:$4 sm:$0xff]   ;;  %v669_v60 = vmul.f32 %v4424_v52, %v521_v43  ;;  %v4540_v43 = vrot.slane %v4353_v36, %v4160_v23  ;;  %v4580_v23 = vld [vmem:[%s4050_s6 + $0xb8] sm:$0xff] }
  0xb1   : > { %2710 = vmatpush2.bf16.msra.mxu0 %v3765_v62  ;;  %v685_v62 = vmul.f32 %v4424_v52, %v537_v37  ;;  %v898_v52 = vmax.f32 %v4474_v57, 0.0  ;;  %v659_v37 = vmul.f32 %v4506_v48, %v511_v32 }
  0xb2   : > { %2763 = vmatpush2.bf16.msra.mxu1 %v3768_v63  ;;  %2711 = vmatprep.subr.bf16.mxu0 %v3773_v0  ;;  %v672_v63 = vmul.f32 %v4385_v44, %v524_v47  ;;  %v688_v0 = vmul.f32 %v4385_v44, %v540_v50  ;;  %v3803_v44 = vld [vmem:[%s3987_s25 + $0x494] ss:$8 sps:$4 sm:$0xff]   ;;  %v3807_v47 = vld [vmem:[%s3987_s25 + $0x480] ss:$8 sps:$4 sm:$0xff]  }
  0xb3   : > { %2764 = vmatprep.subr.bf16.mxu1 %v3776_v31  ;;  %v523_v31 = vunpack.c.l.bf16 %v470_v18  ;;  %v4500_v61 = vadd.f32 %v4443_v21, %v685_v62  ;;  %v3804_v18 = vld [vmem:[%s3987_s25 + $0x590] ss:$8 sps:$4 sm:$0xff]  }
  0xb4   : > { %v4512_v16 = vadd.f32 %v4392_v24, %v688_v0 }
  0xb5   : > { %2712 = vmatpush2.bf16.msra.mxu0 %v3771_v1  ;;  %v3795_v1 = vld [vmem:[%s3987_s25 + $0x4a0] ss:$8 sps:$4 sm:$0xff]   ;;  %v671_v17 = vmul.f32 %v4431_v7, %v523_v31  ;;  %v897_v57 = vmax.f32 %v4500_v61, 0.0 }
  0xb6   : > { %2765 = vmatpush2.bf16.msra.mxu1 %v3774_v2  ;;  %2713 = vmatprep.subr.bf16.mxu0 %v3779_v5  ;;  %v4483_v2 = vpack.c.bf16 %v865_v56, %v849_v55  ;;  %v882_v5 = vmax.f32 %v4471_v35, 0.0  ;;  %v3810_v56 = vld [vmem:[%s3987_s25 + $0x580] ss:$8 sps:$4 sm:$0xff]   ;;  %v900_v36 = vmax.f32 %v4512_v16, 0.0 }
  0xb7   : > { %2766 = vmatprep.subr.bf16.mxu1 %v3782_v13  ;;  %v4497_v13 = vadd.f32 %v4443_v21, %v669_v60  ;;  %v493_v21 = vunpack.c.l.bf16 %v455_v15  ;;  %v819_v15 = vadd.f32 %v4447_v40, %v671_v17  ;;  %v3824_v17 = vld [vmem:[%s3987_s25 + $0x764] ss:$8 sps:$4 sm:$0xff]  }
  0xb9   : > { %2714 = vmatpush2.bf16.msra.mxu0 %v3777_v10  ;;  %v4509_v10 = vadd.f32 %v4392_v24, %v672_v63  ;;  %v3801_v24 = vld [vmem:[%s3987_s25 + $0x490] ss:$8 sps:$4 sm:$0xff]   ;;  %v641_v30 = vmul.f32 %v4492_v38, %v493_v21  ;;  %v881_v35 = vmax.f32 %v4497_v13, 0.0  ;;  %v883_v54 = vmax.f32 %v819_v15, 0.0 }
  0xba   : > { %2767 = vmatpush2.bf16.msra.mxu1 %v3780_v58  ;;  %2715 = vmatprep.subr.bf16.mxu0 %v3785_v26  ;;  %v463_v58 = vld [vmem:[%s4050_s6 + $0x70] sm:$0xff]  ;;  %v495_v26 = vunpack.c.l.bf16 %v456_v11 }
  0xbb   : > { %2768 = vmatprep.subr.bf16.mxu1 %v3788_v14  ;;  %v509_v25 = vunpack.c.l.bf16 %v463_v58  ;;  %v4520_v14 = vrot.slane %v4358_v9, %v4150_v19  ;;  %v3809_v19 = vld [vmem:[%s3987_s25 + $0x484] ss:$8 sps:$4 sm:$0xff]   ;;  %v510_v46 = vunpack.c.h.bf16 %v463_v58  ;;  %v884_v50 = vmax.f32 %v4509_v10, 0.0  ;;  %v3813_v58 = vld [vmem:[%s3987_s25 + $0x670] ss:$8 sps:$4 sm:$0xff]  }
  0xbc   : > { %v643_v41 = vmul.f32 %v4506_v48, %v495_v26  ;;  %v3816_v21 = vld [vmem:[%s3987_s25 + $0x770] ss:$8 sps:$4 sm:$0xff]  }
  0xbd   : > { %2716 = vmatpush2.bf16.msra.mxu0 %v3783_v53  ;;  %v4524_v53 = vrot.slane %v4358_v9, %v4157_v22  ;;  %v687_v22 = vmul.f32 %v4431_v7, %v539_v28  ;;  %v657_v39 = vmul.f32 %v4492_v38, %v509_v25  ;;  %v789_v7 = vadd.f32 %v4520_v14, %v641_v30  ;;  %v4583_v9 = vld [vmem:[%s4050_s6 + $0xf8] sm:$0xff] }
  0xbe   : > { %2769 = vmatpush2.bf16.msra.mxu1 %v3786_v33  ;;  %2717 = vmatprep.subr.bf16.mxu0 %v3791_v42  ;;  %v3812_v33 = vld [vmem:[%s3987_s25 + $0x584] ss:$8 sps:$4 sm:$0xff]   ;;  %v496_v42 = vunpack.c.h.bf16 %v456_v11  ;;  %v658_v60 = vmul.f32 %v4530_v29, %v510_v46  ;;  %v930_v28 = vpack.c.bf16 %v898_v52, %v882_v5  ;;  %v932_v5 = vpack.c.bf16 %v900_v36, %v884_v50  ;;  %v3828_v36 = vld [vmem:[%s3987_s25 + $0x750] ss:$8 sps:$4 sm:$0xff]  }
  0xbf   : > { %2770 = vmatprep.subr.bf16.mxu1 %v3794_v34  ;;  %v512_v34 = vunpack.c.h.bf16 %v464_v3  ;;  %v791_v55 = vadd.f32 %v4524_v53, %v643_v41  ;;  %v853_v62 = vmax.f32 %v789_v7, 0.0  ;;  %v835_v10 = vadd.f32 %v4447_v40, %v687_v22  ;;  %v3821_v40 = vld [vmem:[%s3987_s25 + $0x664] ss:$8 sps:$4 sm:$0xff]   ;;  %v3822_v22 = vld [vmem:[%s3987_s25 + $0x760] ss:$8 sps:$4 sm:$0xff]  }
  0xc0   : > { %v644_v31 = vmul.f32 %v4540_v43, %v496_v42  ;;  %v790_v11 = vadd.f32 %v4554_v8, %v642_v49  ;;  %v806_v3 = vadd.f32 %v4554_v8, %v658_v60  ;;  %v3827_v41 = vld [vmem:[%s3987_s25 + $0x654] ss:$8 sps:$4 sm:$0xff]   ;;  %v929_v7 = vpack.c.bf16 %v897_v57, %v881_v35  ;;  %v3840_v15 = vld [vmem:[%s3987_s25 + $0x730] ss:$8 sps:$4 sm:$0xff]   ;;  %v3846_v35 = vld [vmem:[%s3987_s25 + $0x720] ss:$8 sps:$4 sm:$0xff]  }
  0xc1   : > { %2718 = vmatpush2.bf16.msra.mxu0 %v3789_v51  ;;  %v805_v51 = vadd.f32 %v4520_v14, %v657_v39  ;;  %v855_v0 = vmax.f32 %v791_v55, 0.0  ;;  %v899_v30 = vmax.f32 %v835_v10, 0.0  ;;  %v3845_v10 = vld [vmem:[%s3987_s25 + $0x624] ss:$8 sps:$4 sm:$0xff]   ;;  %v3851_v57 = vld [vmem:[%s3987_s25 + $0x614] ss:$8 sps:$4 sm:$0xff]  }
  0xc2   : > { %2771 = vmatpush2.bf16.msra.mxu1 %v3792_v45  ;;  %2719 = vmatprep.subr.bf16.mxu0 %v3797_v27  ;;  %v3815_v45 = vld [vmem:[%s3987_s25 + $0x674] ss:$8 sps:$4 sm:$0xff]   ;;  %v807_v27 = vadd.f32 %v4524_v53, %v659_v37  ;;  %v792_v13 = vadd.f32 %v4563_v20, %v644_v31  ;;  %v854_v42 = vmax.f32 %v790_v11, 0.0  ;;  %v3834_v31 = vld [vmem:[%s3987_s25 + $0x740] ss:$8 sps:$4 sm:$0xff]  }
  0xc3   : > { %2772 = vmatprep.subr.bf16.mxu1 %v3800_v59  ;;  %v3818_v59 = vld [vmem:[%s3987_s25 + $0x774] ss:$8 sps:$4 sm:$0xff]   ;;  %v869_v63 = vmax.f32 %v805_v51, 0.0  ;;  %v931_v51 = vpack.c.bf16 %v899_v30, %v883_v54  ;;  %v3857_v11 = vld [vmem:[%s3987_s25 + $0x604] ss:$8 sps:$4 sm:$0xff]  }
  0xc4   : > { %v856_v37 = vmax.f32 %v792_v13, 0.0  ;;  %v3863_v13 = vld [vmem:[%s3987_s25 + $0x6f4] ss:$8 sps:$4 sm:$0xff]   ;;  %v3869_v54 = vld [vmem:[%s3987_s25 + $0x6e4] ss:$8 sps:$4 sm:$0xff]  }
  0xc5   : > { %2720 = vmatpush2.bf16.msra.mxu0 %v3795_v1  ;;  %v660_v1 = vmul.f32 %v4540_v43, %v512_v34  ;;  %v4577_v16 = vpack.c.bf16 %v869_v63, %v853_v62  ;;  %v3872_v30 = vld [vmem:[%s3987_s25 + $0x7e4] ss:$8 sps:$4 sm:$0xff]  }
  0xc6   : > { %2773 = vmatpush2.bf16.msra.mxu1 %v3798_v12  ;;  %2721 = vmatprep.subr.bf16.mxu0 %v3803_v44  ;;  %v871_v12 = vmax.f32 %v807_v27, 0.0  ;;  %v4566_v44 = vld [vmem:[%s4050_s6 + $0xb0] sm:$0xff]  ;;  %v3833_v27 = vld [vmem:[%s3987_s25 + $0x644] ss:$8 sps:$4 sm:$0xff]  }
  0xc7   : > { %2774 = vmatprep.subr.bf16.mxu1 %v3806_v6  ;;  %v4569_v6 = vld [vmem:[%s4050_s6 + $0xf0] sm:$0xff]  ;;  %v525_v25 = vunpack.c.l.bf16 %v4566_v44  ;;  %v808_v61 = vadd.f32 %v4563_v20, %v660_v1 }
  0xc8   : > { %v4589_v52 = vpack.c.bf16 %v871_v12, %v855_v0  ;;  %v541_v26 = vunpack.c.l.bf16 %v4569_v6  ;;  %v3831_v0 = vld [vmem:[%s3987_s25 + $0x640] ss:$8 sps:$4 sm:$0xff]   ;;  %v3839_v1 = vld [vmem:[%s3987_s25 + $0x634] ss:$8 sps:$4 sm:$0xff]  }
  0xc9   : > { %2722 = vmatpush2.bf16.msra.mxu0 %v3801_v24  ;;  %v527_v24 = vunpack.c.l.bf16 %v4580_v23  ;;  %v673_v32 = vmul.f32 %v4492_v38, %v525_v25  ;;  %v3842_v12 = vld [vmem:[%s3987_s25 + $0x734] ss:$8 sps:$4 sm:$0xff]   ;;  %v3855_v25 = vld [vmem:[%s3987_s25 + $0x600] ss:$8 sps:$4 sm:$0xff]  }
  0xca   : > { %2775 = vmatpush2.bf16.msra.mxu1 %v3804_v18  ;;  %2723 = vmatprep.subr.bf16.mxu0 %v3809_v19  ;;  %v543_v18 = vunpack.c.l.bf16 %v4583_v9  ;;  %v689_v19 = vmul.f32 %v4492_v38, %v541_v26  ;;  %v3858_v26 = vld [vmem:[%s3987_s25 + $0x700] ss:$8 sps:$4 sm:$0xff]  }
  0xcb   : > { %2776 = vmatprep.subr.bf16.mxu1 %v3812_v33  ;;  %v3819_v33 = vld [vmem:[%s3987_s25 + $0x660] ss:$8 sps:$4 sm:$0xff]   ;;  %v675_v46 = vmul.f32 %v4506_v48, %v527_v24  ;;  %v821_v34 = vadd.f32 %v4520_v14, %v673_v32  ;;  %v3861_v24 = vld [vmem:[%s3987_s25 + $0x6f0] ss:$8 sps:$4 sm:$0xff]  }
  0xcc   : > { %v691_v39 = vmul.f32 %v4506_v48, %v543_v18  ;;  %v837_v38 = vadd.f32 %v4520_v14, %v689_v19  ;;  %v3864_v18 = vld [vmem:[%s3987_s25 + $0x7f0] ss:$8 sps:$4 sm:$0xff]   ;;  %v3867_v32 = vld [vmem:[%s3987_s25 + $0x6e0] ss:$8 sps:$4 sm:$0xff]  }
  0xcd   : > { %2724 = vmatpush2.bf16.msra.mxu0 %v3807_v47  ;;  %v872_v47 = vmax.f32 %v808_v61, 0.0  ;;  %v823_v48 = vadd.f32 %v4524_v53, %v675_v46  ;;  %v885_v55 = vmax.f32 %v821_v34, 0.0  ;;  %v3866_v61 = vld [vmem:[%s3987_s25 + $0x7f4] ss:$8 sps:$4 sm:$0xff]   ;;  %v3870_v19 = vld [vmem:[%s3987_s25 + $0x7e0] ss:$8 sps:$4 sm:$0xff]  }
  0xce   : > { %2777 = vmatpush2.bf16.msra.mxu1 %v3810_v56  ;;  %2799 = vmatprep.subr.bf16.mxu0 %v3815_v45  ;;  %v839_v50 = vadd.f32 %v4524_v53, %v691_v39  ;;  %v901_v56 = vmax.f32 %v837_v38, 0.0  ;;  %v3825_v45 = vld [vmem:[%s3987_s25 + $0x650] ss:$8 sps:$4 sm:$0xff]   ;;  %v3887_v34 = vld [vmem:[%s3987_s25 + $0x6b4] ss:$8 sps:$4 sm:$0xff]  }
  0xcf   : > { %2852 = vmatprep.subr.bf16.mxu1 %v3818_v59  ;;  %v887_v14 = vmax.f32 %v823_v48, 0.0  ;;  %v3836_v59 = vld [vmem:[%s3987_s25 + $0x744] ss:$8 sps:$4 sm:$0xff]   ;;  %v920_v62 = vpack.c.bf16 %v872_v47, %v856_v37  ;;  %v3873_v46 = vld [vmem:[%s3987_s25 + $0x6d0] ss:$8 sps:$4 sm:$0xff]   ;;  %v526_v37 = vunpack.c.h.bf16 %v4566_v44 }
  0xd0   : > { %2726 = vmatmul.mubr.bf16.vlgmr.msra.gmra.mxu0 %v4483_v2  ;;  %v3830_v2 = vld [vmem:[%s3987_s25 + $0x754] ss:$8 sps:$4 sm:$0xff]   ;;  %v903_v49 = vmax.f32 %v839_v50, 0.0  ;;  %v4619_v60 = vpack.c.bf16 %v901_v56, %v885_v55  ;;  %v3876_v39 = vld [vmem:[%s3987_s25 + $0x7d0] ss:$8 sps:$4 sm:$0xff]   ;;  %v542_v50 = vunpack.c.h.bf16 %v4569_v6 }
  0xd1   : > { %2779 = vmatmul.mubr.bf16.vlgmr.msra.gmra.mxu1 %v4486_v4  ;;  %2800 = vmatpush1.bf16.msra.mxu0 %v3813_v58  ;;  %v870_v4 = vmax.f32 %v806_v3, 0.0  ;;  %v3848_v58 = vld [vmem:[%s3987_s25 + $0x724] ss:$8 sps:$4 sm:$0xff]   ;;  %v3890_v38 = vld [vmem:[%s3987_s25 + $0x7b4] ss:$8 sps:$4 sm:$0xff]   ;;  %v674_v44 = vmul.f32 %v4530_v29, %v526_v37 }
  0xd2   : > { %2853 = vmatpush1.bf16.msra.mxu1 %v3816_v21  ;;  %2801 = vmatprep.subr.bf16.mxu0 %v3821_v40  ;;  %v4621_v63 = vpack.c.bf16 %v903_v49, %v887_v14  ;;  %v3843_v21 = vld [vmem:[%s3987_s25 + $0x620] ss:$8 sps:$4 sm:$0xff]   ;;  %v3849_v40 = vld [vmem:[%s3987_s25 + $0x610] ss:$8 sps:$4 sm:$0xff]   ;;  %v3860_v3 = vld [vmem:[%s3987_s25 + $0x704] ss:$8 sps:$4 sm:$0xff]   ;;  %v690_v6 = vmul.f32 %v4530_v29, %v542_v50 }
  0xd3   : > { %2854 = vmatprep.subr.bf16.mxu1 %v3824_v17  ;;  %2735 = vmatprep.mubr.bf16.mxu0 %v930_v28  ;;  %v918_v53 = vpack.c.bf16 %v870_v4, %v854_v42  ;;  %v3837_v28 = vld [vmem:[%s3987_s25 + $0x630] ss:$8 sps:$4 sm:$0xff]   ;;  %v3879_v42 = vld [vmem:[%s3987_s25 + $0x6c0] ss:$8 sps:$4 sm:$0xff]   ;;  %v3893_v55 = vld [vmem:[%s3987_s25 + $0x6a4] ss:$8 sps:$4 sm:$0xff]  }
  0xd4   : > { %2788 = vmatprep.mubr.bf16.mxu1 %v932_v5  ;;  %v3854_v5 = vld [vmem:[%s3987_s25 + $0x714] ss:$8 sps:$4 sm:$0xff]   ;;  %v3852_v17 = vld [vmem:[%s3987_s25 + $0x710] ss:$8 sps:$4 sm:$0xff]   ;;  %v3882_v4 = vld [vmem:[%s3987_s25 + $0x7c0] ss:$8 sps:$4 sm:$0xff]   ;;  %v838_v29 = vadd.f32 %v4554_v8, %v690_v6 }
  0xd5   : > { %2802 = vmatpush1.bf16.msra.mxu0 %v3819_v33  ;;  %v3875_v33 = vld [vmem:[%s3987_s25 + $0x6d4] ss:$8 sps:$4 sm:$0xff]   ;;  %v3885_v47 = vld [vmem:[%s3987_s25 + $0x6b0] ss:$8 sps:$4 sm:$0xff]   ;;  %v3896_v56 = vld [vmem:[%s3987_s25 + $0x7a4] ss:$8 sps:$4 sm:$0xff]  }
  0xd6   : > { %2855 = vmatpush1.bf16.msra.mxu1 %v3822_v22  ;;  %2803 = vmatprep.subr.bf16.mxu0 %v3827_v41  ;;  %v3878_v22 = vld [vmem:[%s3987_s25 + $0x7d4] ss:$8 sps:$4 sm:$0xff]   ;;  %v3881_v41 = vld [vmem:[%s3987_s25 + $0x6c4] ss:$8 sps:$4 sm:$0xff]   ;;  %v3888_v48 = vld [vmem:[%s3987_s25 + $0x7b0] ss:$8 sps:$4 sm:$0xff]  }
  0xd7   : > { %2856 = vmatprep.subr.bf16.mxu1 %v3830_v2  ;;  %v3884_v2 = vld [vmem:[%s3987_s25 + $0x7c4] ss:$8 sps:$4 sm:$0xff]   ;;  %v3899_v14 = vld [vmem:[%s3987_s25 + $0x694] ss:$8 sps:$4 sm:$0xff]  }
  0xd8   : > { %2736 = vmatmul.mubr.bf16.gmra.mxu0 %v929_v7  ;;  %v528_v7 = vunpack.c.h.bf16 %v4580_v23  ;;  %v3902_v49 = vld [vmem:[%s3987_s25 + $0x794] ss:$8 sps:$4 sm:$0xff]  }
  0xd9   : > { %2789 = vmatmul.mubr.bf16.gmra.mxu1 %v931_v51  ;;  %2804 = vmatpush1.bf16.msra.mxu0 %v3825_v45  ;;  %v544_v51 = vunpack.c.h.bf16 %v4583_v9  ;;  %v3891_v45 = vld [vmem:[%s3987_s25 + $0x6a0] ss:$8 sps:$4 sm:$0xff]  }
  0xda   : > { %2857 = vmatpush1.bf16.msra.mxu1 %v3828_v36  ;;  %2805 = vmatprep.subr.bf16.mxu0 %v3833_v27  ;;  %v3894_v36 = vld [vmem:[%s3987_s25 + $0x7a0] ss:$8 sps:$4 sm:$0xff]   ;;  %v676_v23 = vmul.f32 %v4540_v43, %v528_v7  ;;  %v822_v27 = vadd.f32 %v4554_v8, %v674_v44 }
  0xdb   : > { %2858 = vmatprep.subr.bf16.mxu1 %v3836_v59  ;;  %2831 = vmatprep.mubr.bf16.mxu0 %v918_v53  ;;  %v692_v9 = vmul.f32 %v4540_v43, %v544_v51  ;;  %v3897_v59 = vld [vmem:[%s3987_s25 + $0x690] ss:$8 sps:$4 sm:$0xff]   ;;  %v3905_v43 = vld [vmem:[%s3987_s25 + $0x684] ss:$8 sps:$4 sm:$0xff]  }
  0xdc   : > { %2884 = vmatprep.mubr.bf16.mxu1 %v920_v62  ;;  %v3900_v53 = vld [vmem:[%s3987_s25 + $0x790] ss:$8 sps:$4 sm:$0xff]   ;;  %v824_v62 = vadd.f32 %v4563_v20, %v676_v23 }
  0xdd   : > { %2806 = vmatpush1.bf16.msra.mxu0 %v3831_v0  ;;  %v840_v0 = vadd.f32 %v4563_v20, %v692_v9 }
  0xde   : > { %2859 = vmatpush1.bf16.msra.mxu1 %v3834_v31  ;;  %2807 = vmatprep.subr.bf16.mxu0 %v3839_v1  ;;  %v3908_v31 = vld [vmem:[%s3987_s25 + $0x784] ss:$8 sps:$4 sm:$0xff]   ;;  %v3903_v1 = vld [vmem:[%s3987_s25 + $0x680] ss:$8 sps:$4 sm:$0xff]  }
  0xdf   : > { %2860 = vmatprep.subr.bf16.mxu1 %v3842_v12  ;;  %v3906_v12 = vld [vmem:[%s3987_s25 + $0x780] ss:$8 sps:$4 sm:$0xff]  }
  0xe1   : > { %2808 = vmatpush1.bf16.msra.mxu0 %v3837_v28  ;;  %v886_v28 = vmax.f32 %v822_v27, 0.0 }
  0xe2   : > { %2861 = vmatpush1.bf16.msra.mxu1 %v3840_v15  ;;  %2809 = vmatprep.subr.bf16.mxu0 %v3845_v10  ;;  %v902_v15 = vmax.f32 %v838_v29, 0.0  ;;  %v888_v10 = vmax.f32 %v824_v62, 0.0 }
  0xe3   : > { %2862 = vmatprep.subr.bf16.mxu1 %v3848_v58  ;;  %v904_v58 = vmax.f32 %v840_v0, 0.0 }
  0xe4   : > { %v934_v8 = vpack.c.bf16 %v902_v15, %v886_v28 }
  0xe5   : > { %2810 = vmatpush1.bf16.msra.mxu0 %v3843_v21  ;;  %v936_v21 = vpack.c.bf16 %v904_v58, %v888_v10 }
  0xe6   : > { %2863 = vmatpush1.bf16.msra.mxu1 %v3846_v35  ;;  %2811 = vmatprep.subr.bf16.mxu0 %v3851_v57 }
  0xe7   : > { %2864 = vmatprep.subr.bf16.mxu1 %v3854_v5 }
  0xe9   : > { %2812 = vmatpush1.bf16.msra.mxu0 %v3849_v40 }
  0xea   : > { %2865 = vmatpush1.bf16.msra.mxu1 %v3852_v17  ;;  %2813 = vmatprep.subr.bf16.mxu0 %v3857_v11 }
  0xeb   : > { %2866 = vmatprep.subr.bf16.mxu1 %v3860_v3 }
  0xed   : > { %2814 = vmatpush1.bf16.msra.mxu0 %v3855_v25 }
  0xee   : > { %2867 = vmatpush1.bf16.msra.mxu1 %v3858_v26  ;;  %2815 = vmatprep.subr.bf16.mxu0 %v3863_v13 }
  0xef   : > { %2868 = vmatprep.subr.bf16.mxu1 %v3866_v61 }
  0xf1   : > { %2816 = vmatpush2.bf16.msra.mxu0 %v3861_v24 }
  0xf2   : > { %2869 = vmatpush2.bf16.msra.mxu1 %v3864_v18  ;;  %2817 = vmatprep.subr.bf16.mxu0 %v3869_v54 }
  0xf3   : > { %2870 = vmatprep.subr.bf16.mxu1 %v3872_v30 }
  0xf5   : > { %2818 = vmatpush2.bf16.msra.mxu0 %v3867_v32 }
  0xf6   : > { %2871 = vmatpush2.bf16.msra.mxu1 %v3870_v19  ;;  %2819 = vmatprep.subr.bf16.mxu0 %v3875_v33 }
  0xf7   : > { %2872 = vmatprep.subr.bf16.mxu1 %v3878_v22 }
  0xf9   : > { %2820 = vmatpush2.bf16.msra.mxu0 %v3873_v46 }
  0xfa   : > { %2873 = vmatpush2.bf16.msra.mxu1 %v3876_v39  ;;  %2821 = vmatprep.subr.bf16.mxu0 %v3881_v41 }
  0xfb   : > { %2874 = vmatprep.subr.bf16.mxu1 %v3884_v2 }
  0xfd   : > { %2822 = vmatpush2.bf16.msra.mxu0 %v3879_v42 }
  0xfe   : > { %2875 = vmatpush2.bf16.msra.mxu1 %v3882_v4  ;;  %2823 = vmatprep.subr.bf16.mxu0 %v3887_v34 }
  0xff   : > { %2876 = vmatprep.subr.bf16.mxu1 %v3890_v38 }
 0x101   : > { %2824 = vmatpush2.bf16.msra.mxu0 %v3885_v47 }
 0x102   : > { %2877 = vmatpush2.bf16.msra.mxu1 %v3888_v48  ;;  %2825 = vmatprep.subr.bf16.mxu0 %v3893_v55 }
 0x103   : > { %2878 = vmatprep.subr.bf16.mxu1 %v3896_v56 }
 0x105   : > { %2826 = vmatpush2.bf16.msra.mxu0 %v3891_v45 }
 0x106   : > { %2879 = vmatpush2.bf16.msra.mxu1 %v3894_v36  ;;  %2827 = vmatprep.subr.bf16.mxu0 %v3899_v14 }
 0x107   : > { %2880 = vmatprep.subr.bf16.mxu1 %v3902_v49 }
 0x109   : > { %2828 = vmatpush2.bf16.msra.mxu0 %v3897_v59 }
 0x10a   : > { %2881 = vmatpush2.bf16.msra.mxu1 %v3900_v53  ;;  %2829 = vmatprep.subr.bf16.mxu0 %v3905_v43 }
 0x10b   : > { %2882 = vmatprep.subr.bf16.mxu1 %v3908_v31 }
 0x10d   : > { %2830 = vmatpush2.bf16.msra.mxu0 %v3903_v1 }
 0x10e   : > { %2883 = vmatpush2.bf16.msra.mxu1 %v3906_v12 }
 0x110   : > { %2832 = vmatmul.mubr.bf16.vlgmr.msra.gmra.mxu0 %v4577_v16  ;;  %v2515_v20 = vpop.f32.mrf.mxu0 }
 0x111   : > { %2885 = vmatmul.mubr.bf16.vlgmr.msra.gmra.mxu1 %v4589_v52  ;;  %2841 = vmatprep.mubr.bf16.mxu0 %v934_v8  ;;  %v2568_v35 = vpop.f32.mrf.mxu1 }
 0x112   : > { %2894 = vmatprep.mubr.bf16.mxu1 %v936_v21  ;;  %v2517_v57 = vpop.f32.mrf.mxu0  ;;  %v2569_v36 = vadd.f32 %v2568_v35, %v2515_v20 }
 0x113   : > { %v2570_v5 = vpop.f32.mrf.mxu1 }
 0x114   : > { %v2519_v40 = vpop.f32.mrf.mxu0  ;;  %v2571_v6 = vadd.f32 %v2570_v5, %v2517_v57 }
 0x115   : > { %v2572_v17 = vpop.f32.mrf.mxu1 }
 0x116   : > { %v2521_v11 = vpop.f32.mrf.mxu0  ;;  %v2573_v49 = vadd.f32 %v2572_v17, %v2519_v40 }
 0x117   : > { %v2574_v25 = vpop.f32.mrf.mxu1 }
 0x118   : > { %2842 = vmatmul.mubr.bf16.gmra.mxu0 %v4619_v60  ;;  %v2575_v59 = vadd.f32 %v2574_v25, %v2521_v11 }
 0x119   : > { %2895 = vmatmul.mubr.bf16.gmra.mxu1 %v4621_v63 }
 0x123   : > { %v2578_v26 = vpop.f32.mrf.mxu1 }
 0x124   : > { %v2525_v3 = vpop.f32.mrf.mxu0 }
 0x125   : > { %v2580_v16 = vpop.f32.mrf.mxu1  ;;  %v2579_v62 = vadd.f32 %v2578_v26, %v2525_v3 }
 0x126   : > { %v2527_v13 = vpop.f32.mrf.mxu0 }
 0x127   : > { %v2582_v52 = vpop.f32.mrf.mxu1  ;;  %v2581_v58 = vadd.f32 %v2580_v16, %v2527_v13 }
 0x128   : > { %v2529_v61 = vpop.f32.mrf.mxu0 }
 0x129   : > { %v2584_v54 = vpop.f32.mrf.mxu1  ;;  %v2583_v8 = vadd.f32 %v2582_v52, %v2529_v61 }
 0x12a   : > { %v2531_v24 = vpop.f32.mrf.mxu0 }
 0x12b   : > { %v2585_v40 = vadd.f32 %v2584_v54, %v2531_v24 }
 0x150   : > { %v2621_v18 = vpop.f32.mrf.mxu0 }
 0x151   : > { %v2674_v60 = vpop.f32.mrf.mxu1  ;;  %v2622_v23 = vadd.f32 %v2621_v18, %v2569_v36 }
 0x152   : > { %v2623_v30 = vpop.f32.mrf.mxu0 }
 0x153   : > { %v2676_v63 = vpop.f32.mrf.mxu1  ;;  %v2624_v27 = vadd.f32 %v2623_v30, %v2571_v6  ;;  %v2675_v53 = vadd.f32 %v2674_v60, %v2622_v23 }
 0x154   : > { %v2625_v32 = vpop.f32.mrf.mxu0 }
 0x155   : > { %v2678_v19 = vpop.f32.mrf.mxu1  ;;  %v2626_v29 = vadd.f32 %v2625_v32, %v2573_v49  ;;  %v2677_v31 = vadd.f32 %v2676_v63, %v2624_v27 }
 0x156   : > { %v2627_v33 = vpop.f32.mrf.mxu0 }
 0x157   : > { %v2680_v22 = vpop.f32.mrf.mxu1  ;;  %v2628_v1 = vadd.f32 %v2627_v33, %v2575_v59  ;;  %v2679_v15 = vadd.f32 %v2678_v19, %v2626_v29 }
 0x158   : > { %v2631_v46 = vpop.f32.mrf.mxu0 }
 0x159   : > { %v2684_v39 = vpop.f32.mrf.mxu1  ;;  %v2632_v28 = vadd.f32 %v2631_v46, %v2579_v62  ;;  %v2681_v35 = vadd.f32 %v2680_v22, %v2628_v1 }
 0x15a   : > { %v2633_v41 = vpop.f32.mrf.mxu0 }
 0x15b   : > { %v2686_v2 = vpop.f32.mrf.mxu1  ;;  %v2634_v17 = vadd.f32 %v2633_v41, %v2581_v58  ;;  %v2685_v11 = vadd.f32 %v2684_v39, %v2632_v28 }
 0x15c   : > { %v2635_v42 = vpop.f32.mrf.mxu0 }
 0x15d   : > { %v2688_v4 = vpop.f32.mrf.mxu1  ;;  %v2636_v3 = vadd.f32 %v2635_v42, %v2583_v8  ;;  %v2687_v52 = vadd.f32 %v2686_v2, %v2634_v17 }
 0x15e   : > { %v2637_v34 = vpop.f32.mrf.mxu0 }
 0x15f   : > { %v2690_v38 = vpop.f32.mrf.mxu1  ;;  %v2638_v63 = vadd.f32 %v2637_v34, %v2585_v40  ;;  %v2689_v33 = vadd.f32 %v2688_v4, %v2636_v3 }
 0x161   : > { %v2691_v42 = vadd.f32 %v2690_v38, %v2638_v63 }
 0x190   : > { %v2727_v37 = vpop.f32.mrf.mxu0 }
 0x191   : > { %v2780_v47 = vpop.f32.mrf.mxu1  ;;  %v2728_v12 = vadd.f32 %v2727_v37, %v2675_v53 }
 0x192   : > { %v2729_v48 = vpop.f32.mrf.mxu0 }
 0x193   : > { %v2782_v50 = vpop.f32.mrf.mxu1  ;;  %v2730_v10 = vadd.f32 %v2729_v48, %v2677_v31  ;;  %v2781_v57 = vadd.f32 %v2780_v47, %v2728_v12 }
 0x194   : > { %v2731_v7 = vpop.f32.mrf.mxu0 }
 0x195   : > { %v2784_v51 = vpop.f32.mrf.mxu1  ;;  %v2732_v5 = vadd.f32 %v2731_v7, %v2679_v15  ;;  %v2783_v18 = vadd.f32 %v2782_v50, %v2730_v10 }
 0x196   : > { %v2733_v55 = vpop.f32.mrf.mxu0 }
 0x197   : > { %v2786_v56 = vpop.f32.mrf.mxu1  ;;  %v2734_v60 = vadd.f32 %v2733_v55, %v2681_v35  ;;  %v2785_v16 = vadd.f32 %v2784_v51, %v2732_v5 }
 0x198   : > { %v2737_v44 = vpop.f32.mrf.mxu0 }
 0x199   : > { %v2790_v45 = vpop.f32.mrf.mxu1  ;;  %v2738_v32 = vadd.f32 %v2737_v44, %v2685_v11  ;;  %v2787_v54 = vadd.f32 %v2786_v56, %v2734_v60 }
 0x19a   : > { %v2739_v9 = vpop.f32.mrf.mxu0 }
 0x19b   : > { %v2792_v14 = vpop.f32.mrf.mxu1  ;;  %v2740_v37 = vadd.f32 %v2739_v9, %v2687_v52  ;;  %v2791_v47 = vadd.f32 %v2790_v45, %v2738_v32 }
 0x19c   : > { %v2741_v0 = vpop.f32.mrf.mxu0 }
 0x19d   : > { %v2794_v43 = vpop.f32.mrf.mxu1  ;;  %v2742_v2 = vadd.f32 %v2741_v0, %v2689_v33  ;;  %v2793_v45 = vadd.f32 %v2792_v14, %v2740_v37 }
 0x19e   : > { %v2743_v21 = vpop.f32.mrf.mxu0 }
 0x19f   : > { %v2796_v20 = vpop.f32.mrf.mxu1  ;;  %v2744_v56 = vadd.f32 %v2743_v21, %v2691_v42  ;;  %v2795_v9 = vadd.f32 %v2794_v43, %v2742_v2 }
 0x1a1   : > { %v2797_v31 = vadd.f32 %v2796_v20, %v2744_v56 }
 0x1d0   : > { %v2833_v25 = vpop.f32.mrf.mxu0 }
 0x1d1   : > { %v2886_v26 = vpop.f32.mrf.mxu1  ;;  %v2834_v30 = vadd.f32 %v2833_v25, %v2781_v57 }
 0x1d2   : > { %v2835_v19 = vpop.f32.mrf.mxu0 }
 0x1d3   : > { %v2888_v13 = vpop.f32.mrf.mxu1  ;;  %v2836_v61 = vadd.f32 %v2835_v19, %v2783_v18  ;;  %v2887_v46 = vadd.f32 %v2886_v26, %v2834_v30 }
 0x1d4   : > { %v2837_v22 = vpop.f32.mrf.mxu0 }
 0x1d5   : > { %v2890_v24 = vpop.f32.mrf.mxu1  ;;  %v2889_v39 = vadd.f32 %v2888_v13, %v2836_v61  ;;  %v2838_v41 = vadd.f32 %v2837_v22, %v2785_v16  ;;  %v2968_v27 = vmul.f32 %v2887_v46, %v2887_v46 }
 0x1d6   : > { %v2839_v34 = vpop.f32.mrf.mxu0 }
 0x1d7   : > { %v2892_v48 = vpop.f32.mrf.mxu1  ;;  %v3497_v4 = vpack.c.bf16 %v2889_v39, %v2887_v46  ;;  %v2891_v50 = vadd.f32 %v2890_v24, %v2838_v41  ;;  %v2840_v7 = vadd.f32 %v2839_v34, %v2787_v54  ;;  %v2969_v28 = vmul.f32 %v2889_v39, %v2889_v39 }
 0x1d8   : > { %v2843_v51 = vpop.f32.mrf.mxu0 }
 0x1d9   : > { %v2896_v55 = vpop.f32.mrf.mxu1  ;;  %2956 = vst [vmem:[%s4695_s16] sm:$0xff] %v3497_v4  ;;  %v2893_v38 = vadd.f32 %v2892_v48, %v2840_v7  ;;  %v2844_v44 = vadd.f32 %v2843_v51, %v2791_v47  ;;  %v2970_v36 = vmul.f32 %v2891_v50, %v2891_v50  ;;  %v2960_v1 = vadd.f32 %v2891_v50, %v2887_v46 }
 0x1da   : > { %v2845_v6 = vpop.f32.mrf.mxu0 }
 0x1db   : > { %v2898_v23 = vpop.f32.mrf.mxu1  ;;  %v3498_v49 = vpack.c.bf16 %v2893_v38, %v2891_v50  ;;  %v2971_v59 = vmul.f32 %v2893_v38, %v2893_v38  ;;  %v2897_v53 = vadd.f32 %v2896_v55, %v2844_v44  ;;  %v2846_v29 = vadd.f32 %v2845_v6, %v2793_v45 }
 0x1dc   : > { %v2847_v62 = vpop.f32.mrf.mxu0  ;;  %v2976_v15 = vadd.f32 %v2970_v36, %v2968_v27  ;;  %v2963_v8 = vadd.f32 %v2893_v38, %v2889_v39 }
 0x1dd   : > { %v2900_v0 = vpop.f32.mrf.mxu1  ;;  %2957 = vst [vmem:[%s4695_s16 + $0x8] sm:$0xff] %v3498_v49  ;;  %v2848_v12 = vadd.f32 %v2847_v62, %v2795_v9  ;;  %v2972_v10 = vmul.f32 %v2897_v53, %v2897_v53  ;;  %v2899_v14 = vadd.f32 %v2898_v23, %v2846_v29  ;;  %v2961_v43 = vadd.f32 %v2960_v1, %v2897_v53 }
 0x1de   : > { %v2849_v58 = vpop.f32.mrf.mxu0  ;;  %v2979_v57 = vadd.f32 %v2971_v59, %v2969_v28 }
 0x1df   : > { %v2901_v21 = vadd.f32 %v2900_v0, %v2848_v12  ;;  %v2850_v35 = vadd.f32 %v2849_v58, %v2797_v31  ;;  %v2977_v5 = vadd.f32 %v2976_v15, %v2972_v10  ;;  %v3499_v40 = vpack.c.bf16 %v2899_v14, %v2897_v53  ;;  %v2902_v20 = vpop.f32.mrf.mxu1 }
 0x1e0   : > { %v2973_v17 = vmul.f32 %v2899_v14, %v2899_v14  ;;  %v2964_v11 = vadd.f32 %v2963_v8, %v2899_v14 }
 0x1e1   : > { %v2962_v3 = vadd.f32 %v2961_v43, %v2901_v21  ;;  %v2974_v25 = vmul.f32 %v2901_v21, %v2901_v21  ;;  %v2903_v26 = vadd.f32 %v2902_v20, %v2850_v35  ;;  %2958 = vst [vmem:[%s4695_s16 + $0x10] sm:$0xff] %v3499_v40 }
 0x1e2   : > { %v2980_v18 = vadd.f32 %v2979_v57, %v2973_v17 }
 0x1e3   : > { %2966 = vst [vmem:[%s435_s23] sm:$0xff] %v2962_v3  ;;  %v2978_v60 = vadd.f32 %v2977_v5, %v2974_v25  ;;  %v3500_v30 = vpack.c.bf16 %v2903_v26, %v2901_v21  ;;  %v2965_v63 = vadd.f32 %v2964_v11, %v2903_v26  ;;  %v2975_v32 = vmul.f32 %v2903_v26, %v2903_v26 }
 0x1e5   : > { %2982 = vst [vmem:[%s435_s23 + $0x10] sm:$0xff] %v2978_v60  ;;  %2959 = vst [vmem:[%s4695_s16 + $0x18] sm:$0xff] %v3500_v30  ;;  %v2981_v19 = vadd.f32 %v2980_v18, %v2975_v32 }
 0x1e6   : > { %2967 = vst [vmem:[%s435_s23 + $0x8] sm:$0xff] %v2965_v63 }
 0x1e7   : > { %2983 = vst [vmem:[%s435_s23 + $0x18] sm:$0xff] %v2981_v19 }
 0x1e8 PF: > { %s16_s20 = sadd.s32 1, %s3931_s20   ;;  %s4721_s18 = smov %s3927_s19 }
 0x1e9   : > { %p13_p5 = scmp.ge.s32.totalorder %s16_s20, 6   ;;  %s4722_s19 = smov %s4724_s21 }
 0x1eb   :  { %15 = sbr.rel (!%p13_p5) target bundleno = 2 (0x2), region = 95 }

// kernel: generator_cifar_forward.6
= control target key start
LH: loop header
LB: loop body
LE: loop exit
PB: predicated region body
PF: predicated region fallthrough
CT: control target
= control target key end

     0   :  { %s3040_s18 = smov 0   ;;  %s3042_s19 = smov 0   ;;  %s3639_s0 = inlined_call_operand.vmem [shape: bf16[4,128,1024], index: 0, kind: input, shape index: {}]   ;;  %s3640_s1 = inlined_call_operand.vmem [shape: f32[1,1024], index: 1, kind: input, shape index: {}]   ;;  %s3641_s2 = inlined_call_operand.vmem [shape: f32[1,1024], index: 2, kind: input, shape index: {}]   ;;  %s3642_s3 = inlined_call_operand.vmem [shape: bf16[4,1024,128], index: 3, kind: input, shape index: {}]   ;;  %s3643_s4 = inlined_call_operand.vmem [shape: bf16[4,128,128], index: 4, kind: output, shape index: {0}]   ;;  %s3644_s5 = inlined_call_operand.vmem [shape: f32[4,1,16,128], index: 5, kind: output, shape index: {1}]  }
   0x1   :  { %s3044_s20 = smov 0  }
   0x2 LB: > { %s42_s21 = sadd.s32 1, %s3004_s19  ;;  %p2484_p0 = scmp.ge.s32.totalorder %s3008_s20, 1  ;;  %s3008_s20 = sphi %s3044_s20, %s16_s20   ;;  %s3004_s19 = sphi %s3042_s19, %s3646_s19   ;;  %s3000_s18 = sphi %s3040_s18, %s3645_s18  }
   0x3   : > { %p44_p1 = scmp.ge.s32.totalorder %s42_s21, 4  ;;  %p281_p2 = scmp.lt.s32.totalorder %s3008_s20, 5 }
   0x5   : > { %s3648_s21 = smov (%p44_p1, %s42_s21), 0  ;;  %p282_p3 = pnand %p2484_p0, %p281_p2 }
   0x6   : > { %p359_p4 = scmp.lt.s32.totalorder (!%p282_p3), %s3000_s18, 3 }
   0x7   : > { %285 = sbr.rel (%p282_p3) target bundleno = 389 (0x185), region = 36 }
   0xc   : > { %v636_v0 = vlaneseq  ;;  %s3650_s18 = smov (!%p359_p4, %s3000_s18), 3  ;;  %v3073_v2 = vld [vmem:[%s3640_s1] sm:$0xff] }
   0xd   : > { %s2575_s22 = sshll.u32 %s3650_s18, 9  ;;  %v3078_v3 = vld [vmem:[%s3641_s2] sm:$0xff]  ;;  %s2577_s8 = sshll.u32 %s3650_s18, 6 }
   0xe   : > { %v3060_v1 = vshrl.u32 %v636_v0, 7  ;;  %s3068_s25 = scalar_lea.vmem %s3642_s3, %s2575_s22  ;;  %s3147_s7 = scalar_lea.vmem %s3639_s0, %s2575_s22 }
   0xf   : > { %v2922_v8 = vld [vmem:[%s3068_s25 + $0x78] sm:$0xff]   ;;  %v2926_v20 = vld [vmem:[%s3068_s25 + $0x70] sm:$0xff]   ;;  %v2930_v24 = vld [vmem:[%s3068_s25 + $0x68] sm:$0xff]   ;;  %s3602_s11 = scalar_lea.vmem %s3643_s4, %s2577_s8  ;;  %s2578_s12 = sshll.u32 %s3650_s18, 4 }
  0x10   : > { %v654_v4 = vsub.s32 4, %v3060_v1  ;;  %v658_v5 = vsub.s32 5, %v3060_v1  ;;  %v662_v6 = vsub.s32 6, %v3060_v1  ;;  %v666_v7 = vsub.s32 7, %v3060_v1  ;;  %v2923_v9 = vld [vmem:[%s3068_s25 + $0xf8] sm:$0xff]   ;;  %2642 = vmatprep.subr.bf16.mxu0 %v2922_v8  ;;  %v2927_v21 = vld [vmem:[%s3068_s25 + $0xf0] sm:$0xff]   ;;  %s420_s15 = scalar_lea.vmem %s3644_s5, %s2578_s12 }
  0x11   : > { %v2924_v10 = vld [vmem:[%s3068_s25 + $0x38] sm:$0xff]   ;;  %2706 = vmatprep.subr.bf16.mxu1 %v2923_v9  ;;  %v2928_v22 = vld [vmem:[%s3068_s25 + $0x30] sm:$0xff]   ;;  %v2931_v25 = vld [vmem:[%s3068_s25 + $0xe8] sm:$0xff]   ;;  %v642_v42 = vsub.s32 1, %v3060_v1  ;;  %v650_v44 = vsub.s32 3, %v3060_v1  ;;  %v638_v46 = vsub.s32 0, %v3060_v1 }
  0x12   : > { %v3088_v11 = vrot.slane %v3073_v2, %v654_v4  ;;  %v3091_v12 = vrot.slane %v3073_v2, %v658_v5  ;;  %v3094_v13 = vrot.slane %v3078_v3, %v658_v5  ;;  %v3097_v14 = vrot.slane %v3073_v2, %v662_v6  ;;  %v2925_v15 = vld [vmem:[%s3068_s25 + $0xb8] sm:$0xff]   ;;  %2643 = vmatpush3.bf16.msra.mxu0 %v2924_v10  ;;  %v2929_v23 = vld [vmem:[%s3068_s25 + $0xb0] sm:$0xff]   ;;  %v2932_v26 = vld [vmem:[%s3068_s25 + $0x28] sm:$0xff]  }
  0x13   : > { %v3101_v16 = vrot.slane %v3073_v2, %v666_v7  ;;  %v3104_v17 = vrot.slane %v3078_v3, %v666_v7  ;;  %v3107_v18 = vrot.slane %v3078_v3, %v654_v4  ;;  %v3110_v19 = vrot.slane %v3078_v3, %v662_v6  ;;  %2707 = vmatpush3.bf16.msra.mxu1 %v2925_v15  ;;  %v2933_v27 = vld [vmem:[%s3068_s25 + $0xa8] sm:$0xff]   ;;  %v2934_v28 = vld [vmem:[%s3068_s25 + $0x60] sm:$0xff]   ;;  %v2938_v32 = vld [vmem:[%s3068_s25 + $0x58] sm:$0xff]  }
  0x14   : > { %2644 = vmatprep.subr.bf16.mxu0 %v2926_v20  ;;  %2708 = vmatprep.subr.bf16.mxu1 %v2927_v21  ;;  %v2935_v29 = vld [vmem:[%s3068_s25 + $0xe0] sm:$0xff]   ;;  %v2939_v33 = vld [vmem:[%s3068_s25 + $0xd8] sm:$0xff]   ;;  %v2942_v36 = vld [vmem:[%s3068_s25 + $0x50] sm:$0xff]   ;;  %v646_v48 = vsub.s32 2, %v3060_v1  ;;  %v3152_v52 = vrot.slane %v3073_v2, %v642_v42  ;;  %v3155_v53 = vrot.slane %v3078_v3, %v642_v42  ;;  %v3158_v54 = vrot.slane %v3073_v2, %v650_v44 }
  0x15   : > { %v2936_v30 = vld [vmem:[%s3068_s25 + $0x20] sm:$0xff]   ;;  %v2940_v34 = vld [vmem:[%s3068_s25 + $0x18] sm:$0xff]   ;;  %v2943_v37 = vld [vmem:[%s3068_s25 + $0xd0] sm:$0xff]   ;;  %v3161_v55 = vrot.slane %v3073_v2, %v638_v46  ;;  %v3167_v59 = vrot.slane %v3078_v3, %v650_v44  ;;  %v3170_v60 = vrot.slane %v3078_v3, %v638_v46 }
  0x16   : > { %2645 = vmatpush3.bf16.msra.mxu0 %v2928_v22  ;;  %v2937_v31 = vld [vmem:[%s3068_s25 + $0xa0] sm:$0xff]   ;;  %v2941_v35 = vld [vmem:[%s3068_s25 + $0x98] sm:$0xff]   ;;  %v2944_v38 = vld [vmem:[%s3068_s25 + $0x10] sm:$0xff]   ;;  %v3173_v61 = vrot.slane %v3073_v2, %v646_v48  ;;  %v3176_v62 = vrot.slane %v3078_v3, %v646_v48 }
  0x17   : > { %2709 = vmatpush3.bf16.msra.mxu1 %v2929_v23  ;;  %2646 = vmatprep.subr.bf16.mxu0 %v2930_v24  ;;  %v2945_v39 = vld [vmem:[%s3068_s25 + $0x90] sm:$0xff]   ;;  %v2946_v40 = vld [vmem:[%s3068_s25 + $0x48] sm:$0xff]   ;;  %v2950_v47 = vld [vmem:[%s3068_s25 + $0x40] sm:$0xff]  }
  0x18   : > { %2710 = vmatprep.subr.bf16.mxu1 %v2931_v25  ;;  %v2947_v41 = vld [vmem:[%s3068_s25 + $0xc8] sm:$0xff]   ;;  %v2951_v49 = vld [vmem:[%s3068_s25 + $0xc0] sm:$0xff]   ;;  %v2954_v10 = vld [vmem:[%s3068_s25 + $0x178] sm:$0xff]  }
  0x19   : > { %v2948_v43 = vld [vmem:[%s3068_s25 + $0x8] sm:$0xff]   ;;  %v2952_v50 = vld [vmem:[%s3068_s25] sm:$0xff]   ;;  %v2956_v25 = vld [vmem:[%s3068_s25 + $0x1f8] sm:$0xff]  }
  0x1a   : > { %2647 = vmatpush3.bf16.msra.mxu0 %v2932_v26  ;;  %v2949_v45 = vld [vmem:[%s3068_s25 + $0x88] sm:$0xff]   ;;  %v2953_v51 = vld [vmem:[%s3068_s25 + $0x80] sm:$0xff]   ;;  %v2955_v46 = vld [vmem:[%s3068_s25 + $0x138] sm:$0xff]  }
  0x1b   : > { %2711 = vmatpush3.bf16.msra.mxu1 %v2933_v27  ;;  %2648 = vmatprep.subr.bf16.mxu0 %v2934_v28  ;;  %v442_v56 = vld [vmem:[%s3147_s7] sm:$0xff]  ;;  %v443_v58 = vld [vmem:[%s3147_s7 + $0x8] sm:$0xff] }
  0x1c   : > { %2712 = vmatprep.subr.bf16.mxu1 %v2935_v29  ;;  %v446_v57 = vld [vmem:[%s3147_s7 + $0x20] sm:$0xff]  ;;  %v506_v63 = vunpack.c.l.bf16 %v442_v56  ;;  %v507_v0 = vunpack.c.h.bf16 %v442_v56  ;;  %v447_v5 = vld [vmem:[%s3147_s7 + $0x28] sm:$0xff]  ;;  %v508_v6 = vunpack.c.l.bf16 %v443_v58  ;;  %v509_v7 = vunpack.c.h.bf16 %v443_v58 }
  0x1d   : > { %v514_v1 = vunpack.c.l.bf16 %v446_v57  ;;  %v515_v4 = vunpack.c.h.bf16 %v446_v57  ;;  %v516_v8 = vunpack.c.l.bf16 %v447_v5  ;;  %v517_v9 = vunpack.c.h.bf16 %v447_v5 }
  0x1e   : > { %2649 = vmatpush3.bf16.msra.mxu0 %v2936_v30  ;;  %v677_v2 = vmul.f32 %v3152_v52, %v507_v0  ;;  %v676_v3 = vmul.f32 %v3161_v55, %v506_v63  ;;  %v679_v21 = vmul.f32 %v3158_v54, %v509_v7  ;;  %v678_v23 = vmul.f32 %v3173_v61, %v508_v6  ;;  %v450_v30 = vld [vmem:[%s3147_s7 + $0x40] sm:$0xff]  ;;  %v2958_v0 = vld [vmem:[%s3068_s25 + $0x170] sm:$0xff]  }
  0x1f   : > { %2713 = vmatpush3.bf16.msra.mxu1 %v2937_v31  ;;  %2650 = vmatprep.subr.bf16.mxu0 %v2938_v32  ;;  %v685_v15 = vmul.f32 %v3152_v52, %v515_v4  ;;  %v684_v20 = vmul.f32 %v3161_v55, %v514_v1  ;;  %v687_v22 = vmul.f32 %v3158_v54, %v517_v9  ;;  %v454_v31 = vld [vmem:[%s3147_s7 + $0x60] sm:$0xff]  ;;  %v522_v5 = vunpack.c.l.bf16 %v450_v30  ;;  %v2960_v7 = vld [vmem:[%s3068_s25 + $0x1f0] sm:$0xff]  }
  0x20   : > { %2714 = vmatprep.subr.bf16.mxu1 %v2939_v33  ;;  %v686_v24 = vmul.f32 %v3173_v61, %v516_v8  ;;  %v847_v26 = vadd.f32 %v3155_v53, %v677_v2  ;;  %v846_v28 = vadd.f32 %v3170_v60, %v676_v3  ;;  %v849_v32 = vadd.f32 %v3167_v59, %v679_v21  ;;  %v3208_v8 = vld [vmem:[%s3147_s7 + $0x80] sm:$0xff]  ;;  %v2959_v3 = vld [vmem:[%s3068_s25 + $0x130] sm:$0xff]  }
  0x21   : > { %v855_v27 = vadd.f32 %v3155_v53, %v685_v15  ;;  %v854_v29 = vadd.f32 %v3170_v60, %v684_v20  ;;  %v857_v33 = vadd.f32 %v3167_v59, %v687_v22  ;;  %v530_v6 = vunpack.c.l.bf16 %v454_v31  ;;  %v2961_v20 = vld [vmem:[%s3068_s25 + $0x1b0] sm:$0xff]  }
  0x22   : > { %2651 = vmatpush3.bf16.msra.mxu0 %v2940_v34  ;;  %v848_v34 = vadd.f32 %v3176_v62, %v678_v23  ;;  %v977_v42 = vmax.f32 %v849_v32, 0.0  ;;  %v692_v23 = vmul.f32 %v3161_v55, %v522_v5 }
  0x23   : > { %2715 = vmatpush3.bf16.msra.mxu1 %v2941_v35  ;;  %2652 = vmatprep.subr.bf16.mxu0 %v2942_v36  ;;  %v856_v35 = vadd.f32 %v3176_v62, %v686_v24  ;;  %v451_v36 = vld [vmem:[%s3147_s7 + $0x48] sm:$0xff]  ;;  %v462_v24 = vld [vmem:[%s3147_s7 + $0xa0] sm:$0xff] }
  0x24   : > { %2716 = vmatprep.subr.bf16.mxu1 %v2943_v37  ;;  %v455_v37 = vld [vmem:[%s3147_s7 + $0x68] sm:$0xff]  ;;  %v976_v44 = vmax.f32 %v848_v34, 0.0  ;;  %v525_v58 = vunpack.c.h.bf16 %v451_v36  ;;  %v524_v2 = vunpack.c.l.bf16 %v451_v36  ;;  %v862_v34 = vadd.f32 %v3170_v60, %v692_v23 }
  0x25   : > { %v533_v63 = vunpack.c.h.bf16 %v455_v37  ;;  %v532_v15 = vunpack.c.l.bf16 %v455_v37 }
  0x26   : > { %2653 = vmatpush3.bf16.msra.mxu0 %v2944_v38  ;;  %v975_v38 = vmax.f32 %v847_v26, 0.0  ;;  %v695_v9 = vmul.f32 %v3158_v54, %v525_v58 }
  0x27   : > { %2717 = vmatpush3.bf16.msra.mxu1 %v2945_v39  ;;  %2654 = vmatprep.subr.bf16.mxu0 %v2946_v40  ;;  %v983_v39 = vmax.f32 %v855_v27, 0.0  ;;  %v974_v40 = vmax.f32 %v846_v28, 0.0  ;;  %v700_v28 = vmul.f32 %v3161_v55, %v530_v6  ;;  %v538_v6 = vunpack.c.l.bf16 %v3208_v8 }
  0x28   : > { %2718 = vmatprep.subr.bf16.mxu1 %v2947_v41  ;;  %v982_v41 = vmax.f32 %v854_v29, 0.0  ;;  %v865_v26 = vadd.f32 %v3167_v59, %v695_v9  ;;  %v694_v29 = vmul.f32 %v3173_v61, %v524_v2  ;;  %v2967_v9 = vld [vmem:[%s3068_s25 + $0x120] sm:$0xff]  }
  0x29   : > { %v1103_v48 = vpack.c.bf16 %v983_v39, %v975_v38  ;;  %v870_v38 = vadd.f32 %v3170_v60, %v700_v28 }
  0x2a   : > { %2655 = vmatpush3.bf16.msra.mxu0 %v2948_v43  ;;  %v985_v43 = vmax.f32 %v857_v33, 0.0  ;;  %v993_v36 = vmax.f32 %v865_v26, 0.0  ;;  %v864_v39 = vadd.f32 %v3176_v62, %v694_v29  ;;  %v470_v29 = vld [vmem:[%s3147_s7 + $0xe0] sm:$0xff] }
  0x2b   : > { %2719 = vmatpush3.bf16.msra.mxu1 %v2949_v45  ;;  %2656 = vmatprep.subr.bf16.mxu0 %v2950_v47  ;;  %v984_v45 = vmax.f32 %v856_v35, 0.0  ;;  %v2957_v47 = vld [vmem:[%s3068_s25 + $0x1b8] sm:$0xff]   ;;  %v702_v35 = vmul.f32 %v3173_v61, %v532_v15 }
  0x2c   : > { %2720 = vmatprep.subr.bf16.mxu1 %v2951_v49  ;;  %v1102_v49 = vpack.c.bf16 %v982_v41, %v974_v40  ;;  %v1105_v56 = vpack.c.bf16 %v985_v43, %v977_v42  ;;  %1726 = vmatprep.mubr.bf16.mxu0 %v1103_v48  ;;  %v463_v40 = vld [vmem:[%s3147_s7 + $0xa8] sm:$0xff]  ;;  %v990_v43 = vmax.f32 %v862_v34, 0.0  ;;  %v998_v48 = vmax.f32 %v870_v38, 0.0 }
  0x2d   : > { %v1104_v57 = vpack.c.bf16 %v984_v45, %v976_v44  ;;  %v2964_v41 = vld [vmem:[%s3068_s25 + $0x1e8] sm:$0xff]   ;;  %v872_v44 = vadd.f32 %v3176_v62, %v702_v35  ;;  %v547_v45 = vunpack.c.h.bf16 %v462_v24  ;;  %v548_v28 = vunpack.c.l.bf16 %v463_v40 }
  0x2e   : > { %2657 = vmatpush3.bf16.msra.mxu0 %v2952_v50  ;;  %v523_v50 = vunpack.c.h.bf16 %v450_v30  ;;  %1823 = vmatprep.mubr.bf16.mxu1 %v1105_v56  ;;  %v3224_v30 = vld [vmem:[%s3147_s7 + $0x88] sm:$0xff] }
  0x2f   : > { %2721 = vmatpush3.bf16.msra.mxu1 %v2953_v51  ;;  %2770 = vmatprep.subr.bf16.mxu0 %v2954_v10  ;;  %v531_v51 = vunpack.c.h.bf16 %v454_v31  ;;  %v703_v10 = vmul.f32 %v3158_v54, %v533_v63  ;;  %v2962_v31 = vld [vmem:[%s3068_s25 + $0x168] sm:$0xff]   ;;  %v1000_v56 = vmax.f32 %v872_v44, 0.0  ;;  %v541_v58 = vunpack.c.h.bf16 %v3224_v30 }
  0x30   : > { %2834 = vmatprep.subr.bf16.mxu1 %v2956_v25  ;;  %v693_v1 = vmul.f32 %v3152_v52, %v523_v50  ;;  %v539_v25 = vunpack.c.h.bf16 %v3208_v8  ;;  %v549_v63 = vunpack.c.h.bf16 %v463_v40  ;;  %v540_v23 = vunpack.c.l.bf16 %v3224_v30 }
  0x31   : > { %v701_v4 = vmul.f32 %v3152_v52, %v531_v51  ;;  %1727 = vmatmul.mubr.bf16.vlgmr.msra.gmra.mxu0 %v1102_v49  ;;  %v873_v27 = vadd.f32 %v3167_v59, %v703_v10  ;;  %v992_v49 = vmax.f32 %v864_v39, 0.0  ;;  %v2965_v51 = vld [vmem:[%s3068_s25 + $0x1a8] sm:$0xff]   ;;  %v711_v15 = vmul.f32 %v3158_v54, %v541_v58 }
  0x32   : > { %1824 = vmatmul.mubr.bf16.vlgmr.msra.gmra.mxu1 %v1104_v57  ;;  %2771 = vmatpush3.bf16.msra.mxu0 %v2955_v46  ;;  %v863_v21 = vadd.f32 %v3155_v53, %v693_v1  ;;  %v2963_v46 = vld [vmem:[%s3068_s25 + $0x128] sm:$0xff]   ;;  %v709_v50 = vmul.f32 %v3152_v52, %v539_v25  ;;  %v717_v57 = vmul.f32 %v3152_v52, %v547_v45  ;;  %v2966_v1 = vld [vmem:[%s3068_s25 + $0x160] sm:$0xff]   ;;  %v563_v44 = vunpack.c.h.bf16 %v470_v29  ;;  %v2971_v45 = vld [vmem:[%s3068_s25 + $0x118] sm:$0xff]  }
  0x33   : > { %v871_v22 = vadd.f32 %v3155_v53, %v701_v4  ;;  %2835 = vmatpush3.bf16.msra.mxu1 %v2957_v47  ;;  %2772 = vmatprep.subr.bf16.mxu0 %v2958_v0  ;;  %v1001_v37 = vmax.f32 %v873_v27, 0.0  ;;  %v3240_v0 = vld [vmem:[%s3147_s7 + $0xc0] sm:$0xff]  ;;  %v1110_v4 = vpack.c.bf16 %v998_v48, %v990_v43  ;;  %v1112_v10 = vpack.c.bf16 %v1000_v56, %v992_v49 }
  0x34   : > { %v991_v32 = vmax.f32 %v863_v21, 0.0  ;;  %2836 = vmatprep.subr.bf16.mxu1 %v2960_v7  ;;  %v879_v5 = vadd.f32 %v3155_v53, %v709_v50  ;;  %v546_v7 = vunpack.c.l.bf16 %v462_v24  ;;  %v887_v2 = vadd.f32 %v3155_v53, %v717_v57  ;;  %v2969_v24 = vld [vmem:[%s3068_s25 + $0x1a0] sm:$0xff]  }
  0x35   : > { %v999_v33 = vmax.f32 %v871_v22, 0.0  ;;  %v1113_v47 = vpack.c.bf16 %v1001_v37, %v993_v36  ;;  %v708_v22 = vmul.f32 %v3161_v55, %v538_v6  ;;  %v881_v26 = vadd.f32 %v3167_v59, %v711_v15  ;;  %v2970_v36 = vld [vmem:[%s3068_s25 + $0x158] sm:$0xff]  }
  0x36   : > { %2773 = vmatpush3.bf16.msra.mxu0 %v2959_v3  ;;  %v719_v3 = vmul.f32 %v3158_v54, %v549_v63  ;;  %v1007_v21 = vmax.f32 %v879_v5, 0.0  ;;  %v716_v8 = vmul.f32 %v3161_v55, %v546_v7  ;;  %v1015_v25 = vmax.f32 %v887_v2, 0.0  ;;  %v2973_v63 = vld [vmem:[%s3068_s25 + $0x198] sm:$0xff]   ;;  %v3282_v7 = vld [vmem:[%s3147_s7 + $0x100] sm:$0xff] }
  0x37   : > { %v1111_v42 = vpack.c.bf16 %v999_v33, %v991_v32  ;;  %2837 = vmatpush3.bf16.msra.mxu1 %v2961_v20  ;;  %2774 = vmatprep.subr.bf16.mxu0 %v2962_v31  ;;  %v2968_v20 = vld [vmem:[%s3068_s25 + $0x1e0] sm:$0xff]   ;;  %v3258_v31 = vld [vmem:[%s3147_s7 + $0xc8] sm:$0xff]  ;;  %v878_v33 = vadd.f32 %v3170_v60, %v708_v22  ;;  %v710_v34 = vmul.f32 %v3173_v61, %v540_v23  ;;  %v555_v35 = vunpack.c.h.bf16 %v3240_v0  ;;  %v2975_v23 = vld [vmem:[%s3068_s25 + $0x110] sm:$0xff]  }
  0x38   : > { %2838 = vmatprep.subr.bf16.mxu1 %v2964_v41  ;;  %1831 = vmatprep.mubr.bf16.mxu1 %v1113_v47  ;;  %v889_v27 = vadd.f32 %v3167_v59, %v719_v3  ;;  %v3261_v32 = vld [vmem:[%s3147_s7 + $0xe8] sm:$0xff]  ;;  %v886_v30 = vadd.f32 %v3170_v60, %v716_v8  ;;  %v1119_v37 = vpack.c.bf16 %v1015_v25, %v1007_v21  ;;  %v1009_v38 = vmax.f32 %v881_v26, 0.0  ;;  %v3288_v3 = vld [vmem:[%s3147_s7 + $0x120] sm:$0xff] }
  0x39   : > { %1734 = vmatprep.mubr.bf16.mxu0 %v1111_v42  ;;  %v718_v40 = vmul.f32 %v3173_v61, %v548_v28  ;;  %v1006_v41 = vmax.f32 %v878_v33, 0.0  ;;  %v880_v43 = vadd.f32 %v3176_v62, %v710_v34  ;;  %v725_v49 = vmul.f32 %v3152_v52, %v555_v35  ;;  %v2976_v28 = vld [vmem:[%s3068_s25 + $0x1d0] sm:$0xff]   ;;  %v475_v34 = vld [vmem:[%s3147_s7 + $0x108] sm:$0xff] }
  0x3a   : > { %2775 = vmatpush3.bf16.msra.mxu0 %v2963_v46  ;;  %1832 = vmatmul.mubr.bf16.gmra.mxu1 %v1112_v10  ;;  %v1017_v39 = vmax.f32 %v889_v27, 0.0  ;;  %v1014_v42 = vmax.f32 %v886_v30, 0.0  ;;  %v2972_v46 = vld [vmem:[%s3068_s25 + $0x1d8] sm:$0xff]   ;;  %v557_v50 = vunpack.c.h.bf16 %v3258_v31  ;;  %v733_v57 = vmul.f32 %v3152_v52, %v563_v44  ;;  %v2977_v35 = vld [vmem:[%s3068_s25 + $0x190] sm:$0xff]   ;;  %v2978_v44 = vld [vmem:[%s3068_s25 + $0x148] sm:$0xff]  }
  0x3b   : > { %1735 = vmatmul.mubr.bf16.gmra.mxu0 %v1110_v4  ;;  %2839 = vmatpush3.bf16.msra.mxu1 %v2965_v51  ;;  %v888_v48 = vadd.f32 %v3176_v62, %v718_v40  ;;  %v1008_v56 = vmax.f32 %v880_v43, 0.0  ;;  %v565_v58 = vunpack.c.h.bf16 %v3261_v32  ;;  %v895_v4 = vadd.f32 %v3155_v53, %v725_v49  ;;  %v2979_v49 = vld [vmem:[%s3068_s25 + $0x108] sm:$0xff]  }
  0x3c   : > { %2776 = vmatprep.subr.bf16.mxu0 %v2966_v1  ;;  %2840 = vmatprep.subr.bf16.mxu1 %v2968_v20  ;;  %v1121_v47 = vpack.c.bf16 %v1017_v39, %v1009_v38  ;;  %v1118_v51 = vpack.c.bf16 %v1014_v42, %v1006_v41  ;;  %v727_v5 = vmul.f32 %v3158_v54, %v557_v50  ;;  %v554_v6 = vunpack.c.l.bf16 %v3240_v0  ;;  %v2974_v20 = vld [vmem:[%s3068_s25 + $0x150] sm:$0xff]   ;;  %v479_v39 = vld [vmem:[%s3147_s7 + $0x128] sm:$0xff] }
  0x3d   : > { %1742 = vmatprep.mubr.bf16.mxu0 %v1119_v37  ;;  %v1016_v1 = vmax.f32 %v888_v48, 0.0  ;;  %v735_v10 = vmul.f32 %v3158_v54, %v565_v58  ;;  %v562_v2 = vunpack.c.l.bf16 %v470_v29  ;;  %v556_v15 = vunpack.c.l.bf16 %v3258_v31  ;;  %v2980_v58 = vld [vmem:[%s3068_s25 + $0x1c8] sm:$0xff]  }
  0x3e   : > { %2777 = vmatpush3.bf16.msra.mxu0 %v2967_v9  ;;  %1839 = vmatprep.mubr.bf16.mxu1 %v1121_v47  ;;  %v903_v9 = vadd.f32 %v3155_v53, %v733_v57  ;;  %v1023_v22 = vmax.f32 %v895_v4, 0.0  ;;  %v897_v0 = vadd.f32 %v3167_v59, %v727_v5  ;;  %v724_v8 = vmul.f32 %v3161_v55, %v554_v6  ;;  %v2981_v6 = vld [vmem:[%s3068_s25 + $0x188] sm:$0xff]  }
  0x3f   : > { %2841 = vmatpush3.bf16.msra.mxu1 %v2969_v24  ;;  %2778 = vmatprep.subr.bf16.mxu0 %v2970_v36  ;;  %v1120_v21 = vpack.c.bf16 %v1016_v1, %v1008_v56  ;;  %v905_v25 = vadd.f32 %v3167_v59, %v735_v10  ;;  %v732_v26 = vmul.f32 %v3161_v55, %v562_v2  ;;  %v564_v27 = vunpack.c.l.bf16 %v3261_v32 }
  0x40   : > { %2842 = vmatprep.subr.bf16.mxu1 %v2972_v46  ;;  %v1031_v24 = vmax.f32 %v903_v9, 0.0  ;;  %v1025_v29 = vmax.f32 %v897_v0, 0.0  ;;  %v894_v31 = vadd.f32 %v3170_v60, %v724_v8  ;;  %v726_v33 = vmul.f32 %v3173_v61, %v556_v15 }
  0x41   : > { %v571_v30 = vunpack.c.h.bf16 %v3282_v7  ;;  %v1033_v37 = vmax.f32 %v905_v25, 0.0  ;;  %v902_v38 = vadd.f32 %v3170_v60, %v732_v26  ;;  %v734_v32 = vmul.f32 %v3173_v61, %v564_v27  ;;  %v487_v27 = vld [vmem:[%s3147_s7 + $0x168] sm:$0xff] }
  0x42   : > { %2779 = vmatpush3.bf16.msra.mxu0 %v2971_v45  ;;  %1840 = vmatmul.mubr.bf16.gmra.mxu1 %v1120_v21  ;;  %v1127_v36 = vpack.c.bf16 %v1031_v24, %v1023_v22  ;;  %v1022_v40 = vmax.f32 %v894_v31, 0.0  ;;  %v896_v41 = vadd.f32 %v3176_v62, %v726_v33  ;;  %v579_v42 = vunpack.c.h.bf16 %v3288_v3  ;;  %v486_v21 = vld [vmem:[%s3147_s7 + $0x160] sm:$0xff] }
  0x43   : > { %1743 = vmatmul.mubr.bf16.gmra.mxu0 %v1118_v51  ;;  %2843 = vmatpush3.bf16.msra.mxu1 %v2973_v63  ;;  %v741_v43 = vmul.f32 %v3152_v52, %v571_v30  ;;  %v1129_v45 = vpack.c.bf16 %v1033_v37, %v1025_v29  ;;  %v1030_v46 = vmax.f32 %v902_v38, 0.0  ;;  %v904_v47 = vadd.f32 %v3176_v62, %v734_v32  ;;  %v2984_v32 = vld [vmem:[%s3068_s25 + $0x1c0] sm:$0xff]  }
  0x44   : > { %2780 = vmatprep.subr.bf16.mxu0 %v2974_v20  ;;  %2844 = vmatprep.subr.bf16.mxu1 %v2976_v28  ;;  %v573_v48 = vunpack.c.h.bf16 %v475_v34  ;;  %v1024_v50 = vmax.f32 %v896_v41, 0.0  ;;  %v749_v51 = vmul.f32 %v3152_v52, %v579_v42  ;;  %v581_v57 = vunpack.c.h.bf16 %v479_v39  ;;  %v482_v20 = vld [vmem:[%s3147_s7 + $0x140] sm:$0xff] }
  0x45   : > { %1750 = vmatprep.mubr.bf16.mxu0 %v1127_v36  ;;  %v911_v56 = vadd.f32 %v3155_v53, %v741_v43  ;;  %1847 = vmatprep.mubr.bf16.mxu1 %v1129_v45  ;;  %v1126_v63 = vpack.c.bf16 %v1030_v46, %v1022_v40  ;;  %v1032_v1 = vmax.f32 %v904_v47, 0.0  ;;  %v570_v5 = vunpack.c.l.bf16 %v3282_v7  ;;  %v2982_v28 = vld [vmem:[%s3068_s25 + $0x140] sm:$0xff]  }
  0x46   : > { %2781 = vmatpush3.bf16.msra.mxu0 %v2975_v23  ;;  %v743_v4 = vmul.f32 %v3158_v54, %v573_v48  ;;  %v919_v9 = vadd.f32 %v3155_v53, %v749_v51  ;;  %v751_v2 = vmul.f32 %v3158_v54, %v581_v57  ;;  %v578_v15 = vunpack.c.l.bf16 %v3288_v3  ;;  %v483_v23 = vld [vmem:[%s3147_s7 + $0x148] sm:$0xff]  ;;  %v2985_v43 = vld [vmem:[%s3068_s25 + $0x180] sm:$0xff]  }
  0x47   : > { %2845 = vmatpush3.bf16.msra.mxu1 %v2977_v35  ;;  %2782 = vmatprep.subr.bf16.mxu0 %v2978_v44  ;;  %v1039_v10 = vmax.f32 %v911_v56, 0.0  ;;  %v1128_v22 = vpack.c.bf16 %v1032_v1, %v1024_v50  ;;  %v740_v7 = vmul.f32 %v3161_v55, %v570_v5  ;;  %v572_v8 = vunpack.c.l.bf16 %v475_v34  ;;  %v2983_v34 = vld [vmem:[%s3068_s25 + $0x100] sm:$0xff]  }
  0x48   : > { %2846 = vmatprep.subr.bf16.mxu1 %v2980_v58  ;;  %v913_v0 = vadd.f32 %v3167_v59, %v743_v4  ;;  %v1047_v24 = vmax.f32 %v919_v9, 0.0  ;;  %v921_v25 = vadd.f32 %v3167_v59, %v751_v2  ;;  %v748_v3 = vmul.f32 %v3161_v55, %v578_v15  ;;  %v490_v9 = vld [vmem:[%s3147_s7 + $0x180] sm:$0xff] }
  0x49   : > { %v580_v26 = vunpack.c.l.bf16 %v479_v39  ;;  %v910_v31 = vadd.f32 %v3170_v60, %v740_v7  ;;  %v742_v33 = vmul.f32 %v3173_v61, %v572_v8  ;;  %v587_v30 = vunpack.c.h.bf16 %v482_v20 }
  0x4a   : > { %2783 = vmatpush3.bf16.msra.mxu0 %v2979_v49  ;;  %1848 = vmatmul.mubr.bf16.gmra.mxu1 %v1128_v22  ;;  %v1041_v29 = vmax.f32 %v913_v0, 0.0  ;;  %v1135_v35 = vpack.c.bf16 %v1047_v24, %v1039_v10  ;;  %v1049_v36 = vmax.f32 %v921_v25, 0.0  ;;  %v918_v37 = vadd.f32 %v3170_v60, %v748_v3  ;;  %v494_v24 = vld [vmem:[%s3147_s7 + $0x1a0] sm:$0xff] }
  0x4b   : > { %1751 = vmatmul.mubr.bf16.gmra.mxu0 %v1126_v63  ;;  %2847 = vmatpush3.bf16.msra.mxu1 %v2981_v6  ;;  %v750_v38 = vmul.f32 %v3173_v61, %v580_v26  ;;  %v1038_v39 = vmax.f32 %v910_v31, 0.0  ;;  %v912_v40 = vadd.f32 %v3176_v62, %v742_v33  ;;  %v595_v41 = vunpack.c.h.bf16 %v486_v21 }
  0x4c   : > { %2784 = vmatprep.subr.bf16.mxu0 %v2982_v28  ;;  %v757_v42 = vmul.f32 %v3152_v52, %v587_v30  ;;  %1758 = vmatprep.mubr.bf16.mxu0 %v1135_v35  ;;  %v1137_v44 = vpack.c.bf16 %v1049_v36, %v1041_v29  ;;  %v1046_v45 = vmax.f32 %v918_v37, 0.0  ;;  %v589_v47 = vunpack.c.h.bf16 %v483_v23  ;;  %v491_v28 = vld [vmem:[%s3147_s7 + $0x188] sm:$0xff] }
  0x4d   : > { %v920_v46 = vadd.f32 %v3176_v62, %v750_v38  ;;  %2848 = vmatprep.subr.bf16.mxu1 %v2984_v32  ;;  %v1040_v48 = vmax.f32 %v912_v40, 0.0  ;;  %v765_v49 = vmul.f32 %v3152_v52, %v595_v41  ;;  %v597_v51 = vunpack.c.h.bf16 %v487_v27  ;;  %v495_v30 = vld [vmem:[%s3147_s7 + $0x1a8] sm:$0xff] }
  0x4e   : > { %2785 = vmatpush3.bf16.msra.mxu0 %v2983_v34  ;;  %v927_v50 = vadd.f32 %v3155_v53, %v757_v42  ;;  %1855 = vmatprep.mubr.bf16.mxu1 %v1137_v44  ;;  %v1134_v56 = vpack.c.bf16 %v1046_v45, %v1038_v39  ;;  %v759_v58 = vmul.f32 %v3158_v54, %v589_v47  ;;  %v586_v63 = vunpack.c.l.bf16 %v482_v20 }
  0x4f   : > { %2849 = vmatpush3.bf16.msra.mxu1 %v2985_v43  ;;  %v1048_v57 = vmax.f32 %v920_v46, 0.0  ;;  %v935_v1 = vadd.f32 %v3155_v53, %v765_v49  ;;  %v767_v5 = vmul.f32 %v3158_v54, %v597_v51  ;;  %v594_v6 = vunpack.c.l.bf16 %v486_v21 }
  0x50   : > { %v1055_v4 = vmax.f32 %v927_v50, 0.0  ;;  %v929_v2 = vadd.f32 %v3167_v59, %v759_v58  ;;  %v756_v15 = vmul.f32 %v3161_v55, %v586_v63  ;;  %v588_v22 = vunpack.c.l.bf16 %v483_v23 }
  0x51   : > { %v1136_v10 = vpack.c.bf16 %v1048_v57, %v1040_v48  ;;  %v1063_v0 = vmax.f32 %v935_v1, 0.0  ;;  %v937_v7 = vadd.f32 %v3167_v59, %v767_v5  ;;  %v764_v20 = vmul.f32 %v3161_v55, %v594_v6 }
  0x52   : > { %v596_v8 = vunpack.c.l.bf16 %v487_v27  ;;  %v1057_v25 = vmax.f32 %v929_v2, 0.0  ;;  %v926_v21 = vadd.f32 %v3170_v60, %v756_v15  ;;  %v758_v3 = vmul.f32 %v3173_v61, %v588_v22 }
  0x53   : > { %1759 = vmatmul.mubr.bf16.gmra.mxu0 %v1134_v56  ;;  %1856 = vmatmul.mubr.bf16.gmra.mxu1 %v1136_v10  ;;  %v603_v26 = vunpack.c.h.bf16 %v490_v9  ;;  %v1143_v29 = vpack.c.bf16 %v1063_v0, %v1055_v4  ;;  %v1065_v31 = vmax.f32 %v937_v7, 0.0  ;;  %v934_v23 = vadd.f32 %v3170_v60, %v764_v20  ;;  %v498_v56 = vld [vmem:[%s3147_s7 + $0x1c0] sm:$0xff]  ;;  %v499_v7 = vld [vmem:[%s3147_s7 + $0x1c8] sm:$0xff] }
  0x54   : > { %v766_v33 = vmul.f32 %v3173_v61, %v596_v8  ;;  %v1054_v34 = vmax.f32 %v926_v21, 0.0  ;;  %v928_v35 = vadd.f32 %v3176_v62, %v758_v3  ;;  %v611_v27 = vunpack.c.h.bf16 %v494_v24  ;;  %v502_v10 = vld [vmem:[%s3147_s7 + $0x1e0] sm:$0xff]  ;;  %v503_v21 = vld [vmem:[%s3147_s7 + $0x1e8] sm:$0xff] }
  0x55   : > { %v773_v36 = vmul.f32 %v3152_v52, %v603_v26  ;;  %1766 = vmatprep.mubr.bf16.mxu0 %v1143_v29  ;;  %v1145_v37 = vpack.c.bf16 %v1065_v31, %v1057_v25  ;;  %v1062_v38 = vmax.f32 %v934_v23, 0.0  ;;  %v605_v39 = vunpack.c.h.bf16 %v491_v28 }
  0x56   : > { %v936_v32 = vadd.f32 %v3176_v62, %v766_v33  ;;  %v1056_v40 = vmax.f32 %v928_v35, 0.0  ;;  %v781_v41 = vmul.f32 %v3152_v52, %v611_v27  ;;  %v613_v43 = vunpack.c.h.bf16 %v495_v30 }
  0x57   : > { %v943_v42 = vadd.f32 %v3155_v53, %v773_v36  ;;  %1863 = vmatprep.mubr.bf16.mxu1 %v1145_v37  ;;  %v1142_v44 = vpack.c.bf16 %v1062_v38, %v1054_v34  ;;  %v775_v46 = vmul.f32 %v3158_v54, %v605_v39  ;;  %v602_v47 = vunpack.c.l.bf16 %v490_v9 }
  0x58   : > { %v1064_v45 = vmax.f32 %v936_v32, 0.0  ;;  %v951_v48 = vadd.f32 %v3155_v53, %v781_v41  ;;  %v783_v50 = vmul.f32 %v3158_v54, %v613_v43  ;;  %v610_v51 = vunpack.c.l.bf16 %v494_v24 }
  0x59   : > { %v1071_v49 = vmax.f32 %v943_v42, 0.0  ;;  %v945_v58 = vadd.f32 %v3167_v59, %v775_v46  ;;  %v772_v63 = vmul.f32 %v3161_v55, %v602_v47  ;;  %v604_v1 = vunpack.c.l.bf16 %v491_v28 }
  0x5a   : > { %v1144_v57 = vpack.c.bf16 %v1064_v45, %v1056_v40  ;;  %v1079_v4 = vmax.f32 %v951_v48, 0.0  ;;  %v953_v5 = vadd.f32 %v3167_v59, %v783_v50  ;;  %v780_v6 = vmul.f32 %v3161_v55, %v610_v51 }
  0x5b   : > { %1767 = vmatmul.mubr.bf16.gmra.mxu0 %v1142_v44  ;;  %v612_v9 = vunpack.c.l.bf16 %v495_v30  ;;  %v1073_v2 = vmax.f32 %v945_v58, 0.0  ;;  %v942_v15 = vadd.f32 %v3170_v60, %v772_v63  ;;  %v774_v22 = vmul.f32 %v3173_v61, %v604_v1  ;;  %v444_v44 = vld [vmem:[%s3147_s7 + $0x10] sm:$0xff] }
  0x5c   : > { %1864 = vmatmul.mubr.bf16.gmra.mxu1 %v1144_v57  ;;  %v619_v0 = vunpack.c.h.bf16 %v498_v56  ;;  %v1151_v20 = vpack.c.bf16 %v1079_v4, %v1071_v49  ;;  %v1081_v8 = vmax.f32 %v953_v5, 0.0  ;;  %v950_v24 = vadd.f32 %v3170_v60, %v780_v6 }
  0x5d   : > { %v782_v25 = vmul.f32 %v3173_v61, %v612_v9  ;;  %v1070_v3 = vmax.f32 %v942_v15, 0.0  ;;  %v944_v26 = vadd.f32 %v3176_v62, %v774_v22  ;;  %v627_v28 = vunpack.c.h.bf16 %v502_v10 }
  0x5e   : > { %v789_v29 = vmul.f32 %v3152_v52, %v619_v0  ;;  %1774 = vmatprep.mubr.bf16.mxu0 %v1151_v20  ;;  %v1153_v31 = vpack.c.bf16 %v1081_v8, %v1073_v2  ;;  %v1078_v23 = vmax.f32 %v950_v24, 0.0  ;;  %v621_v30 = vunpack.c.h.bf16 %v499_v7 }
  0x5f   : > { %v952_v33 = vadd.f32 %v3176_v62, %v782_v25  ;;  %v1072_v34 = vmax.f32 %v944_v26, 0.0  ;;  %v797_v35 = vmul.f32 %v3152_v52, %v627_v28  ;;  %v629_v36 = vunpack.c.h.bf16 %v503_v21 }
  0x60   : > { %v959_v27 = vadd.f32 %v3155_v53, %v789_v29  ;;  %1871 = vmatprep.mubr.bf16.mxu1 %v1153_v31  ;;  %v1150_v37 = vpack.c.bf16 %v1078_v23, %v1070_v3  ;;  %v791_v32 = vmul.f32 %v3158_v54, %v621_v30  ;;  %v618_v39 = vunpack.c.l.bf16 %v498_v56 }
  0x61   : > { %v1080_v38 = vmax.f32 %v952_v33, 0.0  ;;  %v967_v40 = vadd.f32 %v3155_v53, %v797_v35  ;;  %v799_v42 = vmul.f32 %v3158_v54, %v629_v36  ;;  %v626_v43 = vunpack.c.l.bf16 %v502_v10  ;;  %v448_v53 = vld [vmem:[%s3147_s7 + $0x30] sm:$0xff]  ;;  %v445_v10 = vld [vmem:[%s3147_s7 + $0x18] sm:$0xff] }
  0x62   : > { %v1087_v41 = vmax.f32 %v959_v27, 0.0  ;;  %v961_v52 = vadd.f32 %v3167_v59, %v791_v32  ;;  %v788_v46 = vmul.f32 %v3161_v55, %v618_v39  ;;  %v620_v47 = vunpack.c.l.bf16 %v499_v7  ;;  %v449_v7 = vld [vmem:[%s3147_s7 + $0x38] sm:$0xff] }
  0x63   : > { %1775 = vmatmul.mubr.bf16.gmra.mxu0 %v1150_v37  ;;  %v1152_v45 = vpack.c.bf16 %v1080_v38, %v1072_v34  ;;  %v1095_v48 = vmax.f32 %v967_v40, 0.0  ;;  %v969_v49 = vadd.f32 %v3167_v59, %v799_v42  ;;  %v796_v50 = vmul.f32 %v3161_v55, %v626_v43  ;;  %v452_v34 = vld [vmem:[%s3147_s7 + $0x50] sm:$0xff] }
  0x64   : > { %v628_v51 = vunpack.c.l.bf16 %v503_v21  ;;  %v1089_v56 = vmax.f32 %v961_v52, 0.0  ;;  %v958_v54 = vadd.f32 %v3170_v60, %v788_v46  ;;  %v790_v57 = vmul.f32 %v3173_v61, %v620_v47  ;;  %v456_v38 = vld [vmem:[%s3147_s7 + $0x70] sm:$0xff]  ;;  %v453_v52 = vld [vmem:[%s3147_s7 + $0x58] sm:$0xff] }
  0x65   : > { %1872 = vmatmul.mubr.bf16.gmra.mxu1 %v1152_v45  ;;  %v510_v58 = vunpack.c.l.bf16 %v444_v44  ;;  %v1159_v63 = vpack.c.bf16 %v1095_v48, %v1087_v41  ;;  %v1097_v1 = vmax.f32 %v969_v49, 0.0  ;;  %v966_v4 = vadd.f32 %v3170_v60, %v796_v50  ;;  %v457_v46 = vld [vmem:[%s3147_s7 + $0x78] sm:$0xff] }
  0x66   : > { %v798_v5 = vmul.f32 %v3173_v61, %v628_v51  ;;  %v1086_v59 = vmax.f32 %v958_v54, 0.0  ;;  %v960_v55 = vadd.f32 %v3176_v62, %v790_v57  ;;  %v511_v6 = vunpack.c.h.bf16 %v444_v44 }
  0x67   : > { %v518_v9 = vunpack.c.l.bf16 %v448_v53  ;;  %1782 = vmatprep.mubr.bf16.mxu0 %v1159_v63  ;;  %v1161_v2 = vpack.c.bf16 %v1097_v1, %v1089_v56  ;;  %v1094_v15 = vmax.f32 %v966_v4, 0.0  ;;  %v519_v0 = vunpack.c.h.bf16 %v448_v53 }
  0x68   : > { %v968_v22 = vadd.f32 %v3176_v62, %v798_v5  ;;  %v1088_v20 = vmax.f32 %v960_v55, 0.0  ;;  %v680_v8 = vmul.f32 %v3088_v11, %v510_v58  ;;  %v681_v60 = vmul.f32 %v3091_v12, %v511_v6 }
  0x69   : > { %v688_v61 = vmul.f32 %v3088_v11, %v518_v9  ;;  %1879 = vmatprep.mubr.bf16.mxu1 %v1161_v2  ;;  %v1158_v24 = vpack.c.bf16 %v1094_v15, %v1086_v59  ;;  %v689_v21 = vmul.f32 %v3091_v12, %v519_v0  ;;  %v512_v3 = vunpack.c.l.bf16 %v445_v10  ;;  %v460_v15 = vld [vmem:[%s3147_s7 + $0x90] sm:$0xff] }
  0x6a   : > { %v1096_v25 = vmax.f32 %v968_v22, 0.0  ;;  %v851_v26 = vadd.f32 %v3094_v13, %v681_v60  ;;  %v513_v62 = vunpack.c.h.bf16 %v445_v10  ;;  %v520_v28 = vunpack.c.l.bf16 %v449_v7 }
  0x6b   : > { %v521_v29 = vunpack.c.h.bf16 %v449_v7  ;;  %1783 = vmatmul.mubr.bf16.gmra.mxu0 %v1158_v24  ;;  %v859_v23 = vadd.f32 %v3094_v13, %v689_v21  ;;  %v682_v33 = vmul.f32 %v3097_v14, %v512_v3  ;;  %v850_v30 = vadd.f32 %v3107_v18, %v680_v8 }
  0x6c   : > { %v1160_v31 = vpack.c.bf16 %v1096_v25, %v1088_v20  ;;  %v979_v35 = vmax.f32 %v851_v26, 0.0  ;;  %v683_v27 = vmul.f32 %v3101_v16, %v513_v62  ;;  %v690_v36 = vmul.f32 %v3097_v14, %v520_v28  ;;  %v464_v25 = vld [vmem:[%s3147_s7 + $0xb0] sm:$0xff]  ;;  %v461_v28 = vld [vmem:[%s3147_s7 + $0x98] sm:$0xff] }
  0x6d   : > { %v691_v37 = vmul.f32 %v3101_v16, %v521_v29  ;;  %v987_v32 = vmax.f32 %v859_v23, 0.0  ;;  %v858_v39 = vadd.f32 %v3107_v18, %v688_v61  ;;  %v978_v40 = vmax.f32 %v850_v30, 0.0  ;;  %v465_v30 = vld [vmem:[%s3147_s7 + $0xb8] sm:$0xff] }
  0x6e   : > { %1880 = vmatmul.mubr.bf16.gmra.mxu1 %v1160_v31  ;;  %v852_v41 = vadd.f32 %v3110_v19, %v682_v33  ;;  %v853_v42 = vadd.f32 %v3104_v17, %v683_v27  ;;  %v860_v44 = vadd.f32 %v3110_v19, %v690_v36  ;;  %v527_v45 = vunpack.c.h.bf16 %v452_v34 }
  0x6f   : > { %v861_v43 = vadd.f32 %v3104_v17, %v691_v37  ;;  %v1107_v47 = vpack.c.bf16 %v987_v32, %v979_v35  ;;  %v986_v48 = vmax.f32 %v858_v39, 0.0  ;;  %v535_v50 = vunpack.c.h.bf16 %v456_v38 }
  0x70   : > { %v980_v49 = vmax.f32 %v852_v41, 0.0  ;;  %v981_v51 = vmax.f32 %v853_v42, 0.0  ;;  %v988_v56 = vmax.f32 %v860_v44, 0.0  ;;  %v697_v54 = vmul.f32 %v3091_v12, %v527_v45 }
  0x71   : > { %v989_v53 = vmax.f32 %v861_v43, 0.0  ;;  %1920 = vmatprep.mubr.bf16.mxu0 %v1107_v47  ;;  %v1106_v57 = vpack.c.bf16 %v986_v48, %v978_v40  ;;  %v705_v58 = vmul.f32 %v3091_v12, %v535_v50  ;;  %v529_v63 = vunpack.c.h.bf16 %v453_v52 }
  0x72   : > { %v537_v1 = vunpack.c.h.bf16 %v457_v46  ;;  %v1108_v5 = vpack.c.bf16 %v988_v56, %v980_v49  ;;  %v867_v59 = vadd.f32 %v3094_v13, %v697_v54  ;;  %v526_v55 = vunpack.c.l.bf16 %v452_v34 }
  0x73   : > { %v1109_v4 = vpack.c.bf16 %v989_v53, %v981_v51  ;;  %1921 = vmatmul.mubr.bf16.vlgmr.msra.gmra.mxu0 %v1106_v57  ;;  %v875_v6 = vadd.f32 %v3094_v13, %v705_v58  ;;  %v699_v9 = vmul.f32 %v3101_v16, %v529_v63  ;;  %v534_v2 = vunpack.c.l.bf16 %v456_v38  ;;  %v468_v51 = vld [vmem:[%s3147_s7 + $0xd0] sm:$0xff] }
  0x74   : > { %v707_v10 = vmul.f32 %v3101_v16, %v537_v1  ;;  %v995_v22 = vmax.f32 %v867_v59, 0.0  ;;  %v696_v0 = vmul.f32 %v3088_v11, %v526_v55  ;;  %v528_v7 = vunpack.c.l.bf16 %v453_v52 }
  0x75   : > { %2017 = vmatprep.mubr.bf16.mxu1 %v1109_v4  ;;  %v536_v20 = vunpack.c.l.bf16 %v457_v46  ;;  %v1003_v8 = vmax.f32 %v875_v6, 0.0  ;;  %v869_v60 = vadd.f32 %v3104_v17, %v699_v9  ;;  %v704_v24 = vmul.f32 %v3088_v11, %v534_v2 }
  0x76   : > { %2018 = vmatmul.mubr.bf16.vlgmr.msra.gmra.mxu1 %v1108_v5  ;;  %v877_v61 = vadd.f32 %v3104_v17, %v707_v10  ;;  %v866_v21 = vadd.f32 %v3107_v18, %v696_v0  ;;  %v698_v3 = vmul.f32 %v3097_v14, %v528_v7  ;;  %v543_v62 = vunpack.c.h.bf16 %v460_v15  ;;  %v472_v5 = vld [vmem:[%s3147_s7 + $0xf0] sm:$0xff]  ;;  %v469_v10 = vld [vmem:[%s3147_s7 + $0xd8] sm:$0xff] }
  0x77   : > { %v706_v26 = vmul.f32 %v3097_v14, %v536_v20  ;;  %v1115_v29 = vpack.c.bf16 %v1003_v8, %v995_v22  ;;  %v997_v31 = vmax.f32 %v869_v60, 0.0  ;;  %v874_v33 = vadd.f32 %v3107_v18, %v704_v24  ;;  %v473_v7 = vld [vmem:[%s3147_s7 + $0xf8] sm:$0xff] }
  0x78   : > { %v1005_v23 = vmax.f32 %v877_v61, 0.0  ;;  %v994_v34 = vmax.f32 %v866_v21, 0.0  ;;  %v868_v35 = vadd.f32 %v3110_v19, %v698_v3  ;;  %v551_v36 = vunpack.c.h.bf16 %v464_v25 }
  0x79   : > { %v876_v27 = vadd.f32 %v3110_v19, %v706_v26  ;;  %1928 = vmatprep.mubr.bf16.mxu0 %v1115_v29  ;;  %v1002_v38 = vmax.f32 %v874_v33, 0.0  ;;  %v713_v32 = vmul.f32 %v3091_v12, %v543_v62  ;;  %v545_v39 = vunpack.c.h.bf16 %v461_v28 }
  0x7a   : > { %v1117_v37 = vpack.c.bf16 %v1005_v23, %v997_v31  ;;  %v996_v40 = vmax.f32 %v868_v35, 0.0  ;;  %v721_v42 = vmul.f32 %v3091_v12, %v551_v36  ;;  %v553_v43 = vunpack.c.h.bf16 %v465_v30 }
  0x7b   : > { %v1004_v41 = vmax.f32 %v876_v27, 0.0  ;;  %v1114_v44 = vpack.c.bf16 %v1002_v38, %v994_v34  ;;  %v883_v45 = vadd.f32 %v3094_v13, %v713_v32  ;;  %v715_v52 = vmul.f32 %v3101_v16, %v545_v39 }
  0x7c   : > { %2025 = vmatprep.mubr.bf16.mxu1 %v1117_v37  ;;  %v542_v46 = vunpack.c.l.bf16 %v460_v15  ;;  %v891_v48 = vadd.f32 %v3094_v13, %v721_v42  ;;  %v723_v49 = vmul.f32 %v3101_v16, %v553_v43  ;;  %v550_v50 = vunpack.c.l.bf16 %v464_v25  ;;  %v476_v37 = vld [vmem:[%s3147_s7 + $0x110] sm:$0xff] }
  0x7d   : > { %v1116_v47 = vpack.c.bf16 %v1004_v41, %v996_v40  ;;  %1929 = vmatmul.mubr.bf16.gmra.mxu0 %v1114_v44  ;;  %v1011_v53 = vmax.f32 %v883_v45, 0.0  ;;  %v885_v56 = vadd.f32 %v3104_v17, %v715_v52  ;;  %v544_v57 = vunpack.c.l.bf16 %v461_v28  ;;  %v480_v45 = vld [vmem:[%s3147_s7 + $0x130] sm:$0xff] }
  0x7e   : > { %v712_v54 = vmul.f32 %v3088_v11, %v542_v46  ;;  %v1019_v58 = vmax.f32 %v891_v48, 0.0  ;;  %v893_v63 = vadd.f32 %v3104_v17, %v723_v49  ;;  %v720_v1 = vmul.f32 %v3088_v11, %v550_v50  ;;  %v477_v49 = vld [vmem:[%s3147_s7 + $0x118] sm:$0xff] }
  0x7f   : > { %2026 = vmatmul.mubr.bf16.gmra.mxu1 %v1116_v47  ;;  %v552_v4 = vunpack.c.l.bf16 %v465_v30  ;;  %v1013_v59 = vmax.f32 %v885_v56, 0.0  ;;  %v714_v6 = vmul.f32 %v3097_v14, %v544_v57  ;;  %v559_v9 = vunpack.c.h.bf16 %v468_v51 }
  0x80   : > { %v882_v55 = vadd.f32 %v3107_v18, %v712_v54  ;;  %v1123_v2 = vpack.c.bf16 %v1019_v58, %v1011_v53  ;;  %v1021_v15 = vmax.f32 %v893_v63, 0.0  ;;  %v890_v22 = vadd.f32 %v3107_v18, %v720_v1  ;;  %v481_v54 = vld [vmem:[%s3147_s7 + $0x138] sm:$0xff] }
  0x81   : > { %v722_v0 = vmul.f32 %v3097_v14, %v552_v4  ;;  %v884_v8 = vadd.f32 %v3110_v19, %v714_v6  ;;  %v567_v60 = vunpack.c.h.bf16 %v472_v5  ;;  %v729_v61 = vmul.f32 %v3091_v12, %v559_v9 }
  0x82   : > { %v1010_v20 = vmax.f32 %v882_v55, 0.0  ;;  %1936 = vmatprep.mubr.bf16.mxu0 %v1123_v2  ;;  %v1125_v24 = vpack.c.bf16 %v1021_v15, %v1013_v59  ;;  %v1018_v25 = vmax.f32 %v890_v22, 0.0  ;;  %v561_v3 = vunpack.c.h.bf16 %v469_v10 }
  0x83   : > { %v892_v21 = vadd.f32 %v3110_v19, %v722_v0  ;;  %v1012_v26 = vmax.f32 %v884_v8, 0.0  ;;  %v737_v62 = vmul.f32 %v3091_v12, %v567_v60  ;;  %v899_v28 = vadd.f32 %v3094_v13, %v729_v61 }
  0x84   : > { %v569_v29 = vunpack.c.h.bf16 %v473_v7  ;;  %2033 = vmatprep.mubr.bf16.mxu1 %v1125_v24  ;;  %v1122_v31 = vpack.c.bf16 %v1018_v25, %v1010_v20  ;;  %v731_v33 = vmul.f32 %v3101_v16, %v561_v3  ;;  %v558_v30 = vunpack.c.l.bf16 %v468_v51  ;;  %v484_v24 = vld [vmem:[%s3147_s7 + $0x150] sm:$0xff] }
  0x85   : > { %v1020_v23 = vmax.f32 %v892_v21, 0.0  ;;  %v907_v34 = vadd.f32 %v3094_v13, %v737_v62  ;;  %v1027_v35 = vmax.f32 %v899_v28, 0.0  ;;  %v566_v36 = vunpack.c.l.bf16 %v472_v5 }
  0x86   : > { %v739_v27 = vmul.f32 %v3101_v16, %v569_v29  ;;  %1937 = vmatmul.mubr.bf16.gmra.mxu0 %v1122_v31  ;;  %v901_v32 = vadd.f32 %v3104_v17, %v731_v33  ;;  %v728_v39 = vmul.f32 %v3088_v11, %v558_v30  ;;  %v560_v40 = vunpack.c.l.bf16 %v469_v10 }
  0x87   : > { %v1124_v38 = vpack.c.bf16 %v1020_v23, %v1012_v26  ;;  %v1035_v41 = vmax.f32 %v907_v34, 0.0  ;;  %v736_v43 = vmul.f32 %v3088_v11, %v566_v36  ;;  %v568_v44 = vunpack.c.l.bf16 %v473_v7  ;;  %v488_v23 = vld [vmem:[%s3147_s7 + $0x170] sm:$0xff] }
  0x88   : > { %v909_v42 = vadd.f32 %v3104_v17, %v739_v27  ;;  %v1029_v52 = vmax.f32 %v901_v32, 0.0  ;;  %v898_v46 = vadd.f32 %v3107_v18, %v728_v39  ;;  %v730_v47 = vmul.f32 %v3097_v14, %v560_v40  ;;  %v485_v27 = vld [vmem:[%s3147_s7 + $0x158] sm:$0xff] }
  0x89   : > { %2034 = vmatmul.mubr.bf16.gmra.mxu1 %v1124_v38  ;;  %v575_v48 = vunpack.c.h.bf16 %v476_v37  ;;  %v1131_v50 = vpack.c.bf16 %v1035_v41, %v1027_v35  ;;  %v906_v53 = vadd.f32 %v3107_v18, %v736_v43  ;;  %v738_v56 = vmul.f32 %v3097_v14, %v568_v44  ;;  %v489_v39 = vld [vmem:[%s3147_s7 + $0x178] sm:$0xff] }
  0x8a   : > { %v1037_v51 = vmax.f32 %v909_v42, 0.0  ;;  %v1026_v57 = vmax.f32 %v898_v46, 0.0  ;;  %v900_v58 = vadd.f32 %v3110_v19, %v730_v47  ;;  %v583_v63 = vunpack.c.h.bf16 %v480_v45 }
  0x8b   : > { %v745_v1 = vmul.f32 %v3091_v12, %v575_v48  ;;  %1944 = vmatprep.mubr.bf16.mxu0 %v1131_v50  ;;  %v1034_v5 = vmax.f32 %v906_v53, 0.0  ;;  %v908_v59 = vadd.f32 %v3110_v19, %v738_v56  ;;  %v577_v55 = vunpack.c.h.bf16 %v477_v49 }
  0x8c   : > { %v1133_v4 = vpack.c.bf16 %v1037_v51, %v1029_v52  ;;  %v1028_v6 = vmax.f32 %v900_v58, 0.0  ;;  %v753_v9 = vmul.f32 %v3091_v12, %v583_v63  ;;  %v585_v2 = vunpack.c.h.bf16 %v481_v54 }
  0x8d   : > { %v915_v10 = vadd.f32 %v3094_v13, %v745_v1  ;;  %v1130_v15 = vpack.c.bf16 %v1034_v5, %v1026_v57  ;;  %v1036_v22 = vmax.f32 %v908_v59, 0.0  ;;  %v747_v0 = vmul.f32 %v3101_v16, %v577_v55 }
  0x8e   : > { %2041 = vmatprep.mubr.bf16.mxu1 %v1133_v4  ;;  %v574_v7 = vunpack.c.l.bf16 %v476_v37  ;;  %v923_v20 = vadd.f32 %v3094_v13, %v753_v9  ;;  %v755_v60 = vmul.f32 %v3101_v16, %v585_v2  ;;  %v582_v61 = vunpack.c.l.bf16 %v480_v45  ;;  %v492_v4 = vld [vmem:[%s3147_s7 + $0x190] sm:$0xff] }
  0x8f   : > { %v1043_v8 = vmax.f32 %v915_v10, 0.0  ;;  %1945 = vmatmul.mubr.bf16.gmra.mxu0 %v1130_v15  ;;  %v1132_v25 = vpack.c.bf16 %v1036_v22, %v1028_v6  ;;  %v917_v21 = vadd.f32 %v3104_v17, %v747_v0  ;;  %v576_v26 = vunpack.c.l.bf16 %v477_v49  ;;  %v496_v22 = vld [vmem:[%s3147_s7 + $0x1b0] sm:$0xff] }
  0x90   : > { %v744_v3 = vmul.f32 %v3088_v11, %v574_v7  ;;  %v1051_v62 = vmax.f32 %v923_v20, 0.0  ;;  %v925_v28 = vadd.f32 %v3104_v17, %v755_v60  ;;  %v752_v29 = vmul.f32 %v3088_v11, %v582_v61  ;;  %v493_v60 = vld [vmem:[%s3147_s7 + $0x198] sm:$0xff] }
  0x91   : > { %v584_v31 = vunpack.c.l.bf16 %v481_v54  ;;  %2042 = vmatmul.mubr.bf16.gmra.mxu1 %v1132_v25  ;;  %v1045_v33 = vmax.f32 %v917_v21, 0.0  ;;  %v746_v34 = vmul.f32 %v3097_v14, %v576_v26  ;;  %v591_v35 = vunpack.c.h.bf16 %v484_v24 }
  0x92   : > { %v914_v30 = vadd.f32 %v3107_v18, %v744_v3  ;;  %v1139_v36 = vpack.c.bf16 %v1051_v62, %v1043_v8  ;;  %v1053_v37 = vmax.f32 %v925_v28, 0.0  ;;  %v922_v38 = vadd.f32 %v3107_v18, %v752_v29  ;;  %v497_v3 = vld [vmem:[%s3147_s7 + $0x1b8] sm:$0xff] }
  0x93   : > { %v754_v32 = vmul.f32 %v3097_v14, %v584_v31  ;;  %v916_v41 = vadd.f32 %v3110_v19, %v746_v34  ;;  %v599_v42 = vunpack.c.h.bf16 %v488_v23  ;;  %v761_v43 = vmul.f32 %v3091_v12, %v591_v35 }
  0x94   : > { %v1042_v40 = vmax.f32 %v914_v30, 0.0  ;;  %1952 = vmatprep.mubr.bf16.mxu0 %v1139_v36  ;;  %v1141_v44 = vpack.c.bf16 %v1053_v37, %v1045_v33  ;;  %v1050_v45 = vmax.f32 %v922_v38, 0.0  ;;  %v593_v46 = vunpack.c.h.bf16 %v485_v27 }
  0x95   : > { %v924_v52 = vadd.f32 %v3110_v19, %v754_v32  ;;  %v1044_v47 = vmax.f32 %v916_v41, 0.0  ;;  %v769_v48 = vmul.f32 %v3091_v12, %v599_v42  ;;  %v931_v49 = vadd.f32 %v3094_v13, %v761_v43 }
  0x96   : > { %v601_v50 = vunpack.c.h.bf16 %v489_v39  ;;  %2049 = vmatprep.mubr.bf16.mxu1 %v1141_v44  ;;  %v1138_v51 = vpack.c.bf16 %v1050_v45, %v1042_v40  ;;  %v763_v56 = vmul.f32 %v3101_v16, %v593_v46  ;;  %v590_v54 = vunpack.c.l.bf16 %v484_v24  ;;  %v500_v44 = vld [vmem:[%s3147_s7 + $0x1d0] sm:$0xff] }
  0x97   : > { %v1052_v53 = vmax.f32 %v924_v52, 0.0  ;;  %v939_v57 = vadd.f32 %v3094_v13, %v769_v48  ;;  %v1059_v58 = vmax.f32 %v931_v49, 0.0  ;;  %v598_v1 = vunpack.c.l.bf16 %v488_v23 }
  0x98   : > { %v771_v63 = vmul.f32 %v3101_v16, %v601_v50  ;;  %1953 = vmatmul.mubr.bf16.gmra.mxu0 %v1138_v51  ;;  %v933_v59 = vadd.f32 %v3104_v17, %v763_v56  ;;  %v760_v55 = vmul.f32 %v3088_v11, %v590_v54  ;;  %v592_v6 = vunpack.c.l.bf16 %v485_v27 }
  0x99   : > { %v1140_v5 = vpack.c.bf16 %v1052_v53, %v1044_v47  ;;  %v1067_v9 = vmax.f32 %v939_v57, 0.0  ;;  %v768_v2 = vmul.f32 %v3088_v11, %v598_v1  ;;  %v600_v15 = vunpack.c.l.bf16 %v489_v39  ;;  %v504_v53 = vld [vmem:[%s3147_s7 + $0x1f0] sm:$0xff] }
  0x9a   : > { %v941_v10 = vadd.f32 %v3104_v17, %v771_v63  ;;  %v1061_v0 = vmax.f32 %v933_v59, 0.0  ;;  %v930_v7 = vadd.f32 %v3107_v18, %v760_v55  ;;  %v762_v20 = vmul.f32 %v3097_v14, %v592_v6  ;;  %v501_v63 = vld [vmem:[%s3147_s7 + $0x1d8] sm:$0xff] }
  0x9b   : > { %2050 = vmatmul.mubr.bf16.gmra.mxu1 %v1140_v5  ;;  %v607_v8 = vunpack.c.h.bf16 %v492_v4  ;;  %v1147_v61 = vpack.c.bf16 %v1067_v9, %v1059_v58  ;;  %v938_v25 = vadd.f32 %v3107_v18, %v768_v2  ;;  %v770_v21 = vmul.f32 %v3097_v14, %v600_v15  ;;  %v505_v55 = vld [vmem:[%s3147_s7 + $0x1f8] sm:$0xff] }
  0x9c   : > { %v1069_v24 = vmax.f32 %v941_v10, 0.0  ;;  %v1058_v26 = vmax.f32 %v930_v7, 0.0  ;;  %v932_v62 = vadd.f32 %v3110_v19, %v762_v20  ;;  %v615_v28 = vunpack.c.h.bf16 %v496_v22 }
  0x9d   : > { %v777_v29 = vmul.f32 %v3091_v12, %v607_v8  ;;  %1960 = vmatprep.mubr.bf16.mxu0 %v1147_v61  ;;  %v1066_v23 = vmax.f32 %v938_v25, 0.0  ;;  %v940_v33 = vadd.f32 %v3110_v19, %v770_v21  ;;  %v609_v30 = vunpack.c.h.bf16 %v493_v60 }
  0x9e   : > { %v1149_v31 = vpack.c.bf16 %v1069_v24, %v1061_v0  ;;  %v1060_v34 = vmax.f32 %v932_v62, 0.0  ;;  %v785_v35 = vmul.f32 %v3091_v12, %v615_v28  ;;  %v617_v36 = vunpack.c.h.bf16 %v497_v3 }
  0x9f   : > { %v947_v27 = vadd.f32 %v3094_v13, %v777_v29  ;;  %v1146_v37 = vpack.c.bf16 %v1066_v23, %v1058_v26  ;;  %v1068_v38 = vmax.f32 %v940_v33, 0.0  ;;  %v779_v32 = vmul.f32 %v3101_v16, %v609_v30 }
  0xa0   : > { %2057 = vmatprep.mubr.bf16.mxu1 %v1149_v31  ;;  %v606_v39 = vunpack.c.l.bf16 %v492_v4  ;;  %v955_v40 = vadd.f32 %v3094_v13, %v785_v35  ;;  %v787_v42 = vmul.f32 %v3101_v16, %v617_v36  ;;  %v614_v43 = vunpack.c.l.bf16 %v496_v22 }
  0xa1   : > { %v1075_v41 = vmax.f32 %v947_v27, 0.0  ;;  %1961 = vmatmul.mubr.bf16.gmra.mxu0 %v1146_v37  ;;  %v1148_v45 = vpack.c.bf16 %v1068_v38, %v1060_v34  ;;  %v949_v52 = vadd.f32 %v3104_v17, %v779_v32  ;;  %v608_v47 = vunpack.c.l.bf16 %v493_v60 }
  0xa2   : > { %v776_v46 = vmul.f32 %v3088_v11, %v606_v39  ;;  %v1083_v48 = vmax.f32 %v955_v40, 0.0  ;;  %v957_v49 = vadd.f32 %v3104_v17, %v787_v42  ;;  %v784_v50 = vmul.f32 %v3088_v11, %v614_v43 }
  0xa3   : > { %v616_v51 = vunpack.c.l.bf16 %v497_v3  ;;  %2058 = vmatmul.mubr.bf16.gmra.mxu1 %v1148_v45  ;;  %v1077_v56 = vmax.f32 %v949_v52, 0.0  ;;  %v778_v57 = vmul.f32 %v3097_v14, %v608_v47  ;;  %v623_v58 = vunpack.c.h.bf16 %v500_v44 }
  0xa4   : > { %v946_v54 = vadd.f32 %v3107_v18, %v776_v46  ;;  %v1155_v1 = vpack.c.bf16 %v1083_v48, %v1075_v41  ;;  %v1085_v4 = vmax.f32 %v957_v49, 0.0  ;;  %v954_v5 = vadd.f32 %v3107_v18, %v784_v50 }
  0xa5   : > { %v786_v59 = vmul.f32 %v3097_v14, %v616_v51  ;;  %v948_v9 = vadd.f32 %v3110_v19, %v778_v57  ;;  %v631_v10 = vunpack.c.h.bf16 %v504_v53  ;;  %v793_v2 = vmul.f32 %v3091_v12, %v623_v58 }
  0xa6   : > { %v1074_v6 = vmax.f32 %v946_v54, 0.0  ;;  %1968 = vmatprep.mubr.bf16.mxu0 %v1155_v1  ;;  %v1157_v15 = vpack.c.bf16 %v1085_v4, %v1077_v56  ;;  %v1082_v22 = vmax.f32 %v954_v5, 0.0  ;;  %v625_v7 = vunpack.c.h.bf16 %v501_v63 }
  0xa7   : > { %v956_v0 = vadd.f32 %v3110_v19, %v786_v59  ;;  %v1076_v20 = vmax.f32 %v948_v9, 0.0  ;;  %v801_v8 = vmul.f32 %v3091_v12, %v631_v10  ;;  %v963_v60 = vadd.f32 %v3094_v13, %v793_v2 }
  0xa8   : > { %v633_v61 = vunpack.c.h.bf16 %v505_v55  ;;  %2065 = vmatprep.mubr.bf16.mxu1 %v1157_v15  ;;  %v1154_v24 = vpack.c.bf16 %v1082_v22, %v1074_v6  ;;  %v795_v21 = vmul.f32 %v3101_v16, %v625_v7  ;;  %v622_v3 = vunpack.c.l.bf16 %v500_v44 }
  0xa9   : > { %v1084_v25 = vmax.f32 %v956_v0, 0.0  ;;  %v971_v26 = vadd.f32 %v3094_v13, %v801_v8  ;;  %v1091_v62 = vmax.f32 %v963_v60, 0.0  ;;  %v630_v29 = vunpack.c.l.bf16 %v504_v53 }
  0xaa   : > { %v803_v28 = vmul.f32 %v3101_v16, %v633_v61  ;;  %1969 = vmatmul.mubr.bf16.gmra.mxu0 %v1154_v24  ;;  %v965_v23 = vadd.f32 %v3104_v17, %v795_v21  ;;  %v792_v12 = vmul.f32 %v3088_v11, %v622_v3  ;;  %v624_v33 = vunpack.c.l.bf16 %v501_v63 }
  0xab   : > { %v1156_v31 = vpack.c.bf16 %v1084_v25, %v1076_v20  ;;  %v1099_v30 = vmax.f32 %v971_v26, 0.0  ;;  %v800_v35 = vmul.f32 %v3088_v11, %v630_v29  ;;  %v632_v27 = vunpack.c.l.bf16 %v505_v55 }
  0xac   : > { %v973_v34 = vadd.f32 %v3104_v17, %v803_v28  ;;  %v1093_v36 = vmax.f32 %v965_v23, 0.0  ;;  %v962_v13 = vadd.f32 %v3107_v18, %v792_v12  ;;  %v794_v16 = vmul.f32 %v3097_v14, %v624_v33 }
  0xad   : > { %2066 = vmatmul.mubr.bf16.gmra.mxu1 %v1156_v31  ;;  %v1163_v37 = vpack.c.bf16 %v1099_v30, %v1091_v62  ;;  %v970_v32 = vadd.f32 %v3107_v18, %v800_v35  ;;  %v802_v39 = vmul.f32 %v3097_v14, %v632_v27 }
  0xae   : > { %v1101_v38 = vmax.f32 %v973_v34, 0.0  ;;  %v1090_v40 = vmax.f32 %v962_v13, 0.0  ;;  %v964_v41 = vadd.f32 %v3110_v19, %v794_v16 }
  0xaf   : > { %1976 = vmatprep.mubr.bf16.mxu0 %v1163_v37  ;;  %v1098_v42 = vmax.f32 %v970_v32, 0.0  ;;  %v972_v11 = vadd.f32 %v3110_v19, %v802_v39 }
  0xb0   : > { %v1165_v17 = vpack.c.bf16 %v1101_v38, %v1093_v36  ;;  %v1092_v43 = vmax.f32 %v964_v41, 0.0 }
  0xb1   : > { %v1162_v44 = vpack.c.bf16 %v1098_v42, %v1090_v40  ;;  %v1100_v45 = vmax.f32 %v972_v11, 0.0 }
  0xb2   : > { %2073 = vmatprep.mubr.bf16.mxu1 %v1165_v17 }
  0xb3   : > { %1977 = vmatmul.mubr.bf16.gmra.mxu0 %v1162_v44  ;;  %v1164_v52 = vpack.c.bf16 %v1100_v45, %v1092_v43 }
  0xb5   : > { %2074 = vmatmul.mubr.bf16.gmra.mxu1 %v1164_v52 }
  0xf1   : > { %v2658_v46 = vpop.f32.mrf.mxu0 }
  0xf2   : > { %v2722_v47 = vpop.f32.mrf.mxu1 }
  0xf3   : > { %v2659_v18 = vpop.f32.mrf.mxu0 }
  0xf4   : > { %v2660_v48 = vadd.f32 %v2659_v18, %v2658_v46  ;;  %v2723_v14 = vpop.f32.mrf.mxu1 }
  0xf5   : > { %v2724_v49 = vadd.f32 %v2723_v14, %v2722_v47  ;;  %v3555_v50 = vpop.f32.mrf.mxu0 }
  0xf6   : > { %v3557_v51 = vpop.f32.mrf.mxu1 }
  0xf7   : > { %v3559_v53 = vadd.f32 %v2724_v49, %v2660_v48  ;;  %v3561_v19 = vpop.f32.mrf.mxu0 }
  0xf8   : > { %v3563_v56 = vpop.f32.mrf.mxu1 }
  0xfa   : > { %v2728_v57 = vpop.f32.mrf.mxu1 }
  0xfb   : > { %v2664_v54 = vpop.f32.mrf.mxu0 }
  0xfc   : > { %v2729_v1 = vpop.f32.mrf.mxu1 }
  0xfd   : > { %v2665_v58 = vpop.f32.mrf.mxu0  ;;  %v2730_v4 = vadd.f32 %v2729_v1, %v2728_v57 }
  0xfe   : > { %v2666_v63 = vadd.f32 %v2665_v58, %v2664_v54  ;;  %v2731_v59 = vpop.f32.mrf.mxu1 }
  0xff   : > { %v2667_v5 = vpop.f32.mrf.mxu0 }
 0x100   : > { %v3565_v55 = vadd.f32 %v2730_v4, %v2666_v63  ;;  %v2732_v10 = vpop.f32.mrf.mxu1 }
 0x101   : > { %v2668_v6 = vpop.f32.mrf.mxu0  ;;  %v2733_v2 = vadd.f32 %v2732_v10, %v2731_v59 }
 0x102   : > { %v2669_v9 = vadd.f32 %v2668_v6, %v2667_v5  ;;  %v2734_v7 = vpop.f32.mrf.mxu1 }
 0x103   : > { %v2670_v15 = vpop.f32.mrf.mxu0 }
 0x104   : > { %v3567_v22 = vadd.f32 %v2733_v2, %v2669_v9  ;;  %v2735_v60 = vpop.f32.mrf.mxu1 }
 0x105   : > { %v2671_v0 = vpop.f32.mrf.mxu0  ;;  %v2736_v61 = vadd.f32 %v2735_v60, %v2734_v7 }
 0x106   : > { %v2672_v20 = vadd.f32 %v2671_v0, %v2670_v15  ;;  %v2737_v25 = vpop.f32.mrf.mxu1 }
 0x107   : > { %v2673_v8 = vpop.f32.mrf.mxu0 }
 0x108   : > { %v3569_v3 = vadd.f32 %v2736_v61, %v2672_v20  ;;  %v2738_v26 = vpop.f32.mrf.mxu1 }
 0x109   : > { %v2674_v24 = vpop.f32.mrf.mxu0  ;;  %v2739_v62 = vadd.f32 %v2738_v26, %v2737_v25 }
 0x10a   : > { %v2675_v21 = vadd.f32 %v2674_v24, %v2673_v8  ;;  %v2740_v31 = vpop.f32.mrf.mxu1 }
 0x10b   : > { %v2676_v28 = vpop.f32.mrf.mxu0 }
 0x10c   : > { %v3571_v29 = vadd.f32 %v2739_v62, %v2675_v21  ;;  %v2741_v33 = vpop.f32.mrf.mxu1 }
 0x10d   : > { %v2677_v23 = vpop.f32.mrf.mxu0  ;;  %v2742_v34 = vadd.f32 %v2741_v33, %v2740_v31 }
 0x10e   : > { %v2678_v12 = vadd.f32 %v2677_v23, %v2676_v28  ;;  %v2743_v35 = vpop.f32.mrf.mxu1 }
 0x10f   : > { %v2679_v30 = vpop.f32.mrf.mxu0 }
 0x110   : > { %v3573_v36 = vadd.f32 %v2742_v34, %v2678_v12  ;;  %v2744_v16 = vpop.f32.mrf.mxu1 }
 0x111   : > { %v2680_v27 = vpop.f32.mrf.mxu0  ;;  %v2745_v37 = vadd.f32 %v2744_v16, %v2743_v35 }
 0x112   : > { %v2681_v13 = vadd.f32 %v2680_v27, %v2679_v30 }
 0x113   : > { %v2682_v38 = vpop.f32.mrf.mxu0  ;;  %v2746_v39 = vpop.f32.mrf.mxu1 }
 0x114   : > { %v3575_v32 = vadd.f32 %v2745_v37, %v2681_v13 }
 0x115   : > { %v2683_v40 = vpop.f32.mrf.mxu0  ;;  %v2747_v17 = vpop.f32.mrf.mxu1 }
 0x116   : > { %v2684_v41 = vadd.f32 %v2683_v40, %v2682_v38  ;;  %v2748_v11 = vadd.f32 %v2747_v17, %v2746_v39 }
 0x117   : > { %v2685_v42 = vpop.f32.mrf.mxu0  ;;  %v2749_v43 = vpop.f32.mrf.mxu1 }
 0x118   : > { %v3577_v45 = vadd.f32 %v2748_v11, %v2684_v41  ;;  %v2727_v11 = vadd.f32 %v3563_v56, %v3557_v51 }
 0x119   : > { %v2686_v44 = vpop.f32.mrf.mxu0  ;;  %v2750_v46 = vpop.f32.mrf.mxu1 }
 0x11a   : > { %v2687_v52 = vadd.f32 %v2686_v44, %v2685_v42  ;;  %v2751_v47 = vadd.f32 %v2750_v46, %v2749_v43  ;;  %v2663_v42 = vadd.f32 %v3561_v19, %v3555_v50 }
 0x11b   : > { %v2688_v18 = vpop.f32.mrf.mxu0 }
 0x11c   : > { %v3579_v48 = vadd.f32 %v2751_v47, %v2687_v52  ;;  %v2752_v14 = vpop.f32.mrf.mxu1 }
 0x11d   : > { %v2689_v49 = vpop.f32.mrf.mxu0 }
 0x11e   : > { %v2690_v54 = vadd.f32 %v2689_v49, %v2688_v18  ;;  %v2753_v57 = vpop.f32.mrf.mxu1 }
 0x11f   : > { %v2691_v58 = vpop.f32.mrf.mxu0  ;;  %v2754_v63 = vadd.f32 %v2753_v57, %v2752_v14 }
 0x120   : > { %v2755_v1 = vpop.f32.mrf.mxu1 }
 0x121   : > { %v2692_v4 = vpop.f32.mrf.mxu0  ;;  %v3581_v5 = vadd.f32 %v2754_v63, %v2690_v54  ;;  %v1829_v54 = vadd.f32 %v2727_v11, %v2663_v42 }
 0x122   : > { %v2693_v59 = vadd.f32 %v2692_v4, %v2691_v58  ;;  %v2756_v6 = vpop.f32.mrf.mxu1 }
 0x123   : > { %v2757_v9 = vadd.f32 %v2756_v6, %v2755_v1  ;;  %v2694_v10 = vpop.f32.mrf.mxu0 }
 0x125   : > { %v3583_v2 = vadd.f32 %v2757_v9, %v2693_v59  ;;  %v2758_v15 = vpop.f32.mrf.mxu1  ;;  %v2695_v0 = vpop.f32.mrf.mxu0 }
 0x126   : > { %v2696_v7 = vadd.f32 %v2695_v0, %v2694_v10 }
 0x127   : > { %v2759_v20 = vpop.f32.mrf.mxu1  ;;  %v2697_v8 = vpop.f32.mrf.mxu0 }
 0x128   : > { %v2760_v60 = vadd.f32 %v2759_v20, %v2758_v15 }
 0x129   : > { %v2761_v61 = vpop.f32.mrf.mxu1  ;;  %v2698_v24 = vpop.f32.mrf.mxu0 }
 0x12a   : > { %v3585_v25 = vadd.f32 %v2760_v60, %v2696_v7  ;;  %v2699_v21 = vadd.f32 %v2698_v24, %v2697_v8 }
 0x12b   : > { %v2762_v26 = vpop.f32.mrf.mxu1  ;;  %v2700_v28 = vpop.f32.mrf.mxu0 }
 0x12c   : > { %v2763_v62 = vadd.f32 %v2762_v26, %v2761_v61 }
 0x12d   : > { %v2701_v12 = vpop.f32.mrf.mxu0 }
 0x12e   : > { %v3587_v31 = vadd.f32 %v2763_v62, %v2699_v21  ;;  %v2764_v23 = vpop.f32.mrf.mxu1  ;;  %v2702_v33 = vadd.f32 %v2701_v12, %v2700_v28 }
 0x12f   : > { %v2703_v34 = vpop.f32.mrf.mxu0 }
 0x130   : > { %v2765_v30 = vpop.f32.mrf.mxu1 }
 0x131   : > { %v2766_v35 = vadd.f32 %v2765_v30, %v2764_v23  ;;  %v2704_v13 = vpop.f32.mrf.mxu0 }
 0x132   : > { %v2767_v27 = vpop.f32.mrf.mxu1  ;;  %v2705_v37 = vadd.f32 %v2704_v13, %v2703_v34 }
 0x133   : > { %v3589_v16 = vadd.f32 %v2766_v35, %v2702_v33  ;;  %v2786_v39 = vpop.f32.mrf.mxu0 }
 0x134   : > { %v2768_v38 = vpop.f32.mrf.mxu1 }
 0x135   : > { %v2769_v40 = vadd.f32 %v2768_v38, %v2767_v27  ;;  %v2787_v17 = vpop.f32.mrf.mxu0 }
 0x136   : > { %v2850_v41 = vpop.f32.mrf.mxu1  ;;  %v2788_v44 = vadd.f32 %v2787_v17, %v2786_v39 }
 0x137   : > { %v3595_v43 = vadd.f32 %v2769_v40, %v2705_v37  ;;  %v2789_v46 = vpop.f32.mrf.mxu0 }
 0x138   : > { %v2851_v52 = vpop.f32.mrf.mxu1  ;;  %v1923_v47 = vadd.f32 %v2788_v44, %v3559_v53 }
 0x139   : > { %v2852_v18 = vadd.f32 %v2851_v52, %v2850_v41  ;;  %v2790_v49 = vpop.f32.mrf.mxu0 }
 0x13a   : > { %v2853_v14 = vpop.f32.mrf.mxu1  ;;  %v2791_v57 = vadd.f32 %v2790_v49, %v2789_v46 }
 0x13b   : > { %v2020_v58 = vadd.f32 %v2852_v18, %v1923_v47 }
 0x13c   : > { %v2854_v63 = vpop.f32.mrf.mxu1  ;;  %v1926_v1 = vadd.f32 %v2791_v57, %v1829_v54 }
 0x13d   : > { %v2855_v50 = vadd.f32 %v2854_v63, %v2853_v14  ;;  %v2792_v19 = vpop.f32.mrf.mxu0  ;;  %v2229_v56 = vmul.f32 %v2020_v58, %v2020_v58 }
 0x13f   : > { %v2023_v4 = vadd.f32 %v2855_v50, %v1926_v1  ;;  %v2856_v51 = vpop.f32.mrf.mxu1  ;;  %v2793_v53 = vpop.f32.mrf.mxu0 }
 0x140   : > { %v2794_v10 = vadd.f32 %v2793_v53, %v2792_v19 }
 0x141   : > { %v2598_v59 = vpack.c.bf16 %v2023_v4, %v2020_v58  ;;  %v2213_v6 = vadd.f32 %v2023_v4, %v2020_v58  ;;  %v2230_v9 = vmul.f32 %v2023_v4, %v2023_v4  ;;  %v2857_v15 = vpop.f32.mrf.mxu1  ;;  %v2795_v0 = vpop.f32.mrf.mxu0 }
 0x142   : > { %v1931_v20 = vadd.f32 %v2794_v10, %v3565_v55  ;;  %v2858_v8 = vadd.f32 %v2857_v15, %v2856_v51 }
 0x143   : > { %2599 = vst [vmem:[%s3602_s11] sm:$0xff] %v2598_v59   ;;  %v2245_v7 = vadd.f32 %v2230_v9, %v2229_v56  ;;  %v2859_v60 = vpop.f32.mrf.mxu1  ;;  %v2796_v61 = vpop.f32.mrf.mxu0 }
 0x144   : > { %v2028_v24 = vadd.f32 %v2858_v8, %v1931_v20  ;;  %v2797_v21 = vadd.f32 %v2796_v61, %v2795_v0 }
 0x145   : > { %v2860_v26 = vpop.f32.mrf.mxu1 }
 0x146   : > { %v2214_v62 = vadd.f32 %v2213_v6, %v2028_v24  ;;  %v2231_v28 = vmul.f32 %v2028_v24, %v2028_v24  ;;  %v1934_v23 = vadd.f32 %v2797_v21, %v3567_v22  ;;  %v2861_v12 = vadd.f32 %v2860_v26, %v2859_v60  ;;  %v2798_v33 = vpop.f32.mrf.mxu0 }
 0x148   : > { %v2246_v30 = vadd.f32 %v2245_v7, %v2231_v28  ;;  %v2031_v34 = vadd.f32 %v2861_v12, %v1934_v23  ;;  %v2799_v27 = vpop.f32.mrf.mxu0 }
 0x149   : > { %v2862_v35 = vpop.f32.mrf.mxu1  ;;  %v2800_v13 = vadd.f32 %v2799_v27, %v2798_v33 }
 0x14a   : > { %v2603_v37 = vpack.c.bf16 %v2031_v34, %v2028_v24  ;;  %v2215_v55 = vadd.f32 %v2214_v62, %v2031_v34  ;;  %v2232_v38 = vmul.f32 %v2031_v34, %v2031_v34  ;;  %v2801_v40 = vpop.f32.mrf.mxu0 }
 0x14b   : > { %v2863_v39 = vpop.f32.mrf.mxu1  ;;  %v1939_v41 = vadd.f32 %v2800_v13, %v3569_v3 }
 0x14c   : > { %v2864_v17 = vadd.f32 %v2863_v39, %v2862_v35  ;;  %2635 = vst [vmem:[%s3602_s11 + $0x8] sm:$0xff] %v2603_v37   ;;  %v2247_v42 = vadd.f32 %v2246_v30, %v2232_v38  ;;  %v2802_v44 = vpop.f32.mrf.mxu0 }
 0x14d   : > { %v2865_v11 = vpop.f32.mrf.mxu1  ;;  %v2803_v52 = vadd.f32 %v2802_v44, %v2801_v40 }
 0x14e   : > { %v2036_v22 = vadd.f32 %v2864_v17, %v1939_v41 }
 0x14f   : > { %v2866_v46 = vpop.f32.mrf.mxu1  ;;  %v1942_v14 = vadd.f32 %v2803_v52, %v3571_v29  ;;  %v2804_v54 = vpop.f32.mrf.mxu0 }
 0x150   : > { %v2216_v47 = vadd.f32 %v2215_v55, %v2036_v22  ;;  %v2233_v18 = vmul.f32 %v2036_v22, %v2036_v22  ;;  %v2867_v49 = vadd.f32 %v2866_v46, %v2865_v11 }
 0x151   : > { %v2868_v63 = vpop.f32.mrf.mxu1  ;;  %v2805_v1 = vpop.f32.mrf.mxu0 }
 0x152   : > { %v2248_v57 = vadd.f32 %v2247_v42, %v2233_v18  ;;  %v2039_v58 = vadd.f32 %v2867_v49, %v1942_v14  ;;  %v2806_v3 = vadd.f32 %v2805_v1, %v2804_v54 }
 0x153   : > { %v2869_v51 = vpop.f32.mrf.mxu1  ;;  %v2807_v56 = vpop.f32.mrf.mxu0 }
 0x154   : > { %v2608_v50 = vpack.c.bf16 %v2039_v58, %v2036_v22  ;;  %v2217_v19 = vadd.f32 %v2216_v47, %v2039_v58  ;;  %v2234_v4 = vmul.f32 %v2039_v58, %v2039_v58  ;;  %v1947_v53 = vadd.f32 %v2806_v3, %v3573_v36 }
 0x155   : > { %v2870_v59 = vadd.f32 %v2869_v51, %v2868_v63  ;;  %v2871_v9 = vpop.f32.mrf.mxu1  ;;  %v2808_v10 = vpop.f32.mrf.mxu0 }
 0x156   : > { %2636 = vst [vmem:[%s3602_s11 + $0x10] sm:$0xff] %v2608_v50   ;;  %v2249_v6 = vadd.f32 %v2248_v57, %v2234_v4  ;;  %v2809_v15 = vadd.f32 %v2808_v10, %v2807_v56 }
 0x157   : > { %v2044_v29 = vadd.f32 %v2870_v59, %v1947_v53  ;;  %v2872_v0 = vpop.f32.mrf.mxu1 }
 0x158   : > { %v1950_v8 = vadd.f32 %v2809_v15, %v3575_v32  ;;  %v2873_v60 = vadd.f32 %v2872_v0, %v2871_v9  ;;  %v2810_v61 = vpop.f32.mrf.mxu0 }
 0x159   : > { %v2218_v7 = vadd.f32 %v2217_v19, %v2044_v29  ;;  %v2235_v20 = vmul.f32 %v2044_v29, %v2044_v29 }
 0x15a   : > { %v2047_v21 = vadd.f32 %v2873_v60, %v1950_v8  ;;  %v2811_v62 = vpop.f32.mrf.mxu0 }
 0x15b   : > { %v2250_v24 = vadd.f32 %v2249_v6, %v2235_v20  ;;  %v2874_v26 = vpop.f32.mrf.mxu1  ;;  %v2812_v36 = vadd.f32 %v2811_v62, %v2810_v61 }
 0x15c   : > { %v2613_v28 = vpack.c.bf16 %v2047_v21, %v2044_v29  ;;  %v2219_v23 = vadd.f32 %v2218_v7, %v2047_v21  ;;  %v2236_v12 = vmul.f32 %v2047_v21, %v2047_v21  ;;  %v2813_v30 = vpop.f32.mrf.mxu0 }
 0x15d   : > { %v2875_v33 = vpop.f32.mrf.mxu1  ;;  %v1955_v34 = vadd.f32 %v2812_v36, %v3577_v45 }
 0x15e   : > { %v2876_v35 = vadd.f32 %v2875_v33, %v2874_v26  ;;  %2637 = vst [vmem:[%s3602_s11 + $0x18] sm:$0xff] %v2613_v28   ;;  %v2251_v27 = vadd.f32 %v2250_v24, %v2236_v12  ;;  %v2814_v37 = vpop.f32.mrf.mxu0 }
 0x15f   : > { %v2877_v13 = vpop.f32.mrf.mxu1  ;;  %v2815_v55 = vadd.f32 %v2814_v37, %v2813_v30 }
 0x160   : > { %v2052_v32 = vadd.f32 %v2876_v35, %v1955_v34 }
 0x161   : > { %v2878_v38 = vpop.f32.mrf.mxu1  ;;  %v1958_v41 = vadd.f32 %v2815_v55, %v3579_v48  ;;  %v2816_v42 = vpop.f32.mrf.mxu0 }
 0x162   : > { %v2220_v39 = vadd.f32 %v2219_v23, %v2052_v32  ;;  %v2237_v40 = vmul.f32 %v2052_v32, %v2052_v32  ;;  %v2879_v17 = vadd.f32 %v2878_v38, %v2877_v13 }
 0x163   : > { %v2880_v22 = vpop.f32.mrf.mxu1  ;;  %v2817_v52 = vpop.f32.mrf.mxu0 }
 0x164   : > { %v2252_v11 = vadd.f32 %v2251_v27, %v2237_v40  ;;  %v2055_v44 = vadd.f32 %v2879_v17, %v1958_v41  ;;  %v2818_v45 = vadd.f32 %v2817_v52, %v2816_v42 }
 0x165   : > { %v2881_v14 = vpop.f32.mrf.mxu1  ;;  %v2819_v49 = vpop.f32.mrf.mxu0 }
 0x166   : > { %v2618_v46 = vpack.c.bf16 %v2055_v44, %v2052_v32  ;;  %v2221_v47 = vadd.f32 %v2220_v39, %v2055_v44  ;;  %v2238_v18 = vmul.f32 %v2055_v44, %v2055_v44  ;;  %v1963_v54 = vadd.f32 %v2818_v45, %v3581_v5 }
 0x167   : > { %v2882_v57 = vadd.f32 %v2881_v14, %v2880_v22  ;;  %v2883_v63 = vpop.f32.mrf.mxu1  ;;  %v2820_v1 = vpop.f32.mrf.mxu0 }
 0x168   : > { %2638 = vst [vmem:[%s3602_s11 + $0x20] sm:$0xff] %v2618_v46   ;;  %v2253_v58 = vadd.f32 %v2252_v11, %v2238_v18  ;;  %v2821_v3 = vadd.f32 %v2820_v1, %v2819_v49 }
 0x169   : > { %v2060_v48 = vadd.f32 %v2882_v57, %v1963_v54  ;;  %v2884_v50 = vpop.f32.mrf.mxu1 }
 0x16a   : > { %v1966_v51 = vadd.f32 %v2821_v3, %v3583_v2  ;;  %v2885_v56 = vadd.f32 %v2884_v50, %v2883_v63  ;;  %v2822_v53 = vpop.f32.mrf.mxu0 }
 0x16b   : > { %v2222_v19 = vadd.f32 %v2221_v47, %v2060_v48  ;;  %v2239_v4 = vmul.f32 %v2060_v48, %v2060_v48 }
 0x16c   : > { %v2063_v6 = vadd.f32 %v2885_v56, %v1966_v51  ;;  %v2823_v10 = vpop.f32.mrf.mxu0 }
 0x16d   : > { %v2254_v59 = vadd.f32 %v2253_v58, %v2239_v4  ;;  %v2886_v9 = vpop.f32.mrf.mxu1  ;;  %v2824_v5 = vadd.f32 %v2823_v10, %v2822_v53 }
 0x16e   : > { %v2623_v29 = vpack.c.bf16 %v2063_v6, %v2060_v48  ;;  %v2223_v15 = vadd.f32 %v2222_v19, %v2063_v6  ;;  %v2240_v0 = vmul.f32 %v2063_v6, %v2063_v6  ;;  %v2825_v20 = vpop.f32.mrf.mxu0 }
 0x16f   : > { %v2887_v7 = vpop.f32.mrf.mxu1  ;;  %v1971_v8 = vadd.f32 %v2824_v5, %v3585_v25 }
 0x170   : > { %v2888_v60 = vadd.f32 %v2887_v7, %v2886_v9  ;;  %2639 = vst [vmem:[%s3602_s11 + $0x28] sm:$0xff] %v2623_v29   ;;  %v2255_v61 = vadd.f32 %v2254_v59, %v2240_v0  ;;  %v2826_v21 = vpop.f32.mrf.mxu0 }
 0x171   : > { %v2889_v24 = vpop.f32.mrf.mxu1  ;;  %v2827_v26 = vadd.f32 %v2826_v21, %v2825_v20 }
 0x172   : > { %v2068_v2 = vadd.f32 %v2888_v60, %v1971_v8 }
 0x173   : > { %v2890_v62 = vpop.f32.mrf.mxu1  ;;  %v1974_v23 = vadd.f32 %v2827_v26, %v3587_v31  ;;  %v2828_v33 = vpop.f32.mrf.mxu0 }
 0x174   : > { %v2224_v36 = vadd.f32 %v2223_v15, %v2068_v2  ;;  %v2241_v28 = vmul.f32 %v2068_v2, %v2068_v2  ;;  %v2891_v12 = vadd.f32 %v2890_v62, %v2889_v24 }
 0x175   : > { %v2892_v35 = vpop.f32.mrf.mxu1  ;;  %v2829_v27 = vpop.f32.mrf.mxu0 }
 0x176   : > { %v2256_v30 = vadd.f32 %v2255_v61, %v2241_v28  ;;  %v2071_v34 = vadd.f32 %v2891_v12, %v1974_v23  ;;  %v2830_v25 = vadd.f32 %v2829_v27, %v2828_v33 }
 0x177   : > { %v2893_v55 = vpop.f32.mrf.mxu1  ;;  %v2831_v38 = vpop.f32.mrf.mxu0 }
 0x178   : > { %v2628_v13 = vpack.c.bf16 %v2071_v34, %v2068_v2  ;;  %v2225_v37 = vadd.f32 %v2224_v36, %v2071_v34  ;;  %v2242_v32 = vmul.f32 %v2071_v34, %v2071_v34  ;;  %v1979_v39 = vadd.f32 %v2830_v25, %v3589_v16 }
 0x179   : > { %v2894_v40 = vadd.f32 %v2893_v55, %v2892_v35  ;;  %v2895_v17 = vpop.f32.mrf.mxu1  ;;  %v2832_v31 = vpop.f32.mrf.mxu0 }
 0x17a   : > { %2640 = vst [vmem:[%s3602_s11 + $0x30] sm:$0xff] %v2628_v13   ;;  %v2257_v41 = vadd.f32 %v2256_v30, %v2242_v32  ;;  %v2833_v11 = vadd.f32 %v2832_v31, %v2831_v38 }
 0x17b   : > { %v2076_v42 = vadd.f32 %v2894_v40, %v1979_v39  ;;  %v2896_v44 = vpop.f32.mrf.mxu1 }
 0x17c   : > { %v1982_v45 = vadd.f32 %v2833_v11, %v3595_v43  ;;  %v2897_v46 = vadd.f32 %v2896_v44, %v2895_v17 }
 0x17d   : > { %v2226_v22 = vadd.f32 %v2225_v37, %v2076_v42  ;;  %v2243_v52 = vmul.f32 %v2076_v42, %v2076_v42 }
 0x17e   : > { %v2079_v18 = vadd.f32 %v2897_v46, %v1982_v45 }
 0x17f   : > { %v2258_v47 = vadd.f32 %v2257_v41, %v2243_v52 }
 0x180   : > { %v2633_v16 = vpack.c.bf16 %v2079_v18, %v2076_v42  ;;  %v2227_v14 = vadd.f32 %v2226_v22, %v2079_v18  ;;  %v2244_v49 = vmul.f32 %v2079_v18, %v2079_v18 }
 0x182   : > { %2641 = vst [vmem:[%s3602_s11 + $0x38] sm:$0xff] %v2633_v16   ;;  %2228 = vst [vmem:[%s420_s15] sm:$0xff] %v2227_v14  ;;  %v2259_v54 = vadd.f32 %v2258_v47, %v2244_v49 }
 0x184   : > { %2260 = vst [vmem:[%s420_s15 + $0x8] sm:$0xff] %v2259_v54 }
 0x185 PF: > { %s16_s20 = sadd.s32 1, %s3008_s20   ;;  %s3645_s18 = smov %s3004_s19 }
 0x186   : > { %p13_p5 = scmp.ge.s32.totalorder %s16_s20, 6   ;;  %s3646_s19 = smov %s3648_s21 }
 0x188   :  { %15 = sbr.rel (!%p13_p5) target bundleno = 2 (0x2), region = 95 }

// kernel: tile.53
= control target key start
LH: loop header
LB: loop body
LE: loop exit
PB: predicated region body
PF: predicated region fallthrough
CT: control target
= control target key end

     0   :  { %s22_s0 = inlined_call_operand.vmem [shape: f32[128], index: 0, kind: input, shape index: {}]   ;;  %s23_s1 = inlined_call_operand.vmem [shape: f32[4,128], index: 1, kind: output, shape index: {}]  }
   0x1   :  { %v4_v0 = vld [vmem:[%s22_s0] ss:$0 sm:$0xff] }
   0x2   :  { %5 = vst [vmem:[%s23_s1] sm:$0xf] %v4_v0 }

// kernel: generator_cifar_forward.7
= control target key start
LH: loop header
LB: loop body
LE: loop exit
PB: predicated region body
PF: predicated region fallthrough
CT: control target
= control target key end

     0   :  { %s2681_s15 = smov 0   ;;  %s2683_s16 = smov 0   ;;  %s3146_s0 = inlined_call_operand.vmem [shape: bf16[4,512,512], index: 0, kind: input, shape index: {}]   ;;  %s3147_s1 = inlined_call_operand.vmem [shape: f32[1,512], index: 1, kind: input, shape index: {}]   ;;  %s3148_s2 = inlined_call_operand.vmem [shape: f32[1,512], index: 2, kind: input, shape index: {}]   ;;  %s3149_s3 = inlined_call_operand.vmem [shape: bf16[4,512,128], index: 3, kind: input, shape index: {}]   ;;  %s3150_s4 = inlined_call_operand.vmem [shape: bf16[4,512,128], index: 4, kind: output, shape index: {}]  }
   0x1   :  { %s2685_s17 = smov 0   ;;  %s2687_s18 = smov 0  }
   0x2   :  { %s2689_s19 = smov 0  }
   0x3 LB: > { %s36_s20 = sadd.s32 1, %s2646_s17  ;;  %s40_s21 = sadd.s32 1, %s2650_s18  ;;  %s2654_s19 = sphi %s2689_s19, %s14_s19   ;;  %s2650_s18 = sphi %s2687_s18, %s3154_s18   ;;  %s2646_s17 = sphi %s2685_s17, %s3153_s17   ;;  %s2642_s16 = sphi %s2683_s16, %s3152_s16   ;;  %s2638_s15 = sphi %s2681_s15, %s3151_s15  }
   0x4   : > { %p38_p0 = scmp.ge.s32.totalorder %s36_s20, 2  ;;  %p2116_p1 = scmp.ge.s32.totalorder %s2654_s19, 1 }
   0x5   : > { %p249_p2 = scmp.lt.s32.totalorder %s2654_s19, 9 }
   0x6   : > { %s3156_s20 = smov (%p38_p0, %s36_s20), 0  ;;  %s3158_s21 = smov (!%p38_p0, %s40_s21), %s2650_s18 }
   0x7   : > { %p250_p3 = pnand %p2116_p1, %p249_p2  ;;  %p42_p4 = scmp.ge.s32.totalorder %s3158_s21, 4 }
   0x8   : > { %p313_p5 = scmp.lt.s32.totalorder (!%p250_p3), %s2642_s16, 3  ;;  %s2117_s26 = sshll.u32 (!%p250_p3), %s2638_s15, 5 }
   0x9   : > { %s3160_s21 = smov (%p42_p4, %s3158_s21), 0  ;;  %253 = sbr.rel (%p250_p3) target bundleno = 387 (0x183), region = 36 }
   0xa   : > { %p315_p6 = scmp.lt.s32.totalorder (!%p250_p3), %s2117_s26, 63 }
   0xe   : > { %s3162_s16 = smov (!%p313_p5, %s2642_s16), 3  ;;  %v594_v16 = vlaneseq  ;;  %s3164_s26 = smov (!%p315_p6, %s2117_s26), 63  ;;  %v592_v31 = vld [vmem:[%s3147_s1] sm:$0xf] }
   0xf   : > { %s2119_s22 = sshll.u32 %s3162_s16, 8  ;;  %s2118_s27 = sshll.u32 %s3164_s26, 2  ;;  %v742_v32 = vld [vmem:[%s3148_s2] sm:$0xf] }
  0x10   : > { %s2721_s25 = scalar_lea.vmem %s3149_s3, %s2119_s22  ;;  %v595_v21 = vshrl.u32 %v594_v16, 7  ;;  %s322_s28 = sadd.s32 %s2119_s22, %s2118_s27 }
  0x11   : > { %v2584_v0 = vld [vmem:[%s2721_s25 + $0x78] sm:$0xff]   ;;  %v2588_v4 = vld [vmem:[%s2721_s25 + $0x70] sm:$0xff]   ;;  %v2592_v8 = vld [vmem:[%s2721_s25 + $0x68] sm:$0xff]   ;;  %s2120_s29 = sshll.u32 %s322_s28, 2  ;;  %s2124_s11 = sshll.u32 %s3162_s16, 6 }
  0x12   : > { %v2585_v1 = vld [vmem:[%s2721_s25 + $0xf8] sm:$0xff]   ;;  %2320 = vmatprep.subr.bf16.mxu0 %v2584_v0  ;;  %v2589_v5 = vld [vmem:[%s2721_s25 + $0xf0] sm:$0xff]   ;;  %v2593_v9 = vld [vmem:[%s2721_s25 + $0xe8] sm:$0xff]   ;;  %v600_v27 = vsub.s32 1, %v595_v21  ;;  %v608_v29 = vsub.s32 3, %v595_v21  ;;  %v596_v34 = vsub.s32 0, %v595_v21  ;;  %s2767_s10 = scalar_lea.vmem %s3146_s0, %s2120_s29  ;;  %s359_s12 = sadd.s32 %s2124_s11, %s3164_s26 }
  0x13   : > { %v2586_v2 = vld [vmem:[%s2721_s25 + $0x38] sm:$0xff]   ;;  %2432 = vmatprep.subr.bf16.mxu1 %v2585_v1  ;;  %v2590_v6 = vld [vmem:[%s2721_s25 + $0x30] sm:$0xff]   ;;  %v2594_v10 = vld [vmem:[%s2721_s25 + $0x28] sm:$0xff]   ;;  %v604_v36 = vsub.s32 2, %v595_v21  ;;  %s2125_s13 = sshll.u32 %s359_s12, 2 }
  0x14   : > { %v2587_v3 = vld [vmem:[%s2721_s25 + $0xb8] sm:$0xff]   ;;  %2321 = vmatpush3.bf16.msra.mxu0 %v2586_v2  ;;  %v2591_v7 = vld [vmem:[%s2721_s25 + $0xb0] sm:$0xff]   ;;  %v2595_v11 = vld [vmem:[%s2721_s25 + $0xa8] sm:$0xff]   ;;  %v2772_v40 = vrot.slane %v592_v31, %v600_v27  ;;  %v2774_v41 = vrot.slane %v742_v32, %v600_v27  ;;  %v2776_v42 = vrot.slane %v592_v31, %v608_v29  ;;  %v2778_v43 = vrot.slane %v592_v31, %v596_v34  ;;  %s3113_s22 = scalar_lea.vmem %s3150_s4, %s2125_s13 }
  0x15   : > { %2433 = vmatpush3.bf16.msra.mxu1 %v2587_v3  ;;  %2322 = vmatprep.subr.bf16.mxu0 %v2588_v4  ;;  %v2596_v12 = vld [vmem:[%s2721_s25 + $0x60] sm:$0xff]   ;;  %v2600_v17 = vld [vmem:[%s2721_s25 + $0x58] sm:$0xff]   ;;  %v2604_v22 = vld [vmem:[%s2721_s25 + $0x50] sm:$0xff]   ;;  %v2783_v47 = vrot.slane %v742_v32, %v608_v29  ;;  %v2785_v48 = vrot.slane %v742_v32, %v596_v34  ;;  %v2787_v49 = vrot.slane %v592_v31, %v604_v36 }
  0x16   : > { %2434 = vmatprep.subr.bf16.mxu1 %v2589_v5  ;;  %v2597_v13 = vld [vmem:[%s2721_s25 + $0xe0] sm:$0xff]   ;;  %v2601_v18 = vld [vmem:[%s2721_s25 + $0xd8] sm:$0xff]   ;;  %v2605_v23 = vld [vmem:[%s2721_s25 + $0xd0] sm:$0xff]   ;;  %v2789_v50 = vrot.slane %v742_v32, %v604_v36 }
  0x17   : > { %v2598_v14 = vld [vmem:[%s2721_s25 + $0x20] sm:$0xff]   ;;  %v2602_v19 = vld [vmem:[%s2721_s25 + $0x18] sm:$0xff]   ;;  %v2606_v24 = vld [vmem:[%s2721_s25 + $0x10] sm:$0xff]  }
  0x18   : > { %2323 = vmatpush3.bf16.msra.mxu0 %v2590_v6  ;;  %v2599_v15 = vld [vmem:[%s2721_s25 + $0xa0] sm:$0xff]   ;;  %v2603_v20 = vld [vmem:[%s2721_s25 + $0x98] sm:$0xff]   ;;  %v2607_v25 = vld [vmem:[%s2721_s25 + $0x90] sm:$0xff]  }
  0x19   : > { %2435 = vmatpush3.bf16.msra.mxu1 %v2591_v7  ;;  %2324 = vmatprep.subr.bf16.mxu0 %v2592_v8  ;;  %v2608_v26 = vld [vmem:[%s2721_s25 + $0x48] sm:$0xff]   ;;  %v2612_v35 = vld [vmem:[%s2721_s25 + $0x40] sm:$0xff]   ;;  %v402_v45 = vld [vmem:[%s2767_s10 + $0x10] sm:$0xff] }
  0x1a   : > { %2436 = vmatprep.subr.bf16.mxu1 %v2593_v9  ;;  %v2609_v28 = vld [vmem:[%s2721_s25 + $0xc8] sm:$0xff]   ;;  %v2613_v37 = vld [vmem:[%s2721_s25 + $0xc0] sm:$0xff]   ;;  %v468_v53 = vunpack.c.l.bf16 %v402_v45  ;;  %v469_v54 = vunpack.c.h.bf16 %v402_v45  ;;  %v403_v55 = vld [vmem:[%s2767_s10 + $0x18] sm:$0xff] }
  0x1b   : > { %v2610_v30 = vld [vmem:[%s2721_s25 + $0x8] sm:$0xff]   ;;  %v2614_v38 = vld [vmem:[%s2721_s25] sm:$0xff]   ;;  %v470_v58 = vunpack.c.l.bf16 %v403_v55  ;;  %v471_v59 = vunpack.c.h.bf16 %v403_v55 }
  0x1c   : > { %2325 = vmatpush3.bf16.msra.mxu0 %v2594_v10  ;;  %v2611_v33 = vld [vmem:[%s2721_s25 + $0x88] sm:$0xff]   ;;  %v2615_v39 = vld [vmem:[%s2721_s25 + $0x80] sm:$0xff]   ;;  %v619_v61 = vmul.f32 %v2772_v40, %v469_v54  ;;  %v618_v63 = vmul.f32 %v2778_v43, %v468_v53 }
  0x1d   : > { %2437 = vmatpush3.bf16.msra.mxu1 %v2595_v11  ;;  %2326 = vmatprep.subr.bf16.mxu0 %v2596_v12  ;;  %v400_v44 = vld [vmem:[%s2767_s10] sm:$0xff]  ;;  %v401_v46 = vld [vmem:[%s2767_s10 + $0x8] sm:$0xff]  ;;  %v621_v1 = vmul.f32 %v2776_v42, %v471_v59  ;;  %v620_v3 = vmul.f32 %v2787_v49, %v470_v58 }
  0x1e   : > { %2438 = vmatprep.subr.bf16.mxu1 %v2597_v13  ;;  %v464_v51 = vunpack.c.l.bf16 %v400_v44  ;;  %v465_v52 = vunpack.c.h.bf16 %v400_v44  ;;  %v466_v56 = vunpack.c.l.bf16 %v401_v46  ;;  %v467_v57 = vunpack.c.h.bf16 %v401_v46  ;;  %v404_v12 = vld [vmem:[%s2767_s10 + $0x20] sm:$0xff]  ;;  %v406_v13 = vld [vmem:[%s2767_s10 + $0x30] sm:$0xff] }
  0x1f   : > { %v769_v5 = vadd.f32 %v2774_v41, %v619_v61  ;;  %v768_v7 = vadd.f32 %v2785_v48, %v618_v63  ;;  %v771_v9 = vadd.f32 %v2783_v47, %v621_v1  ;;  %v770_v11 = vadd.f32 %v2789_v50, %v620_v3  ;;  %v410_v61 = vld [vmem:[%s2767_s10 + $0x50] sm:$0xff]  ;;  %v411_v3 = vld [vmem:[%s2767_s10 + $0x58] sm:$0xff] }
  0x20   : > { %2327 = vmatpush3.bf16.msra.mxu0 %v2598_v14  ;;  %v615_v60 = vmul.f32 %v2772_v40, %v465_v52  ;;  %v614_v62 = vmul.f32 %v2778_v43, %v464_v51  ;;  %v617_v0 = vmul.f32 %v2776_v42, %v467_v57  ;;  %v616_v2 = vmul.f32 %v2787_v49, %v466_v56  ;;  %v408_v56 = vld [vmem:[%s2767_s10 + $0x40] sm:$0xff] }
  0x21   : > { %2439 = vmatpush3.bf16.msra.mxu1 %v2599_v15  ;;  %2328 = vmatprep.subr.bf16.mxu0 %v2600_v17  ;;  %v897_v15 = vmax.f32 %v769_v5, 0.0  ;;  %v896_v17 = vmax.f32 %v768_v7, 0.0  ;;  %v899_v21 = vmax.f32 %v771_v9, 0.0  ;;  %v477_v27 = vunpack.c.h.bf16 %v406_v13 }
  0x22   : > { %2440 = vmatprep.subr.bf16.mxu1 %v2601_v18  ;;  %v765_v4 = vadd.f32 %v2774_v41, %v615_v60  ;;  %v764_v6 = vadd.f32 %v2785_v48, %v614_v62  ;;  %v767_v8 = vadd.f32 %v2783_v47, %v617_v0  ;;  %v766_v10 = vadd.f32 %v2789_v50, %v616_v2  ;;  %v405_v18 = vld [vmem:[%s2767_s10 + $0x28] sm:$0xff] }
  0x23   : > { %v472_v34 = vunpack.c.l.bf16 %v404_v12  ;;  %v409_v2 = vld [vmem:[%s2767_s10 + $0x48] sm:$0xff]  ;;  %v481_v7 = vunpack.c.h.bf16 %v408_v56 }
  0x24   : > { %2329 = vmatpush3.bf16.msra.mxu0 %v2602_v19  ;;  %v893_v14 = vmax.f32 %v765_v4, 0.0  ;;  %v892_v16 = vmax.f32 %v764_v6, 0.0  ;;  %v407_v19 = vld [vmem:[%s2767_s10 + $0x38] sm:$0xff] }
  0x25   : > { %2441 = vmatpush3.bf16.msra.mxu1 %v2603_v20  ;;  %2330 = vmatprep.subr.bf16.mxu0 %v2604_v22  ;;  %v895_v20 = vmax.f32 %v767_v8, 0.0  ;;  %v894_v22 = vmax.f32 %v766_v10, 0.0  ;;  %v479_v31 = vunpack.c.h.bf16 %v407_v19  ;;  %v622_v46 = vmul.f32 %v2778_v43, %v472_v34 }
  0x26   : > { %2442 = vmatprep.subr.bf16.mxu1 %v2605_v23  ;;  %v898_v23 = vmax.f32 %v770_v11, 0.0  ;;  %v485_v11 = vunpack.c.h.bf16 %v410_v61 }
  0x27   : > { %v772_v59 = vadd.f32 %v2785_v48, %v622_v46  ;;  %v413_v46 = vld [vmem:[%s2767_s10 + $0x68] sm:$0xff] }
  0x28   : > { %2331 = vmatpush3.bf16.msra.mxu0 %v2606_v24  ;;  %v1021_v24 = vpack.c.bf16 %v897_v15, %v893_v14  ;;  %v1022_v29 = vpack.c.bf16 %v898_v23, %v894_v22  ;;  %v483_v14 = vunpack.c.h.bf16 %v409_v2  ;;  %v487_v15 = vunpack.c.h.bf16 %v411_v3 }
  0x29   : > { %2443 = vmatpush3.bf16.msra.mxu1 %v2607_v25  ;;  %2332 = vmatprep.subr.bf16.mxu0 %v2608_v26  ;;  %v1020_v25 = vpack.c.bf16 %v896_v17, %v892_v16  ;;  %v473_v26 = vunpack.c.h.bf16 %v404_v12  ;;  %v900_v5 = vmax.f32 %v772_v59, 0.0  ;;  %v635_v17 = vmul.f32 %v2772_v40, %v485_v11 }
  0x2a   : > { %2444 = vmatprep.subr.bf16.mxu1 %v2609_v28  ;;  %v1023_v28 = vpack.c.bf16 %v899_v21, %v895_v20  ;;  %1404 = vmatprep.mubr.bf16.mxu0 %v1021_v24  ;;  %v633_v21 = vmul.f32 %v2776_v42, %v483_v14  ;;  %v637_v22 = vmul.f32 %v2776_v42, %v487_v15  ;;  %v482_v23 = vunpack.c.l.bf16 %v409_v2 }
  0x2b   : > { %v623_v32 = vmul.f32 %v2772_v40, %v473_v26  ;;  %v785_v24 = vadd.f32 %v2774_v41, %v635_v17  ;;  %v418_v17 = vld [vmem:[%s2767_s10 + $0x90] sm:$0xff] }
  0x2c   : > { %2333 = vmatpush3.bf16.msra.mxu0 %v2610_v30  ;;  %v475_v30 = vunpack.c.h.bf16 %v405_v18  ;;  %1565 = vmatprep.mubr.bf16.mxu1 %v1023_v28  ;;  %v412_v28 = vld [vmem:[%s2767_s10 + $0x60] sm:$0xff] }
  0x2d   : > { %2445 = vmatpush3.bf16.msra.mxu1 %v2611_v33  ;;  %2334 = vmatprep.subr.bf16.mxu0 %v2612_v35  ;;  %v627_v33 = vmul.f32 %v2772_v40, %v477_v27  ;;  %v476_v35 = vunpack.c.l.bf16 %v406_v13  ;;  %v773_v44 = vadd.f32 %v2774_v41, %v623_v32  ;;  %v631_v13 = vmul.f32 %v2772_v40, %v481_v7 }
  0x2e   : > { %2446 = vmatprep.subr.bf16.mxu1 %v2613_v37  ;;  %v625_v36 = vmul.f32 %v2776_v42, %v475_v30  ;;  %v629_v37 = vmul.f32 %v2776_v42, %v479_v31  ;;  %v486_v27 = vunpack.c.l.bf16 %v411_v3  ;;  %v783_v30 = vadd.f32 %v2783_v47, %v633_v21 }
  0x2f   : > { %v777_v45 = vadd.f32 %v2774_v41, %v627_v33  ;;  %v626_v51 = vmul.f32 %v2778_v43, %v476_v35  ;;  %v901_v57 = vmax.f32 %v773_v44, 0.0  ;;  %v781_v20 = vadd.f32 %v2774_v41, %v631_v13 }
  0x30   : > { %2335 = vmatpush3.bf16.msra.mxu0 %v2614_v38  ;;  %v474_v38 = vunpack.c.l.bf16 %v405_v18  ;;  %v775_v52 = vadd.f32 %v2783_v47, %v625_v36  ;;  %v779_v53 = vadd.f32 %v2783_v47, %v629_v37  ;;  %v480_v18 = vunpack.c.l.bf16 %v408_v56  ;;  %v414_v37 = vld [vmem:[%s2767_s10 + $0x70] sm:$0xff] }
  0x31   : > { %2447 = vmatpush3.bf16.msra.mxu1 %v2615_v39  ;;  %v478_v39 = vunpack.c.l.bf16 %v407_v19  ;;  %v905_v58 = vmax.f32 %v777_v45, 0.0  ;;  %v776_v60 = vadd.f32 %v2785_v48, %v626_v51  ;;  %v484_v19 = vunpack.c.l.bf16 %v410_v61  ;;  %v415_v51 = vld [vmem:[%s2767_s10 + $0x78] sm:$0xff] }
  0x32   : > { %v624_v54 = vmul.f32 %v2787_v49, %v474_v38  ;;  %v903_v62 = vmax.f32 %v775_v52, 0.0  ;;  %v907_v63 = vmax.f32 %v779_v53, 0.0  ;;  %v787_v31 = vadd.f32 %v2783_v47, %v637_v22 }
  0x33   : > { %1405 = vmatmul.mubr.bf16.vlgmr.msra.gmra.mxu0 %v1020_v25  ;;  %v628_v55 = vmul.f32 %v2787_v49, %v478_v39  ;;  %v1025_v4 = vpack.c.bf16 %v905_v58, %v901_v57  ;;  %v904_v6 = vmax.f32 %v776_v60, 0.0  ;;  %v630_v25 = vmul.f32 %v2778_v43, %v480_v18 }
  0x34   : > { %1566 = vmatmul.mubr.bf16.vlgmr.msra.gmra.mxu1 %v1022_v29  ;;  %v774_v0 = vadd.f32 %v2789_v50, %v624_v54  ;;  %v1027_v8 = vpack.c.bf16 %v907_v63, %v903_v62  ;;  %v634_v26 = vmul.f32 %v2778_v43, %v484_v19  ;;  %v909_v29 = vmax.f32 %v781_v20, 0.0 }
  0x35   : > { %v778_v1 = vadd.f32 %v2789_v50, %v628_v55  ;;  %1412 = vmatprep.mubr.bf16.mxu0 %v1025_v4  ;;  %v1024_v12 = vpack.c.bf16 %v904_v6, %v900_v5  ;;  %v632_v32 = vmul.f32 %v2787_v49, %v482_v23  ;;  %v913_v33 = vmax.f32 %v785_v24, 0.0 }
  0x36   : > { %v902_v9 = vmax.f32 %v774_v0, 0.0  ;;  %1573 = vmatprep.mubr.bf16.mxu1 %v1027_v8  ;;  %v780_v34 = vadd.f32 %v2785_v48, %v630_v25  ;;  %v784_v35 = vadd.f32 %v2785_v48, %v634_v26  ;;  %v636_v36 = vmul.f32 %v2787_v49, %v486_v27  ;;  %v416_v8 = vld [vmem:[%s2767_s10 + $0x80] sm:$0xff]  ;;  %v417_v26 = vld [vmem:[%s2767_s10 + $0x88] sm:$0xff]  ;;  %v419_v27 = vld [vmem:[%s2767_s10 + $0x98] sm:$0xff] }
  0x37   : > { %v906_v10 = vmax.f32 %v778_v1, 0.0  ;;  %v911_v38 = vmax.f32 %v783_v30, 0.0  ;;  %v915_v39 = vmax.f32 %v787_v31, 0.0  ;;  %v782_v44 = vadd.f32 %v2789_v50, %v632_v32 }
  0x38   : > { %v489_v45 = vunpack.c.h.bf16 %v412_v28  ;;  %v1029_v52 = vpack.c.bf16 %v913_v33, %v909_v29  ;;  %v908_v53 = vmax.f32 %v780_v34, 0.0  ;;  %v912_v54 = vmax.f32 %v784_v35, 0.0 }
  0x39   : > { %v1026_v16 = vpack.c.bf16 %v906_v10, %v902_v9  ;;  %v786_v55 = vadd.f32 %v2789_v50, %v636_v36  ;;  %v1031_v56 = vpack.c.bf16 %v915_v39, %v911_v38  ;;  %v910_v57 = vmax.f32 %v782_v44, 0.0 }
  0x3a   : > { %v493_v58 = vunpack.c.h.bf16 %v414_v37  ;;  %v639_v59 = vmul.f32 %v2772_v40, %v489_v45  ;;  %v1028_v60 = vpack.c.bf16 %v912_v54, %v908_v53  ;;  %v491_v62 = vunpack.c.h.bf16 %v413_v46 }
  0x3b   : > { %1413 = vmatmul.mubr.bf16.gmra.mxu0 %v1024_v12  ;;  %v914_v61 = vmax.f32 %v786_v55, 0.0  ;;  %v495_v63 = vunpack.c.h.bf16 %v415_v51  ;;  %v488_v2 = vunpack.c.l.bf16 %v412_v28  ;;  %v492_v3 = vunpack.c.l.bf16 %v414_v37 }
  0x3c   : > { %1574 = vmatmul.mubr.bf16.gmra.mxu1 %v1026_v16  ;;  %1420 = vmatprep.mubr.bf16.mxu0 %v1029_v52  ;;  %v643_v0 = vmul.f32 %v2772_v40, %v493_v58  ;;  %v789_v1 = vadd.f32 %v2774_v41, %v639_v59  ;;  %v641_v5 = vmul.f32 %v2776_v42, %v491_v62  ;;  %v490_v7 = vunpack.c.l.bf16 %v413_v46 }
  0x3d   : > { %1581 = vmatprep.mubr.bf16.mxu1 %v1031_v56  ;;  %v1030_v4 = vpack.c.bf16 %v914_v61, %v910_v57  ;;  %v645_v6 = vmul.f32 %v2776_v42, %v495_v63  ;;  %v638_v11 = vmul.f32 %v2778_v43, %v488_v2  ;;  %v642_v12 = vmul.f32 %v2778_v43, %v492_v3  ;;  %v420_v56 = vld [vmem:[%s2767_s10 + $0xa0] sm:$0xff] }
  0x3e   : > { %v793_v9 = vadd.f32 %v2774_v41, %v643_v0  ;;  %v917_v10 = vmax.f32 %v789_v1, 0.0  ;;  %v791_v13 = vadd.f32 %v2783_v47, %v641_v5  ;;  %v494_v15 = vunpack.c.l.bf16 %v415_v51  ;;  %v422_v1 = vld [vmem:[%s2767_s10 + $0xb0] sm:$0xff] }
  0x3f   : > { %v795_v14 = vadd.f32 %v2783_v47, %v645_v6  ;;  %v640_v16 = vmul.f32 %v2787_v49, %v490_v7  ;;  %v788_v19 = vadd.f32 %v2785_v48, %v638_v11  ;;  %v792_v20 = vadd.f32 %v2785_v48, %v642_v12  ;;  %v421_v6 = vld [vmem:[%s2767_s10 + $0xa8] sm:$0xff]  ;;  %v423_v11 = vld [vmem:[%s2767_s10 + $0xb8] sm:$0xff] }
  0x40   : > { %v921_v18 = vmax.f32 %v793_v9, 0.0  ;;  %v497_v21 = vunpack.c.h.bf16 %v416_v8  ;;  %v919_v22 = vmax.f32 %v791_v13, 0.0  ;;  %v644_v24 = vmul.f32 %v2787_v49, %v494_v15 }
  0x41   : > { %v923_v23 = vmax.f32 %v795_v14, 0.0  ;;  %v790_v25 = vadd.f32 %v2789_v50, %v640_v16  ;;  %v916_v29 = vmax.f32 %v788_v19, 0.0  ;;  %v920_v30 = vmax.f32 %v792_v20, 0.0 }
  0x42   : > { %v1033_v28 = vpack.c.bf16 %v921_v18, %v917_v10  ;;  %v501_v31 = vunpack.c.h.bf16 %v418_v17  ;;  %v794_v33 = vadd.f32 %v2789_v50, %v644_v24  ;;  %v647_v35 = vmul.f32 %v2772_v40, %v497_v21 }
  0x43   : > { %1421 = vmatmul.mubr.bf16.gmra.mxu0 %v1028_v60  ;;  %v1035_v32 = vpack.c.bf16 %v923_v23, %v919_v22  ;;  %v918_v34 = vmax.f32 %v790_v25, 0.0  ;;  %v1032_v36 = vpack.c.bf16 %v920_v30, %v916_v29  ;;  %v499_v38 = vunpack.c.h.bf16 %v417_v26 }
  0x44   : > { %1582 = vmatmul.mubr.bf16.gmra.mxu1 %v1030_v4  ;;  %1428 = vmatprep.mubr.bf16.mxu0 %v1033_v28  ;;  %v651_v37 = vmul.f32 %v2772_v40, %v501_v31  ;;  %v503_v39 = vunpack.c.h.bf16 %v419_v27  ;;  %v922_v44 = vmax.f32 %v794_v33, 0.0  ;;  %v797_v45 = vadd.f32 %v2774_v41, %v647_v35 }
  0x45   : > { %1589 = vmatprep.mubr.bf16.mxu1 %v1035_v32  ;;  %v496_v46 = vunpack.c.l.bf16 %v416_v8  ;;  %v500_v51 = vunpack.c.l.bf16 %v418_v17  ;;  %v649_v53 = vmul.f32 %v2776_v42, %v499_v38  ;;  %v498_v55 = vunpack.c.l.bf16 %v417_v26  ;;  %v424_v32 = vld [vmem:[%s2767_s10 + $0xc0] sm:$0xff] }
  0x46   : > { %v801_v52 = vadd.f32 %v2774_v41, %v651_v37  ;;  %v653_v54 = vmul.f32 %v2776_v42, %v503_v39  ;;  %v1034_v57 = vpack.c.bf16 %v922_v44, %v918_v34  ;;  %v925_v58 = vmax.f32 %v797_v45, 0.0  ;;  %v426_v45 = vld [vmem:[%s2767_s10 + $0xd0] sm:$0xff] }
  0x47   : > { %v646_v59 = vmul.f32 %v2778_v43, %v496_v46  ;;  %v650_v60 = vmul.f32 %v2778_v43, %v500_v51  ;;  %v799_v62 = vadd.f32 %v2783_v47, %v649_v53  ;;  %v502_v0 = vunpack.c.l.bf16 %v419_v27 }
  0x48   : > { %v929_v61 = vmax.f32 %v801_v52, 0.0  ;;  %v803_v63 = vadd.f32 %v2783_v47, %v653_v54  ;;  %v648_v4 = vmul.f32 %v2787_v49, %v498_v55  ;;  %v505_v5 = vunpack.c.h.bf16 %v420_v56  ;;  %v425_v54 = vld [vmem:[%s2767_s10 + $0xc8] sm:$0xff] }
  0x49   : > { %v796_v2 = vadd.f32 %v2785_v48, %v646_v59  ;;  %v800_v3 = vadd.f32 %v2785_v48, %v650_v60  ;;  %v927_v8 = vmax.f32 %v799_v62, 0.0  ;;  %v652_v10 = vmul.f32 %v2787_v49, %v502_v0  ;;  %v427_v59 = vld [vmem:[%s2767_s10 + $0xd8] sm:$0xff] }
  0x4a   : > { %v1037_v7 = vpack.c.bf16 %v929_v61, %v925_v58  ;;  %v931_v9 = vmax.f32 %v803_v63, 0.0  ;;  %v798_v14 = vadd.f32 %v2789_v50, %v648_v4  ;;  %v509_v15 = vunpack.c.h.bf16 %v422_v1 }
  0x4b   : > { %1429 = vmatmul.mubr.bf16.gmra.mxu0 %v1032_v36  ;;  %v924_v12 = vmax.f32 %v796_v2, 0.0  ;;  %v928_v13 = vmax.f32 %v800_v3, 0.0  ;;  %v802_v17 = vadd.f32 %v2789_v50, %v652_v10  ;;  %v655_v18 = vmul.f32 %v2772_v40, %v505_v5 }
  0x4c   : > { %1590 = vmatmul.mubr.bf16.gmra.mxu1 %v1034_v57  ;;  %1436 = vmatprep.mubr.bf16.mxu0 %v1037_v7  ;;  %v1039_v16 = vpack.c.bf16 %v931_v9, %v927_v8  ;;  %v507_v19 = vunpack.c.h.bf16 %v421_v6  ;;  %v926_v21 = vmax.f32 %v798_v14, 0.0  ;;  %v659_v22 = vmul.f32 %v2772_v40, %v509_v15 }
  0x4d   : > { %v1036_v20 = vpack.c.bf16 %v928_v13, %v924_v12  ;;  %v511_v23 = vunpack.c.h.bf16 %v423_v11  ;;  %v930_v24 = vmax.f32 %v802_v17, 0.0  ;;  %v805_v25 = vadd.f32 %v2774_v41, %v655_v18 }
  0x4e   : > { %1597 = vmatprep.mubr.bf16.mxu1 %v1039_v16  ;;  %v657_v26 = vmul.f32 %v2776_v42, %v507_v19  ;;  %v504_v27 = vunpack.c.l.bf16 %v420_v56  ;;  %v809_v28 = vadd.f32 %v2774_v41, %v659_v22  ;;  %v508_v30 = vunpack.c.l.bf16 %v422_v1  ;;  %v428_v16 = vld [vmem:[%s2767_s10 + $0xe0] sm:$0xff] }
  0x4f   : > { %v661_v29 = vmul.f32 %v2776_v42, %v511_v23  ;;  %v506_v31 = vunpack.c.l.bf16 %v421_v6  ;;  %v1038_v33 = vpack.c.bf16 %v930_v24, %v926_v21  ;;  %v933_v34 = vmax.f32 %v805_v25, 0.0  ;;  %v430_v25 = vld [vmem:[%s2767_s10 + $0xf0] sm:$0xff] }
  0x50   : > { %v807_v35 = vadd.f32 %v2783_v47, %v657_v26  ;;  %v654_v36 = vmul.f32 %v2778_v43, %v504_v27  ;;  %v937_v37 = vmax.f32 %v809_v28, 0.0  ;;  %v658_v39 = vmul.f32 %v2778_v43, %v508_v30  ;;  %v429_v30 = vld [vmem:[%s2767_s10 + $0xe8] sm:$0xff] }
  0x51   : > { %v811_v38 = vadd.f32 %v2783_v47, %v661_v29  ;;  %v510_v44 = vunpack.c.l.bf16 %v423_v11  ;;  %v656_v52 = vmul.f32 %v2787_v49, %v506_v31  ;;  %v513_v53 = vunpack.c.h.bf16 %v424_v32 }
  0x52   : > { %v935_v46 = vmax.f32 %v807_v35, 0.0  ;;  %v804_v51 = vadd.f32 %v2785_v48, %v654_v36  ;;  %v1041_v55 = vpack.c.bf16 %v937_v37, %v933_v34  ;;  %v808_v57 = vadd.f32 %v2785_v48, %v658_v39  ;;  %v431_v35 = vld [vmem:[%s2767_s10 + $0xf8] sm:$0xff] }
  0x53   : > { %1437 = vmatmul.mubr.bf16.gmra.mxu0 %v1036_v20  ;;  %v939_v56 = vmax.f32 %v811_v38, 0.0  ;;  %v660_v58 = vmul.f32 %v2787_v49, %v510_v44  ;;  %v806_v61 = vadd.f32 %v2789_v50, %v656_v52  ;;  %v517_v62 = vunpack.c.h.bf16 %v426_v45 }
  0x54   : > { %1598 = vmatmul.mubr.bf16.gmra.mxu1 %v1038_v33  ;;  %v932_v60 = vmax.f32 %v804_v51, 0.0  ;;  %v663_v63 = vmul.f32 %v2772_v40, %v513_v53  ;;  %1444 = vmatprep.mubr.bf16.mxu0 %v1041_v55  ;;  %v936_v1 = vmax.f32 %v808_v57, 0.0  ;;  %v515_v3 = vunpack.c.h.bf16 %v425_v54 }
  0x55   : > { %v1043_v0 = vpack.c.bf16 %v939_v56, %v935_v46  ;;  %v810_v2 = vadd.f32 %v2789_v50, %v660_v58  ;;  %v934_v4 = vmax.f32 %v806_v61, 0.0  ;;  %v667_v5 = vmul.f32 %v2772_v40, %v517_v62 }
  0x56   : > { %v813_v6 = vadd.f32 %v2774_v41, %v663_v63  ;;  %v519_v7 = vunpack.c.h.bf16 %v427_v59  ;;  %v1040_v8 = vpack.c.bf16 %v936_v1, %v932_v60  ;;  %v665_v10 = vmul.f32 %v2776_v42, %v515_v3 }
  0x57   : > { %1605 = vmatprep.mubr.bf16.mxu1 %v1043_v0  ;;  %v938_v9 = vmax.f32 %v810_v2, 0.0  ;;  %v512_v11 = vunpack.c.l.bf16 %v424_v32  ;;  %v817_v12 = vadd.f32 %v2774_v41, %v667_v5  ;;  %v516_v15 = vunpack.c.l.bf16 %v426_v45  ;;  %v432_v0 = vld [vmem:[%s2767_s10 + $0x100] sm:$0xff] }
  0x58   : > { %v941_v13 = vmax.f32 %v813_v6, 0.0  ;;  %v669_v14 = vmul.f32 %v2776_v42, %v519_v7  ;;  %v815_v18 = vadd.f32 %v2783_v47, %v665_v10  ;;  %v514_v20 = vunpack.c.l.bf16 %v425_v54 }
  0x59   : > { %v1042_v17 = vpack.c.bf16 %v938_v9, %v934_v4  ;;  %v662_v19 = vmul.f32 %v2778_v43, %v512_v11  ;;  %v945_v21 = vmax.f32 %v817_v12, 0.0  ;;  %v666_v23 = vmul.f32 %v2778_v43, %v516_v15  ;;  %v434_v9 = vld [vmem:[%s2767_s10 + $0x110] sm:$0xff] }
  0x5a   : > { %v819_v22 = vadd.f32 %v2783_v47, %v669_v14  ;;  %v518_v24 = vunpack.c.l.bf16 %v427_v59  ;;  %v943_v26 = vmax.f32 %v815_v18, 0.0  ;;  %v664_v28 = vmul.f32 %v2787_v49, %v514_v20  ;;  %v433_v14 = vld [vmem:[%s2767_s10 + $0x108] sm:$0xff] }
  0x5b   : > { %1445 = vmatmul.mubr.bf16.gmra.mxu0 %v1040_v8  ;;  %v812_v27 = vadd.f32 %v2785_v48, %v662_v19  ;;  %v521_v29 = vunpack.c.h.bf16 %v428_v16  ;;  %v1045_v31 = vpack.c.bf16 %v945_v21, %v941_v13  ;;  %v816_v33 = vadd.f32 %v2785_v48, %v666_v23  ;;  %v435_v19 = vld [vmem:[%s2767_s10 + $0x118] sm:$0xff] }
  0x5c   : > { %1606 = vmatmul.mubr.bf16.gmra.mxu1 %v1042_v17  ;;  %v947_v32 = vmax.f32 %v819_v22, 0.0  ;;  %v668_v34 = vmul.f32 %v2787_v49, %v518_v24  ;;  %v814_v37 = vadd.f32 %v2789_v50, %v664_v28  ;;  %v525_v38 = vunpack.c.h.bf16 %v430_v25 }
  0x5d   : > { %v940_v36 = vmax.f32 %v812_v27, 0.0  ;;  %v671_v39 = vmul.f32 %v2772_v40, %v521_v29  ;;  %1452 = vmatprep.mubr.bf16.mxu0 %v1045_v31  ;;  %v944_v45 = vmax.f32 %v816_v33, 0.0  ;;  %v523_v51 = vunpack.c.h.bf16 %v429_v30 }
  0x5e   : > { %v1047_v44 = vpack.c.bf16 %v947_v32, %v943_v26  ;;  %v818_v46 = vadd.f32 %v2789_v50, %v668_v34  ;;  %v942_v52 = vmax.f32 %v814_v37, 0.0  ;;  %v675_v53 = vmul.f32 %v2772_v40, %v525_v38 }
  0x5f   : > { %v821_v54 = vadd.f32 %v2774_v41, %v671_v39  ;;  %v527_v55 = vunpack.c.h.bf16 %v431_v35  ;;  %v1044_v56 = vpack.c.bf16 %v944_v45, %v940_v36  ;;  %v673_v58 = vmul.f32 %v2776_v42, %v523_v51 }
  0x60   : > { %1613 = vmatprep.mubr.bf16.mxu1 %v1047_v44  ;;  %v946_v57 = vmax.f32 %v818_v46, 0.0  ;;  %v520_v59 = vunpack.c.l.bf16 %v428_v16  ;;  %v825_v60 = vadd.f32 %v2774_v41, %v675_v53  ;;  %v524_v63 = vunpack.c.l.bf16 %v430_v25  ;;  %v436_v44 = vld [vmem:[%s2767_s10 + $0x120] sm:$0xff] }
  0x61   : > { %v949_v61 = vmax.f32 %v821_v54, 0.0  ;;  %v677_v62 = vmul.f32 %v2776_v42, %v527_v55  ;;  %v823_v2 = vadd.f32 %v2783_v47, %v673_v58  ;;  %v522_v4 = vunpack.c.l.bf16 %v429_v30 }
  0x62   : > { %v1046_v1 = vpack.c.bf16 %v946_v57, %v942_v52  ;;  %v670_v3 = vmul.f32 %v2778_v43, %v520_v59  ;;  %v953_v5 = vmax.f32 %v825_v60, 0.0  ;;  %v674_v7 = vmul.f32 %v2778_v43, %v524_v63  ;;  %v438_v57 = vld [vmem:[%s2767_s10 + $0x130] sm:$0xff] }
  0x63   : > { %1453 = vmatmul.mubr.bf16.gmra.mxu0 %v1044_v56  ;;  %v827_v6 = vadd.f32 %v2783_v47, %v677_v62  ;;  %v526_v8 = vunpack.c.l.bf16 %v431_v35  ;;  %v951_v10 = vmax.f32 %v823_v2, 0.0  ;;  %v672_v12 = vmul.f32 %v2787_v49, %v522_v4  ;;  %v437_v62 = vld [vmem:[%s2767_s10 + $0x128] sm:$0xff] }
  0x64   : > { %1614 = vmatmul.mubr.bf16.gmra.mxu1 %v1046_v1  ;;  %v820_v11 = vadd.f32 %v2785_v48, %v670_v3  ;;  %v529_v13 = vunpack.c.h.bf16 %v432_v0  ;;  %v1049_v15 = vpack.c.bf16 %v953_v5, %v949_v61  ;;  %v824_v17 = vadd.f32 %v2785_v48, %v674_v7  ;;  %v439_v3 = vld [vmem:[%s2767_s10 + $0x138] sm:$0xff] }
  0x65   : > { %v955_v16 = vmax.f32 %v827_v6, 0.0  ;;  %v676_v18 = vmul.f32 %v2787_v49, %v526_v8  ;;  %v822_v21 = vadd.f32 %v2789_v50, %v672_v12  ;;  %v533_v22 = vunpack.c.h.bf16 %v434_v9 }
  0x66   : > { %v948_v20 = vmax.f32 %v820_v11, 0.0  ;;  %v679_v23 = vmul.f32 %v2772_v40, %v529_v13  ;;  %1460 = vmatprep.mubr.bf16.mxu0 %v1049_v15  ;;  %v952_v25 = vmax.f32 %v824_v17, 0.0  ;;  %v531_v27 = vunpack.c.h.bf16 %v433_v14 }
  0x67   : > { %v1051_v24 = vpack.c.bf16 %v955_v16, %v951_v10  ;;  %v826_v26 = vadd.f32 %v2789_v50, %v676_v18  ;;  %v950_v28 = vmax.f32 %v822_v21, 0.0  ;;  %v683_v29 = vmul.f32 %v2772_v40, %v533_v22 }
  0x68   : > { %v829_v30 = vadd.f32 %v2774_v41, %v679_v23  ;;  %v535_v31 = vunpack.c.h.bf16 %v435_v19  ;;  %v1048_v32 = vpack.c.bf16 %v952_v25, %v948_v20  ;;  %v681_v34 = vmul.f32 %v2776_v42, %v531_v27 }
  0x69   : > { %1621 = vmatprep.mubr.bf16.mxu1 %v1051_v24  ;;  %v954_v33 = vmax.f32 %v826_v26, 0.0  ;;  %v528_v35 = vunpack.c.l.bf16 %v432_v0  ;;  %v833_v36 = vadd.f32 %v2774_v41, %v683_v29  ;;  %v532_v39 = vunpack.c.l.bf16 %v434_v9  ;;  %v440_v24 = vld [vmem:[%s2767_s10 + $0x140] sm:$0xff] }
  0x6a   : > { %v957_v37 = vmax.f32 %v829_v30, 0.0  ;;  %v685_v38 = vmul.f32 %v2776_v42, %v535_v31  ;;  %v831_v46 = vadd.f32 %v2783_v47, %v681_v34  ;;  %v530_v52 = vunpack.c.l.bf16 %v433_v14 }
  0x6b   : > { %1461 = vmatmul.mubr.bf16.gmra.mxu0 %v1048_v32  ;;  %v1050_v45 = vpack.c.bf16 %v954_v33, %v950_v28  ;;  %v678_v51 = vmul.f32 %v2778_v43, %v528_v35  ;;  %v961_v53 = vmax.f32 %v833_v36, 0.0  ;;  %v682_v55 = vmul.f32 %v2778_v43, %v532_v39  ;;  %v442_v33 = vld [vmem:[%s2767_s10 + $0x150] sm:$0xff] }
  0x6c   : > { %v835_v54 = vadd.f32 %v2783_v47, %v685_v38  ;;  %v534_v56 = vunpack.c.l.bf16 %v435_v19  ;;  %v959_v58 = vmax.f32 %v831_v46, 0.0  ;;  %v680_v60 = vmul.f32 %v2787_v49, %v530_v52  ;;  %v441_v38 = vld [vmem:[%s2767_s10 + $0x148] sm:$0xff] }
  0x6d   : > { %1622 = vmatmul.mubr.bf16.gmra.mxu1 %v1050_v45  ;;  %v828_v59 = vadd.f32 %v2785_v48, %v678_v51  ;;  %v537_v61 = vunpack.c.h.bf16 %v436_v44  ;;  %v1053_v63 = vpack.c.bf16 %v961_v53, %v957_v37  ;;  %v832_v1 = vadd.f32 %v2785_v48, %v682_v55  ;;  %v443_v51 = vld [vmem:[%s2767_s10 + $0x158] sm:$0xff] }
  0x6e   : > { %v963_v0 = vmax.f32 %v835_v54, 0.0  ;;  %v684_v2 = vmul.f32 %v2787_v49, %v534_v56  ;;  %v830_v5 = vadd.f32 %v2789_v50, %v680_v60  ;;  %v541_v6 = vunpack.c.h.bf16 %v438_v57 }
  0x6f   : > { %v956_v4 = vmax.f32 %v828_v59, 0.0  ;;  %v687_v7 = vmul.f32 %v2772_v40, %v537_v61  ;;  %1468 = vmatprep.mubr.bf16.mxu0 %v1053_v63  ;;  %v960_v9 = vmax.f32 %v832_v1, 0.0  ;;  %v539_v11 = vunpack.c.h.bf16 %v437_v62 }
  0x70   : > { %v1055_v8 = vpack.c.bf16 %v963_v0, %v959_v58  ;;  %v834_v10 = vadd.f32 %v2789_v50, %v684_v2  ;;  %v958_v12 = vmax.f32 %v830_v5, 0.0  ;;  %v691_v13 = vmul.f32 %v2772_v40, %v541_v6 }
  0x71   : > { %v837_v14 = vadd.f32 %v2774_v41, %v687_v7  ;;  %v543_v15 = vunpack.c.h.bf16 %v439_v3  ;;  %v1052_v16 = vpack.c.bf16 %v960_v9, %v956_v4  ;;  %v689_v18 = vmul.f32 %v2776_v42, %v539_v11 }
  0x72   : > { %1629 = vmatprep.mubr.bf16.mxu1 %v1055_v8  ;;  %v962_v17 = vmax.f32 %v834_v10, 0.0  ;;  %v536_v19 = vunpack.c.l.bf16 %v436_v44  ;;  %v841_v20 = vadd.f32 %v2774_v41, %v691_v13  ;;  %v540_v23 = vunpack.c.l.bf16 %v438_v57  ;;  %v444_v8 = vld [vmem:[%s2767_s10 + $0x160] sm:$0xff] }
  0x73   : > { %v965_v21 = vmax.f32 %v837_v14, 0.0  ;;  %v693_v22 = vmul.f32 %v2776_v42, %v543_v15  ;;  %1469 = vmatmul.mubr.bf16.gmra.mxu0 %v1052_v16  ;;  %v839_v26 = vadd.f32 %v2783_v47, %v689_v18  ;;  %v538_v28 = vunpack.c.l.bf16 %v437_v62 }
  0x74   : > { %v1054_v25 = vpack.c.bf16 %v962_v17, %v958_v12  ;;  %v686_v27 = vmul.f32 %v2778_v43, %v536_v19  ;;  %v969_v29 = vmax.f32 %v841_v20, 0.0  ;;  %v690_v31 = vmul.f32 %v2778_v43, %v540_v23  ;;  %v446_v17 = vld [vmem:[%s2767_s10 + $0x170] sm:$0xff] }
  0x75   : > { %v843_v30 = vadd.f32 %v2783_v47, %v693_v22  ;;  %v542_v32 = vunpack.c.l.bf16 %v439_v3  ;;  %v967_v34 = vmax.f32 %v839_v26, 0.0  ;;  %v688_v36 = vmul.f32 %v2787_v49, %v538_v28  ;;  %v445_v22 = vld [vmem:[%s2767_s10 + $0x168] sm:$0xff] }
  0x76   : > { %1630 = vmatmul.mubr.bf16.gmra.mxu1 %v1054_v25  ;;  %v836_v35 = vadd.f32 %v2785_v48, %v686_v27  ;;  %v545_v37 = vunpack.c.h.bf16 %v440_v24  ;;  %v1057_v39 = vpack.c.bf16 %v969_v29, %v965_v21  ;;  %v840_v45 = vadd.f32 %v2785_v48, %v690_v31  ;;  %v447_v27 = vld [vmem:[%s2767_s10 + $0x178] sm:$0xff] }
  0x77   : > { %v971_v44 = vmax.f32 %v843_v30, 0.0  ;;  %v692_v46 = vmul.f32 %v2787_v49, %v542_v32  ;;  %v838_v53 = vadd.f32 %v2789_v50, %v688_v36  ;;  %v549_v54 = vunpack.c.h.bf16 %v442_v33 }
  0x78   : > { %v964_v52 = vmax.f32 %v836_v35, 0.0  ;;  %v695_v55 = vmul.f32 %v2772_v40, %v545_v37  ;;  %1476 = vmatprep.mubr.bf16.mxu0 %v1057_v39  ;;  %v968_v57 = vmax.f32 %v840_v45, 0.0  ;;  %v547_v59 = vunpack.c.h.bf16 %v441_v38 }
  0x79   : > { %v1059_v56 = vpack.c.bf16 %v971_v44, %v967_v34  ;;  %v842_v58 = vadd.f32 %v2789_v50, %v692_v46  ;;  %v966_v60 = vmax.f32 %v838_v53, 0.0  ;;  %v699_v61 = vmul.f32 %v2772_v40, %v549_v54 }
  0x7a   : > { %v845_v62 = vadd.f32 %v2774_v41, %v695_v55  ;;  %v551_v63 = vunpack.c.h.bf16 %v443_v51  ;;  %v1056_v0 = vpack.c.bf16 %v968_v57, %v964_v52  ;;  %v697_v2 = vmul.f32 %v2776_v42, %v547_v59 }
  0x7b   : > { %1637 = vmatprep.mubr.bf16.mxu1 %v1059_v56  ;;  %v970_v1 = vmax.f32 %v842_v58, 0.0  ;;  %v544_v3 = vunpack.c.l.bf16 %v440_v24  ;;  %v849_v4 = vadd.f32 %v2774_v41, %v699_v61  ;;  %v548_v7 = vunpack.c.l.bf16 %v442_v33  ;;  %v448_v56 = vld [vmem:[%s2767_s10 + $0x180] sm:$0xff] }
  0x7c   : > { %v973_v5 = vmax.f32 %v845_v62, 0.0  ;;  %v701_v6 = vmul.f32 %v2776_v42, %v551_v63  ;;  %1477 = vmatmul.mubr.bf16.gmra.mxu0 %v1056_v0  ;;  %v847_v10 = vadd.f32 %v2783_v47, %v697_v2  ;;  %v546_v12 = vunpack.c.l.bf16 %v441_v38 }
  0x7d   : > { %v1058_v9 = vpack.c.bf16 %v970_v1, %v966_v60  ;;  %v694_v11 = vmul.f32 %v2778_v43, %v544_v3  ;;  %v977_v13 = vmax.f32 %v849_v4, 0.0  ;;  %v698_v15 = vmul.f32 %v2778_v43, %v548_v7  ;;  %v450_v1 = vld [vmem:[%s2767_s10 + $0x190] sm:$0xff] }
  0x7e   : > { %v851_v14 = vadd.f32 %v2783_v47, %v701_v6  ;;  %v550_v16 = vunpack.c.l.bf16 %v443_v51  ;;  %v975_v18 = vmax.f32 %v847_v10, 0.0  ;;  %v696_v20 = vmul.f32 %v2787_v49, %v546_v12  ;;  %v449_v6 = vld [vmem:[%s2767_s10 + $0x188] sm:$0xff] }
  0x7f   : > { %1638 = vmatmul.mubr.bf16.gmra.mxu1 %v1058_v9  ;;  %v844_v19 = vadd.f32 %v2785_v48, %v694_v11  ;;  %v553_v21 = vunpack.c.h.bf16 %v444_v8  ;;  %v1061_v23 = vpack.c.bf16 %v977_v13, %v973_v5  ;;  %v848_v25 = vadd.f32 %v2785_v48, %v698_v15  ;;  %v451_v11 = vld [vmem:[%s2767_s10 + $0x198] sm:$0xff] }
  0x80   : > { %v979_v24 = vmax.f32 %v851_v14, 0.0  ;;  %v700_v26 = vmul.f32 %v2787_v49, %v550_v16  ;;  %v846_v29 = vadd.f32 %v2789_v50, %v696_v20  ;;  %v557_v30 = vunpack.c.h.bf16 %v446_v17 }
  0x81   : > { %v972_v28 = vmax.f32 %v844_v19, 0.0  ;;  %v703_v31 = vmul.f32 %v2772_v40, %v553_v21  ;;  %1484 = vmatprep.mubr.bf16.mxu0 %v1061_v23  ;;  %v976_v33 = vmax.f32 %v848_v25, 0.0  ;;  %v555_v35 = vunpack.c.h.bf16 %v445_v22 }
  0x82   : > { %v1063_v32 = vpack.c.bf16 %v979_v24, %v975_v18  ;;  %v850_v34 = vadd.f32 %v2789_v50, %v700_v26  ;;  %v974_v36 = vmax.f32 %v846_v29, 0.0  ;;  %v707_v37 = vmul.f32 %v2772_v40, %v557_v30 }
  0x83   : > { %v853_v38 = vadd.f32 %v2774_v41, %v703_v31  ;;  %v559_v39 = vunpack.c.h.bf16 %v447_v27  ;;  %v1060_v44 = vpack.c.bf16 %v976_v33, %v972_v28  ;;  %v705_v46 = vmul.f32 %v2776_v42, %v555_v35 }
  0x84   : > { %1645 = vmatprep.mubr.bf16.mxu1 %v1063_v32  ;;  %v978_v45 = vmax.f32 %v850_v34, 0.0  ;;  %v552_v51 = vunpack.c.l.bf16 %v444_v8  ;;  %v857_v52 = vadd.f32 %v2774_v41, %v707_v37  ;;  %v556_v55 = vunpack.c.l.bf16 %v446_v17  ;;  %v452_v32 = vld [vmem:[%s2767_s10 + $0x1a0] sm:$0xff] }
  0x85   : > { %v981_v53 = vmax.f32 %v853_v38, 0.0  ;;  %v709_v54 = vmul.f32 %v2776_v42, %v559_v39  ;;  %1485 = vmatmul.mubr.bf16.gmra.mxu0 %v1060_v44  ;;  %v855_v58 = vadd.f32 %v2783_v47, %v705_v46  ;;  %v554_v60 = vunpack.c.l.bf16 %v445_v22 }
  0x86   : > { %v1062_v57 = vpack.c.bf16 %v978_v45, %v974_v36  ;;  %v702_v59 = vmul.f32 %v2778_v43, %v552_v51  ;;  %v985_v61 = vmax.f32 %v857_v52, 0.0  ;;  %v706_v63 = vmul.f32 %v2778_v43, %v556_v55  ;;  %v454_v45 = vld [vmem:[%s2767_s10 + $0x1b0] sm:$0xff] }
  0x87   : > { %v859_v62 = vadd.f32 %v2783_v47, %v709_v54  ;;  %v558_v0 = vunpack.c.l.bf16 %v447_v27  ;;  %v983_v2 = vmax.f32 %v855_v58, 0.0  ;;  %v704_v4 = vmul.f32 %v2787_v49, %v554_v60  ;;  %v453_v54 = vld [vmem:[%s2767_s10 + $0x1a8] sm:$0xff] }
  0x88   : > { %1646 = vmatmul.mubr.bf16.gmra.mxu1 %v1062_v57  ;;  %v852_v3 = vadd.f32 %v2785_v48, %v702_v59  ;;  %v561_v5 = vunpack.c.h.bf16 %v448_v56  ;;  %v1065_v7 = vpack.c.bf16 %v985_v61, %v981_v53  ;;  %v856_v9 = vadd.f32 %v2785_v48, %v706_v63  ;;  %v455_v59 = vld [vmem:[%s2767_s10 + $0x1b8] sm:$0xff] }
  0x89   : > { %v987_v8 = vmax.f32 %v859_v62, 0.0  ;;  %v708_v10 = vmul.f32 %v2787_v49, %v558_v0  ;;  %v854_v13 = vadd.f32 %v2789_v50, %v704_v4  ;;  %v565_v14 = vunpack.c.h.bf16 %v450_v1 }
  0x8a   : > { %v980_v12 = vmax.f32 %v852_v3, 0.0  ;;  %v711_v15 = vmul.f32 %v2772_v40, %v561_v5  ;;  %1492 = vmatprep.mubr.bf16.mxu0 %v1065_v7  ;;  %v984_v17 = vmax.f32 %v856_v9, 0.0  ;;  %v563_v19 = vunpack.c.h.bf16 %v449_v6 }
  0x8b   : > { %v1067_v16 = vpack.c.bf16 %v987_v8, %v983_v2  ;;  %v858_v18 = vadd.f32 %v2789_v50, %v708_v10  ;;  %v982_v20 = vmax.f32 %v854_v13, 0.0  ;;  %v715_v21 = vmul.f32 %v2772_v40, %v565_v14 }
  0x8c   : > { %v861_v22 = vadd.f32 %v2774_v41, %v711_v15  ;;  %v567_v23 = vunpack.c.h.bf16 %v451_v11  ;;  %v1064_v24 = vpack.c.bf16 %v984_v17, %v980_v12  ;;  %v713_v26 = vmul.f32 %v2776_v42, %v563_v19 }
  0x8d   : > { %1653 = vmatprep.mubr.bf16.mxu1 %v1067_v16  ;;  %v986_v25 = vmax.f32 %v858_v18, 0.0  ;;  %v560_v27 = vunpack.c.l.bf16 %v448_v56  ;;  %v865_v28 = vadd.f32 %v2774_v41, %v715_v21  ;;  %v564_v31 = vunpack.c.l.bf16 %v450_v1  ;;  %v456_v16 = vld [vmem:[%s2767_s10 + $0x1c0] sm:$0xff] }
  0x8e   : > { %v989_v29 = vmax.f32 %v861_v22, 0.0  ;;  %v717_v30 = vmul.f32 %v2776_v42, %v567_v23  ;;  %1493 = vmatmul.mubr.bf16.gmra.mxu0 %v1064_v24  ;;  %v863_v34 = vadd.f32 %v2783_v47, %v713_v26  ;;  %v562_v36 = vunpack.c.l.bf16 %v449_v6 }
  0x8f   : > { %v1066_v33 = vpack.c.bf16 %v986_v25, %v982_v20  ;;  %v710_v35 = vmul.f32 %v2778_v43, %v560_v27  ;;  %v993_v37 = vmax.f32 %v865_v28, 0.0  ;;  %v714_v39 = vmul.f32 %v2778_v43, %v564_v31  ;;  %v458_v25 = vld [vmem:[%s2767_s10 + $0x1d0] sm:$0xff] }
  0x90   : > { %v867_v38 = vadd.f32 %v2783_v47, %v717_v30  ;;  %v566_v44 = vunpack.c.l.bf16 %v451_v11  ;;  %v991_v46 = vmax.f32 %v863_v34, 0.0  ;;  %v712_v52 = vmul.f32 %v2787_v49, %v562_v36  ;;  %v457_v30 = vld [vmem:[%s2767_s10 + $0x1c8] sm:$0xff] }
  0x91   : > { %1654 = vmatmul.mubr.bf16.gmra.mxu1 %v1066_v33  ;;  %v860_v51 = vadd.f32 %v2785_v48, %v710_v35  ;;  %v569_v53 = vunpack.c.h.bf16 %v452_v32  ;;  %v1069_v55 = vpack.c.bf16 %v993_v37, %v989_v29  ;;  %v864_v57 = vadd.f32 %v2785_v48, %v714_v39  ;;  %v459_v35 = vld [vmem:[%s2767_s10 + $0x1d8] sm:$0xff] }
  0x92   : > { %v995_v56 = vmax.f32 %v867_v38, 0.0  ;;  %v716_v58 = vmul.f32 %v2787_v49, %v566_v44  ;;  %v862_v61 = vadd.f32 %v2789_v50, %v712_v52  ;;  %v573_v62 = vunpack.c.h.bf16 %v454_v45 }
  0x93   : > { %v988_v60 = vmax.f32 %v860_v51, 0.0  ;;  %v719_v63 = vmul.f32 %v2772_v40, %v569_v53  ;;  %1500 = vmatprep.mubr.bf16.mxu0 %v1069_v55  ;;  %v992_v1 = vmax.f32 %v864_v57, 0.0  ;;  %v571_v3 = vunpack.c.h.bf16 %v453_v54 }
  0x94   : > { %v1071_v0 = vpack.c.bf16 %v995_v56, %v991_v46  ;;  %v866_v2 = vadd.f32 %v2789_v50, %v716_v58  ;;  %v990_v4 = vmax.f32 %v862_v61, 0.0  ;;  %v723_v5 = vmul.f32 %v2772_v40, %v573_v62 }
  0x95   : > { %v869_v6 = vadd.f32 %v2774_v41, %v719_v63  ;;  %v575_v7 = vunpack.c.h.bf16 %v455_v59  ;;  %v1068_v8 = vpack.c.bf16 %v992_v1, %v988_v60  ;;  %v721_v10 = vmul.f32 %v2776_v42, %v571_v3 }
  0x96   : > { %1661 = vmatprep.mubr.bf16.mxu1 %v1071_v0  ;;  %v994_v9 = vmax.f32 %v866_v2, 0.0  ;;  %v568_v11 = vunpack.c.l.bf16 %v452_v32  ;;  %v873_v12 = vadd.f32 %v2774_v41, %v723_v5  ;;  %v572_v15 = vunpack.c.l.bf16 %v454_v45  ;;  %v460_v0 = vld [vmem:[%s2767_s10 + $0x1e0] sm:$0xff] }
  0x97   : > { %v997_v13 = vmax.f32 %v869_v6, 0.0  ;;  %v725_v14 = vmul.f32 %v2776_v42, %v575_v7  ;;  %1501 = vmatmul.mubr.bf16.gmra.mxu0 %v1068_v8  ;;  %v871_v18 = vadd.f32 %v2783_v47, %v721_v10  ;;  %v570_v20 = vunpack.c.l.bf16 %v453_v54 }
  0x98   : > { %v1070_v17 = vpack.c.bf16 %v994_v9, %v990_v4  ;;  %v718_v19 = vmul.f32 %v2778_v43, %v568_v11  ;;  %v1001_v21 = vmax.f32 %v873_v12, 0.0  ;;  %v722_v23 = vmul.f32 %v2778_v43, %v572_v15  ;;  %v462_v9 = vld [vmem:[%s2767_s10 + $0x1f0] sm:$0xff] }
  0x99   : > { %v875_v22 = vadd.f32 %v2783_v47, %v725_v14  ;;  %v574_v24 = vunpack.c.l.bf16 %v455_v59  ;;  %v999_v26 = vmax.f32 %v871_v18, 0.0  ;;  %v720_v28 = vmul.f32 %v2787_v49, %v570_v20  ;;  %v461_v14 = vld [vmem:[%s2767_s10 + $0x1e8] sm:$0xff] }
  0x9a   : > { %1662 = vmatmul.mubr.bf16.gmra.mxu1 %v1070_v17  ;;  %v868_v27 = vadd.f32 %v2785_v48, %v718_v19  ;;  %v577_v29 = vunpack.c.h.bf16 %v456_v16  ;;  %v1073_v31 = vpack.c.bf16 %v1001_v21, %v997_v13  ;;  %v872_v33 = vadd.f32 %v2785_v48, %v722_v23  ;;  %v463_v19 = vld [vmem:[%s2767_s10 + $0x1f8] sm:$0xff] }
  0x9b   : > { %v1003_v32 = vmax.f32 %v875_v22, 0.0  ;;  %v724_v34 = vmul.f32 %v2787_v49, %v574_v24  ;;  %v870_v37 = vadd.f32 %v2789_v50, %v720_v28  ;;  %v581_v38 = vunpack.c.h.bf16 %v458_v25 }
  0x9c   : > { %v996_v36 = vmax.f32 %v868_v27, 0.0  ;;  %v727_v39 = vmul.f32 %v2772_v40, %v577_v29  ;;  %1508 = vmatprep.mubr.bf16.mxu0 %v1073_v31  ;;  %v1000_v45 = vmax.f32 %v872_v33, 0.0  ;;  %v579_v51 = vunpack.c.h.bf16 %v457_v30 }
  0x9d   : > { %v1075_v44 = vpack.c.bf16 %v1003_v32, %v999_v26  ;;  %v874_v46 = vadd.f32 %v2789_v50, %v724_v34  ;;  %v998_v52 = vmax.f32 %v870_v37, 0.0  ;;  %v731_v53 = vmul.f32 %v2772_v40, %v581_v38 }
  0x9e   : > { %v877_v54 = vadd.f32 %v2774_v41, %v727_v39  ;;  %v583_v55 = vunpack.c.h.bf16 %v459_v35  ;;  %v1072_v56 = vpack.c.bf16 %v1000_v45, %v996_v36  ;;  %v729_v58 = vmul.f32 %v2776_v42, %v579_v51 }
  0x9f   : > { %1669 = vmatprep.mubr.bf16.mxu1 %v1075_v44  ;;  %v1002_v57 = vmax.f32 %v874_v46, 0.0  ;;  %v576_v59 = vunpack.c.l.bf16 %v456_v16  ;;  %v881_v60 = vadd.f32 %v2774_v41, %v731_v53  ;;  %v580_v63 = vunpack.c.l.bf16 %v458_v25 }
  0xa0   : > { %v1005_v61 = vmax.f32 %v877_v54, 0.0  ;;  %v733_v62 = vmul.f32 %v2776_v42, %v583_v55  ;;  %1509 = vmatmul.mubr.bf16.gmra.mxu0 %v1072_v56  ;;  %v879_v2 = vadd.f32 %v2783_v47, %v729_v58  ;;  %v578_v4 = vunpack.c.l.bf16 %v457_v30 }
  0xa1   : > { %v1074_v1 = vpack.c.bf16 %v1002_v57, %v998_v52  ;;  %v726_v3 = vmul.f32 %v2778_v43, %v576_v59  ;;  %v1009_v5 = vmax.f32 %v881_v60, 0.0  ;;  %v730_v7 = vmul.f32 %v2778_v43, %v580_v63 }
  0xa2   : > { %v883_v6 = vadd.f32 %v2783_v47, %v733_v62  ;;  %v582_v8 = vunpack.c.l.bf16 %v459_v35  ;;  %v1007_v10 = vmax.f32 %v879_v2, 0.0  ;;  %v728_v12 = vmul.f32 %v2787_v49, %v578_v4 }
  0xa3   : > { %1670 = vmatmul.mubr.bf16.gmra.mxu1 %v1074_v1  ;;  %v876_v11 = vadd.f32 %v2785_v48, %v726_v3  ;;  %v585_v13 = vunpack.c.h.bf16 %v460_v0  ;;  %v1077_v15 = vpack.c.bf16 %v1009_v5, %v1005_v61  ;;  %v880_v17 = vadd.f32 %v2785_v48, %v730_v7 }
  0xa4   : > { %v1011_v16 = vmax.f32 %v883_v6, 0.0  ;;  %v732_v18 = vmul.f32 %v2787_v49, %v582_v8  ;;  %v878_v21 = vadd.f32 %v2789_v50, %v728_v12  ;;  %v589_v22 = vunpack.c.h.bf16 %v462_v9 }
  0xa5   : > { %v1004_v20 = vmax.f32 %v876_v11, 0.0  ;;  %v735_v23 = vmul.f32 %v2772_v40, %v585_v13  ;;  %1516 = vmatprep.mubr.bf16.mxu0 %v1077_v15  ;;  %v1008_v25 = vmax.f32 %v880_v17, 0.0  ;;  %v587_v27 = vunpack.c.h.bf16 %v461_v14 }
  0xa6   : > { %v1079_v24 = vpack.c.bf16 %v1011_v16, %v1007_v10  ;;  %v882_v26 = vadd.f32 %v2789_v50, %v732_v18  ;;  %v1006_v28 = vmax.f32 %v878_v21, 0.0  ;;  %v739_v29 = vmul.f32 %v2772_v40, %v589_v22 }
  0xa7   : > { %v885_v30 = vadd.f32 %v2774_v41, %v735_v23  ;;  %v591_v31 = vunpack.c.h.bf16 %v463_v19  ;;  %v1076_v32 = vpack.c.bf16 %v1008_v25, %v1004_v20  ;;  %v737_v34 = vmul.f32 %v2776_v42, %v587_v27 }
  0xa8   : > { %1677 = vmatprep.mubr.bf16.mxu1 %v1079_v24  ;;  %v1010_v33 = vmax.f32 %v882_v26, 0.0  ;;  %v584_v35 = vunpack.c.l.bf16 %v460_v0  ;;  %v889_v36 = vadd.f32 %v2774_v41, %v739_v29  ;;  %v588_v39 = vunpack.c.l.bf16 %v462_v9 }
  0xa9   : > { %v1013_v37 = vmax.f32 %v885_v30, 0.0  ;;  %v741_v38 = vmul.f32 %v2776_v42, %v591_v31  ;;  %1517 = vmatmul.mubr.bf16.gmra.mxu0 %v1076_v32  ;;  %v887_v45 = vadd.f32 %v2783_v47, %v737_v34  ;;  %v586_v46 = vunpack.c.l.bf16 %v461_v14 }
  0xaa   : > { %v1078_v44 = vpack.c.bf16 %v1010_v33, %v1006_v28  ;;  %v734_v40 = vmul.f32 %v2778_v43, %v584_v35  ;;  %v1017_v51 = vmax.f32 %v889_v36, 0.0  ;;  %v738_v53 = vmul.f32 %v2778_v43, %v588_v39 }
  0xab   : > { %v891_v52 = vadd.f32 %v2783_v47, %v741_v38  ;;  %v590_v54 = vunpack.c.l.bf16 %v463_v19  ;;  %v1015_v55 = vmax.f32 %v887_v45, 0.0  ;;  %v736_v42 = vmul.f32 %v2787_v49, %v586_v46 }
  0xac   : > { %1678 = vmatmul.mubr.bf16.gmra.mxu1 %v1078_v44  ;;  %v884_v41 = vadd.f32 %v2785_v48, %v734_v40  ;;  %v1081_v56 = vpack.c.bf16 %v1017_v51, %v1013_v37  ;;  %v888_v58 = vadd.f32 %v2785_v48, %v738_v53 }
  0xad   : > { %v1019_v57 = vmax.f32 %v891_v52, 0.0  ;;  %v740_v59 = vmul.f32 %v2787_v49, %v590_v54  ;;  %v886_v61 = vadd.f32 %v2789_v50, %v736_v42 }
  0xae   : > { %v1012_v60 = vmax.f32 %v884_v41, 0.0  ;;  %1524 = vmatprep.mubr.bf16.mxu0 %v1081_v56  ;;  %v1016_v43 = vmax.f32 %v888_v58, 0.0 }
  0xaf   : > { %v1083_v47 = vpack.c.bf16 %v1019_v57, %v1015_v55  ;;  %v890_v62 = vadd.f32 %v2789_v50, %v740_v59  ;;  %v1014_v63 = vmax.f32 %v886_v61, 0.0 }
  0xb0   : > { %v1080_v0 = vpack.c.bf16 %v1016_v43, %v1012_v60 }
  0xb1   : > { %1685 = vmatprep.mubr.bf16.mxu1 %v1083_v47  ;;  %v1018_v1 = vmax.f32 %v890_v62, 0.0 }
  0xb2   : > { %1525 = vmatmul.mubr.bf16.gmra.mxu0 %v1080_v0 }
  0xb3   : > { %v1082_v2 = vpack.c.bf16 %v1018_v1, %v1014_v63 }
  0xb5   : > { %1686 = vmatmul.mubr.bf16.gmra.mxu1 %v1082_v2 }
  0xf3   : > { %v2336_v48 = vpop.f32.mrf.mxu0 }
  0xf4   : > { %v2448_v3 = vpop.f32.mrf.mxu1 }
  0xf5   : > { %v2337_v49 = vpop.f32.mrf.mxu0 }
  0xf6   : > { %v2449_v4 = vpop.f32.mrf.mxu1  ;;  %v2338_v7 = vadd.f32 %v2337_v49, %v2336_v48 }
  0xf7   : > { %v2339_v5 = vpop.f32.mrf.mxu0  ;;  %v2450_v8 = vadd.f32 %v2449_v4, %v2448_v3 }
  0xf8   : > { %v2451_v6 = vpop.f32.mrf.mxu1 }
  0xf9   : > { %v2340_v9 = vpop.f32.mrf.mxu0  ;;  %v1568_v13 = vadd.f32 %v2450_v8, %v2338_v7 }
  0xfa   : > { %v2341_v10 = vadd.f32 %v2340_v9, %v2339_v5  ;;  %v2452_v50 = vpop.f32.mrf.mxu1 }
  0xfb   : > { %v2453_v11 = vadd.f32 %v2452_v50, %v2451_v6  ;;  %v2342_v12 = vpop.f32.mrf.mxu0 }
  0xfc   : > { %v2454_v15 = vpop.f32.mrf.mxu1 }
  0xfd   : > { %v1571_v14 = vadd.f32 %v2453_v11, %v2341_v10  ;;  %v2343_v16 = vpop.f32.mrf.mxu0 }
  0xfe   : > { %v2455_v18 = vpop.f32.mrf.mxu1  ;;  %v2344_v21 = vadd.f32 %v2343_v16, %v2342_v12 }
  0xff   : > { %v2228_v17 = vpack.c.bf16 %v1571_v14, %v1568_v13  ;;  %v2345_v19 = vpop.f32.mrf.mxu0  ;;  %v2456_v22 = vadd.f32 %v2455_v18, %v2454_v15 }
 0x100   : > { %v2457_v20 = vpop.f32.mrf.mxu1 }
 0x101   : > { %2229 = vst [vmem:[%s3113_s22] sm:$0xff] %v2228_v17   ;;  %v2346_v23 = vpop.f32.mrf.mxu0  ;;  %v1576_v28 = vadd.f32 %v2456_v22, %v2344_v21 }
 0x102   : > { %v2347_v24 = vadd.f32 %v2346_v23, %v2345_v19  ;;  %v2458_v25 = vpop.f32.mrf.mxu1 }
 0x103   : > { %v2459_v26 = vadd.f32 %v2458_v25, %v2457_v20  ;;  %v2348_v27 = vpop.f32.mrf.mxu0 }
 0x104   : > { %v2460_v30 = vpop.f32.mrf.mxu1 }
 0x105   : > { %v1579_v29 = vadd.f32 %v2459_v26, %v2347_v24  ;;  %v2349_v31 = vpop.f32.mrf.mxu0 }
 0x106   : > { %v2461_v33 = vpop.f32.mrf.mxu1  ;;  %v2350_v37 = vadd.f32 %v2349_v31, %v2348_v27 }
 0x107   : > { %v2233_v32 = vpack.c.bf16 %v1579_v29, %v1576_v28  ;;  %v2351_v34 = vpop.f32.mrf.mxu0  ;;  %v2462_v38 = vadd.f32 %v2461_v33, %v2460_v30 }
 0x108   : > { %v2463_v35 = vpop.f32.mrf.mxu1 }
 0x109   : > { %2305 = vst [vmem:[%s3113_s22 + $0x8] sm:$0xff] %v2233_v32   ;;  %v2352_v36 = vpop.f32.mrf.mxu0  ;;  %v1584_v46 = vadd.f32 %v2462_v38, %v2350_v37 }
 0x10a   : > { %v2353_v39 = vadd.f32 %v2352_v36, %v2351_v34  ;;  %v2464_v44 = vpop.f32.mrf.mxu1 }
 0x10b   : > { %v2465_v45 = vadd.f32 %v2464_v44, %v2463_v35  ;;  %v2354_v40 = vpop.f32.mrf.mxu0 }
 0x10c   : > { %v2466_v53 = vpop.f32.mrf.mxu1 }
 0x10d   : > { %v1587_v51 = vadd.f32 %v2465_v45, %v2353_v39  ;;  %v2355_v52 = vpop.f32.mrf.mxu0 }
 0x10e   : > { %v2467_v41 = vpop.f32.mrf.mxu1  ;;  %v2356_v57 = vadd.f32 %v2355_v52, %v2354_v40 }
 0x10f   : > { %v2238_v54 = vpack.c.bf16 %v1587_v51, %v1584_v46  ;;  %v2357_v55 = vpop.f32.mrf.mxu0  ;;  %v2468_v58 = vadd.f32 %v2467_v41, %v2466_v53 }
 0x110   : > { %v2469_v56 = vpop.f32.mrf.mxu1 }
 0x111   : > { %2306 = vst [vmem:[%s3113_s22 + $0x10] sm:$0xff] %v2238_v54   ;;  %v2358_v42 = vpop.f32.mrf.mxu0  ;;  %v1592_v62 = vadd.f32 %v2468_v58, %v2356_v57 }
 0x112   : > { %v2359_v59 = vadd.f32 %v2358_v42, %v2357_v55  ;;  %v2470_v60 = vpop.f32.mrf.mxu1 }
 0x113   : > { %v2360_v61 = vpop.f32.mrf.mxu0  ;;  %v2471_v47 = vadd.f32 %v2470_v60, %v2469_v56 }
 0x114   : > { %v2472_v0 = vpop.f32.mrf.mxu1 }
 0x115   : > { %v2361_v43 = vpop.f32.mrf.mxu0  ;;  %v1595_v63 = vadd.f32 %v2471_v47, %v2359_v59 }
 0x116   : > { %v2473_v48 = vpop.f32.mrf.mxu1  ;;  %v2362_v4 = vadd.f32 %v2361_v43, %v2360_v61 }
 0x117   : > { %v2363_v1 = vpop.f32.mrf.mxu0  ;;  %v2243_v2 = vpack.c.bf16 %v1595_v63, %v1592_v62  ;;  %v2474_v5 = vadd.f32 %v2473_v48, %v2472_v0 }
 0x118   : > { %v2475_v49 = vpop.f32.mrf.mxu1 }
 0x119   : > { %v2364_v3 = vpop.f32.mrf.mxu0  ;;  %2307 = vst [vmem:[%s3113_s22 + $0x18] sm:$0xff] %v2243_v2   ;;  %v1600_v10 = vadd.f32 %v2474_v5, %v2362_v4 }
 0x11a   : > { %v2365_v6 = vadd.f32 %v2364_v3, %v2363_v1  ;;  %v2476_v7 = vpop.f32.mrf.mxu1 }
 0x11b   : > { %v2477_v8 = vadd.f32 %v2476_v7, %v2475_v49  ;;  %v2366_v9 = vpop.f32.mrf.mxu0 }
 0x11c   : > { %v2478_v11 = vpop.f32.mrf.mxu1 }
 0x11d   : > { %v1603_v50 = vadd.f32 %v2477_v8, %v2365_v6  ;;  %v2367_v12 = vpop.f32.mrf.mxu0 }
 0x11e   : > { %v2479_v14 = vpop.f32.mrf.mxu1  ;;  %v2368_v18 = vadd.f32 %v2367_v12, %v2366_v9 }
 0x11f   : > { %v2248_v13 = vpack.c.bf16 %v1603_v50, %v1600_v10  ;;  %v2369_v15 = vpop.f32.mrf.mxu0  ;;  %v2480_v19 = vadd.f32 %v2479_v14, %v2478_v11 }
 0x120   : > { %v2481_v16 = vpop.f32.mrf.mxu1 }
 0x121   : > { %2308 = vst [vmem:[%s3113_s22 + $0x20] sm:$0xff] %v2248_v13   ;;  %v2370_v17 = vpop.f32.mrf.mxu0  ;;  %v1608_v24 = vadd.f32 %v2480_v19, %v2368_v18 }
 0x122   : > { %v2371_v20 = vadd.f32 %v2370_v17, %v2369_v15  ;;  %v2482_v21 = vpop.f32.mrf.mxu1 }
 0x123   : > { %v2483_v22 = vadd.f32 %v2482_v21, %v2481_v16  ;;  %v2372_v23 = vpop.f32.mrf.mxu0 }
 0x124   : > { %v2484_v26 = vpop.f32.mrf.mxu1 }
 0x125   : > { %v1611_v25 = vadd.f32 %v2483_v22, %v2371_v20  ;;  %v2373_v27 = vpop.f32.mrf.mxu0 }
 0x126   : > { %v2485_v29 = vpop.f32.mrf.mxu1  ;;  %v2374_v33 = vadd.f32 %v2373_v27, %v2372_v23 }
 0x127   : > { %v2253_v28 = vpack.c.bf16 %v1611_v25, %v1608_v24  ;;  %v2375_v30 = vpop.f32.mrf.mxu0  ;;  %v2486_v34 = vadd.f32 %v2485_v29, %v2484_v26 }
 0x128   : > { %v2487_v31 = vpop.f32.mrf.mxu1 }
 0x129   : > { %2309 = vst [vmem:[%s3113_s22 + $0x28] sm:$0xff] %v2253_v28   ;;  %v2376_v32 = vpop.f32.mrf.mxu0  ;;  %v1616_v39 = vadd.f32 %v2486_v34, %v2374_v33 }
 0x12a   : > { %v2377_v35 = vadd.f32 %v2376_v32, %v2375_v30  ;;  %v2488_v36 = vpop.f32.mrf.mxu1 }
 0x12b   : > { %v2489_v37 = vadd.f32 %v2488_v36, %v2487_v31  ;;  %v2378_v38 = vpop.f32.mrf.mxu0 }
 0x12d   : > { %v1619_v44 = vadd.f32 %v2489_v37, %v2377_v35  ;;  %v2490_v45 = vpop.f32.mrf.mxu1  ;;  %v2379_v40 = vpop.f32.mrf.mxu0 }
 0x12e   : > { %v2380_v55 = vadd.f32 %v2379_v40, %v2378_v38 }
 0x12f   : > { %v2258_v46 = vpack.c.bf16 %v1619_v44, %v1616_v39  ;;  %v2491_v51 = vpop.f32.mrf.mxu1  ;;  %v2381_v52 = vpop.f32.mrf.mxu0 }
 0x130   : > { %v2492_v41 = vadd.f32 %v2491_v51, %v2490_v45 }
 0x131   : > { %2310 = vst [vmem:[%s3113_s22 + $0x30] sm:$0xff] %v2258_v46   ;;  %v2493_v53 = vpop.f32.mrf.mxu1  ;;  %v2382_v54 = vpop.f32.mrf.mxu0 }
 0x132   : > { %v2383_v42 = vadd.f32 %v2382_v54, %v2381_v52  ;;  %v1624_v59 = vadd.f32 %v2492_v41, %v2380_v55 }
 0x133   : > { %v2494_v56 = vpop.f32.mrf.mxu1  ;;  %v2384_v58 = vpop.f32.mrf.mxu0 }
 0x134   : > { %v2495_v57 = vadd.f32 %v2494_v56, %v2493_v53 }
 0x135   : > { %v2385_v47 = vpop.f32.mrf.mxu0 }
 0x136   : > { %v1627_v60 = vadd.f32 %v2495_v57, %v2383_v42  ;;  %v2496_v61 = vpop.f32.mrf.mxu1  ;;  %v2386_v2 = vadd.f32 %v2385_v47, %v2384_v58 }
 0x137   : > { %v2387_v63 = vpop.f32.mrf.mxu0 }
 0x138   : > { %v2263_v43 = vpack.c.bf16 %v1627_v60, %v1624_v59  ;;  %v2497_v62 = vpop.f32.mrf.mxu1 }
 0x139   : > { %v2388_v1 = vpop.f32.mrf.mxu0  ;;  %v2498_v48 = vadd.f32 %v2497_v62, %v2496_v61 }
 0x13a   : > { %2311 = vst [vmem:[%s3113_s22 + $0x38] sm:$0xff] %v2263_v43   ;;  %v2499_v0 = vpop.f32.mrf.mxu1  ;;  %v2389_v3 = vadd.f32 %v2388_v1, %v2387_v63 }
 0x13b   : > { %v1632_v6 = vadd.f32 %v2498_v48, %v2386_v2 }
 0x13c   : > { %v2500_v49 = vpop.f32.mrf.mxu1  ;;  %v2390_v5 = vpop.f32.mrf.mxu0 }
 0x13d   : > { %v2501_v4 = vadd.f32 %v2500_v49, %v2499_v0 }
 0x13e   : > { %v2391_v9 = vpop.f32.mrf.mxu0 }
 0x13f   : > { %v1635_v7 = vadd.f32 %v2501_v4, %v2389_v3  ;;  %v2502_v8 = vpop.f32.mrf.mxu1  ;;  %v2392_v14 = vadd.f32 %v2391_v9, %v2390_v5 }
 0x140   : > { %v2393_v11 = vpop.f32.mrf.mxu0 }
 0x141   : > { %v2268_v10 = vpack.c.bf16 %v1635_v7, %v1632_v6  ;;  %v2503_v50 = vpop.f32.mrf.mxu1 }
 0x142   : > { %v2394_v13 = vpop.f32.mrf.mxu0  ;;  %v2504_v15 = vadd.f32 %v2503_v50, %v2502_v8 }
 0x143   : > { %2312 = vst [vmem:[%s3113_s22 + $0x40] sm:$0xff] %v2268_v10   ;;  %v2505_v12 = vpop.f32.mrf.mxu1  ;;  %v2395_v16 = vadd.f32 %v2394_v13, %v2393_v11 }
 0x144   : > { %v1640_v20 = vadd.f32 %v2504_v15, %v2392_v14 }
 0x145   : > { %v2506_v17 = vpop.f32.mrf.mxu1  ;;  %v2396_v19 = vpop.f32.mrf.mxu0 }
 0x146   : > { %v2507_v18 = vadd.f32 %v2506_v17, %v2505_v12 }
 0x147   : > { %v2397_v23 = vpop.f32.mrf.mxu0 }
 0x148   : > { %v1643_v21 = vadd.f32 %v2507_v18, %v2395_v16  ;;  %v2508_v22 = vpop.f32.mrf.mxu1  ;;  %v2398_v29 = vadd.f32 %v2397_v23, %v2396_v19 }
 0x149   : > { %v2399_v26 = vpop.f32.mrf.mxu0 }
 0x14a   : > { %v2273_v24 = vpack.c.bf16 %v1643_v21, %v1640_v20  ;;  %v2509_v25 = vpop.f32.mrf.mxu1 }
 0x14b   : > { %v2400_v28 = vpop.f32.mrf.mxu0  ;;  %v2510_v30 = vadd.f32 %v2509_v25, %v2508_v22 }
 0x14c   : > { %2313 = vst [vmem:[%s3113_s22 + $0x48] sm:$0xff] %v2273_v24   ;;  %v2511_v27 = vpop.f32.mrf.mxu1  ;;  %v2401_v31 = vadd.f32 %v2400_v28, %v2399_v26 }
 0x14d   : > { %v1648_v35 = vadd.f32 %v2510_v30, %v2398_v29 }
 0x14e   : > { %v2512_v32 = vpop.f32.mrf.mxu1  ;;  %v2402_v34 = vpop.f32.mrf.mxu0 }
 0x14f   : > { %v2513_v33 = vadd.f32 %v2512_v32, %v2511_v27 }
 0x150   : > { %v2403_v38 = vpop.f32.mrf.mxu0 }
 0x151   : > { %v1651_v36 = vadd.f32 %v2513_v33, %v2401_v31  ;;  %v2514_v37 = vpop.f32.mrf.mxu1  ;;  %v2404_v51 = vadd.f32 %v2403_v38, %v2402_v34 }
 0x152   : > { %v2405_v45 = vpop.f32.mrf.mxu0 }
 0x153   : > { %v2278_v39 = vpack.c.bf16 %v1651_v36, %v1648_v35  ;;  %v2515_v44 = vpop.f32.mrf.mxu1 }
 0x154   : > { %v2406_v46 = vpop.f32.mrf.mxu0  ;;  %v2516_v52 = vadd.f32 %v2515_v44, %v2514_v37 }
 0x155   : > { %2314 = vst [vmem:[%s3113_s22 + $0x50] sm:$0xff] %v2278_v39   ;;  %v2517_v40 = vpop.f32.mrf.mxu1  ;;  %v2407_v53 = vadd.f32 %v2406_v46, %v2405_v45 }
 0x156   : > { %v1656_v42 = vadd.f32 %v2516_v52, %v2404_v51 }
 0x157   : > { %v2518_v54 = vpop.f32.mrf.mxu1  ;;  %v2408_v41 = vpop.f32.mrf.mxu0 }
 0x158   : > { %v2519_v55 = vadd.f32 %v2518_v54, %v2517_v40 }
 0x159   : > { %v2409_v58 = vpop.f32.mrf.mxu0 }
 0x15a   : > { %v1659_v56 = vadd.f32 %v2519_v55, %v2407_v53  ;;  %v2520_v57 = vpop.f32.mrf.mxu1  ;;  %v2410_v62 = vadd.f32 %v2409_v58, %v2408_v41 }
 0x15b   : > { %v2411_v61 = vpop.f32.mrf.mxu0 }
 0x15c   : > { %v2283_v59 = vpack.c.bf16 %v1659_v56, %v1656_v42  ;;  %v2521_v60 = vpop.f32.mrf.mxu1 }
 0x15d   : > { %v2412_v43 = vpop.f32.mrf.mxu0  ;;  %v2522_v63 = vadd.f32 %v2521_v60, %v2520_v57 }
 0x15e   : > { %2315 = vst [vmem:[%s3113_s22 + $0x58] sm:$0xff] %v2283_v59   ;;  %v2523_v47 = vpop.f32.mrf.mxu1  ;;  %v2413_v0 = vadd.f32 %v2412_v43, %v2411_v61 }
 0x15f   : > { %v1664_v3 = vadd.f32 %v2522_v63, %v2410_v62 }
 0x160   : > { %v2524_v1 = vpop.f32.mrf.mxu1  ;;  %v2414_v48 = vpop.f32.mrf.mxu0 }
 0x161   : > { %v2525_v2 = vadd.f32 %v2524_v1, %v2523_v47 }
 0x162   : > { %v2415_v5 = vpop.f32.mrf.mxu0 }
 0x163   : > { %v1667_v49 = vadd.f32 %v2525_v2, %v2413_v0  ;;  %v2526_v4 = vpop.f32.mrf.mxu1  ;;  %v2416_v50 = vadd.f32 %v2415_v5, %v2414_v48 }
 0x164   : > { %v2417_v8 = vpop.f32.mrf.mxu0 }
 0x165   : > { %v2288_v6 = vpack.c.bf16 %v1667_v49, %v1664_v3  ;;  %v2527_v7 = vpop.f32.mrf.mxu1 }
 0x166   : > { %v2418_v10 = vpop.f32.mrf.mxu0  ;;  %v2528_v11 = vadd.f32 %v2527_v7, %v2526_v4 }
 0x167   : > { %2316 = vst [vmem:[%s3113_s22 + $0x60] sm:$0xff] %v2288_v6   ;;  %v2529_v9 = vpop.f32.mrf.mxu1  ;;  %v2419_v12 = vadd.f32 %v2418_v10, %v2417_v8 }
 0x168   : > { %v1672_v16 = vadd.f32 %v2528_v11, %v2416_v50 }
 0x169   : > { %v2530_v13 = vpop.f32.mrf.mxu1  ;;  %v2420_v15 = vpop.f32.mrf.mxu0 }
 0x16a   : > { %v2531_v14 = vadd.f32 %v2530_v13, %v2529_v9 }
 0x16b   : > { %v2421_v19 = vpop.f32.mrf.mxu0 }
 0x16c   : > { %v1675_v17 = vadd.f32 %v2531_v14, %v2419_v12  ;;  %v2532_v18 = vpop.f32.mrf.mxu1  ;;  %v2422_v25 = vadd.f32 %v2421_v19, %v2420_v15 }
 0x16d   : > { %v2423_v22 = vpop.f32.mrf.mxu0 }
 0x16e   : > { %v2293_v20 = vpack.c.bf16 %v1675_v17, %v1672_v16  ;;  %v2533_v21 = vpop.f32.mrf.mxu1 }
 0x16f   : > { %v2424_v24 = vpop.f32.mrf.mxu0  ;;  %v2534_v26 = vadd.f32 %v2533_v21, %v2532_v18 }
 0x170   : > { %2317 = vst [vmem:[%s3113_s22 + $0x68] sm:$0xff] %v2293_v20   ;;  %v2535_v23 = vpop.f32.mrf.mxu1  ;;  %v2425_v27 = vadd.f32 %v2424_v24, %v2423_v22 }
 0x171   : > { %v1680_v31 = vadd.f32 %v2534_v26, %v2422_v25 }
 0x172   : > { %v2536_v28 = vpop.f32.mrf.mxu1  ;;  %v2426_v30 = vpop.f32.mrf.mxu0 }
 0x173   : > { %v2537_v29 = vadd.f32 %v2536_v28, %v2535_v23 }
 0x174   : > { %v2427_v34 = vpop.f32.mrf.mxu0 }
 0x175   : > { %v1683_v32 = vadd.f32 %v2537_v29, %v2425_v27  ;;  %v2538_v33 = vpop.f32.mrf.mxu1  ;;  %v2428_v44 = vadd.f32 %v2427_v34, %v2426_v30 }
 0x176   : > { %v2429_v37 = vpop.f32.mrf.mxu0 }
 0x177   : > { %v2298_v35 = vpack.c.bf16 %v1683_v32, %v1680_v31  ;;  %v2539_v36 = vpop.f32.mrf.mxu1 }
 0x178   : > { %v2430_v39 = vpop.f32.mrf.mxu0  ;;  %v2540_v45 = vadd.f32 %v2539_v36, %v2538_v33 }
 0x179   : > { %2318 = vst [vmem:[%s3113_s22 + $0x70] sm:$0xff] %v2298_v35   ;;  %v2541_v38 = vpop.f32.mrf.mxu1  ;;  %v2431_v40 = vadd.f32 %v2430_v39, %v2429_v37 }
 0x17a   : > { %v1688_v52 = vadd.f32 %v2540_v45, %v2428_v44 }
 0x17b   : > { %v2542_v46 = vpop.f32.mrf.mxu1 }
 0x17c   : > { %v2543_v51 = vadd.f32 %v2542_v46, %v2541_v38 }
 0x17e   : > { %v1691_v53 = vadd.f32 %v2543_v51, %v2431_v40 }
 0x180   : > { %v2303_v54 = vpack.c.bf16 %v1691_v53, %v1688_v52 }
 0x182   : > { %2319 = vst [vmem:[%s3113_s22 + $0x78] sm:$0xff] %v2303_v54  }
 0x183 PF: > { %s14_s19 = sadd.s32 1, %s2654_s19   ;;  %s3151_s15 = smov %s2646_s17 }
 0x184   : > { %p11_p7 = scmp.ge.s32.totalorder %s14_s19, 10   ;;  %s3152_s16 = smov %s2650_s18 }
 0x185   : > { %s3153_s17 = smov %s3156_s20  ;;  %s3154_s18 = smov %s3160_s21 }
 0x186   :  { %13 = sbr.rel (!%p11_p7) target bundleno = 3 (0x3), region = 83 }

</bundles_post_ra>
